<compile_context>
chip_gen: v7x
topology: tpu7x:2x2x1
jax: 0.10.0
libtpu: 0.0.40
codegen_flags: <defaults>
</compile_context>

<pallas_src>
import functools

import jax
import jax.numpy as jnp
import numpy as np
from jax.experimental import pallas as pl
from jax.experimental.pallas import tpu as pltpu

_VMEM_LIMIT = 32 * 1024 * 1024  # safe on v5e/v6e (128 MiB) and v7x (64 MiB)


# ----------------------------- trace-time helpers ---------------------------

def _interp_consts(out_size, in_size):
    """Static two-tap blend constants for align_corners=True linear interp."""
    if out_size == 1:
        return (0,), (0,), (0.0,)
    src = np.arange(out_size, dtype=np.float64) * (in_size - 1) / (out_size - 1)
    i0 = np.clip(np.floor(src).astype(np.int64), 0, in_size - 1)
    i1 = np.minimum(i0 + 1, in_size - 1)
    frac = (src - i0).astype(np.float32)
    return (tuple(int(v) for v in i0),
            tuple(int(v) for v in i1),
            tuple(float(v) for v in frac))


def _fold_bn(gamma, beta, mean, var, eps=1e-5):
    scale = gamma / jnp.sqrt(var + eps)
    bias = beta - mean * scale
    return scale, bias


# ----------------------------- in-kernel helpers ----------------------------

def _bilinear_upsample_value(x, hcfg, wcfg):
    """x: (h, w, C) value -> (H, W, C); bilinear, align_corners=True.
    Static two-tap VPU blends (indices/weights are Python constants)."""
    i0h, i1h, fh = hcfg
    i0w, i1w, fw = wcfg
    rows = []
    for j in range(len(i0h)):
        r0 = x[i0h[j]:i0h[j] + 1]                       # (1, w, C)
        if fh[j] == 0.0:
            rows.append(r0)
        else:
            r1 = x[i1h[j]:i1h[j] + 1]
            rows.append((1.0 - fh[j]) * r0 + fh[j] * r1)
    xh = jnp.concatenate(rows, axis=0)                  # (H, w, C)
    cols = []
    for j in range(len(i0w)):
        c0 = xh[:, i0w[j]:i0w[j] + 1, :]                # (H, 1, C)
        if fw[j] == 0.0:
            cols.append(c0)
        else:
            c1 = xh[:, i1w[j]:i1w[j] + 1, :]
            cols.append((1.0 - fw[j]) * c0 + fw[j] * c1)
    return jnp.concatenate(cols, axis=1)                # (H, W, C)


def _fill_padded(pad_ref, interior):
    """Zero a (h+2, w+2, C) VMEM halo scratch and store the interior."""
    pad_ref[...] = jnp.zeros(pad_ref.shape, pad_ref.dtype)
    h, w = interior.shape[0], interior.shape[1]
    pad_ref[1:h + 1, 1:w + 1, :] = interior.astype(pad_ref.dtype)


def _conv3x3_accum(pad_ref, w_all, h, w, acc):
    """Accumulate 9 shifted taps: acc += patch(dh,dw) @ w_all[dh,dw] (f32 acc)."""
    cin = w_all.shape[2]
    for dh in range(3):
        for dw in range(3):
            patch = pad_ref[dh:dh + h, dw:dw + w, :]
            patch = patch.reshape(h * w, cin).astype(w_all.dtype)
            acc = acc + jnp.dot(patch, w_all[dh, dw],
                                preferred_element_type=jnp.float32)
    return acc


def _entropy_rank(p):
    """clamp(-sum(p*log(p+1e-7), channel), min=1), keepdims over channel."""
    ent = -jnp.sum(p * jnp.log(p + 1e-7), axis=-1, keepdims=True)
    return jnp.maximum(ent, 1.0)


# ------------------------------- Pallas kernels -----------------------------

def _high_branch_kernel(map_ref, feat_ref, w_ref, b_ref, p_ref, y_ref, pad_ref,
                        *, hh, wh):
    """softmax + entropy-rank * feature_high + conv3x3(BN-folded) + ReLU."""
    logits = map_ref[0]                                     # (hh, wh, ncls) f32
    mx = jnp.max(logits, axis=-1, keepdims=True)
    e = jnp.exp(logits - mx)
    denom = jnp.sum(e, axis=-1, keepdims=True)
    p = e * pl.reciprocal(denom, approx=True)
    p_ref[0] = p.astype(p_ref.dtype)

    uf = _entropy_rank(p) * feat_ref[0]                     # (hh, wh, Ch)
    _fill_padded(pad_ref, uf)

    cout = b_ref.shape[-1]
    acc = jnp.zeros((hh * wh, cout), jnp.float32)
    acc = _conv3x3_accum(pad_ref, w_ref[...], hh, wh, acc)
    acc = jnp.maximum(acc + b_ref[...], 0.0)
    y_ref[0] = acc.reshape(hh, wh, cout).astype(y_ref.dtype)


def _low_branch_kernel(p_ref, feat_ref, w_ref, b_ref, y_ref, pad_ref,
                       *, hl, wl, hcfg, wcfg):
    """upsample(p) + entropy-rank * feature_low + conv3x3(BN-folded) + ReLU.
    The upsampled probability map never leaves VMEM."""
    p_up = _bilinear_upsample_value(p_ref[0], hcfg, wcfg)   # (hl, wl, ncls) f32
    uf = _entropy_rank(p_up) * feat_ref[0]                  # (hl, wl, Cl)
    _fill_padded(pad_ref, uf)

    cout = b_ref.shape[-1]
    acc = jnp.zeros((hl * wl, cout), jnp.float32)
    acc = _conv3x3_accum(pad_ref, w_ref[...], hl, wl, acc)
    acc = jnp.maximum(acc + b_ref[...], 0.0)
    y_ref[0] = acc.reshape(hl, wl, cout).astype(y_ref.dtype)


def _fusion_kernel(yh_ref, yl_ref, wfh_ref, wfl_ref, bfus_ref, wseg_ref,
                   bseg_ref, segf_ref, seg_ref, padh_ref, padl_ref,
                   *, hl, wl, hcfg, wcfg):
    """upsample(y_high) + conv_fusion(concat) + seg_out 1x1, all fused.
    concat is realized by splitting the fusion weight into high/low halves."""
    up = _bilinear_upsample_value(yh_ref[0], hcfg, wcfg)    # (hl, wl, Cout) f32
    _fill_padded(padh_ref, up)
    _fill_padded(padl_ref, yl_ref[0])

    cout = bfus_ref.shape[-1]
    acc = jnp.zeros((hl * wl, cout), jnp.float32)
    acc = _conv3x3_accum(padh_ref, wfh_ref[...], hl, wl, acc)
    acc = _conv3x3_accum(padl_ref, wfl_ref[...], hl, wl, acc)
    segf = acc + bfus_ref[...]                              # (hl*wl, Cout) f32
    segf_ref[0] = segf.reshape(hl, wl, cout).astype(segf_ref.dtype)

    seg = jnp.dot(segf, wseg_ref[...],
                  preferred_element_type=jnp.float32) + bseg_ref[...]
    ncls = bseg_ref.shape[-1]
    seg_ref[0] = seg.reshape(hl, wl, ncls).astype(seg_ref.dtype)


# ------------------------------ module forward ------------------------------

def multiclass_uafm_forward(feature_low, feature_high, logit_map, params):
    """Inputs/outputs are NCHW (PyTorch convention)."""
    fl = jnp.transpose(feature_low, (0, 2, 3, 1)).astype(jnp.float32)
    fh = jnp.transpose(feature_high, (0, 2, 3, 1)).astype(jnp.float32)
    mp = jnp.transpose(logit_map, (0, 2, 3, 1)).astype(jnp.float32)
    n, hl, wl, cl = fl.shape
    _, hh, wh, ch = fh.shape
    ncls = mp.shape[-1]
    cout = params["w_high"].shape[-1]
    nseg = params["w_seg"].shape[-1]

    hcfg = _interp_consts(hl, hh)
    wcfg = _interp_consts(wl, wh)

    # Fold BN scale into conv weights (trace time, free); bf16 MXU operands.
    w_high = (params["w_high"] * params["scale_high"]).astype(jnp.bfloat16)
    b_high = params["bias_high"].reshape(1, cout).astype(jnp.float32)
    w_low = (params["w_low"] * params["scale_low"]).astype(jnp.bfloat16)
    b_low = params["bias_low"].reshape(1, cout).astype(jnp.float32)
    w_fus = params["w_fusion"].astype(jnp.bfloat16)         # (3,3,2*Cout,Cout)
    w_fus_high = w_fus[:, :, :cout, :]
    w_fus_low = w_fus[:, :, cout:, :]
    b_fus = params["b_fusion"].reshape(1, cout).astype(jnp.float32)
    w_seg = params["w_seg"].astype(jnp.float32)              # (Cout, nseg)
    b_seg = params["b_seg"].reshape(1, nseg).astype(jnp.float32)

    cparams = pltpu.CompilerParams(dimension_semantics=("parallel",),
                                   vmem_limit_bytes=_VMEM_LIMIT)

    # ---- high branch: softmax + rank*feat_high + conv_high(BN,ReLU) ----
    p, y_high = pl.pallas_call(
        functools.partial(_high_branch_kernel, hh=hh, wh=wh),
        out_shape=(jax.ShapeDtypeStruct((n, hh, wh, ncls), jnp.float32),
                   jax.ShapeDtypeStruct((n, hh, wh, cout), jnp.float32)),
        grid=(n,),
        in_specs=[
            pl.BlockSpec((1, hh, wh, ncls), lambda i: (i, 0, 0, 0)),
            pl.BlockSpec((1, hh, wh, ch), lambda i: (i, 0, 0, 0)),
            pl.BlockSpec((3, 3, ch, cout), lambda i: (0, 0, 0, 0)),
            pl.BlockSpec((1, cout), lambda i: (0, 0)),
        ],
        out_specs=(pl.BlockSpec((1, hh, wh, ncls), lambda i: (i, 0, 0, 0)),
                   pl.BlockSpec((1, hh, wh, cout), lambda i: (i, 0, 0, 0))),
        scratch_shapes=[pltpu.VMEM((hh + 2, wh + 2, ch), jnp.float32)],
        compiler_params=cparams,
    )(mp, fh, w_high, b_high)

    # ---- low branch: upsample(p) + rank*feat_low + conv_low(BN,ReLU) ----
    y_low = pl.pallas_call(
        functools.partial(_low_branch_kernel, hl=hl, wl=wl, hcfg=hcfg, wcfg=wcfg),
        out_shape=jax.ShapeDtypeStruct((n, hl, wl, cout), jnp.float32),
        grid=(n,),
        in_specs=[
            pl.BlockSpec((1, hh, wh, ncls), lambda i: (i, 0, 0, 0)),
            pl.BlockSpec((1, hl, wl, cl), lambda i: (i, 0, 0, 0)),
            pl.BlockSpec((3, 3, cl, cout), lambda i: (0, 0, 0, 0)),
            pl.BlockSpec((1, cout), lambda i: (0, 0)),
        ],
        out_specs=pl.BlockSpec((1, hl, wl, cout), lambda i: (i, 0, 0, 0)),
        scratch_shapes=[pltpu.VMEM((hl + 2, wl + 2, cl), jnp.float32)],
        compiler_params=cparams,
    )(p, fl, w_low, b_low)

    # ---- fusion: upsample(y_high) + conv_fusion(concat) + seg_out 1x1 ----
    seg_fusion, seg = pl.pallas_call(
        functools.partial(_fusion_kernel, hl=hl, wl=wl, hcfg=hcfg, wcfg=wcfg),
        out_shape=(jax.ShapeDtypeStruct((n, hl, wl, cout), jnp.float32),
                   jax.ShapeDtypeStruct((n, hl, wl, nseg), jnp.float32)),
        grid=(n,),
        in_specs=[
            pl.BlockSpec((1, hh, wh, cout), lambda i: (i, 0, 0, 0)),
            pl.BlockSpec((1, hl, wl, cout), lambda i: (i, 0, 0, 0)),
            pl.BlockSpec((3, 3, cout, cout), lambda i: (0, 0, 0, 0)),
            pl.BlockSpec((3, 3, cout, cout), lambda i: (0, 0, 0, 0)),
            pl.BlockSpec((1, cout), lambda i: (0, 0)),
            pl.BlockSpec((cout, nseg), lambda i: (0, 0)),
            pl.BlockSpec((1, nseg), lambda i: (0, 0)),
        ],
        out_specs=(pl.BlockSpec((1, hl, wl, cout), lambda i: (i, 0, 0, 0)),
                   pl.BlockSpec((1, hl, wl, nseg), lambda i: (i, 0, 0, 0))),
        scratch_shapes=[pltpu.VMEM((hl + 2, wl + 2, cout), jnp.float32),
                        pltpu.VMEM((hl + 2, wl + 2, cout), jnp.float32)],
        compiler_params=cparams,
    )(y_high, y_low, w_fus_high, w_fus_low, b_fus, w_seg, b_seg)

    return (jnp.transpose(seg_fusion, (0, 3, 1, 2)),
            jnp.transpose(seg, (0, 3, 1, 2)))


# ------------------------------- parameter init -----------------------------

def init_params(key, high_channel, low_channel, out_channel, num_classes):
    ks = jax.random.split(key, 12)

    def conv_w(k, cin, co, ksz):
        # stored as (kh, kw, Cin, Cout) to match the in-kernel tap matmuls
        return 0.1 * jax.random.normal(k, (ksz, ksz, cin, co), jnp.float32)

    # conv_high (no bias) + BN
    w_high = conv_w(ks[0], high_channel, out_channel, 3)
    g_h = 1.0 + 0.1 * jax.random.normal(ks[1], (out_channel,))
    b_h = 0.05 * jax.random.normal(ks[2], (out_channel,))
    m_h = 0.05 * jax.random.normal(ks[3], (out_channel,))
    v_h = 0.5 + jax.random.uniform(ks[4], (out_channel,))
    scale_high, bias_high = _fold_bn(g_h, b_h, m_h, v_h)

    # conv_low (no bias) + BN
    w_low = conv_w(ks[5], low_channel, out_channel, 3)
    g_l = 1.0 + 0.1 * jax.random.normal(ks[6], (out_channel,))
    b_l = 0.05 * jax.random.normal(ks[7], (out_channel,))
    m_l = 0.05 * jax.random.normal(ks[8], (out_channel,))
    v_l = 0.5 + jax.random.uniform(ks[9], (out_channel,))
    scale_low, bias_low = _fold_bn(g_l, b_l, m_l, v_l)

    # conv_fusion (bias=True), seg_out 1x1 (bias=True)
    w_fusion = conv_w(ks[10], 2 * out_channel, out_channel, 3)
    b_fusion = 0.01 * jnp.arange(out_channel, dtype=jnp.float32)
    w_seg = 0.1 * jax.random.normal(ks[11], (out_channel, num_classes), jnp.float32)
    b_seg = 0.01 * jnp.arange(num_classes, dtype=jnp.float32)

    return {
        "w_high": w_high, "scale_high": scale_high, "bias_high": bias_high,
        "w_low": w_low, "scale_low": scale_low, "bias_low": bias_low,
        "w_fusion": w_fusion, "b_fusion": b_fusion,
        "w_seg": w_seg, "b_seg": b_seg,
    }


if __name__ == "__main__":
    # small deterministic example shapes
    N = 2
    high_channel, low_channel, out_channel, num_classes = 8, 6, 16, 5
    Hh = Wh = 8      # high-level (coarse) spatial size == logit map spatial size
    Hl = Wl = 16     # low-level (fine) spatial size

    key = jax.random.PRNGKey(0)
    k_in = jax.random.split(key, 4)
    feature_low = jax.random.normal(k_in[0], (N, low_channel, Hl, Wl), jnp.float32)
    feature_high = jax.random.normal(k_in[1], (N, high_channel, Hh, Wh), jnp.float32)
    logit_map = jax.random.normal(k_in[2], (N, num_classes, Hh, Wh), jnp.float32)

    params = init_params(k_in[3], high_channel, low_channel, out_channel, num_classes)

    fwd = jax.jit(multiclass_uafm_forward)
    seg_fusion, seg = fwd(feature_low, feature_high, logit_map, params)
    jax.block_until_ready((seg_fusion, seg))

    assert seg_fusion.shape == (N, out_channel, Hl, Wl)
    assert seg.shape == (N, num_classes, Hl, Wl)
    print("KERNEL_OK")
</pallas_src>

<mosaic_0001>
module attributes {stable_mosaic.version = 11 : i64} {
  func.func @_high_branch_kernel(%arg0: i32, %arg1: memref<1x8x8x5xf32, #tpu.memory_space<vmem>>, %arg2: memref<1x8x8x8xf32, #tpu.memory_space<vmem>>, %arg3: memref<3x3x8x16xbf16, #tpu.memory_space<vmem>>, %arg4: memref<1x16xf32, #tpu.memory_space<vmem>>, %arg5: memref<1x8x8x5xf32, #tpu.memory_space<vmem>>, %arg6: memref<1x8x8x16xf32, #tpu.memory_space<vmem>>, %arg7: memref<10x10x8xf32, #tpu.memory_space<vmem>>) attributes {dimension_semantics = [#tpu.dimension_semantics<parallel>], iteration_bounds = array<i64: 2>, scalar_prefetch = 0 : i64, scratch_operands = 1 : i64, tpu.core_type = #tpu.core_type<tc>, window_params = [{transform_indices = @transform_0, window_bounds = array<i64: 1, 8, 8, 5>}, {transform_indices = @transform_1, window_bounds = array<i64: 1, 8, 8, 8>}, {pipeline_mode = #tpu.pipeline_mode<synchronous>, transform_indices = @transform_2, window_bounds = array<i64: 3, 3, 8, 16>}, {pipeline_mode = #tpu.pipeline_mode<synchronous>, transform_indices = @transform_3, window_bounds = array<i64: 1, 16>}, {transform_indices = @transform_4, window_bounds = array<i64: 1, 8, 8, 5>}, {transform_indices = @transform_5, window_bounds = array<i64: 1, 8, 8, 16>}]} {
    %c0 = arith.constant 0 : index
    %c0_0 = arith.constant 0 : index
    %c0_1 = arith.constant 0 : index
    %c0_2 = arith.constant 0 : index
    %0 = vector.load %arg1[%c0, %c0_0, %c0_1, %c0_2] : memref<1x8x8x5xf32, #tpu.memory_space<vmem>>, vector<1x8x8x5xf32>
    %1 = vector.shape_cast %0 : vector<1x8x8x5xf32> to vector<8x8x5xf32>
    %cst = arith.constant dense<0xFF800000> : vector<8x8xf32>
    %2 = vector.multi_reduction <maximumf>, %1, %cst [2] : vector<8x8x5xf32> to vector<8x8xf32>
    %3 = vector.shape_cast %2 : vector<8x8xf32> to vector<8x8x1xf32>
    %4 = vector.broadcast %3 : vector<8x8x1xf32> to vector<8x8x5xf32>
    %5 = arith.subf %1, %4 : vector<8x8x5xf32>
    %6 = math.exp %5 : vector<8x8x5xf32>
    %cst_3 = arith.constant dense<0.000000e+00> : vector<8x8xf32>
    %7 = vector.multi_reduction <add>, %6, %cst_3 [2] : vector<8x8x5xf32> to vector<8x8xf32>
    %8 = vector.shape_cast %7 : vector<8x8xf32> to vector<8x8x1xf32>
    %9 = tpu.reciprocal %8 {approx = true} : vector<8x8x1xf32> -> vector<8x8x1xf32>
    %10 = vector.broadcast %9 : vector<8x8x1xf32> to vector<8x8x5xf32>
    %11 = arith.mulf %6, %10 : vector<8x8x5xf32>
    %c0_4 = arith.constant 0 : index
    %c0_5 = arith.constant 0 : index
    %c0_6 = arith.constant 0 : index
    %c0_7 = arith.constant 0 : index
    %12 = vector.load %arg5[%c0_4, %c0_5, %c0_6, %c0_7] : memref<1x8x8x5xf32, #tpu.memory_space<vmem>>, vector<1x8x8x5xf32>
    %13 = vector.shape_cast %12 : vector<1x8x8x5xf32> to vector<8x8x5xf32>
    %14 = vector.shape_cast %11 : vector<8x8x5xf32> to vector<1x8x8x5xf32>
    tpu.vector_store %arg5[%c0_4, %c0_5, %c0_6, %c0_7], %14 {strides = array<i32>} : memref<1x8x8x5xf32, #tpu.memory_space<vmem>>, vector<1x8x8x5xf32>,
    %cst_8 = arith.constant 1.000000e-07 : f32
    %15 = vector.broadcast %cst_8 : f32 to vector<8x8x5xf32>
    %16 = arith.addf %11, %15 : vector<8x8x5xf32>
    %17 = math.log %16 : vector<8x8x5xf32>
    %18 = arith.mulf %11, %17 : vector<8x8x5xf32>
    %cst_9 = arith.constant dense<0.000000e+00> : vector<8x8xf32>
    %19 = vector.multi_reduction <add>, %18, %cst_9 [2] : vector<8x8x5xf32> to vector<8x8xf32>
    %20 = vector.shape_cast %19 : vector<8x8xf32> to vector<8x8x1xf32>
    %cst_10 = arith.constant 0.000000e+00 : f32
    %21 = vector.broadcast %cst_10 : f32 to vector<8x8x1xf32>
    %22 = arith.subf %21, %20 : vector<8x8x1xf32>
    %cst_11 = arith.constant 1.000000e+00 : f32
    %23 = vector.broadcast %cst_11 : f32 to vector<8x8x1xf32>
    %24 = arith.maximumf %22, %23 : vector<8x8x1xf32>
    %c0_12 = arith.constant 0 : index
    %c0_13 = arith.constant 0 : index
    %c0_14 = arith.constant 0 : index
    %c0_15 = arith.constant 0 : index
    %25 = vector.load %arg2[%c0_12, %c0_13, %c0_14, %c0_15] : memref<1x8x8x8xf32, #tpu.memory_space<vmem>>, vector<1x8x8x8xf32>
    %26 = vector.shape_cast %25 : vector<1x8x8x8xf32> to vector<8x8x8xf32>
    %27 = vector.broadcast %24 : vector<8x8x1xf32> to vector<8x8x8xf32>
    %28 = arith.mulf %27, %26 : vector<8x8x8xf32>
    %cst_16 = arith.constant 0.000000e+00 : f32
    %29 = vector.broadcast %cst_16 : f32 to vector<10x10x8xf32>
    %c0_17 = arith.constant 0 : index
    %c0_18 = arith.constant 0 : index
    %c0_19 = arith.constant 0 : index
    %30 = vector.load %arg7[%c0_17, %c0_18, %c0_19] : memref<10x10x8xf32, #tpu.memory_space<vmem>>, vector<10x10x8xf32>
    tpu.vector_store %arg7[%c0_17, %c0_18, %c0_19], %29 {strides = array<i32>} : memref<10x10x8xf32, #tpu.memory_space<vmem>>, vector<10x10x8xf32>,
    %c1 = arith.constant 1 : index
    %c1_20 = arith.constant 1 : index
    %c0_21 = arith.constant 0 : index
    %31 = vector.load %arg7[%c1, %c1_20, %c0_21] : memref<10x10x8xf32, #tpu.memory_space<vmem>>, vector<8x8x8xf32>
    tpu.vector_store %arg7[%c1, %c1_20, %c0_21], %28 {strides = array<i32>} : memref<10x10x8xf32, #tpu.memory_space<vmem>>, vector<8x8x8xf32>,
    %cst_22 = arith.constant 0.000000e+00 : f32
    %32 = vector.broadcast %cst_22 : f32 to vector<64x16xf32>
    %c0_23 = arith.constant 0 : index
    %c0_24 = arith.constant 0 : index
    %c0_25 = arith.constant 0 : index
    %c0_26 = arith.constant 0 : index
    %33 = vector.load %arg3[%c0_23, %c0_24, %c0_25, %c0_26] : memref<3x3x8x16xbf16, #tpu.memory_space<vmem>>, vector<3x3x8x16xbf16>
    %c0_27 = arith.constant 0 : index
    %c0_28 = arith.constant 0 : index
    %c0_29 = arith.constant 0 : index
    %34 = vector.load %arg7[%c0_27, %c0_28, %c0_29] : memref<10x10x8xf32, #tpu.memory_space<vmem>>, vector<8x8x8xf32>
    %35 = vector.shape_cast %34 : vector<8x8x8xf32> to vector<64x8xf32>
    %36 = arith.truncf %35 : vector<64x8xf32> to vector<64x8xbf16>
    %37 = vector.extract_strided_slice %33 {offsets = [0, 0, 0, 0], sizes = [1, 1, 8, 16], strides = [1, 1, 1, 1]} : vector<3x3x8x16xbf16> to vector<1x1x8x16xbf16>
    %38 = vector.shape_cast %37 : vector<1x1x8x16xbf16> to vector<8x16xbf16>
    %cst_30 = arith.constant dense<0.000000e+00> : vector<64x16xf32>
    %39 = tpu.matmul %36, %38, %cst_30 {dimension_numbers = #tpu.dot_dimension_numbers<[1], [0], [0], [1], [0, 0, 1, 1], [], []>} : vector<64x8xbf16>, vector<8x16xbf16>, vector<64x16xf32> -> vector<64x16xf32>
    %40 = arith.addf %32, %39 : vector<64x16xf32>
    %c0_31 = arith.constant 0 : index
    %c1_32 = arith.constant 1 : index
    %c0_33 = arith.constant 0 : index
    %41 = vector.load %arg7[%c0_31, %c1_32, %c0_33] : memref<10x10x8xf32, #tpu.memory_space<vmem>>, vector<8x8x8xf32>
    %42 = vector.shape_cast %41 : vector<8x8x8xf32> to vector<64x8xf32>
    %43 = arith.truncf %42 : vector<64x8xf32> to vector<64x8xbf16>
    %44 = vector.extract_strided_slice %33 {offsets = [0, 1, 0, 0], sizes = [1, 1, 8, 16], strides = [1, 1, 1, 1]} : vector<3x3x8x16xbf16> to vector<1x1x8x16xbf16>
    %45 = vector.shape_cast %44 : vector<1x1x8x16xbf16> to vector<8x16xbf16>
    %cst_34 = arith.constant dense<0.000000e+00> : vector<64x16xf32>
    %46 = tpu.matmul %43, %45, %cst_34 {dimension_numbers = #tpu.dot_dimension_numbers<[1], [0], [0], [1], [0, 0, 1, 1], [], []>} : vector<64x8xbf16>, vector<8x16xbf16>, vector<64x16xf32> -> vector<64x16xf32>
    %47 = arith.addf %40, %46 : vector<64x16xf32>
    %c0_35 = arith.constant 0 : index
    %c2 = arith.constant 2 : index
    %c0_36 = arith.constant 0 : index
    %48 = vector.load %arg7[%c0_35, %c2, %c0_36] : memref<10x10x8xf32, #tpu.memory_space<vmem>>, vector<8x8x8xf32>
    %49 = vector.shape_cast %48 : vector<8x8x8xf32> to vector<64x8xf32>
    %50 = arith.truncf %49 : vector<64x8xf32> to vector<64x8xbf16>
    %51 = vector.extract_strided_slice %33 {offsets = [0, 2, 0, 0], sizes = [1, 1, 8, 16], strides = [1, 1, 1, 1]} : vector<3x3x8x16xbf16> to vector<1x1x8x16xbf16>
    %52 = vector.shape_cast %51 : vector<1x1x8x16xbf16> to vector<8x16xbf16>
    %cst_37 = arith.constant dense<0.000000e+00> : vector<64x16xf32>
    %53 = tpu.matmul %50, %52, %cst_37 {dimension_numbers = #tpu.dot_dimension_numbers<[1], [0], [0], [1], [0, 0, 1, 1], [], []>} : vector<64x8xbf16>, vector<8x16xbf16>, vector<64x16xf32> -> vector<64x16xf32>
    %54 = arith.addf %47, %53 : vector<64x16xf32>
    %c1_38 = arith.constant 1 : index
    %c0_39 = arith.constant 0 : index
    %c0_40 = arith.constant 0 : index
    %55 = vector.load %arg7[%c1_38, %c0_39, %c0_40] : memref<10x10x8xf32, #tpu.memory_space<vmem>>, vector<8x8x8xf32>
    %56 = vector.shape_cast %55 : vector<8x8x8xf32> to vector<64x8xf32>
    %57 = arith.truncf %56 : vector<64x8xf32> to vector<64x8xbf16>
    %58 = vector.extract_strided_slice %33 {offsets = [1, 0, 0, 0], sizes = [1, 1, 8, 16], strides = [1, 1, 1, 1]} : vector<3x3x8x16xbf16> to vector<1x1x8x16xbf16>
    %59 = vector.shape_cast %58 : vector<1x1x8x16xbf16> to vector<8x16xbf16>
    %cst_41 = arith.constant dense<0.000000e+00> : vector<64x16xf32>
    %60 = tpu.matmul %57, %59, %cst_41 {dimension_numbers = #tpu.dot_dimension_numbers<[1], [0], [0], [1], [0, 0, 1, 1], [], []>} : vector<64x8xbf16>, vector<8x16xbf16>, vector<64x16xf32> -> vector<64x16xf32>
    %61 = arith.addf %54, %60 : vector<64x16xf32>
    %c1_42 = arith.constant 1 : index
    %c1_43 = arith.constant 1 : index
    %c0_44 = arith.constant 0 : index
    %62 = vector.load %arg7[%c1_42, %c1_43, %c0_44] : memref<10x10x8xf32, #tpu.memory_space<vmem>>, vector<8x8x8xf32>
    %63 = vector.shape_cast %62 : vector<8x8x8xf32> to vector<64x8xf32>
    %64 = arith.truncf %63 : vector<64x8xf32> to vector<64x8xbf16>
    %65 = vector.extract_strided_slice %33 {offsets = [1, 1, 0, 0], sizes = [1, 1, 8, 16], strides = [1, 1, 1, 1]} : vector<3x3x8x16xbf16> to vector<1x1x8x16xbf16>
    %66 = vector.shape_cast %65 : vector<1x1x8x16xbf16> to vector<8x16xbf16>
    %cst_45 = arith.constant dense<0.000000e+00> : vector<64x16xf32>
    %67 = tpu.matmul %64, %66, %cst_45 {dimension_numbers = #tpu.dot_dimension_numbers<[1], [0], [0], [1], [0, 0, 1, 1], [], []>} : vector<64x8xbf16>, vector<8x16xbf16>, vector<64x16xf32> -> vector<64x16xf32>
    %68 = arith.addf %61, %67 : vector<64x16xf32>
    %c1_46 = arith.constant 1 : index
    %c2_47 = arith.constant 2 : index
    %c0_48 = arith.constant 0 : index
    %69 = vector.load %arg7[%c1_46, %c2_47, %c0_48] : memref<10x10x8xf32, #tpu.memory_space<vmem>>, vector<8x8x8xf32>
    %70 = vector.shape_cast %69 : vector<8x8x8xf32> to vector<64x8xf32>
    %71 = arith.truncf %70 : vector<64x8xf32> to vector<64x8xbf16>
    %72 = vector.extract_strided_slice %33 {offsets = [1, 2, 0, 0], sizes = [1, 1, 8, 16], strides = [1, 1, 1, 1]} : vector<3x3x8x16xbf16> to vector<1x1x8x16xbf16>
    %73 = vector.shape_cast %72 : vector<1x1x8x16xbf16> to vector<8x16xbf16>
    %cst_49 = arith.constant dense<0.000000e+00> : vector<64x16xf32>
    %74 = tpu.matmul %71, %73, %cst_49 {dimension_numbers = #tpu.dot_dimension_numbers<[1], [0], [0], [1], [0, 0, 1, 1], [], []>} : vector<64x8xbf16>, vector<8x16xbf16>, vector<64x16xf32> -> vector<64x16xf32>
    %75 = arith.addf %68, %74 : vector<64x16xf32>
    %c2_50 = arith.constant 2 : index
    %c0_51 = arith.constant 0 : index
    %c0_52 = arith.constant 0 : index
    %76 = vector.load %arg7[%c2_50, %c0_51, %c0_52] : memref<10x10x8xf32, #tpu.memory_space<vmem>>, vector<8x8x8xf32>
    %77 = vector.shape_cast %76 : vector<8x8x8xf32> to vector<64x8xf32>
    %78 = arith.truncf %77 : vector<64x8xf32> to vector<64x8xbf16>
    %79 = vector.extract_strided_slice %33 {offsets = [2, 0, 0, 0], sizes = [1, 1, 8, 16], strides = [1, 1, 1, 1]} : vector<3x3x8x16xbf16> to vector<1x1x8x16xbf16>
    %80 = vector.shape_cast %79 : vector<1x1x8x16xbf16> to vector<8x16xbf16>
    %cst_53 = arith.constant dense<0.000000e+00> : vector<64x16xf32>
    %81 = tpu.matmul %78, %80, %cst_53 {dimension_numbers = #tpu.dot_dimension_numbers<[1], [0], [0], [1], [0, 0, 1, 1], [], []>} : vector<64x8xbf16>, vector<8x16xbf16>, vector<64x16xf32> -> vector<64x16xf32>
    %82 = arith.addf %75, %81 : vector<64x16xf32>
    %c2_54 = arith.constant 2 : index
    %c1_55 = arith.constant 1 : index
    %c0_56 = arith.constant 0 : index
    %83 = vector.load %arg7[%c2_54, %c1_55, %c0_56] : memref<10x10x8xf32, #tpu.memory_space<vmem>>, vector<8x8x8xf32>
    %84 = vector.shape_cast %83 : vector<8x8x8xf32> to vector<64x8xf32>
    %85 = arith.truncf %84 : vector<64x8xf32> to vector<64x8xbf16>
    %86 = vector.extract_strided_slice %33 {offsets = [2, 1, 0, 0], sizes = [1, 1, 8, 16], strides = [1, 1, 1, 1]} : vector<3x3x8x16xbf16> to vector<1x1x8x16xbf16>
    %87 = vector.shape_cast %86 : vector<1x1x8x16xbf16> to vector<8x16xbf16>
    %cst_57 = arith.constant dense<0.000000e+00> : vector<64x16xf32>
    %88 = tpu.matmul %85, %87, %cst_57 {dimension_numbers = #tpu.dot_dimension_numbers<[1], [0], [0], [1], [0, 0, 1, 1], [], []>} : vector<64x8xbf16>, vector<8x16xbf16>, vector<64x16xf32> -> vector<64x16xf32>
    %89 = arith.addf %82, %88 : vector<64x16xf32>
    %c2_58 = arith.constant 2 : index
    %c2_59 = arith.constant 2 : index
    %c0_60 = arith.constant 0 : index
    %90 = vector.load %arg7[%c2_58, %c2_59, %c0_60] : memref<10x10x8xf32, #tpu.memory_space<vmem>>, vector<8x8x8xf32>
    %91 = vector.shape_cast %90 : vector<8x8x8xf32> to vector<64x8xf32>
    %92 = arith.truncf %91 : vector<64x8xf32> to vector<64x8xbf16>
    %93 = vector.extract_strided_slice %33 {offsets = [2, 2, 0, 0], sizes = [1, 1, 8, 16], strides = [1, 1, 1, 1]} : vector<3x3x8x16xbf16> to vector<1x1x8x16xbf16>
    %94 = vector.shape_cast %93 : vector<1x1x8x16xbf16> to vector<8x16xbf16>
    %cst_61 = arith.constant dense<0.000000e+00> : vector<64x16xf32>
    %95 = tpu.matmul %92, %94, %cst_61 {dimension_numbers = #tpu.dot_dimension_numbers<[1], [0], [0], [1], [0, 0, 1, 1], [], []>} : vector<64x8xbf16>, vector<8x16xbf16>, vector<64x16xf32> -> vector<64x16xf32>
    %96 = arith.addf %89, %95 : vector<64x16xf32>
    %c0_62 = arith.constant 0 : index
    %c0_63 = arith.constant 0 : index
    %97 = vector.load %arg4[%c0_62, %c0_63] : memref<1x16xf32, #tpu.memory_space<vmem>>, vector<1x16xf32>
    %98 = vector.broadcast %97 : vector<1x16xf32> to vector<64x16xf32>
    %99 = arith.addf %96, %98 : vector<64x16xf32>
    %cst_64 = arith.constant 0.000000e+00 : f32
    %100 = vector.broadcast %cst_64 : f32 to vector<64x16xf32>
    %101 = arith.maximumf %99, %100 : vector<64x16xf32>
    %102 = vector.shape_cast %101 : vector<64x16xf32> to vector<8x8x16xf32>
    %c0_65 = arith.constant 0 : index
    %c0_66 = arith.constant 0 : index
    %c0_67 = arith.constant 0 : index
    %c0_68 = arith.constant 0 : index
    %103 = vector.load %arg6[%c0_65, %c0_66, %c0_67, %c0_68] : memref<1x8x8x16xf32, #tpu.memory_space<vmem>>, vector<1x8x8x16xf32>
    %104 = vector.shape_cast %103 : vector<1x8x8x16xf32> to vector<8x8x16xf32>
    %105 = vector.shape_cast %102 : vector<8x8x16xf32> to vector<1x8x8x16xf32>
    tpu.vector_store %arg6[%c0_65, %c0_66, %c0_67, %c0_68], %105 {strides = array<i32>} : memref<1x8x8x16xf32, #tpu.memory_space<vmem>>, vector<1x8x8x16xf32>,
    return
  }
  func.func @transform_0(%arg0: i32) -> (i32, i32, i32, i32) {
    %c0_i32 = arith.constant 0 : i32
    %c0_i32_0 = arith.constant 0 : i32
    %c0_i32_1 = arith.constant 0 : i32
    %c0_i32_2 = arith.constant 0 : i32
    return %arg0, %c0_i32, %c0_i32_0, %c0_i32_1 : i32, i32, i32, i32
  }
  func.func @transform_1(%arg0: i32) -> (i32, i32, i32, i32) {
    %c0_i32 = arith.constant 0 : i32
    %c0_i32_0 = arith.constant 0 : i32
    %c0_i32_1 = arith.constant 0 : i32
    %c0_i32_2 = arith.constant 0 : i32
    return %arg0, %c0_i32, %c0_i32_0, %c0_i32_1 : i32, i32, i32, i32
  }
  func.func @transform_2(%arg0: i32) -> (i32, i32, i32, i32) {
    %c0_i32 = arith.constant 0 : i32
    %c0_i32_0 = arith.constant 0 : i32
    %c0_i32_1 = arith.constant 0 : i32
    %c0_i32_2 = arith.constant 0 : i32
    %c0_i32_3 = arith.constant 0 : i32
    return %c0_i32, %c0_i32_0, %c0_i32_1, %c0_i32_2 : i32, i32, i32, i32
  }
  func.func @transform_3(%arg0: i32) -> (i32, i32) {
    %c0_i32 = arith.constant 0 : i32
    %c0_i32_0 = arith.constant 0 : i32
    %c0_i32_1 = arith.constant 0 : i32
    return %c0_i32, %c0_i32_0 : i32, i32
  }
  func.func @transform_4(%arg0: i32) -> (i32, i32, i32, i32) {
    %c0_i32 = arith.constant 0 : i32
    %c0_i32_0 = arith.constant 0 : i32
    %c0_i32_1 = arith.constant 0 : i32
    %c0_i32_2 = arith.constant 0 : i32
    return %arg0, %c0_i32, %c0_i32_0, %c0_i32_1 : i32, i32, i32, i32
  }
  func.func @transform_5(%arg0: i32) -> (i32, i32, i32, i32) {
    %c0_i32 = arith.constant 0 : i32
    %c0_i32_0 = arith.constant 0 : i32
    %c0_i32_1 = arith.constant 0 : i32
    %c0_i32_2 = arith.constant 0 : i32
    return %arg0, %c0_i32, %c0_i32_0, %c0_i32_1 : i32, i32, i32, i32
  }
}

module attributes {stable_mosaic.version = 11 : i64} {
  func.func @_low_branch_kernel(%arg0: i32, %arg1: memref<1x8x8x5xf32, #tpu.memory_space<vmem>>, %arg2: memref<1x16x16x6xf32, #tpu.memory_space<vmem>>, %arg3: memref<3x3x6x16xbf16, #tpu.memory_space<vmem>>, %arg4: memref<1x16xf32, #tpu.memory_space<vmem>>, %arg5: memref<1x16x16x16xf32, #tpu.memory_space<vmem>>, %arg6: memref<18x18x6xf32, #tpu.memory_space<vmem>>) attributes {dimension_semantics = [#tpu.dimension_semantics<parallel>], iteration_bounds = array<i64: 2>, scalar_prefetch = 0 : i64, scratch_operands = 1 : i64, tpu.core_type = #tpu.core_type<tc>, window_params = [{transform_indices = @transform_0, window_bounds = array<i64: 1, 8, 8, 5>}, {transform_indices = @transform_1, window_bounds = array<i64: 1, 16, 16, 6>}, {pipeline_mode = #tpu.pipeline_mode<synchronous>, transform_indices = @transform_2, window_bounds = array<i64: 3, 3, 6, 16>}, {pipeline_mode = #tpu.pipeline_mode<synchronous>, transform_indices = @transform_3, window_bounds = array<i64: 1, 16>}, {transform_indices = @transform_4, window_bounds = array<i64: 1, 16, 16, 16>}]} {
    %c0 = arith.constant 0 : index
    %c0_0 = arith.constant 0 : index
    %c0_1 = arith.constant 0 : index
    %c0_2 = arith.constant 0 : index
    %0 = vector.load %arg1[%c0, %c0_0, %c0_1, %c0_2] : memref<1x8x8x5xf32, #tpu.memory_space<vmem>>, vector<1x8x8x5xf32>
    %1 = vector.shape_cast %0 : vector<1x8x8x5xf32> to vector<8x8x5xf32>
    %2 = vector.extract_strided_slice %1 {offsets = [0, 0, 0], sizes = [1, 8, 5], strides = [1, 1, 1]} : vector<8x8x5xf32> to vector<1x8x5xf32>
    %3 = vector.extract_strided_slice %1 {offsets = [0, 0, 0], sizes = [1, 8, 5], strides = [1, 1, 1]} : vector<8x8x5xf32> to vector<1x8x5xf32>
    %4 = vector.extract_strided_slice %1 {offsets = [1, 0, 0], sizes = [1, 8, 5], strides = [1, 1, 1]} : vector<8x8x5xf32> to vector<1x8x5xf32>
    %cst = arith.constant 0.533333302 : f32
    %5 = vector.broadcast %cst : f32 to vector<1x8x5xf32>
    %6 = arith.mulf %5, %3 : vector<1x8x5xf32>
    %cst_3 = arith.constant 0.466666669 : f32
    %7 = vector.broadcast %cst_3 : f32 to vector<1x8x5xf32>
    %8 = arith.mulf %7, %4 : vector<1x8x5xf32>
    %9 = arith.addf %6, %8 : vector<1x8x5xf32>
    %10 = vector.extract_strided_slice %1 {offsets = [0, 0, 0], sizes = [1, 8, 5], strides = [1, 1, 1]} : vector<8x8x5xf32> to vector<1x8x5xf32>
    %11 = vector.extract_strided_slice %1 {offsets = [1, 0, 0], sizes = [1, 8, 5], strides = [1, 1, 1]} : vector<8x8x5xf32> to vector<1x8x5xf32>
    %cst_4 = arith.constant 0.0666666627 : f32
    %12 = vector.broadcast %cst_4 : f32 to vector<1x8x5xf32>
    %13 = arith.mulf %12, %10 : vector<1x8x5xf32>
    %cst_5 = arith.constant 0.933333337 : f32
    %14 = vector.broadcast %cst_5 : f32 to vector<1x8x5xf32>
    %15 = arith.mulf %14, %11 : vector<1x8x5xf32>
    %16 = arith.addf %13, %15 : vector<1x8x5xf32>
    %17 = vector.extract_strided_slice %1 {offsets = [1, 0, 0], sizes = [1, 8, 5], strides = [1, 1, 1]} : vector<8x8x5xf32> to vector<1x8x5xf32>
    %18 = vector.extract_strided_slice %1 {offsets = [2, 0, 0], sizes = [1, 8, 5], strides = [1, 1, 1]} : vector<8x8x5xf32> to vector<1x8x5xf32>
    %cst_6 = arith.constant 6.000000e-01 : f32
    %19 = vector.broadcast %cst_6 : f32 to vector<1x8x5xf32>
    %20 = arith.mulf %19, %17 : vector<1x8x5xf32>
    %cst_7 = arith.constant 4.000000e-01 : f32
    %21 = vector.broadcast %cst_7 : f32 to vector<1x8x5xf32>
    %22 = arith.mulf %21, %18 : vector<1x8x5xf32>
    %23 = arith.addf %20, %22 : vector<1x8x5xf32>
    %24 = vector.extract_strided_slice %1 {offsets = [1, 0, 0], sizes = [1, 8, 5], strides = [1, 1, 1]} : vector<8x8x5xf32> to vector<1x8x5xf32>
    %25 = vector.extract_strided_slice %1 {offsets = [2, 0, 0], sizes = [1, 8, 5], strides = [1, 1, 1]} : vector<8x8x5xf32> to vector<1x8x5xf32>
    %cst_8 = arith.constant 0.133333325 : f32
    %26 = vector.broadcast %cst_8 : f32 to vector<1x8x5xf32>
    %27 = arith.mulf %26, %24 : vector<1x8x5xf32>
    %cst_9 = arith.constant 0.866666674 : f32
    %28 = vector.broadcast %cst_9 : f32 to vector<1x8x5xf32>
    %29 = arith.mulf %28, %25 : vector<1x8x5xf32>
    %30 = arith.addf %27, %29 : vector<1x8x5xf32>
    %31 = vector.extract_strided_slice %1 {offsets = [2, 0, 0], sizes = [1, 8, 5], strides = [1, 1, 1]} : vector<8x8x5xf32> to vector<1x8x5xf32>
    %32 = vector.extract_strided_slice %1 {offsets = [3, 0, 0], sizes = [1, 8, 5], strides = [1, 1, 1]} : vector<8x8x5xf32> to vector<1x8x5xf32>
    %cst_10 = arith.constant 0.666666627 : f32
    %33 = vector.broadcast %cst_10 : f32 to vector<1x8x5xf32>
    %34 = arith.mulf %33, %31 : vector<1x8x5xf32>
    %cst_11 = arith.constant 0.333333343 : f32
    %35 = vector.broadcast %cst_11 : f32 to vector<1x8x5xf32>
    %36 = arith.mulf %35, %32 : vector<1x8x5xf32>
    %37 = arith.addf %34, %36 : vector<1x8x5xf32>
    %38 = vector.extract_strided_slice %1 {offsets = [2, 0, 0], sizes = [1, 8, 5], strides = [1, 1, 1]} : vector<8x8x5xf32> to vector<1x8x5xf32>
    %39 = vector.extract_strided_slice %1 {offsets = [3, 0, 0], sizes = [1, 8, 5], strides = [1, 1, 1]} : vector<8x8x5xf32> to vector<1x8x5xf32>
    %cst_12 = arith.constant 0.199999988 : f32
    %40 = vector.broadcast %cst_12 : f32 to vector<1x8x5xf32>
    %41 = arith.mulf %40, %38 : vector<1x8x5xf32>
    %cst_13 = arith.constant 8.000000e-01 : f32
    %42 = vector.broadcast %cst_13 : f32 to vector<1x8x5xf32>
    %43 = arith.mulf %42, %39 : vector<1x8x5xf32>
    %44 = arith.addf %41, %43 : vector<1x8x5xf32>
    %45 = vector.extract_strided_slice %1 {offsets = [3, 0, 0], sizes = [1, 8, 5], strides = [1, 1, 1]} : vector<8x8x5xf32> to vector<1x8x5xf32>
    %46 = vector.extract_strided_slice %1 {offsets = [4, 0, 0], sizes = [1, 8, 5], strides = [1, 1, 1]} : vector<8x8x5xf32> to vector<1x8x5xf32>
    %cst_14 = arith.constant 0.733333349 : f32
    %47 = vector.broadcast %cst_14 : f32 to vector<1x8x5xf32>
    %48 = arith.mulf %47, %45 : vector<1x8x5xf32>
    %cst_15 = arith.constant 0.266666681 : f32
    %49 = vector.broadcast %cst_15 : f32 to vector<1x8x5xf32>
    %50 = arith.mulf %49, %46 : vector<1x8x5xf32>
    %51 = arith.addf %48, %50 : vector<1x8x5xf32>
    %52 = vector.extract_strided_slice %1 {offsets = [3, 0, 0], sizes = [1, 8, 5], strides = [1, 1, 1]} : vector<8x8x5xf32> to vector<1x8x5xf32>
    %53 = vector.extract_strided_slice %1 {offsets = [4, 0, 0], sizes = [1, 8, 5], strides = [1, 1, 1]} : vector<8x8x5xf32> to vector<1x8x5xf32>
    %cst_16 = arith.constant 0.266666651 : f32
    %54 = vector.broadcast %cst_16 : f32 to vector<1x8x5xf32>
    %55 = arith.mulf %54, %52 : vector<1x8x5xf32>
    %cst_17 = arith.constant 0.733333349 : f32
    %56 = vector.broadcast %cst_17 : f32 to vector<1x8x5xf32>
    %57 = arith.mulf %56, %53 : vector<1x8x5xf32>
    %58 = arith.addf %55, %57 : vector<1x8x5xf32>
    %59 = vector.extract_strided_slice %1 {offsets = [4, 0, 0], sizes = [1, 8, 5], strides = [1, 1, 1]} : vector<8x8x5xf32> to vector<1x8x5xf32>
    %60 = vector.extract_strided_slice %1 {offsets = [5, 0, 0], sizes = [1, 8, 5], strides = [1, 1, 1]} : vector<8x8x5xf32> to vector<1x8x5xf32>
    %cst_18 = arith.constant 8.000000e-01 : f32
    %61 = vector.broadcast %cst_18 : f32 to vector<1x8x5xf32>
    %62 = arith.mulf %61, %59 : vector<1x8x5xf32>
    %cst_19 = arith.constant 2.000000e-01 : f32
    %63 = vector.broadcast %cst_19 : f32 to vector<1x8x5xf32>
    %64 = arith.mulf %63, %60 : vector<1x8x5xf32>
    %65 = arith.addf %62, %64 : vector<1x8x5xf32>
    %66 = vector.extract_strided_slice %1 {offsets = [4, 0, 0], sizes = [1, 8, 5], strides = [1, 1, 1]} : vector<8x8x5xf32> to vector<1x8x5xf32>
    %67 = vector.extract_strided_slice %1 {offsets = [5, 0, 0], sizes = [1, 8, 5], strides = [1, 1, 1]} : vector<8x8x5xf32> to vector<1x8x5xf32>
    %cst_20 = arith.constant 0.333333313 : f32
    %68 = vector.broadcast %cst_20 : f32 to vector<1x8x5xf32>
    %69 = arith.mulf %68, %66 : vector<1x8x5xf32>
    %cst_21 = arith.constant 0.666666686 : f32
    %70 = vector.broadcast %cst_21 : f32 to vector<1x8x5xf32>
    %71 = arith.mulf %70, %67 : vector<1x8x5xf32>
    %72 = arith.addf %69, %71 : vector<1x8x5xf32>
    %73 = vector.extract_strided_slice %1 {offsets = [5, 0, 0], sizes = [1, 8, 5], strides = [1, 1, 1]} : vector<8x8x5xf32> to vector<1x8x5xf32>
    %74 = vector.extract_strided_slice %1 {offsets = [6, 0, 0], sizes = [1, 8, 5], strides = [1, 1, 1]} : vector<8x8x5xf32> to vector<1x8x5xf32>
    %cst_22 = arith.constant 0.866666674 : f32
    %75 = vector.broadcast %cst_22 : f32 to vector<1x8x5xf32>
    %76 = arith.mulf %75, %73 : vector<1x8x5xf32>
    %cst_23 = arith.constant 0.13333334 : f32
    %77 = vector.broadcast %cst_23 : f32 to vector<1x8x5xf32>
    %78 = arith.mulf %77, %74 : vector<1x8x5xf32>
    %79 = arith.addf %76, %78 : vector<1x8x5xf32>
    %80 = vector.extract_strided_slice %1 {offsets = [5, 0, 0], sizes = [1, 8, 5], strides = [1, 1, 1]} : vector<8x8x5xf32> to vector<1x8x5xf32>
    %81 = vector.extract_strided_slice %1 {offsets = [6, 0, 0], sizes = [1, 8, 5], strides = [1, 1, 1]} : vector<8x8x5xf32> to vector<1x8x5xf32>
    %cst_24 = arith.constant 0.399999976 : f32
    %82 = vector.broadcast %cst_24 : f32 to vector<1x8x5xf32>
    %83 = arith.mulf %82, %80 : vector<1x8x5xf32>
    %cst_25 = arith.constant 6.000000e-01 : f32
    %84 = vector.broadcast %cst_25 : f32 to vector<1x8x5xf32>
    %85 = arith.mulf %84, %81 : vector<1x8x5xf32>
    %86 = arith.addf %83, %85 : vector<1x8x5xf32>
    %87 = vector.extract_strided_slice %1 {offsets = [6, 0, 0], sizes = [1, 8, 5], strides = [1, 1, 1]} : vector<8x8x5xf32> to vector<1x8x5xf32>
    %88 = vector.extract_strided_slice %1 {offsets = [7, 0, 0], sizes = [1, 8, 5], strides = [1, 1, 1]} : vector<8x8x5xf32> to vector<1x8x5xf32>
    %cst_26 = arith.constant 0.933333337 : f32
    %89 = vector.broadcast %cst_26 : f32 to vector<1x8x5xf32>
    %90 = arith.mulf %89, %87 : vector<1x8x5xf32>
    %cst_27 = arith.constant 0.0666666701 : f32
    %91 = vector.broadcast %cst_27 : f32 to vector<1x8x5xf32>
    %92 = arith.mulf %91, %88 : vector<1x8x5xf32>
    %93 = arith.addf %90, %92 : vector<1x8x5xf32>
    %94 = vector.extract_strided_slice %1 {offsets = [6, 0, 0], sizes = [1, 8, 5], strides = [1, 1, 1]} : vector<8x8x5xf32> to vector<1x8x5xf32>
    %95 = vector.extract_strided_slice %1 {offsets = [7, 0, 0], sizes = [1, 8, 5], strides = [1, 1, 1]} : vector<8x8x5xf32> to vector<1x8x5xf32>
    %cst_28 = arith.constant 0.466666639 : f32
    %96 = vector.broadcast %cst_28 : f32 to vector<1x8x5xf32>
    %97 = arith.mulf %96, %94 : vector<1x8x5xf32>
    %cst_29 = arith.constant 0.533333361 : f32
    %98 = vector.broadcast %cst_29 : f32 to vector<1x8x5xf32>
    %99 = arith.mulf %98, %95 : vector<1x8x5xf32>
    %100 = arith.addf %97, %99 : vector<1x8x5xf32>
    %101 = vector.extract_strided_slice %1 {offsets = [7, 0, 0], sizes = [1, 8, 5], strides = [1, 1, 1]} : vector<8x8x5xf32> to vector<1x8x5xf32>
    %102 = tpu.concatenate %2, %9, %16, %23, %30, %37, %44, %51, %58, %65, %72, %79, %86, %93, %100, %101 in 0 : vector<1x8x5xf32>, vector<1x8x5xf32>, vector<1x8x5xf32>, vector<1x8x5xf32>, vector<1x8x5xf32>, vector<1x8x5xf32>, vector<1x8x5xf32>, vector<1x8x5xf32>, vector<1x8x5xf32>, vector<1x8x5xf32>, vector<1x8x5xf32>, vector<1x8x5xf32>, vector<1x8x5xf32>, vector<1x8x5xf32>, vector<1x8x5xf32>, vector<1x8x5xf32> -> vector<16x8x5xf32>
    %103 = vector.extract_strided_slice %102 {offsets = [0, 0, 0], sizes = [16, 1, 5], strides = [1, 1, 1]} : vector<16x8x5xf32> to vector<16x1x5xf32>
    %104 = vector.extract_strided_slice %102 {offsets = [0, 0, 0], sizes = [16, 1, 5], strides = [1, 1, 1]} : vector<16x8x5xf32> to vector<16x1x5xf32>
    %105 = vector.extract_strided_slice %102 {offsets = [0, 1, 0], sizes = [16, 1, 5], strides = [1, 1, 1]} : vector<16x8x5xf32> to vector<16x1x5xf32>
    %cst_30 = arith.constant 0.533333302 : f32
    %106 = vector.broadcast %cst_30 : f32 to vector<16x1x5xf32>
    %107 = arith.mulf %106, %104 : vector<16x1x5xf32>
    %cst_31 = arith.constant 0.466666669 : f32
    %108 = vector.broadcast %cst_31 : f32 to vector<16x1x5xf32>
    %109 = arith.mulf %108, %105 : vector<16x1x5xf32>
    %110 = arith.addf %107, %109 : vector<16x1x5xf32>
    %111 = vector.extract_strided_slice %102 {offsets = [0, 0, 0], sizes = [16, 1, 5], strides = [1, 1, 1]} : vector<16x8x5xf32> to vector<16x1x5xf32>
    %112 = vector.extract_strided_slice %102 {offsets = [0, 1, 0], sizes = [16, 1, 5], strides = [1, 1, 1]} : vector<16x8x5xf32> to vector<16x1x5xf32>
    %cst_32 = arith.constant 0.0666666627 : f32
    %113 = vector.broadcast %cst_32 : f32 to vector<16x1x5xf32>
    %114 = arith.mulf %113, %111 : vector<16x1x5xf32>
    %cst_33 = arith.constant 0.933333337 : f32
    %115 = vector.broadcast %cst_33 : f32 to vector<16x1x5xf32>
    %116 = arith.mulf %115, %112 : vector<16x1x5xf32>
    %117 = arith.addf %114, %116 : vector<16x1x5xf32>
    %118 = vector.extract_strided_slice %102 {offsets = [0, 1, 0], sizes = [16, 1, 5], strides = [1, 1, 1]} : vector<16x8x5xf32> to vector<16x1x5xf32>
    %119 = vector.extract_strided_slice %102 {offsets = [0, 2, 0], sizes = [16, 1, 5], strides = [1, 1, 1]} : vector<16x8x5xf32> to vector<16x1x5xf32>
    %cst_34 = arith.constant 6.000000e-01 : f32
    %120 = vector.broadcast %cst_34 : f32 to vector<16x1x5xf32>
    %121 = arith.mulf %120, %118 : vector<16x1x5xf32>
    %cst_35 = arith.constant 4.000000e-01 : f32
    %122 = vector.broadcast %cst_35 : f32 to vector<16x1x5xf32>
    %123 = arith.mulf %122, %119 : vector<16x1x5xf32>
    %124 = arith.addf %121, %123 : vector<16x1x5xf32>
    %125 = vector.extract_strided_slice %102 {offsets = [0, 1, 0], sizes = [16, 1, 5], strides = [1, 1, 1]} : vector<16x8x5xf32> to vector<16x1x5xf32>
    %126 = vector.extract_strided_slice %102 {offsets = [0, 2, 0], sizes = [16, 1, 5], strides = [1, 1, 1]} : vector<16x8x5xf32> to vector<16x1x5xf32>
    %cst_36 = arith.constant 0.133333325 : f32
    %127 = vector.broadcast %cst_36 : f32 to vector<16x1x5xf32>
    %128 = arith.mulf %127, %125 : vector<16x1x5xf32>
    %cst_37 = arith.constant 0.866666674 : f32
    %129 = vector.broadcast %cst_37 : f32 to vector<16x1x5xf32>
    %130 = arith.mulf %129, %126 : vector<16x1x5xf32>
    %131 = arith.addf %128, %130 : vector<16x1x5xf32>
    %132 = vector.extract_strided_slice %102 {offsets = [0, 2, 0], sizes = [16, 1, 5], strides = [1, 1, 1]} : vector<16x8x5xf32> to vector<16x1x5xf32>
    %133 = vector.extract_strided_slice %102 {offsets = [0, 3, 0], sizes = [16, 1, 5], strides = [1, 1, 1]} : vector<16x8x5xf32> to vector<16x1x5xf32>
    %cst_38 = arith.constant 0.666666627 : f32
    %134 = vector.broadcast %cst_38 : f32 to vector<16x1x5xf32>
    %135 = arith.mulf %134, %132 : vector<16x1x5xf32>
    %cst_39 = arith.constant 0.333333343 : f32
    %136 = vector.broadcast %cst_39 : f32 to vector<16x1x5xf32>
    %137 = arith.mulf %136, %133 : vector<16x1x5xf32>
    %138 = arith.addf %135, %137 : vector<16x1x5xf32>
    %139 = vector.extract_strided_slice %102 {offsets = [0, 2, 0], sizes = [16, 1, 5], strides = [1, 1, 1]} : vector<16x8x5xf32> to vector<16x1x5xf32>
    %140 = vector.extract_strided_slice %102 {offsets = [0, 3, 0], sizes = [16, 1, 5], strides = [1, 1, 1]} : vector<16x8x5xf32> to vector<16x1x5xf32>
    %cst_40 = arith.constant 0.199999988 : f32
    %141 = vector.broadcast %cst_40 : f32 to vector<16x1x5xf32>
    %142 = arith.mulf %141, %139 : vector<16x1x5xf32>
    %cst_41 = arith.constant 8.000000e-01 : f32
    %143 = vector.broadcast %cst_41 : f32 to vector<16x1x5xf32>
    %144 = arith.mulf %143, %140 : vector<16x1x5xf32>
    %145 = arith.addf %142, %144 : vector<16x1x5xf32>
    %146 = vector.extract_strided_slice %102 {offsets = [0, 3, 0], sizes = [16, 1, 5], strides = [1, 1, 1]} : vector<16x8x5xf32> to vector<16x1x5xf32>
    %147 = vector.extract_strided_slice %102 {offsets = [0, 4, 0], sizes = [16, 1, 5], strides = [1, 1, 1]} : vector<16x8x5xf32> to vector<16x1x5xf32>
    %cst_42 = arith.constant 0.733333349 : f32
    %148 = vector.broadcast %cst_42 : f32 to vector<16x1x5xf32>
    %149 = arith.mulf %148, %146 : vector<16x1x5xf32>
    %cst_43 = arith.constant 0.266666681 : f32
    %150 = vector.broadcast %cst_43 : f32 to vector<16x1x5xf32>
    %151 = arith.mulf %150, %147 : vector<16x1x5xf32>
    %152 = arith.addf %149, %151 : vector<16x1x5xf32>
    %153 = vector.extract_strided_slice %102 {offsets = [0, 3, 0], sizes = [16, 1, 5], strides = [1, 1, 1]} : vector<16x8x5xf32> to vector<16x1x5xf32>
    %154 = vector.extract_strided_slice %102 {offsets = [0, 4, 0], sizes = [16, 1, 5], strides = [1, 1, 1]} : vector<16x8x5xf32> to vector<16x1x5xf32>
    %cst_44 = arith.constant 0.266666651 : f32
    %155 = vector.broadcast %cst_44 : f32 to vector<16x1x5xf32>
    %156 = arith.mulf %155, %153 : vector<16x1x5xf32>
    %cst_45 = arith.constant 0.733333349 : f32
    %157 = vector.broadcast %cst_45 : f32 to vector<16x1x5xf32>
    %158 = arith.mulf %157, %154 : vector<16x1x5xf32>
    %159 = arith.addf %156, %158 : vector<16x1x5xf32>
    %160 = vector.extract_strided_slice %102 {offsets = [0, 4, 0], sizes = [16, 1, 5], strides = [1, 1, 1]} : vector<16x8x5xf32> to vector<16x1x5xf32>
    %161 = vector.extract_strided_slice %102 {offsets = [0, 5, 0], sizes = [16, 1, 5], strides = [1, 1, 1]} : vector<16x8x5xf32> to vector<16x1x5xf32>
    %cst_46 = arith.constant 8.000000e-01 : f32
    %162 = vector.broadcast %cst_46 : f32 to vector<16x1x5xf32>
    %163 = arith.mulf %162, %160 : vector<16x1x5xf32>
    %cst_47 = arith.constant 2.000000e-01 : f32
    %164 = vector.broadcast %cst_47 : f32 to vector<16x1x5xf32>
    %165 = arith.mulf %164, %161 : vector<16x1x5xf32>
    %166 = arith.addf %163, %165 : vector<16x1x5xf32>
    %167 = vector.extract_strided_slice %102 {offsets = [0, 4, 0], sizes = [16, 1, 5], strides = [1, 1, 1]} : vector<16x8x5xf32> to vector<16x1x5xf32>
    %168 = vector.extract_strided_slice %102 {offsets = [0, 5, 0], sizes = [16, 1, 5], strides = [1, 1, 1]} : vector<16x8x5xf32> to vector<16x1x5xf32>
    %cst_48 = arith.constant 0.333333313 : f32
    %169 = vector.broadcast %cst_48 : f32 to vector<16x1x5xf32>
    %170 = arith.mulf %169, %167 : vector<16x1x5xf32>
    %cst_49 = arith.constant 0.666666686 : f32
    %171 = vector.broadcast %cst_49 : f32 to vector<16x1x5xf32>
    %172 = arith.mulf %171, %168 : vector<16x1x5xf32>
    %173 = arith.addf %170, %172 : vector<16x1x5xf32>
    %174 = vector.extract_strided_slice %102 {offsets = [0, 5, 0], sizes = [16, 1, 5], strides = [1, 1, 1]} : vector<16x8x5xf32> to vector<16x1x5xf32>
    %175 = vector.extract_strided_slice %102 {offsets = [0, 6, 0], sizes = [16, 1, 5], strides = [1, 1, 1]} : vector<16x8x5xf32> to vector<16x1x5xf32>
    %cst_50 = arith.constant 0.866666674 : f32
    %176 = vector.broadcast %cst_50 : f32 to vector<16x1x5xf32>
    %177 = arith.mulf %176, %174 : vector<16x1x5xf32>
    %cst_51 = arith.constant 0.13333334 : f32
    %178 = vector.broadcast %cst_51 : f32 to vector<16x1x5xf32>
    %179 = arith.mulf %178, %175 : vector<16x1x5xf32>
    %180 = arith.addf %177, %179 : vector<16x1x5xf32>
    %181 = vector.extract_strided_slice %102 {offsets = [0, 5, 0], sizes = [16, 1, 5], strides = [1, 1, 1]} : vector<16x8x5xf32> to vector<16x1x5xf32>
    %182 = vector.extract_strided_slice %102 {offsets = [0, 6, 0], sizes = [16, 1, 5], strides = [1, 1, 1]} : vector<16x8x5xf32> to vector<16x1x5xf32>
    %cst_52 = arith.constant 0.399999976 : f32
    %183 = vector.broadcast %cst_52 : f32 to vector<16x1x5xf32>
    %184 = arith.mulf %183, %181 : vector<16x1x5xf32>
    %cst_53 = arith.constant 6.000000e-01 : f32
    %185 = vector.broadcast %cst_53 : f32 to vector<16x1x5xf32>
    %186 = arith.mulf %185, %182 : vector<16x1x5xf32>
    %187 = arith.addf %184, %186 : vector<16x1x5xf32>
    %188 = vector.extract_strided_slice %102 {offsets = [0, 6, 0], sizes = [16, 1, 5], strides = [1, 1, 1]} : vector<16x8x5xf32> to vector<16x1x5xf32>
    %189 = vector.extract_strided_slice %102 {offsets = [0, 7, 0], sizes = [16, 1, 5], strides = [1, 1, 1]} : vector<16x8x5xf32> to vector<16x1x5xf32>
    %cst_54 = arith.constant 0.933333337 : f32
    %190 = vector.broadcast %cst_54 : f32 to vector<16x1x5xf32>
    %191 = arith.mulf %190, %188 : vector<16x1x5xf32>
    %cst_55 = arith.constant 0.0666666701 : f32
    %192 = vector.broadcast %cst_55 : f32 to vector<16x1x5xf32>
    %193 = arith.mulf %192, %189 : vector<16x1x5xf32>
    %194 = arith.addf %191, %193 : vector<16x1x5xf32>
    %195 = vector.extract_strided_slice %102 {offsets = [0, 6, 0], sizes = [16, 1, 5], strides = [1, 1, 1]} : vector<16x8x5xf32> to vector<16x1x5xf32>
    %196 = vector.extract_strided_slice %102 {offsets = [0, 7, 0], sizes = [16, 1, 5], strides = [1, 1, 1]} : vector<16x8x5xf32> to vector<16x1x5xf32>
    %cst_56 = arith.constant 0.466666639 : f32
    %197 = vector.broadcast %cst_56 : f32 to vector<16x1x5xf32>
    %198 = arith.mulf %197, %195 : vector<16x1x5xf32>
    %cst_57 = arith.constant 0.533333361 : f32
    %199 = vector.broadcast %cst_57 : f32 to vector<16x1x5xf32>
    %200 = arith.mulf %199, %196 : vector<16x1x5xf32>
    %201 = arith.addf %198, %200 : vector<16x1x5xf32>
    %202 = vector.extract_strided_slice %102 {offsets = [0, 7, 0], sizes = [16, 1, 5], strides = [1, 1, 1]} : vector<16x8x5xf32> to vector<16x1x5xf32>
    %203 = tpu.concatenate %103, %110, %117, %124, %131, %138, %145, %152, %159, %166, %173, %180, %187, %194, %201, %202 in 1 : vector<16x1x5xf32>, vector<16x1x5xf32>, vector<16x1x5xf32>, vector<16x1x5xf32>, vector<16x1x5xf32>, vector<16x1x5xf32>, vector<16x1x5xf32>, vector<16x1x5xf32>, vector<16x1x5xf32>, vector<16x1x5xf32>, vector<16x1x5xf32>, vector<16x1x5xf32>, vector<16x1x5xf32>, vector<16x1x5xf32>, vector<16x1x5xf32>, vector<16x1x5xf32> -> vector<16x16x5xf32>
    %cst_58 = arith.constant 1.000000e-07 : f32
    %204 = vector.broadcast %cst_58 : f32 to vector<16x16x5xf32>
    %205 = arith.addf %203, %204 : vector<16x16x5xf32>
    %206 = math.log %205 : vector<16x16x5xf32>
    %207 = arith.mulf %203, %206 : vector<16x16x5xf32>
    %cst_59 = arith.constant dense<0.000000e+00> : vector<16x16xf32>
    %208 = vector.multi_reduction <add>, %207, %cst_59 [2] : vector<16x16x5xf32> to vector<16x16xf32>
    %209 = vector.shape_cast %208 : vector<16x16xf32> to vector<16x16x1xf32>
    %cst_60 = arith.constant 0.000000e+00 : f32
    %210 = vector.broadcast %cst_60 : f32 to vector<16x16x1xf32>
    %211 = arith.subf %210, %209 : vector<16x16x1xf32>
    %cst_61 = arith.constant 1.000000e+00 : f32
    %212 = vector.broadcast %cst_61 : f32 to vector<16x16x1xf32>
    %213 = arith.maximumf %211, %212 : vector<16x16x1xf32>
    %c0_62 = arith.constant 0 : index
    %c0_63 = arith.constant 0 : index
    %c0_64 = arith.constant 0 : index
    %c0_65 = arith.constant 0 : index
    %214 = vector.load %arg2[%c0_62, %c0_63, %c0_64, %c0_65] : memref<1x16x16x6xf32, #tpu.memory_space<vmem>>, vector<1x16x16x6xf32>
    %215 = vector.shape_cast %214 : vector<1x16x16x6xf32> to vector<16x16x6xf32>
    %216 = vector.broadcast %213 : vector<16x16x1xf32> to vector<16x16x6xf32>
    %217 = arith.mulf %216, %215 : vector<16x16x6xf32>
    %cst_66 = arith.constant 0.000000e+00 : f32
    %218 = vector.broadcast %cst_66 : f32 to vector<18x18x6xf32>
    %c0_67 = arith.constant 0 : index
    %c0_68 = arith.constant 0 : index
    %c0_69 = arith.constant 0 : index
    %219 = vector.load %arg6[%c0_67, %c0_68, %c0_69] : memref<18x18x6xf32, #tpu.memory_space<vmem>>, vector<18x18x6xf32>
    tpu.vector_store %arg6[%c0_67, %c0_68, %c0_69], %218 {strides = array<i32>} : memref<18x18x6xf32, #tpu.memory_space<vmem>>, vector<18x18x6xf32>,
    %c1 = arith.constant 1 : index
    %c1_70 = arith.constant 1 : index
    %c0_71 = arith.constant 0 : index
    %220 = vector.load %arg6[%c1, %c1_70, %c0_71] : memref<18x18x6xf32, #tpu.memory_space<vmem>>, vector<16x16x6xf32>
    tpu.vector_store %arg6[%c1, %c1_70, %c0_71], %217 {strides = array<i32>} : memref<18x18x6xf32, #tpu.memory_space<vmem>>, vector<16x16x6xf32>,
    %cst_72 = arith.constant 0.000000e+00 : f32
    %221 = vector.broadcast %cst_72 : f32 to vector<256x16xf32>
    %c0_73 = arith.constant 0 : index
    %c0_74 = arith.constant 0 : index
    %c0_75 = arith.constant 0 : index
    %c0_76 = arith.constant 0 : index
    %222 = vector.load %arg3[%c0_73, %c0_74, %c0_75, %c0_76] : memref<3x3x6x16xbf16, #tpu.memory_space<vmem>>, vector<3x3x6x16xbf16>
    %c0_77 = arith.constant 0 : index
    %c0_78 = arith.constant 0 : index
    %c0_79 = arith.constant 0 : index
    %223 = vector.load %arg6[%c0_77, %c0_78, %c0_79] : memref<18x18x6xf32, #tpu.memory_space<vmem>>, vector<16x16x6xf32>
    %224 = vector.shape_cast %223 : vector<16x16x6xf32> to vector<256x6xf32>
    %225 = arith.truncf %224 : vector<256x6xf32> to vector<256x6xbf16>
    %226 = vector.extract_strided_slice %222 {offsets = [0, 0, 0, 0], sizes = [1, 1, 6, 16], strides = [1, 1, 1, 1]} : vector<3x3x6x16xbf16> to vector<1x1x6x16xbf16>
    %227 = vector.shape_cast %226 : vector<1x1x6x16xbf16> to vector<6x16xbf16>
    %cst_80 = arith.constant dense<0.000000e+00> : vector<256x16xf32>
    %228 = tpu.matmul %225, %227, %cst_80 {dimension_numbers = #tpu.dot_dimension_numbers<[1], [0], [0], [1], [0, 0, 1, 1], [], []>} : vector<256x6xbf16>, vector<6x16xbf16>, vector<256x16xf32> -> vector<256x16xf32>
    %229 = arith.addf %221, %228 : vector<256x16xf32>
    %c0_81 = arith.constant 0 : index
    %c1_82 = arith.constant 1 : index
    %c0_83 = arith.constant 0 : index
    %230 = vector.load %arg6[%c0_81, %c1_82, %c0_83] : memref<18x18x6xf32, #tpu.memory_space<vmem>>, vector<16x16x6xf32>
    %231 = vector.shape_cast %230 : vector<16x16x6xf32> to vector<256x6xf32>
    %232 = arith.truncf %231 : vector<256x6xf32> to vector<256x6xbf16>
    %233 = vector.extract_strided_slice %222 {offsets = [0, 1, 0, 0], sizes = [1, 1, 6, 16], strides = [1, 1, 1, 1]} : vector<3x3x6x16xbf16> to vector<1x1x6x16xbf16>
    %234 = vector.shape_cast %233 : vector<1x1x6x16xbf16> to vector<6x16xbf16>
    %cst_84 = arith.constant dense<0.000000e+00> : vector<256x16xf32>
    %235 = tpu.matmul %232, %234, %cst_84 {dimension_numbers = #tpu.dot_dimension_numbers<[1], [0], [0], [1], [0, 0, 1, 1], [], []>} : vector<256x6xbf16>, vector<6x16xbf16>, vector<256x16xf32> -> vector<256x16xf32>
    %236 = arith.addf %229, %235 : vector<256x16xf32>
    %c0_85 = arith.constant 0 : index
    %c2 = arith.constant 2 : index
    %c0_86 = arith.constant 0 : index
    %237 = vector.load %arg6[%c0_85, %c2, %c0_86] : memref<18x18x6xf32, #tpu.memory_space<vmem>>, vector<16x16x6xf32>
    %238 = vector.shape_cast %237 : vector<16x16x6xf32> to vector<256x6xf32>
    %239 = arith.truncf %238 : vector<256x6xf32> to vector<256x6xbf16>
    %240 = vector.extract_strided_slice %222 {offsets = [0, 2, 0, 0], sizes = [1, 1, 6, 16], strides = [1, 1, 1, 1]} : vector<3x3x6x16xbf16> to vector<1x1x6x16xbf16>
    %241 = vector.shape_cast %240 : vector<1x1x6x16xbf16> to vector<6x16xbf16>
    %cst_87 = arith.constant dense<0.000000e+00> : vector<256x16xf32>
    %242 = tpu.matmul %239, %241, %cst_87 {dimension_numbers = #tpu.dot_dimension_numbers<[1], [0], [0], [1], [0, 0, 1, 1], [], []>} : vector<256x6xbf16>, vector<6x16xbf16>, vector<256x16xf32> -> vector<256x16xf32>
    %243 = arith.addf %236, %242 : vector<256x16xf32>
    %c1_88 = arith.constant 1 : index
    %c0_89 = arith.constant 0 : index
    %c0_90 = arith.constant 0 : index
    %244 = vector.load %arg6[%c1_88, %c0_89, %c0_90] : memref<18x18x6xf32, #tpu.memory_space<vmem>>, vector<16x16x6xf32>
    %245 = vector.shape_cast %244 : vector<16x16x6xf32> to vector<256x6xf32>
    %246 = arith.truncf %245 : vector<256x6xf32> to vector<256x6xbf16>
    %247 = vector.extract_strided_slice %222 {offsets = [1, 0, 0, 0], sizes = [1, 1, 6, 16], strides = [1, 1, 1, 1]} : vector<3x3x6x16xbf16> to vector<1x1x6x16xbf16>
    %248 = vector.shape_cast %247 : vector<1x1x6x16xbf16> to vector<6x16xbf16>
    %cst_91 = arith.constant dense<0.000000e+00> : vector<256x16xf32>
    %249 = tpu.matmul %246, %248, %cst_91 {dimension_numbers = #tpu.dot_dimension_numbers<[1], [0], [0], [1], [0, 0, 1, 1], [], []>} : vector<256x6xbf16>, vector<6x16xbf16>, vector<256x16xf32> -> vector<256x16xf32>
    %250 = arith.addf %243, %249 : vector<256x16xf32>
    %c1_92 = arith.constant 1 : index
    %c1_93 = arith.constant 1 : index
    %c0_94 = arith.constant 0 : index
    %251 = vector.load %arg6[%c1_92, %c1_93, %c0_94] : memref<18x18x6xf32, #tpu.memory_space<vmem>>, vector<16x16x6xf32>
    %252 = vector.shape_cast %251 : vector<16x16x6xf32> to vector<256x6xf32>
    %253 = arith.truncf %252 : vector<256x6xf32> to vector<256x6xbf16>
    %254 = vector.extract_strided_slice %222 {offsets = [1, 1, 0, 0], sizes = [1, 1, 6, 16], strides = [1, 1, 1, 1]} : vector<3x3x6x16xbf16> to vector<1x1x6x16xbf16>
    %255 = vector.shape_cast %254 : vector<1x1x6x16xbf16> to vector<6x16xbf16>
    %cst_95 = arith.constant dense<0.000000e+00> : vector<256x16xf32>
    %256 = tpu.matmul %253, %255, %cst_95 {dimension_numbers = #tpu.dot_dimension_numbers<[1], [0], [0], [1], [0, 0, 1, 1], [], []>} : vector<256x6xbf16>, vector<6x16xbf16>, vector<256x16xf32> -> vector<256x16xf32>
    %257 = arith.addf %250, %256 : vector<256x16xf32>
    %c1_96 = arith.constant 1 : index
    %c2_97 = arith.constant 2 : index
    %c0_98 = arith.constant 0 : index
    %258 = vector.load %arg6[%c1_96, %c2_97, %c0_98] : memref<18x18x6xf32, #tpu.memory_space<vmem>>, vector<16x16x6xf32>
    %259 = vector.shape_cast %258 : vector<16x16x6xf32> to vector<256x6xf32>
    %260 = arith.truncf %259 : vector<256x6xf32> to vector<256x6xbf16>
    %261 = vector.extract_strided_slice %222 {offsets = [1, 2, 0, 0], sizes = [1, 1, 6, 16], strides = [1, 1, 1, 1]} : vector<3x3x6x16xbf16> to vector<1x1x6x16xbf16>
    %262 = vector.shape_cast %261 : vector<1x1x6x16xbf16> to vector<6x16xbf16>
    %cst_99 = arith.constant dense<0.000000e+00> : vector<256x16xf32>
    %263 = tpu.matmul %260, %262, %cst_99 {dimension_numbers = #tpu.dot_dimension_numbers<[1], [0], [0], [1], [0, 0, 1, 1], [], []>} : vector<256x6xbf16>, vector<6x16xbf16>, vector<256x16xf32> -> vector<256x16xf32>
    %264 = arith.addf %257, %263 : vector<256x16xf32>
    %c2_100 = arith.constant 2 : index
    %c0_101 = arith.constant 0 : index
    %c0_102 = arith.constant 0 : index
    %265 = vector.load %arg6[%c2_100, %c0_101, %c0_102] : memref<18x18x6xf32, #tpu.memory_space<vmem>>, vector<16x16x6xf32>
    %266 = vector.shape_cast %265 : vector<16x16x6xf32> to vector<256x6xf32>
    %267 = arith.truncf %266 : vector<256x6xf32> to vector<256x6xbf16>
    %268 = vector.extract_strided_slice %222 {offsets = [2, 0, 0, 0], sizes = [1, 1, 6, 16], strides = [1, 1, 1, 1]} : vector<3x3x6x16xbf16> to vector<1x1x6x16xbf16>
    %269 = vector.shape_cast %268 : vector<1x1x6x16xbf16> to vector<6x16xbf16>
    %cst_103 = arith.constant dense<0.000000e+00> : vector<256x16xf32>
    %270 = tpu.matmul %267, %269, %cst_103 {dimension_numbers = #tpu.dot_dimension_numbers<[1], [0], [0], [1], [0, 0, 1, 1], [], []>} : vector<256x6xbf16>, vector<6x16xbf16>, vector<256x16xf32> -> vector<256x16xf32>
    %271 = arith.addf %264, %270 : vector<256x16xf32>
    %c2_104 = arith.constant 2 : index
    %c1_105 = arith.constant 1 : index
    %c0_106 = arith.constant 0 : index
    %272 = vector.load %arg6[%c2_104, %c1_105, %c0_106] : memref<18x18x6xf32, #tpu.memory_space<vmem>>, vector<16x16x6xf32>
    %273 = vector.shape_cast %272 : vector<16x16x6xf32> to vector<256x6xf32>
    %274 = arith.truncf %273 : vector<256x6xf32> to vector<256x6xbf16>
    %275 = vector.extract_strided_slice %222 {offsets = [2, 1, 0, 0], sizes = [1, 1, 6, 16], strides = [1, 1, 1, 1]} : vector<3x3x6x16xbf16> to vector<1x1x6x16xbf16>
    %276 = vector.shape_cast %275 : vector<1x1x6x16xbf16> to vector<6x16xbf16>
    %cst_107 = arith.constant dense<0.000000e+00> : vector<256x16xf32>
    %277 = tpu.matmul %274, %276, %cst_107 {dimension_numbers = #tpu.dot_dimension_numbers<[1], [0], [0], [1], [0, 0, 1, 1], [], []>} : vector<256x6xbf16>, vector<6x16xbf16>, vector<256x16xf32> -> vector<256x16xf32>
    %278 = arith.addf %271, %277 : vector<256x16xf32>
    %c2_108 = arith.constant 2 : index
    %c2_109 = arith.constant 2 : index
    %c0_110 = arith.constant 0 : index
    %279 = vector.load %arg6[%c2_108, %c2_109, %c0_110] : memref<18x18x6xf32, #tpu.memory_space<vmem>>, vector<16x16x6xf32>
    %280 = vector.shape_cast %279 : vector<16x16x6xf32> to vector<256x6xf32>
    %281 = arith.truncf %280 : vector<256x6xf32> to vector<256x6xbf16>
    %282 = vector.extract_strided_slice %222 {offsets = [2, 2, 0, 0], sizes = [1, 1, 6, 16], strides = [1, 1, 1, 1]} : vector<3x3x6x16xbf16> to vector<1x1x6x16xbf16>
    %283 = vector.shape_cast %282 : vector<1x1x6x16xbf16> to vector<6x16xbf16>
    %cst_111 = arith.constant dense<0.000000e+00> : vector<256x16xf32>
    %284 = tpu.matmul %281, %283, %cst_111 {dimension_numbers = #tpu.dot_dimension_numbers<[1], [0], [0], [1], [0, 0, 1, 1], [], []>} : vector<256x6xbf16>, vector<6x16xbf16>, vector<256x16xf32> -> vector<256x16xf32>
    %285 = arith.addf %278, %284 : vector<256x16xf32>
    %c0_112 = arith.constant 0 : index
    %c0_113 = arith.constant 0 : index
    %286 = vector.load %arg4[%c0_112, %c0_113] : memref<1x16xf32, #tpu.memory_space<vmem>>, vector<1x16xf32>
    %287 = vector.broadcast %286 : vector<1x16xf32> to vector<256x16xf32>
    %288 = arith.addf %285, %287 : vector<256x16xf32>
    %cst_114 = arith.constant 0.000000e+00 : f32
    %289 = vector.broadcast %cst_114 : f32 to vector<256x16xf32>
    %290 = arith.maximumf %288, %289 : vector<256x16xf32>
    %291 = vector.shape_cast %290 : vector<256x16xf32> to vector<16x16x16xf32>
    %c0_115 = arith.constant 0 : index
    %c0_116 = arith.constant 0 : index
    %c0_117 = arith.constant 0 : index
    %c0_118 = arith.constant 0 : index
    %292 = vector.load %arg5[%c0_115, %c0_116, %c0_117, %c0_118] : memref<1x16x16x16xf32, #tpu.memory_space<vmem>>, vector<1x16x16x16xf32>
    %293 = vector.shape_cast %292 : vector<1x16x16x16xf32> to vector<16x16x16xf32>
    %294 = vector.shape_cast %291 : vector<16x16x16xf32> to vector<1x16x16x16xf32>
    tpu.vector_store %arg5[%c0_115, %c0_116, %c0_117, %c0_118], %294 {strides = array<i32>} : memref<1x16x16x16xf32, #tpu.memory_space<vmem>>, vector<1x16x16x16xf32>,
    return
  }
  func.func @transform_0(%arg0: i32) -> (i32, i32, i32, i32) {
    %c0_i32 = arith.constant 0 : i32
    %c0_i32_0 = arith.constant 0 : i32
    %c0_i32_1 = arith.constant 0 : i32
    %c0_i32_2 = arith.constant 0 : i32
    return %arg0, %c0_i32, %c0_i32_0, %c0_i32_1 : i32, i32, i32, i32
  }
  func.func @transform_1(%arg0: i32) -> (i32, i32, i32, i32) {
    %c0_i32 = arith.constant 0 : i32
    %c0_i32_0 = arith.constant 0 : i32
    %c0_i32_1 = arith.constant 0 : i32
    %c0_i32_2 = arith.constant 0 : i32
    return %arg0, %c0_i32, %c0_i32_0, %c0_i32_1 : i32, i32, i32, i32
  }
  func.func @transform_2(%arg0: i32) -> (i32, i32, i32, i32) {
    %c0_i32 = arith.constant 0 : i32
    %c0_i32_0 = arith.constant 0 : i32
    %c0_i32_1 = arith.constant 0 : i32
    %c0_i32_2 = arith.constant 0 : i32
    %c0_i32_3 = arith.constant 0 : i32
    return %c0_i32, %c0_i32_0, %c0_i32_1, %c0_i32_2 : i32, i32, i32, i32
  }
  func.func @transform_3(%arg0: i32) -> (i32, i32) {
    %c0_i32 = arith.constant 0 : i32
    %c0_i32_0 = arith.constant 0 : i32
    %c0_i32_1 = arith.constant 0 : i32
    return %c0_i32, %c0_i32_0 : i32, i32
  }
  func.func @transform_4(%arg0: i32) -> (i32, i32, i32, i32) {
    %c0_i32 = arith.constant 0 : i32
    %c0_i32_0 = arith.constant 0 : i32
    %c0_i32_1 = arith.constant 0 : i32
    %c0_i32_2 = arith.constant 0 : i32
    return %arg0, %c0_i32, %c0_i32_0, %c0_i32_1 : i32, i32, i32, i32
  }
}

module attributes {stable_mosaic.version = 11 : i64} {
  func.func @_fusion_kernel(%arg0: i32, %arg1: memref<1x8x8x16xf32, #tpu.memory_space<vmem>>, %arg2: memref<1x16x16x16xf32, #tpu.memory_space<vmem>>, %arg3: memref<3x3x16x16xbf16, #tpu.memory_space<vmem>>, %arg4: memref<3x3x16x16xbf16, #tpu.memory_space<vmem>>, %arg5: memref<1x16xf32, #tpu.memory_space<vmem>>, %arg6: memref<16x5xf32, #tpu.memory_space<vmem>>, %arg7: memref<1x5xf32, #tpu.memory_space<vmem>>, %arg8: memref<1x16x16x16xf32, #tpu.memory_space<vmem>>, %arg9: memref<1x16x16x5xf32, #tpu.memory_space<vmem>>, %arg10: memref<18x18x16xf32, #tpu.memory_space<vmem>>, %arg11: memref<18x18x16xf32, #tpu.memory_space<vmem>>) attributes {dimension_semantics = [#tpu.dimension_semantics<parallel>], iteration_bounds = array<i64: 2>, scalar_prefetch = 0 : i64, scratch_operands = 2 : i64, tpu.core_type = #tpu.core_type<tc>, window_params = [{transform_indices = @transform_0, window_bounds = array<i64: 1, 8, 8, 16>}, {transform_indices = @transform_1, window_bounds = array<i64: 1, 16, 16, 16>}, {pipeline_mode = #tpu.pipeline_mode<synchronous>, transform_indices = @transform_2, window_bounds = array<i64: 3, 3, 16, 16>}, {pipeline_mode = #tpu.pipeline_mode<synchronous>, transform_indices = @transform_3, window_bounds = array<i64: 3, 3, 16, 16>}, {pipeline_mode = #tpu.pipeline_mode<synchronous>, transform_indices = @transform_4, window_bounds = array<i64: 1, 16>}, {pipeline_mode = #tpu.pipeline_mode<synchronous>, transform_indices = @transform_5, window_bounds = array<i64: 16, 5>}, {pipeline_mode = #tpu.pipeline_mode<synchronous>, transform_indices = @transform_6, window_bounds = array<i64: 1, 5>}, {transform_indices = @transform_7, window_bounds = array<i64: 1, 16, 16, 16>}, {transform_indices = @transform_8, window_bounds = array<i64: 1, 16, 16, 5>}]} {
    %c0 = arith.constant 0 : index
    %c0_0 = arith.constant 0 : index
    %c0_1 = arith.constant 0 : index
    %c0_2 = arith.constant 0 : index
    %0 = vector.load %arg1[%c0, %c0_0, %c0_1, %c0_2] : memref<1x8x8x16xf32, #tpu.memory_space<vmem>>, vector<1x8x8x16xf32>
    %1 = vector.shape_cast %0 : vector<1x8x8x16xf32> to vector<8x8x16xf32>
    %2 = vector.extract_strided_slice %1 {offsets = [0, 0, 0], sizes = [1, 8, 16], strides = [1, 1, 1]} : vector<8x8x16xf32> to vector<1x8x16xf32>
    %3 = vector.extract_strided_slice %1 {offsets = [0, 0, 0], sizes = [1, 8, 16], strides = [1, 1, 1]} : vector<8x8x16xf32> to vector<1x8x16xf32>
    %4 = vector.extract_strided_slice %1 {offsets = [1, 0, 0], sizes = [1, 8, 16], strides = [1, 1, 1]} : vector<8x8x16xf32> to vector<1x8x16xf32>
    %cst = arith.constant 0.533333302 : f32
    %5 = vector.broadcast %cst : f32 to vector<1x8x16xf32>
    %6 = arith.mulf %5, %3 : vector<1x8x16xf32>
    %cst_3 = arith.constant 0.466666669 : f32
    %7 = vector.broadcast %cst_3 : f32 to vector<1x8x16xf32>
    %8 = arith.mulf %7, %4 : vector<1x8x16xf32>
    %9 = arith.addf %6, %8 : vector<1x8x16xf32>
    %10 = vector.extract_strided_slice %1 {offsets = [0, 0, 0], sizes = [1, 8, 16], strides = [1, 1, 1]} : vector<8x8x16xf32> to vector<1x8x16xf32>
    %11 = vector.extract_strided_slice %1 {offsets = [1, 0, 0], sizes = [1, 8, 16], strides = [1, 1, 1]} : vector<8x8x16xf32> to vector<1x8x16xf32>
    %cst_4 = arith.constant 0.0666666627 : f32
    %12 = vector.broadcast %cst_4 : f32 to vector<1x8x16xf32>
    %13 = arith.mulf %12, %10 : vector<1x8x16xf32>
    %cst_5 = arith.constant 0.933333337 : f32
    %14 = vector.broadcast %cst_5 : f32 to vector<1x8x16xf32>
    %15 = arith.mulf %14, %11 : vector<1x8x16xf32>
    %16 = arith.addf %13, %15 : vector<1x8x16xf32>
    %17 = vector.extract_strided_slice %1 {offsets = [1, 0, 0], sizes = [1, 8, 16], strides = [1, 1, 1]} : vector<8x8x16xf32> to vector<1x8x16xf32>
    %18 = vector.extract_strided_slice %1 {offsets = [2, 0, 0], sizes = [1, 8, 16], strides = [1, 1, 1]} : vector<8x8x16xf32> to vector<1x8x16xf32>
    %cst_6 = arith.constant 6.000000e-01 : f32
    %19 = vector.broadcast %cst_6 : f32 to vector<1x8x16xf32>
    %20 = arith.mulf %19, %17 : vector<1x8x16xf32>
    %cst_7 = arith.constant 4.000000e-01 : f32
    %21 = vector.broadcast %cst_7 : f32 to vector<1x8x16xf32>
    %22 = arith.mulf %21, %18 : vector<1x8x16xf32>
    %23 = arith.addf %20, %22 : vector<1x8x16xf32>
    %24 = vector.extract_strided_slice %1 {offsets = [1, 0, 0], sizes = [1, 8, 16], strides = [1, 1, 1]} : vector<8x8x16xf32> to vector<1x8x16xf32>
    %25 = vector.extract_strided_slice %1 {offsets = [2, 0, 0], sizes = [1, 8, 16], strides = [1, 1, 1]} : vector<8x8x16xf32> to vector<1x8x16xf32>
    %cst_8 = arith.constant 0.133333325 : f32
    %26 = vector.broadcast %cst_8 : f32 to vector<1x8x16xf32>
    %27 = arith.mulf %26, %24 : vector<1x8x16xf32>
    %cst_9 = arith.constant 0.866666674 : f32
    %28 = vector.broadcast %cst_9 : f32 to vector<1x8x16xf32>
    %29 = arith.mulf %28, %25 : vector<1x8x16xf32>
    %30 = arith.addf %27, %29 : vector<1x8x16xf32>
    %31 = vector.extract_strided_slice %1 {offsets = [2, 0, 0], sizes = [1, 8, 16], strides = [1, 1, 1]} : vector<8x8x16xf32> to vector<1x8x16xf32>
    %32 = vector.extract_strided_slice %1 {offsets = [3, 0, 0], sizes = [1, 8, 16], strides = [1, 1, 1]} : vector<8x8x16xf32> to vector<1x8x16xf32>
    %cst_10 = arith.constant 0.666666627 : f32
    %33 = vector.broadcast %cst_10 : f32 to vector<1x8x16xf32>
    %34 = arith.mulf %33, %31 : vector<1x8x16xf32>
    %cst_11 = arith.constant 0.333333343 : f32
    %35 = vector.broadcast %cst_11 : f32 to vector<1x8x16xf32>
    %36 = arith.mulf %35, %32 : vector<1x8x16xf32>
    %37 = arith.addf %34, %36 : vector<1x8x16xf32>
    %38 = vector.extract_strided_slice %1 {offsets = [2, 0, 0], sizes = [1, 8, 16], strides = [1, 1, 1]} : vector<8x8x16xf32> to vector<1x8x16xf32>
    %39 = vector.extract_strided_slice %1 {offsets = [3, 0, 0], sizes = [1, 8, 16], strides = [1, 1, 1]} : vector<8x8x16xf32> to vector<1x8x16xf32>
    %cst_12 = arith.constant 0.199999988 : f32
    %40 = vector.broadcast %cst_12 : f32 to vector<1x8x16xf32>
    %41 = arith.mulf %40, %38 : vector<1x8x16xf32>
    %cst_13 = arith.constant 8.000000e-01 : f32
    %42 = vector.broadcast %cst_13 : f32 to vector<1x8x16xf32>
    %43 = arith.mulf %42, %39 : vector<1x8x16xf32>
    %44 = arith.addf %41, %43 : vector<1x8x16xf32>
    %45 = vector.extract_strided_slice %1 {offsets = [3, 0, 0], sizes = [1, 8, 16], strides = [1, 1, 1]} : vector<8x8x16xf32> to vector<1x8x16xf32>
    %46 = vector.extract_strided_slice %1 {offsets = [4, 0, 0], sizes = [1, 8, 16], strides = [1, 1, 1]} : vector<8x8x16xf32> to vector<1x8x16xf32>
    %cst_14 = arith.constant 0.733333349 : f32
    %47 = vector.broadcast %cst_14 : f32 to vector<1x8x16xf32>
    %48 = arith.mulf %47, %45 : vector<1x8x16xf32>
    %cst_15 = arith.constant 0.266666681 : f32
    %49 = vector.broadcast %cst_15 : f32 to vector<1x8x16xf32>
    %50 = arith.mulf %49, %46 : vector<1x8x16xf32>
    %51 = arith.addf %48, %50 : vector<1x8x16xf32>
    %52 = vector.extract_strided_slice %1 {offsets = [3, 0, 0], sizes = [1, 8, 16], strides = [1, 1, 1]} : vector<8x8x16xf32> to vector<1x8x16xf32>
    %53 = vector.extract_strided_slice %1 {offsets = [4, 0, 0], sizes = [1, 8, 16], strides = [1, 1, 1]} : vector<8x8x16xf32> to vector<1x8x16xf32>
    %cst_16 = arith.constant 0.266666651 : f32
    %54 = vector.broadcast %cst_16 : f32 to vector<1x8x16xf32>
    %55 = arith.mulf %54, %52 : vector<1x8x16xf32>
    %cst_17 = arith.constant 0.733333349 : f32
    %56 = vector.broadcast %cst_17 : f32 to vector<1x8x16xf32>
    %57 = arith.mulf %56, %53 : vector<1x8x16xf32>
    %58 = arith.addf %55, %57 : vector<1x8x16xf32>
    %59 = vector.extract_strided_slice %1 {offsets = [4, 0, 0], sizes = [1, 8, 16], strides = [1, 1, 1]} : vector<8x8x16xf32> to vector<1x8x16xf32>
    %60 = vector.extract_strided_slice %1 {offsets = [5, 0, 0], sizes = [1, 8, 16], strides = [1, 1, 1]} : vector<8x8x16xf32> to vector<1x8x16xf32>
    %cst_18 = arith.constant 8.000000e-01 : f32
    %61 = vector.broadcast %cst_18 : f32 to vector<1x8x16xf32>
    %62 = arith.mulf %61, %59 : vector<1x8x16xf32>
    %cst_19 = arith.constant 2.000000e-01 : f32
    %63 = vector.broadcast %cst_19 : f32 to vector<1x8x16xf32>
    %64 = arith.mulf %63, %60 : vector<1x8x16xf32>
    %65 = arith.addf %62, %64 : vector<1x8x16xf32>
    %66 = vector.extract_strided_slice %1 {offsets = [4, 0, 0], sizes = [1, 8, 16], strides = [1, 1, 1]} : vector<8x8x16xf32> to vector<1x8x16xf32>
    %67 = vector.extract_strided_slice %1 {offsets = [5, 0, 0], sizes = [1, 8, 16], strides = [1, 1, 1]} : vector<8x8x16xf32> to vector<1x8x16xf32>
    %cst_20 = arith.constant 0.333333313 : f32
    %68 = vector.broadcast %cst_20 : f32 to vector<1x8x16xf32>
    %69 = arith.mulf %68, %66 : vector<1x8x16xf32>
    %cst_21 = arith.constant 0.666666686 : f32
    %70 = vector.broadcast %cst_21 : f32 to vector<1x8x16xf32>
    %71 = arith.mulf %70, %67 : vector<1x8x16xf32>
    %72 = arith.addf %69, %71 : vector<1x8x16xf32>
    %73 = vector.extract_strided_slice %1 {offsets = [5, 0, 0], sizes = [1, 8, 16], strides = [1, 1, 1]} : vector<8x8x16xf32> to vector<1x8x16xf32>
    %74 = vector.extract_strided_slice %1 {offsets = [6, 0, 0], sizes = [1, 8, 16], strides = [1, 1, 1]} : vector<8x8x16xf32> to vector<1x8x16xf32>
    %cst_22 = arith.constant 0.866666674 : f32
    %75 = vector.broadcast %cst_22 : f32 to vector<1x8x16xf32>
    %76 = arith.mulf %75, %73 : vector<1x8x16xf32>
    %cst_23 = arith.constant 0.13333334 : f32
    %77 = vector.broadcast %cst_23 : f32 to vector<1x8x16xf32>
    %78 = arith.mulf %77, %74 : vector<1x8x16xf32>
    %79 = arith.addf %76, %78 : vector<1x8x16xf32>
    %80 = vector.extract_strided_slice %1 {offsets = [5, 0, 0], sizes = [1, 8, 16], strides = [1, 1, 1]} : vector<8x8x16xf32> to vector<1x8x16xf32>
    %81 = vector.extract_strided_slice %1 {offsets = [6, 0, 0], sizes = [1, 8, 16], strides = [1, 1, 1]} : vector<8x8x16xf32> to vector<1x8x16xf32>
    %cst_24 = arith.constant 0.399999976 : f32
    %82 = vector.broadcast %cst_24 : f32 to vector<1x8x16xf32>
    %83 = arith.mulf %82, %80 : vector<1x8x16xf32>
    %cst_25 = arith.constant 6.000000e-01 : f32
    %84 = vector.broadcast %cst_25 : f32 to vector<1x8x16xf32>
    %85 = arith.mulf %84, %81 : vector<1x8x16xf32>
    %86 = arith.addf %83, %85 : vector<1x8x16xf32>
    %87 = vector.extract_strided_slice %1 {offsets = [6, 0, 0], sizes = [1, 8, 16], strides = [1, 1, 1]} : vector<8x8x16xf32> to vector<1x8x16xf32>
    %88 = vector.extract_strided_slice %1 {offsets = [7, 0, 0], sizes = [1, 8, 16], strides = [1, 1, 1]} : vector<8x8x16xf32> to vector<1x8x16xf32>
    %cst_26 = arith.constant 0.933333337 : f32
    %89 = vector.broadcast %cst_26 : f32 to vector<1x8x16xf32>
    %90 = arith.mulf %89, %87 : vector<1x8x16xf32>
    %cst_27 = arith.constant 0.0666666701 : f32
    %91 = vector.broadcast %cst_27 : f32 to vector<1x8x16xf32>
    %92 = arith.mulf %91, %88 : vector<1x8x16xf32>
    %93 = arith.addf %90, %92 : vector<1x8x16xf32>
    %94 = vector.extract_strided_slice %1 {offsets = [6, 0, 0], sizes = [1, 8, 16], strides = [1, 1, 1]} : vector<8x8x16xf32> to vector<1x8x16xf32>
    %95 = vector.extract_strided_slice %1 {offsets = [7, 0, 0], sizes = [1, 8, 16], strides = [1, 1, 1]} : vector<8x8x16xf32> to vector<1x8x16xf32>
    %cst_28 = arith.constant 0.466666639 : f32
    %96 = vector.broadcast %cst_28 : f32 to vector<1x8x16xf32>
    %97 = arith.mulf %96, %94 : vector<1x8x16xf32>
    %cst_29 = arith.constant 0.533333361 : f32
    %98 = vector.broadcast %cst_29 : f32 to vector<1x8x16xf32>
    %99 = arith.mulf %98, %95 : vector<1x8x16xf32>
    %100 = arith.addf %97, %99 : vector<1x8x16xf32>
    %101 = vector.extract_strided_slice %1 {offsets = [7, 0, 0], sizes = [1, 8, 16], strides = [1, 1, 1]} : vector<8x8x16xf32> to vector<1x8x16xf32>
    %102 = tpu.concatenate %2, %9, %16, %23, %30, %37, %44, %51, %58, %65, %72, %79, %86, %93, %100, %101 in 0 : vector<1x8x16xf32>, vector<1x8x16xf32>, vector<1x8x16xf32>, vector<1x8x16xf32>, vector<1x8x16xf32>, vector<1x8x16xf32>, vector<1x8x16xf32>, vector<1x8x16xf32>, vector<1x8x16xf32>, vector<1x8x16xf32>, vector<1x8x16xf32>, vector<1x8x16xf32>, vector<1x8x16xf32>, vector<1x8x16xf32>, vector<1x8x16xf32>, vector<1x8x16xf32> -> vector<16x8x16xf32>
    %103 = vector.extract_strided_slice %102 {offsets = [0, 0, 0], sizes = [16, 1, 16], strides = [1, 1, 1]} : vector<16x8x16xf32> to vector<16x1x16xf32>
    %104 = vector.extract_strided_slice %102 {offsets = [0, 0, 0], sizes = [16, 1, 16], strides = [1, 1, 1]} : vector<16x8x16xf32> to vector<16x1x16xf32>
    %105 = vector.extract_strided_slice %102 {offsets = [0, 1, 0], sizes = [16, 1, 16], strides = [1, 1, 1]} : vector<16x8x16xf32> to vector<16x1x16xf32>
    %cst_30 = arith.constant 0.533333302 : f32
    %106 = vector.broadcast %cst_30 : f32 to vector<16x1x16xf32>
    %107 = arith.mulf %106, %104 : vector<16x1x16xf32>
    %cst_31 = arith.constant 0.466666669 : f32
    %108 = vector.broadcast %cst_31 : f32 to vector<16x1x16xf32>
    %109 = arith.mulf %108, %105 : vector<16x1x16xf32>
    %110 = arith.addf %107, %109 : vector<16x1x16xf32>
    %111 = vector.extract_strided_slice %102 {offsets = [0, 0, 0], sizes = [16, 1, 16], strides = [1, 1, 1]} : vector<16x8x16xf32> to vector<16x1x16xf32>
    %112 = vector.extract_strided_slice %102 {offsets = [0, 1, 0], sizes = [16, 1, 16], strides = [1, 1, 1]} : vector<16x8x16xf32> to vector<16x1x16xf32>
    %cst_32 = arith.constant 0.0666666627 : f32
    %113 = vector.broadcast %cst_32 : f32 to vector<16x1x16xf32>
    %114 = arith.mulf %113, %111 : vector<16x1x16xf32>
    %cst_33 = arith.constant 0.933333337 : f32
    %115 = vector.broadcast %cst_33 : f32 to vector<16x1x16xf32>
    %116 = arith.mulf %115, %112 : vector<16x1x16xf32>
    %117 = arith.addf %114, %116 : vector<16x1x16xf32>
    %118 = vector.extract_strided_slice %102 {offsets = [0, 1, 0], sizes = [16, 1, 16], strides = [1, 1, 1]} : vector<16x8x16xf32> to vector<16x1x16xf32>
    %119 = vector.extract_strided_slice %102 {offsets = [0, 2, 0], sizes = [16, 1, 16], strides = [1, 1, 1]} : vector<16x8x16xf32> to vector<16x1x16xf32>
    %cst_34 = arith.constant 6.000000e-01 : f32
    %120 = vector.broadcast %cst_34 : f32 to vector<16x1x16xf32>
    %121 = arith.mulf %120, %118 : vector<16x1x16xf32>
    %cst_35 = arith.constant 4.000000e-01 : f32
    %122 = vector.broadcast %cst_35 : f32 to vector<16x1x16xf32>
    %123 = arith.mulf %122, %119 : vector<16x1x16xf32>
    %124 = arith.addf %121, %123 : vector<16x1x16xf32>
    %125 = vector.extract_strided_slice %102 {offsets = [0, 1, 0], sizes = [16, 1, 16], strides = [1, 1, 1]} : vector<16x8x16xf32> to vector<16x1x16xf32>
    %126 = vector.extract_strided_slice %102 {offsets = [0, 2, 0], sizes = [16, 1, 16], strides = [1, 1, 1]} : vector<16x8x16xf32> to vector<16x1x16xf32>
    %cst_36 = arith.constant 0.133333325 : f32
    %127 = vector.broadcast %cst_36 : f32 to vector<16x1x16xf32>
    %128 = arith.mulf %127, %125 : vector<16x1x16xf32>
    %cst_37 = arith.constant 0.866666674 : f32
    %129 = vector.broadcast %cst_37 : f32 to vector<16x1x16xf32>
    %130 = arith.mulf %129, %126 : vector<16x1x16xf32>
    %131 = arith.addf %128, %130 : vector<16x1x16xf32>
    %132 = vector.extract_strided_slice %102 {offsets = [0, 2, 0], sizes = [16, 1, 16], strides = [1, 1, 1]} : vector<16x8x16xf32> to vector<16x1x16xf32>
    %133 = vector.extract_strided_slice %102 {offsets = [0, 3, 0], sizes = [16, 1, 16], strides = [1, 1, 1]} : vector<16x8x16xf32> to vector<16x1x16xf32>
    %cst_38 = arith.constant 0.666666627 : f32
    %134 = vector.broadcast %cst_38 : f32 to vector<16x1x16xf32>
    %135 = arith.mulf %134, %132 : vector<16x1x16xf32>
    %cst_39 = arith.constant 0.333333343 : f32
    %136 = vector.broadcast %cst_39 : f32 to vector<16x1x16xf32>
    %137 = arith.mulf %136, %133 : vector<16x1x16xf32>
    %138 = arith.addf %135, %137 : vector<16x1x16xf32>
    %139 = vector.extract_strided_slice %102 {offsets = [0, 2, 0], sizes = [16, 1, 16], strides = [1, 1, 1]} : vector<16x8x16xf32> to vector<16x1x16xf32>
    %140 = vector.extract_strided_slice %102 {offsets = [0, 3, 0], sizes = [16, 1, 16], strides = [1, 1, 1]} : vector<16x8x16xf32> to vector<16x1x16xf32>
    %cst_40 = arith.constant 0.199999988 : f32
    %141 = vector.broadcast %cst_40 : f32 to vector<16x1x16xf32>
    %142 = arith.mulf %141, %139 : vector<16x1x16xf32>
    %cst_41 = arith.constant 8.000000e-01 : f32
    %143 = vector.broadcast %cst_41 : f32 to vector<16x1x16xf32>
    %144 = arith.mulf %143, %140 : vector<16x1x16xf32>
    %145 = arith.addf %142, %144 : vector<16x1x16xf32>
    %146 = vector.extract_strided_slice %102 {offsets = [0, 3, 0], sizes = [16, 1, 16], strides = [1, 1, 1]} : vector<16x8x16xf32> to vector<16x1x16xf32>
    %147 = vector.extract_strided_slice %102 {offsets = [0, 4, 0], sizes = [16, 1, 16], strides = [1, 1, 1]} : vector<16x8x16xf32> to vector<16x1x16xf32>
    %cst_42 = arith.constant 0.733333349 : f32
    %148 = vector.broadcast %cst_42 : f32 to vector<16x1x16xf32>
    %149 = arith.mulf %148, %146 : vector<16x1x16xf32>
    %cst_43 = arith.constant 0.266666681 : f32
    %150 = vector.broadcast %cst_43 : f32 to vector<16x1x16xf32>
    %151 = arith.mulf %150, %147 : vector<16x1x16xf32>
    %152 = arith.addf %149, %151 : vector<16x1x16xf32>
    %153 = vector.extract_strided_slice %102 {offsets = [0, 3, 0], sizes = [16, 1, 16], strides = [1, 1, 1]} : vector<16x8x16xf32> to vector<16x1x16xf32>
    %154 = vector.extract_strided_slice %102 {offsets = [0, 4, 0], sizes = [16, 1, 16], strides = [1, 1, 1]} : vector<16x8x16xf32> to vector<16x1x16xf32>
    %cst_44 = arith.constant 0.266666651 : f32
    %155 = vector.broadcast %cst_44 : f32 to vector<16x1x16xf32>
    %156 = arith.mulf %155, %153 : vector<16x1x16xf32>
    %cst_45 = arith.constant 0.733333349 : f32
    %157 = vector.broadcast %cst_45 : f32 to vector<16x1x16xf32>
    %158 = arith.mulf %157, %154 : vector<16x1x16xf32>
    %159 = arith.addf %156, %158 : vector<16x1x16xf32>
    %160 = vector.extract_strided_slice %102 {offsets = [0, 4, 0], sizes = [16, 1, 16], strides = [1, 1, 1]} : vector<16x8x16xf32> to vector<16x1x16xf32>
    %161 = vector.extract_strided_slice %102 {offsets = [0, 5, 0], sizes = [16, 1, 16], strides = [1, 1, 1]} : vector<16x8x16xf32> to vector<16x1x16xf32>
    %cst_46 = arith.constant 8.000000e-01 : f32
    %162 = vector.broadcast %cst_46 : f32 to vector<16x1x16xf32>
    %163 = arith.mulf %162, %160 : vector<16x1x16xf32>
    %cst_47 = arith.constant 2.000000e-01 : f32
    %164 = vector.broadcast %cst_47 : f32 to vector<16x1x16xf32>
    %165 = arith.mulf %164, %161 : vector<16x1x16xf32>
    %166 = arith.addf %163, %165 : vector<16x1x16xf32>
    %167 = vector.extract_strided_slice %102 {offsets = [0, 4, 0], sizes = [16, 1, 16], strides = [1, 1, 1]} : vector<16x8x16xf32> to vector<16x1x16xf32>
    %168 = vector.extract_strided_slice %102 {offsets = [0, 5, 0], sizes = [16, 1, 16], strides = [1, 1, 1]} : vector<16x8x16xf32> to vector<16x1x16xf32>
    %cst_48 = arith.constant 0.333333313 : f32
    %169 = vector.broadcast %cst_48 : f32 to vector<16x1x16xf32>
    %170 = arith.mulf %169, %167 : vector<16x1x16xf32>
    %cst_49 = arith.constant 0.666666686 : f32
    %171 = vector.broadcast %cst_49 : f32 to vector<16x1x16xf32>
    %172 = arith.mulf %171, %168 : vector<16x1x16xf32>
    %173 = arith.addf %170, %172 : vector<16x1x16xf32>
    %174 = vector.extract_strided_slice %102 {offsets = [0, 5, 0], sizes = [16, 1, 16], strides = [1, 1, 1]} : vector<16x8x16xf32> to vector<16x1x16xf32>
    %175 = vector.extract_strided_slice %102 {offsets = [0, 6, 0], sizes = [16, 1, 16], strides = [1, 1, 1]} : vector<16x8x16xf32> to vector<16x1x16xf32>
    %cst_50 = arith.constant 0.866666674 : f32
    %176 = vector.broadcast %cst_50 : f32 to vector<16x1x16xf32>
    %177 = arith.mulf %176, %174 : vector<16x1x16xf32>
    %cst_51 = arith.constant 0.13333334 : f32
    %178 = vector.broadcast %cst_51 : f32 to vector<16x1x16xf32>
    %179 = arith.mulf %178, %175 : vector<16x1x16xf32>
    %180 = arith.addf %177, %179 : vector<16x1x16xf32>
    %181 = vector.extract_strided_slice %102 {offsets = [0, 5, 0], sizes = [16, 1, 16], strides = [1, 1, 1]} : vector<16x8x16xf32> to vector<16x1x16xf32>
    %182 = vector.extract_strided_slice %102 {offsets = [0, 6, 0], sizes = [16, 1, 16], strides = [1, 1, 1]} : vector<16x8x16xf32> to vector<16x1x16xf32>
    %cst_52 = arith.constant 0.399999976 : f32
    %183 = vector.broadcast %cst_52 : f32 to vector<16x1x16xf32>
    %184 = arith.mulf %183, %181 : vector<16x1x16xf32>
    %cst_53 = arith.constant 6.000000e-01 : f32
    %185 = vector.broadcast %cst_53 : f32 to vector<16x1x16xf32>
    %186 = arith.mulf %185, %182 : vector<16x1x16xf32>
    %187 = arith.addf %184, %186 : vector<16x1x16xf32>
    %188 = vector.extract_strided_slice %102 {offsets = [0, 6, 0], sizes = [16, 1, 16], strides = [1, 1, 1]} : vector<16x8x16xf32> to vector<16x1x16xf32>
    %189 = vector.extract_strided_slice %102 {offsets = [0, 7, 0], sizes = [16, 1, 16], strides = [1, 1, 1]} : vector<16x8x16xf32> to vector<16x1x16xf32>
    %cst_54 = arith.constant 0.933333337 : f32
    %190 = vector.broadcast %cst_54 : f32 to vector<16x1x16xf32>
    %191 = arith.mulf %190, %188 : vector<16x1x16xf32>
    %cst_55 = arith.constant 0.0666666701 : f32
    %192 = vector.broadcast %cst_55 : f32 to vector<16x1x16xf32>
    %193 = arith.mulf %192, %189 : vector<16x1x16xf32>
    %194 = arith.addf %191, %193 : vector<16x1x16xf32>
    %195 = vector.extract_strided_slice %102 {offsets = [0, 6, 0], sizes = [16, 1, 16], strides = [1, 1, 1]} : vector<16x8x16xf32> to vector<16x1x16xf32>
    %196 = vector.extract_strided_slice %102 {offsets = [0, 7, 0], sizes = [16, 1, 16], strides = [1, 1, 1]} : vector<16x8x16xf32> to vector<16x1x16xf32>
    %cst_56 = arith.constant 0.466666639 : f32
    %197 = vector.broadcast %cst_56 : f32 to vector<16x1x16xf32>
    %198 = arith.mulf %197, %195 : vector<16x1x16xf32>
    %cst_57 = arith.constant 0.533333361 : f32
    %199 = vector.broadcast %cst_57 : f32 to vector<16x1x16xf32>
    %200 = arith.mulf %199, %196 : vector<16x1x16xf32>
    %201 = arith.addf %198, %200 : vector<16x1x16xf32>
    %202 = vector.extract_strided_slice %102 {offsets = [0, 7, 0], sizes = [16, 1, 16], strides = [1, 1, 1]} : vector<16x8x16xf32> to vector<16x1x16xf32>
    %203 = tpu.concatenate %103, %110, %117, %124, %131, %138, %145, %152, %159, %166, %173, %180, %187, %194, %201, %202 in 1 : vector<16x1x16xf32>, vector<16x1x16xf32>, vector<16x1x16xf32>, vector<16x1x16xf32>, vector<16x1x16xf32>, vector<16x1x16xf32>, vector<16x1x16xf32>, vector<16x1x16xf32>, vector<16x1x16xf32>, vector<16x1x16xf32>, vector<16x1x16xf32>, vector<16x1x16xf32>, vector<16x1x16xf32>, vector<16x1x16xf32>, vector<16x1x16xf32>, vector<16x1x16xf32> -> vector<16x16x16xf32>
    %cst_58 = arith.constant 0.000000e+00 : f32
    %204 = vector.broadcast %cst_58 : f32 to vector<18x18x16xf32>
    %c0_59 = arith.constant 0 : index
    %c0_60 = arith.constant 0 : index
    %c0_61 = arith.constant 0 : index
    %205 = vector.load %arg10[%c0_59, %c0_60, %c0_61] : memref<18x18x16xf32, #tpu.memory_space<vmem>>, vector<18x18x16xf32>
    tpu.vector_store %arg10[%c0_59, %c0_60, %c0_61], %204 {strides = array<i32>} : memref<18x18x16xf32, #tpu.memory_space<vmem>>, vector<18x18x16xf32>,
    %c1 = arith.constant 1 : index
    %c1_62 = arith.constant 1 : index
    %c0_63 = arith.constant 0 : index
    %206 = vector.load %arg10[%c1, %c1_62, %c0_63] : memref<18x18x16xf32, #tpu.memory_space<vmem>>, vector<16x16x16xf32>
    tpu.vector_store %arg10[%c1, %c1_62, %c0_63], %203 {strides = array<i32>} : memref<18x18x16xf32, #tpu.memory_space<vmem>>, vector<16x16x16xf32>,
    %c0_64 = arith.constant 0 : index
    %c0_65 = arith.constant 0 : index
    %c0_66 = arith.constant 0 : index
    %c0_67 = arith.constant 0 : index
    %207 = vector.load %arg2[%c0_64, %c0_65, %c0_66, %c0_67] : memref<1x16x16x16xf32, #tpu.memory_space<vmem>>, vector<1x16x16x16xf32>
    %208 = vector.shape_cast %207 : vector<1x16x16x16xf32> to vector<16x16x16xf32>
    %cst_68 = arith.constant 0.000000e+00 : f32
    %209 = vector.broadcast %cst_68 : f32 to vector<18x18x16xf32>
    %c0_69 = arith.constant 0 : index
    %c0_70 = arith.constant 0 : index
    %c0_71 = arith.constant 0 : index
    %210 = vector.load %arg11[%c0_69, %c0_70, %c0_71] : memref<18x18x16xf32, #tpu.memory_space<vmem>>, vector<18x18x16xf32>
    tpu.vector_store %arg11[%c0_69, %c0_70, %c0_71], %209 {strides = array<i32>} : memref<18x18x16xf32, #tpu.memory_space<vmem>>, vector<18x18x16xf32>,
    %c1_72 = arith.constant 1 : index
    %c1_73 = arith.constant 1 : index
    %c0_74 = arith.constant 0 : index
    %211 = vector.load %arg11[%c1_72, %c1_73, %c0_74] : memref<18x18x16xf32, #tpu.memory_space<vmem>>, vector<16x16x16xf32>
    tpu.vector_store %arg11[%c1_72, %c1_73, %c0_74], %208 {strides = array<i32>} : memref<18x18x16xf32, #tpu.memory_space<vmem>>, vector<16x16x16xf32>,
    %cst_75 = arith.constant 0.000000e+00 : f32
    %212 = vector.broadcast %cst_75 : f32 to vector<256x16xf32>
    %c0_76 = arith.constant 0 : index
    %c0_77 = arith.constant 0 : index
    %c0_78 = arith.constant 0 : index
    %c0_79 = arith.constant 0 : index
    %213 = vector.load %arg3[%c0_76, %c0_77, %c0_78, %c0_79] : memref<3x3x16x16xbf16, #tpu.memory_space<vmem>>, vector<3x3x16x16xbf16>
    %c0_80 = arith.constant 0 : index
    %c0_81 = arith.constant 0 : index
    %c0_82 = arith.constant 0 : index
    %214 = vector.load %arg10[%c0_80, %c0_81, %c0_82] : memref<18x18x16xf32, #tpu.memory_space<vmem>>, vector<16x16x16xf32>
    %215 = vector.shape_cast %214 : vector<16x16x16xf32> to vector<256x16xf32>
    %216 = arith.truncf %215 : vector<256x16xf32> to vector<256x16xbf16>
    %217 = vector.extract_strided_slice %213 {offsets = [0, 0, 0, 0], sizes = [1, 1, 16, 16], strides = [1, 1, 1, 1]} : vector<3x3x16x16xbf16> to vector<1x1x16x16xbf16>
    %218 = vector.shape_cast %217 : vector<1x1x16x16xbf16> to vector<16x16xbf16>
    %cst_83 = arith.constant dense<0.000000e+00> : vector<256x16xf32>
    %219 = tpu.matmul %216, %218, %cst_83 {dimension_numbers = #tpu.dot_dimension_numbers<[1], [0], [0], [1], [0, 0, 1, 1], [], []>} : vector<256x16xbf16>, vector<16x16xbf16>, vector<256x16xf32> -> vector<256x16xf32>
    %220 = arith.addf %212, %219 : vector<256x16xf32>
    %c0_84 = arith.constant 0 : index
    %c1_85 = arith.constant 1 : index
    %c0_86 = arith.constant 0 : index
    %221 = vector.load %arg10[%c0_84, %c1_85, %c0_86] : memref<18x18x16xf32, #tpu.memory_space<vmem>>, vector<16x16x16xf32>
    %222 = vector.shape_cast %221 : vector<16x16x16xf32> to vector<256x16xf32>
    %223 = arith.truncf %222 : vector<256x16xf32> to vector<256x16xbf16>
    %224 = vector.extract_strided_slice %213 {offsets = [0, 1, 0, 0], sizes = [1, 1, 16, 16], strides = [1, 1, 1, 1]} : vector<3x3x16x16xbf16> to vector<1x1x16x16xbf16>
    %225 = vector.shape_cast %224 : vector<1x1x16x16xbf16> to vector<16x16xbf16>
    %cst_87 = arith.constant dense<0.000000e+00> : vector<256x16xf32>
    %226 = tpu.matmul %223, %225, %cst_87 {dimension_numbers = #tpu.dot_dimension_numbers<[1], [0], [0], [1], [0, 0, 1, 1], [], []>} : vector<256x16xbf16>, vector<16x16xbf16>, vector<256x16xf32> -> vector<256x16xf32>
    %227 = arith.addf %220, %226 : vector<256x16xf32>
    %c0_88 = arith.constant 0 : index
    %c2 = arith.constant 2 : index
    %c0_89 = arith.constant 0 : index
    %228 = vector.load %arg10[%c0_88, %c2, %c0_89] : memref<18x18x16xf32, #tpu.memory_space<vmem>>, vector<16x16x16xf32>
    %229 = vector.shape_cast %228 : vector<16x16x16xf32> to vector<256x16xf32>
    %230 = arith.truncf %229 : vector<256x16xf32> to vector<256x16xbf16>
    %231 = vector.extract_strided_slice %213 {offsets = [0, 2, 0, 0], sizes = [1, 1, 16, 16], strides = [1, 1, 1, 1]} : vector<3x3x16x16xbf16> to vector<1x1x16x16xbf16>
    %232 = vector.shape_cast %231 : vector<1x1x16x16xbf16> to vector<16x16xbf16>
    %cst_90 = arith.constant dense<0.000000e+00> : vector<256x16xf32>
    %233 = tpu.matmul %230, %232, %cst_90 {dimension_numbers = #tpu.dot_dimension_numbers<[1], [0], [0], [1], [0, 0, 1, 1], [], []>} : vector<256x16xbf16>, vector<16x16xbf16>, vector<256x16xf32> -> vector<256x16xf32>
    %234 = arith.addf %227, %233 : vector<256x16xf32>
    %c1_91 = arith.constant 1 : index
    %c0_92 = arith.constant 0 : index
    %c0_93 = arith.constant 0 : index
    %235 = vector.load %arg10[%c1_91, %c0_92, %c0_93] : memref<18x18x16xf32, #tpu.memory_space<vmem>>, vector<16x16x16xf32>
    %236 = vector.shape_cast %235 : vector<16x16x16xf32> to vector<256x16xf32>
    %237 = arith.truncf %236 : vector<256x16xf32> to vector<256x16xbf16>
    %238 = vector.extract_strided_slice %213 {offsets = [1, 0, 0, 0], sizes = [1, 1, 16, 16], strides = [1, 1, 1, 1]} : vector<3x3x16x16xbf16> to vector<1x1x16x16xbf16>
    %239 = vector.shape_cast %238 : vector<1x1x16x16xbf16> to vector<16x16xbf16>
    %cst_94 = arith.constant dense<0.000000e+00> : vector<256x16xf32>
    %240 = tpu.matmul %237, %239, %cst_94 {dimension_numbers = #tpu.dot_dimension_numbers<[1], [0], [0], [1], [0, 0, 1, 1], [], []>} : vector<256x16xbf16>, vector<16x16xbf16>, vector<256x16xf32> -> vector<256x16xf32>
    %241 = arith.addf %234, %240 : vector<256x16xf32>
    %c1_95 = arith.constant 1 : index
    %c1_96 = arith.constant 1 : index
    %c0_97 = arith.constant 0 : index
    %242 = vector.load %arg10[%c1_95, %c1_96, %c0_97] : memref<18x18x16xf32, #tpu.memory_space<vmem>>, vector<16x16x16xf32>
    %243 = vector.shape_cast %242 : vector<16x16x16xf32> to vector<256x16xf32>
    %244 = arith.truncf %243 : vector<256x16xf32> to vector<256x16xbf16>
    %245 = vector.extract_strided_slice %213 {offsets = [1, 1, 0, 0], sizes = [1, 1, 16, 16], strides = [1, 1, 1, 1]} : vector<3x3x16x16xbf16> to vector<1x1x16x16xbf16>
    %246 = vector.shape_cast %245 : vector<1x1x16x16xbf16> to vector<16x16xbf16>
    %cst_98 = arith.constant dense<0.000000e+00> : vector<256x16xf32>
    %247 = tpu.matmul %244, %246, %cst_98 {dimension_numbers = #tpu.dot_dimension_numbers<[1], [0], [0], [1], [0, 0, 1, 1], [], []>} : vector<256x16xbf16>, vector<16x16xbf16>, vector<256x16xf32> -> vector<256x16xf32>
    %248 = arith.addf %241, %247 : vector<256x16xf32>
    %c1_99 = arith.constant 1 : index
    %c2_100 = arith.constant 2 : index
    %c0_101 = arith.constant 0 : index
    %249 = vector.load %arg10[%c1_99, %c2_100, %c0_101] : memref<18x18x16xf32, #tpu.memory_space<vmem>>, vector<16x16x16xf32>
    %250 = vector.shape_cast %249 : vector<16x16x16xf32> to vector<256x16xf32>
    %251 = arith.truncf %250 : vector<256x16xf32> to vector<256x16xbf16>
    %252 = vector.extract_strided_slice %213 {offsets = [1, 2, 0, 0], sizes = [1, 1, 16, 16], strides = [1, 1, 1, 1]} : vector<3x3x16x16xbf16> to vector<1x1x16x16xbf16>
    %253 = vector.shape_cast %252 : vector<1x1x16x16xbf16> to vector<16x16xbf16>
    %cst_102 = arith.constant dense<0.000000e+00> : vector<256x16xf32>
    %254 = tpu.matmul %251, %253, %cst_102 {dimension_numbers = #tpu.dot_dimension_numbers<[1], [0], [0], [1], [0, 0, 1, 1], [], []>} : vector<256x16xbf16>, vector<16x16xbf16>, vector<256x16xf32> -> vector<256x16xf32>
    %255 = arith.addf %248, %254 : vector<256x16xf32>
    %c2_103 = arith.constant 2 : index
    %c0_104 = arith.constant 0 : index
    %c0_105 = arith.constant 0 : index
    %256 = vector.load %arg10[%c2_103, %c0_104, %c0_105] : memref<18x18x16xf32, #tpu.memory_space<vmem>>, vector<16x16x16xf32>
    %257 = vector.shape_cast %256 : vector<16x16x16xf32> to vector<256x16xf32>
    %258 = arith.truncf %257 : vector<256x16xf32> to vector<256x16xbf16>
    %259 = vector.extract_strided_slice %213 {offsets = [2, 0, 0, 0], sizes = [1, 1, 16, 16], strides = [1, 1, 1, 1]} : vector<3x3x16x16xbf16> to vector<1x1x16x16xbf16>
    %260 = vector.shape_cast %259 : vector<1x1x16x16xbf16> to vector<16x16xbf16>
    %cst_106 = arith.constant dense<0.000000e+00> : vector<256x16xf32>
    %261 = tpu.matmul %258, %260, %cst_106 {dimension_numbers = #tpu.dot_dimension_numbers<[1], [0], [0], [1], [0, 0, 1, 1], [], []>} : vector<256x16xbf16>, vector<16x16xbf16>, vector<256x16xf32> -> vector<256x16xf32>
    %262 = arith.addf %255, %261 : vector<256x16xf32>
    %c2_107 = arith.constant 2 : index
    %c1_108 = arith.constant 1 : index
    %c0_109 = arith.constant 0 : index
    %263 = vector.load %arg10[%c2_107, %c1_108, %c0_109] : memref<18x18x16xf32, #tpu.memory_space<vmem>>, vector<16x16x16xf32>
    %264 = vector.shape_cast %263 : vector<16x16x16xf32> to vector<256x16xf32>
    %265 = arith.truncf %264 : vector<256x16xf32> to vector<256x16xbf16>
    %266 = vector.extract_strided_slice %213 {offsets = [2, 1, 0, 0], sizes = [1, 1, 16, 16], strides = [1, 1, 1, 1]} : vector<3x3x16x16xbf16> to vector<1x1x16x16xbf16>
    %267 = vector.shape_cast %266 : vector<1x1x16x16xbf16> to vector<16x16xbf16>
    %cst_110 = arith.constant dense<0.000000e+00> : vector<256x16xf32>
    %268 = tpu.matmul %265, %267, %cst_110 {dimension_numbers = #tpu.dot_dimension_numbers<[1], [0], [0], [1], [0, 0, 1, 1], [], []>} : vector<256x16xbf16>, vector<16x16xbf16>, vector<256x16xf32> -> vector<256x16xf32>
    %269 = arith.addf %262, %268 : vector<256x16xf32>
    %c2_111 = arith.constant 2 : index
    %c2_112 = arith.constant 2 : index
    %c0_113 = arith.constant 0 : index
    %270 = vector.load %arg10[%c2_111, %c2_112, %c0_113] : memref<18x18x16xf32, #tpu.memory_space<vmem>>, vector<16x16x16xf32>
    %271 = vector.shape_cast %270 : vector<16x16x16xf32> to vector<256x16xf32>
    %272 = arith.truncf %271 : vector<256x16xf32> to vector<256x16xbf16>
    %273 = vector.extract_strided_slice %213 {offsets = [2, 2, 0, 0], sizes = [1, 1, 16, 16], strides = [1, 1, 1, 1]} : vector<3x3x16x16xbf16> to vector<1x1x16x16xbf16>
    %274 = vector.shape_cast %273 : vector<1x1x16x16xbf16> to vector<16x16xbf16>
    %cst_114 = arith.constant dense<0.000000e+00> : vector<256x16xf32>
    %275 = tpu.matmul %272, %274, %cst_114 {dimension_numbers = #tpu.dot_dimension_numbers<[1], [0], [0], [1], [0, 0, 1, 1], [], []>} : vector<256x16xbf16>, vector<16x16xbf16>, vector<256x16xf32> -> vector<256x16xf32>
    %276 = arith.addf %269, %275 : vector<256x16xf32>
    %c0_115 = arith.constant 0 : index
    %c0_116 = arith.constant 0 : index
    %c0_117 = arith.constant 0 : index
    %c0_118 = arith.constant 0 : index
    %277 = vector.load %arg4[%c0_115, %c0_116, %c0_117, %c0_118] : memref<3x3x16x16xbf16, #tpu.memory_space<vmem>>, vector<3x3x16x16xbf16>
    %c0_119 = arith.constant 0 : index
    %c0_120 = arith.constant 0 : index
    %c0_121 = arith.constant 0 : index
    %278 = vector.load %arg11[%c0_119, %c0_120, %c0_121] : memref<18x18x16xf32, #tpu.memory_space<vmem>>, vector<16x16x16xf32>
    %279 = vector.shape_cast %278 : vector<16x16x16xf32> to vector<256x16xf32>
    %280 = arith.truncf %279 : vector<256x16xf32> to vector<256x16xbf16>
    %281 = vector.extract_strided_slice %277 {offsets = [0, 0, 0, 0], sizes = [1, 1, 16, 16], strides = [1, 1, 1, 1]} : vector<3x3x16x16xbf16> to vector<1x1x16x16xbf16>
    %282 = vector.shape_cast %281 : vector<1x1x16x16xbf16> to vector<16x16xbf16>
    %cst_122 = arith.constant dense<0.000000e+00> : vector<256x16xf32>
    %283 = tpu.matmul %280, %282, %cst_122 {dimension_numbers = #tpu.dot_dimension_numbers<[1], [0], [0], [1], [0, 0, 1, 1], [], []>} : vector<256x16xbf16>, vector<16x16xbf16>, vector<256x16xf32> -> vector<256x16xf32>
    %284 = arith.addf %276, %283 : vector<256x16xf32>
    %c0_123 = arith.constant 0 : index
    %c1_124 = arith.constant 1 : index
    %c0_125 = arith.constant 0 : index
    %285 = vector.load %arg11[%c0_123, %c1_124, %c0_125] : memref<18x18x16xf32, #tpu.memory_space<vmem>>, vector<16x16x16xf32>
    %286 = vector.shape_cast %285 : vector<16x16x16xf32> to vector<256x16xf32>
    %287 = arith.truncf %286 : vector<256x16xf32> to vector<256x16xbf16>
    %288 = vector.extract_strided_slice %277 {offsets = [0, 1, 0, 0], sizes = [1, 1, 16, 16], strides = [1, 1, 1, 1]} : vector<3x3x16x16xbf16> to vector<1x1x16x16xbf16>
    %289 = vector.shape_cast %288 : vector<1x1x16x16xbf16> to vector<16x16xbf16>
    %cst_126 = arith.constant dense<0.000000e+00> : vector<256x16xf32>
    %290 = tpu.matmul %287, %289, %cst_126 {dimension_numbers = #tpu.dot_dimension_numbers<[1], [0], [0], [1], [0, 0, 1, 1], [], []>} : vector<256x16xbf16>, vector<16x16xbf16>, vector<256x16xf32> -> vector<256x16xf32>
    %291 = arith.addf %284, %290 : vector<256x16xf32>
    %c0_127 = arith.constant 0 : index
    %c2_128 = arith.constant 2 : index
    %c0_129 = arith.constant 0 : index
    %292 = vector.load %arg11[%c0_127, %c2_128, %c0_129] : memref<18x18x16xf32, #tpu.memory_space<vmem>>, vector<16x16x16xf32>
    %293 = vector.shape_cast %292 : vector<16x16x16xf32> to vector<256x16xf32>
    %294 = arith.truncf %293 : vector<256x16xf32> to vector<256x16xbf16>
    %295 = vector.extract_strided_slice %277 {offsets = [0, 2, 0, 0], sizes = [1, 1, 16, 16], strides = [1, 1, 1, 1]} : vector<3x3x16x16xbf16> to vector<1x1x16x16xbf16>
    %296 = vector.shape_cast %295 : vector<1x1x16x16xbf16> to vector<16x16xbf16>
    %cst_130 = arith.constant dense<0.000000e+00> : vector<256x16xf32>
    %297 = tpu.matmul %294, %296, %cst_130 {dimension_numbers = #tpu.dot_dimension_numbers<[1], [0], [0], [1], [0, 0, 1, 1], [], []>} : vector<256x16xbf16>, vector<16x16xbf16>, vector<256x16xf32> -> vector<256x16xf32>
    %298 = arith.addf %291, %297 : vector<256x16xf32>
    %c1_131 = arith.constant 1 : index
    %c0_132 = arith.constant 0 : index
    %c0_133 = arith.constant 0 : index
    %299 = vector.load %arg11[%c1_131, %c0_132, %c0_133] : memref<18x18x16xf32, #tpu.memory_space<vmem>>, vector<16x16x16xf32>
    %300 = vector.shape_cast %299 : vector<16x16x16xf32> to vector<256x16xf32>
    %301 = arith.truncf %300 : vector<256x16xf32> to vector<256x16xbf16>
    %302 = vector.extract_strided_slice %277 {offsets = [1, 0, 0, 0], sizes = [1, 1, 16, 16], strides = [1, 1, 1, 1]} : vector<3x3x16x16xbf16> to vector<1x1x16x16xbf16>
    %303 = vector.shape_cast %302 : vector<1x1x16x16xbf16> to vector<16x16xbf16>
    %cst_134 = arith.constant dense<0.000000e+00> : vector<256x16xf32>
    %304 = tpu.matmul %301, %303, %cst_134 {dimension_numbers = #tpu.dot_dimension_numbers<[1], [0], [0], [1], [0, 0, 1, 1], [], []>} : vector<256x16xbf16>, vector<16x16xbf16>, vector<256x16xf32> -> vector<256x16xf32>
    %305 = arith.addf %298, %304 : vector<256x16xf32>
    %c1_135 = arith.constant 1 : index
    %c1_136 = arith.constant 1 : index
    %c0_137 = arith.constant 0 : index
    %306 = vector.load %arg11[%c1_135, %c1_136, %c0_137] : memref<18x18x16xf32, #tpu.memory_space<vmem>>, vector<16x16x16xf32>
    %307 = vector.shape_cast %306 : vector<16x16x16xf32> to vector<256x16xf32>
    %308 = arith.truncf %307 : vector<256x16xf32> to vector<256x16xbf16>
    %309 = vector.extract_strided_slice %277 {offsets = [1, 1, 0, 0], sizes = [1, 1, 16, 16], strides = [1, 1, 1, 1]} : vector<3x3x16x16xbf16> to vector<1x1x16x16xbf16>
    %310 = vector.shape_cast %309 : vector<1x1x16x16xbf16> to vector<16x16xbf16>
    %cst_138 = arith.constant dense<0.000000e+00> : vector<256x16xf32>
    %311 = tpu.matmul %308, %310, %cst_138 {dimension_numbers = #tpu.dot_dimension_numbers<[1], [0], [0], [1], [0, 0, 1, 1], [], []>} : vector<256x16xbf16>, vector<16x16xbf16>, vector<256x16xf32> -> vector<256x16xf32>
    %312 = arith.addf %305, %311 : vector<256x16xf32>
    %c1_139 = arith.constant 1 : index
    %c2_140 = arith.constant 2 : index
    %c0_141 = arith.constant 0 : index
    %313 = vector.load %arg11[%c1_139, %c2_140, %c0_141] : memref<18x18x16xf32, #tpu.memory_space<vmem>>, vector<16x16x16xf32>
    %314 = vector.shape_cast %313 : vector<16x16x16xf32> to vector<256x16xf32>
    %315 = arith.truncf %314 : vector<256x16xf32> to vector<256x16xbf16>
    %316 = vector.extract_strided_slice %277 {offsets = [1, 2, 0, 0], sizes = [1, 1, 16, 16], strides = [1, 1, 1, 1]} : vector<3x3x16x16xbf16> to vector<1x1x16x16xbf16>
    %317 = vector.shape_cast %316 : vector<1x1x16x16xbf16> to vector<16x16xbf16>
    %cst_142 = arith.constant dense<0.000000e+00> : vector<256x16xf32>
    %318 = tpu.matmul %315, %317, %cst_142 {dimension_numbers = #tpu.dot_dimension_numbers<[1], [0], [0], [1], [0, 0, 1, 1], [], []>} : vector<256x16xbf16>, vector<16x16xbf16>, vector<256x16xf32> -> vector<256x16xf32>
    %319 = arith.addf %312, %318 : vector<256x16xf32>
    %c2_143 = arith.constant 2 : index
    %c0_144 = arith.constant 0 : index
    %c0_145 = arith.constant 0 : index
    %320 = vector.load %arg11[%c2_143, %c0_144, %c0_145] : memref<18x18x16xf32, #tpu.memory_space<vmem>>, vector<16x16x16xf32>
    %321 = vector.shape_cast %320 : vector<16x16x16xf32> to vector<256x16xf32>
    %322 = arith.truncf %321 : vector<256x16xf32> to vector<256x16xbf16>
    %323 = vector.extract_strided_slice %277 {offsets = [2, 0, 0, 0], sizes = [1, 1, 16, 16], strides = [1, 1, 1, 1]} : vector<3x3x16x16xbf16> to vector<1x1x16x16xbf16>
    %324 = vector.shape_cast %323 : vector<1x1x16x16xbf16> to vector<16x16xbf16>
    %cst_146 = arith.constant dense<0.000000e+00> : vector<256x16xf32>
    %325 = tpu.matmul %322, %324, %cst_146 {dimension_numbers = #tpu.dot_dimension_numbers<[1], [0], [0], [1], [0, 0, 1, 1], [], []>} : vector<256x16xbf16>, vector<16x16xbf16>, vector<256x16xf32> -> vector<256x16xf32>
    %326 = arith.addf %319, %325 : vector<256x16xf32>
    %c2_147 = arith.constant 2 : index
    %c1_148 = arith.constant 1 : index
    %c0_149 = arith.constant 0 : index
    %327 = vector.load %arg11[%c2_147, %c1_148, %c0_149] : memref<18x18x16xf32, #tpu.memory_space<vmem>>, vector<16x16x16xf32>
    %328 = vector.shape_cast %327 : vector<16x16x16xf32> to vector<256x16xf32>
    %329 = arith.truncf %328 : vector<256x16xf32> to vector<256x16xbf16>
    %330 = vector.extract_strided_slice %277 {offsets = [2, 1, 0, 0], sizes = [1, 1, 16, 16], strides = [1, 1, 1, 1]} : vector<3x3x16x16xbf16> to vector<1x1x16x16xbf16>
    %331 = vector.shape_cast %330 : vector<1x1x16x16xbf16> to vector<16x16xbf16>
    %cst_150 = arith.constant dense<0.000000e+00> : vector<256x16xf32>
    %332 = tpu.matmul %329, %331, %cst_150 {dimension_numbers = #tpu.dot_dimension_numbers<[1], [0], [0], [1], [0, 0, 1, 1], [], []>} : vector<256x16xbf16>, vector<16x16xbf16>, vector<256x16xf32> -> vector<256x16xf32>
    %333 = arith.addf %326, %332 : vector<256x16xf32>
    %c2_151 = arith.constant 2 : index
    %c2_152 = arith.constant 2 : index
    %c0_153 = arith.constant 0 : index
    %334 = vector.load %arg11[%c2_151, %c2_152, %c0_153] : memref<18x18x16xf32, #tpu.memory_space<vmem>>, vector<16x16x16xf32>
    %335 = vector.shape_cast %334 : vector<16x16x16xf32> to vector<256x16xf32>
    %336 = arith.truncf %335 : vector<256x16xf32> to vector<256x16xbf16>
    %337 = vector.extract_strided_slice %277 {offsets = [2, 2, 0, 0], sizes = [1, 1, 16, 16], strides = [1, 1, 1, 1]} : vector<3x3x16x16xbf16> to vector<1x1x16x16xbf16>
    %338 = vector.shape_cast %337 : vector<1x1x16x16xbf16> to vector<16x16xbf16>
    %cst_154 = arith.constant dense<0.000000e+00> : vector<256x16xf32>
    %339 = tpu.matmul %336, %338, %cst_154 {dimension_numbers = #tpu.dot_dimension_numbers<[1], [0], [0], [1], [0, 0, 1, 1], [], []>} : vector<256x16xbf16>, vector<16x16xbf16>, vector<256x16xf32> -> vector<256x16xf32>
    %340 = arith.addf %333, %339 : vector<256x16xf32>
    %c0_155 = arith.constant 0 : index
    %c0_156 = arith.constant 0 : index
    %341 = vector.load %arg5[%c0_155, %c0_156] : memref<1x16xf32, #tpu.memory_space<vmem>>, vector<1x16xf32>
    %342 = vector.broadcast %341 : vector<1x16xf32> to vector<256x16xf32>
    %343 = arith.addf %340, %342 : vector<256x16xf32>
    %344 = vector.shape_cast %343 : vector<256x16xf32> to vector<16x16x16xf32>
    %c0_157 = arith.constant 0 : index
    %c0_158 = arith.constant 0 : index
    %c0_159 = arith.constant 0 : index
    %c0_160 = arith.constant 0 : index
    %345 = vector.load %arg8[%c0_157, %c0_158, %c0_159, %c0_160] : memref<1x16x16x16xf32, #tpu.memory_space<vmem>>, vector<1x16x16x16xf32>
    %346 = vector.shape_cast %345 : vector<1x16x16x16xf32> to vector<16x16x16xf32>
    %347 = vector.shape_cast %344 : vector<16x16x16xf32> to vector<1x16x16x16xf32>
    tpu.vector_store %arg8[%c0_157, %c0_158, %c0_159, %c0_160], %347 {strides = array<i32>} : memref<1x16x16x16xf32, #tpu.memory_space<vmem>>, vector<1x16x16x16xf32>,
    %c0_161 = arith.constant 0 : index
    %c0_162 = arith.constant 0 : index
    %348 = vector.load %arg6[%c0_161, %c0_162] : memref<16x5xf32, #tpu.memory_space<vmem>>, vector<16x5xf32>
    %cst_163 = arith.constant dense<0.000000e+00> : vector<256x5xf32>
    %349 = tpu.matmul %343, %348, %cst_163 {dimension_numbers = #tpu.dot_dimension_numbers<[1], [0], [0], [1], [0, 0, 1, 1], [], []>} : vector<256x16xf32>, vector<16x5xf32>, vector<256x5xf32> -> vector<256x5xf32>
    %c0_164 = arith.constant 0 : index
    %c0_165 = arith.constant 0 : index
    %350 = vector.load %arg7[%c0_164, %c0_165] : memref<1x5xf32, #tpu.memory_space<vmem>>, vector<1x5xf32>
    %351 = vector.broadcast %350 : vector<1x5xf32> to vector<256x5xf32>
    %352 = arith.addf %349, %351 : vector<256x5xf32>
    %353 = vector.shape_cast %352 : vector<256x5xf32> to vector<16x16x5xf32>
    %c0_166 = arith.constant 0 : index
    %c0_167 = arith.constant 0 : index
    %c0_168 = arith.constant 0 : index
    %c0_169 = arith.constant 0 : index
    %354 = vector.load %arg9[%c0_166, %c0_167, %c0_168, %c0_169] : memref<1x16x16x5xf32, #tpu.memory_space<vmem>>, vector<1x16x16x5xf32>
    %355 = vector.shape_cast %354 : vector<1x16x16x5xf32> to vector<16x16x5xf32>
    %356 = vector.shape_cast %353 : vector<16x16x5xf32> to vector<1x16x16x5xf32>
    tpu.vector_store %arg9[%c0_166, %c0_167, %c0_168, %c0_169], %356 {strides = array<i32>} : memref<1x16x16x5xf32, #tpu.memory_space<vmem>>, vector<1x16x16x5xf32>,
    return
  }
  func.func @transform_0(%arg0: i32) -> (i32, i32, i32, i32) {
    %c0_i32 = arith.constant 0 : i32
    %c0_i32_0 = arith.constant 0 : i32
    %c0_i32_1 = arith.constant 0 : i32
    %c0_i32_2 = arith.constant 0 : i32
    return %arg0, %c0_i32, %c0_i32_0, %c0_i32_1 : i32, i32, i32, i32
  }
  func.func @transform_1(%arg0: i32) -> (i32, i32, i32, i32) {
    %c0_i32 = arith.constant 0 : i32
    %c0_i32_0 = arith.constant 0 : i32
    %c0_i32_1 = arith.constant 0 : i32
    %c0_i32_2 = arith.constant 0 : i32
    return %arg0, %c0_i32, %c0_i32_0, %c0_i32_1 : i32, i32, i32, i32
  }
  func.func @transform_2(%arg0: i32) -> (i32, i32, i32, i32) {
    %c0_i32 = arith.constant 0 : i32
    %c0_i32_0 = arith.constant 0 : i32
    %c0_i32_1 = arith.constant 0 : i32
    %c0_i32_2 = arith.constant 0 : i32
    %c0_i32_3 = arith.constant 0 : i32
    return %c0_i32, %c0_i32_0, %c0_i32_1, %c0_i32_2 : i32, i32, i32, i32
  }
  func.func @transform_3(%arg0: i32) -> (i32, i32, i32, i32) {
    %c0_i32 = arith.constant 0 : i32
    %c0_i32_0 = arith.constant 0 : i32
    %c0_i32_1 = arith.constant 0 : i32
    %c0_i32_2 = arith.constant 0 : i32
    %c0_i32_3 = arith.constant 0 : i32
    return %c0_i32, %c0_i32_0, %c0_i32_1, %c0_i32_2 : i32, i32, i32, i32
  }
  func.func @transform_4(%arg0: i32) -> (i32, i32) {
    %c0_i32 = arith.constant 0 : i32
    %c0_i32_0 = arith.constant 0 : i32
    %c0_i32_1 = arith.constant 0 : i32
    return %c0_i32, %c0_i32_0 : i32, i32
  }
  func.func @transform_5(%arg0: i32) -> (i32, i32) {
    %c0_i32 = arith.constant 0 : i32
    %c0_i32_0 = arith.constant 0 : i32
    %c0_i32_1 = arith.constant 0 : i32
    return %c0_i32, %c0_i32_0 : i32, i32
  }
  func.func @transform_6(%arg0: i32) -> (i32, i32) {
    %c0_i32 = arith.constant 0 : i32
    %c0_i32_0 = arith.constant 0 : i32
    %c0_i32_1 = arith.constant 0 : i32
    return %c0_i32, %c0_i32_0 : i32, i32
  }
  func.func @transform_7(%arg0: i32) -> (i32, i32, i32, i32) {
    %c0_i32 = arith.constant 0 : i32
    %c0_i32_0 = arith.constant 0 : i32
    %c0_i32_1 = arith.constant 0 : i32
    %c0_i32_2 = arith.constant 0 : i32
    return %arg0, %c0_i32, %c0_i32_0, %c0_i32_1 : i32, i32, i32, i32
  }
  func.func @transform_8(%arg0: i32) -> (i32, i32, i32, i32) {
    %c0_i32 = arith.constant 0 : i32
    %c0_i32_0 = arith.constant 0 : i32
    %c0_i32_1 = arith.constant 0 : i32
    %c0_i32_2 = arith.constant 0 : i32
    return %arg0, %c0_i32, %c0_i32_0, %c0_i32_1 : i32, i32, i32, i32
  }
}

</mosaic_0001>

<bundles_post_ra>
// kernel: multiclass_uafm_forward.3
= control target key start
LH: loop header
LB: loop body
LE: loop exit
PB: predicated region body
PF: predicated region fallthrough
CT: control target
= control target key end

     0   :  { %s1873_s18 = smov 0   ;;  %s2158_s0 = inlined_call_operand.vmem [shape: f32[2,8,8,5], index: 0, kind: input, shape index: {}]   ;;  %s2159_s1 = inlined_call_operand.vmem [shape: f32[2,8,8,8], index: 1, kind: input, shape index: {}]   ;;  %s2160_s2 = inlined_call_operand.vmem [shape: bf16[3,3,8,16], index: 2, kind: input, shape index: {}]   ;;  %s2161_s3 = inlined_call_operand.vmem [shape: f32[1,16], index: 3, kind: input, shape index: {}]   ;;  %s2162_s4 = inlined_call_operand.vmem [shape: f32[2,8,8,5], index: 4, kind: output, shape index: {0}]   ;;  %s2163_s5 = inlined_call_operand.vmem [shape: f32[2,8,8,16], index: 5, kind: output, shape index: {1}]  }
   0x1 LB: > { %s1510_s19 = sadd.s32 4294967295, %s1840_s18   ;;  %p1514_p0 = scmp.ge.s32.totalorder %s1840_s18, 1  ;;  %s1840_s18 = sphi %s1873_s18, %s16_s18  }
   0x2   : > { %p200_p1 = scmp.lt.s32.totalorder %s1840_s18, 3 }
   0x4   : > { %p201_p2 = pnand %p1514_p0, %p200_p1 }
   0x5   : > { %p238_p3 = scmp.lt.s32.totalorder (!%p201_p2), %s1510_s19, 1  ;;  %vm267_vm0 = vcmask (!%p201_p2), 39936   ;;  %vm452_vm1 = vcmask (!%p201_p2), 64512   ;;  %vm454_vm2 = vcmask (!%p201_p2), 58368   ;;  %v1842_v56 = vmov (!%p201_p2), 0.0  }
   0x6   : > { %204 = sbr.rel (%p201_p2) target bundleno = 805 (0x325), region = 36  ;;  %456 = vst.msk [vmem:[#allocation2 + $0x10] sm:$0xff] (!%p201_p2), %vm452_vm1, %v1842_v56  ;;  %453 = vst.msk [vmem:[#allocation2] sm:$0xff] (!%p201_p2), %vm452_vm1, %v1842_v56  ;;  %vm528_vm3 = vcmask (!%p201_p2), 1043456   ;;  %vm1401_vm4 = vcmask (!%p201_p2), 130048  }
   0x7   : > { %457 = vst.msk [vmem:[#allocation2 + $0x18] sm:$0x3] (!%p201_p2), %vm454_vm2, %v1842_v56  ;;  %455 = vst.msk [vmem:[#allocation2 + $0x8] sm:$0x3] (!%p201_p2), %vm454_vm2, %v1842_v56 }
   0x8   : > { %458 = vst.msk [vmem:[#allocation2 + $0x20] sm:$0xff] (!%p201_p2), %vm452_vm1, %v1842_v56  ;;  %460 = vst.msk [vmem:[#allocation2 + $0x30] sm:$0xff] (!%p201_p2), %vm452_vm1, %v1842_v56 }
   0x9   : > { %459 = vst.msk [vmem:[#allocation2 + $0x28] sm:$0x3] (!%p201_p2), %vm454_vm2, %v1842_v56  ;;  %461 = vst.msk [vmem:[#allocation2 + $0x38] sm:$0x3] (!%p201_p2), %vm454_vm2, %v1842_v56 }
   0xa   : > { %462 = vst.msk [vmem:[#allocation2 + $0x40] sm:$0xff] (!%p201_p2), %vm452_vm1, %v1842_v56  ;;  %464 = vst.msk [vmem:[#allocation2 + $0x50] sm:$0xff] (!%p201_p2), %vm452_vm1, %v1842_v56 }
   0xb   : > { %463 = vst.msk [vmem:[#allocation2 + $0x48] sm:$0x3] (!%p201_p2), %vm454_vm2, %v1842_v56  ;;  %465 = vst.msk [vmem:[#allocation2 + $0x58] sm:$0x3] (!%p201_p2), %vm454_vm2, %v1842_v56 }
   0xc   : > { %466 = vst.msk [vmem:[#allocation2 + $0x60] sm:$0xff] (!%p201_p2), %vm452_vm1, %v1842_v56  ;;  %468 = vst.msk [vmem:[#allocation2 + $0x70] sm:$0xff] (!%p201_p2), %vm452_vm1, %v1842_v56 }
   0xd   : > { %s2165_s19 = smov (!%p238_p3, %s1510_s19), 1  ;;  %467 = vst.msk [vmem:[#allocation2 + $0x68] sm:$0x3] %vm454_vm2, %v1842_v56  ;;  %469 = vst.msk [vmem:[#allocation2 + $0x78] sm:$0x3] %vm454_vm2, %v1842_v56 }
   0xe   : > { %s1881_s20 = sshll.u32 %s2165_s19, 6  ;;  %470 = vst.msk [vmem:[#allocation2 + $0x80] sm:$0xff] %vm452_vm1, %v1842_v56  ;;  %472 = vst.msk [vmem:[#allocation2 + $0x90] sm:$0xff] %vm452_vm1, %v1842_v56 }
   0xf   : > { %s242_s23 = scalar_lea.vmem %s2158_s0, %s1881_s20  ;;  %471 = vst.msk [vmem:[#allocation2 + $0x88] sm:$0x3] %vm454_vm2, %v1842_v56  ;;  %473 = vst.msk [vmem:[#allocation2 + $0x98] sm:$0x3] %vm454_vm2, %v1842_v56  ;;  %s1951_s26 = scalar_lea.vmem %s2162_s4, %s1881_s20 }
  0x10   : > { %v259_v0 = vld [vmem:[%s242_s23] sm:$0xff]  ;;  %v261_v1 = vld [vmem:[%s242_s23 + $0x10] sm:$0xff]  ;;  %v260_v2 = vld [vmem:[%s242_s23 + $0x8] sm:$0xff]  ;;  %s2017_s12 = scalar_lea.vmem %s2159_s1, %s1881_s20  ;;  %s2137_s29 = scalar_lea.vmem %s2163_s5, %s1881_s20 }
  0x11   : > { %v268_v3 = vsel %vm267_vm0, %v259_v0, -inf  ;;  %v274_v4 = vsel %vm267_vm0, %v261_v1, -inf  ;;  %v262_v5 = vld [vmem:[%s242_s23 + $0x18] sm:$0xff]  ;;  %v271_v6 = vsel %vm267_vm0, %v260_v2, -inf  ;;  %v263_v8 = vld [vmem:[%s242_s23 + $0x20] sm:$0xff]  ;;  %v264_v9 = vld [vmem:[%s242_s23 + $0x28] sm:$0xff] }
  0x12   : > { %269 = vmax.xlane.f32.xlu0 %v268_v3  ;;  %275 = vmax.xlane.f32.xlu1 %v274_v4  ;;  %v277_v7 = vsel %vm267_vm0, %v262_v5, -inf  ;;  %v280_v10 = vsel %vm267_vm0, %v263_v8, -inf  ;;  %v283_v11 = vsel %vm267_vm0, %v264_v9, -inf  ;;  %v265_v12 = vld [vmem:[%s242_s23 + $0x30] sm:$0xff]  ;;  %v266_v13 = vld [vmem:[%s242_s23 + $0x38] sm:$0xff] }
  0x13   : > { %v286_v14 = vsel %vm267_vm0, %v265_v12, -inf  ;;  %v289_v15 = vsel %vm267_vm0, %v266_v13, -inf }
  0x16   : > { %272 = vmax.xlane.f32.xlu0 %v271_v6  ;;  %278 = vmax.xlane.f32.xlu1 %v277_v7 }
  0x1a   : > { %281 = vmax.xlane.f32.xlu0 %v280_v10  ;;  %284 = vmax.xlane.f32.xlu1 %v283_v11 }
  0x1e   : > { %287 = vmax.xlane.f32.xlu0 %v286_v14  ;;  %290 = vmax.xlane.f32.xlu1 %v289_v15 }
  0x9f   : > { %v270_v16 = vpop.xlane.xlu0 %269  ;;  %v276_v17 = vpop.xlane.xlu1 %275 }
  0xa0   : > { %v292_v18 = vsub.f32 %v259_v0, %v270_v16  ;;  %v294_v19 = vsub.f32 %v261_v1, %v276_v17 }
  0xa2   : > { %v300_v20 = vmul.f32 1.442695, %v292_v18  ;;  %v304_v21 = vmul.f32 1.442695, %v294_v19 }
  0xa3   : > { %v273_v22 = vpop.xlane.xlu0 %272  ;;  %v279_v23 = vpop.xlane.xlu1 %278 }
  0xa4   : > { %1786 = vpow2.f32 %v300_v20  ;;  %v293_v24 = vsub.f32 %v260_v2, %v273_v22  ;;  %v295_v25 = vsub.f32 %v262_v5, %v279_v23 }
  0xa5   : > { %1788 = vpow2.f32 %v304_v21 }
  0xa6   : > { %v302_v26 = vmul.f32 1.442695, %v293_v24  ;;  %v306_v27 = vmul.f32 1.442695, %v295_v25 }
  0xa7   : > { %v282_v28 = vpop.xlane.xlu0 %281  ;;  %v285_v29 = vpop.xlane.xlu1 %284 }
  0xa8   : > { %1790 = vpow2.f32 %v302_v26  ;;  %v296_v30 = vsub.f32 %v263_v8, %v282_v28  ;;  %v297_v31 = vsub.f32 %v264_v9, %v285_v29 }
  0xa9   : > { %1792 = vpow2.f32 %v306_v27 }
  0xaa   : > { %v308_v32 = vmul.f32 1.442695, %v296_v30  ;;  %v310_v33 = vmul.f32 1.442695, %v297_v31 }
  0xab   : > { %v288_v34 = vpop.xlane.xlu0 %287  ;;  %v291_v35 = vpop.xlane.xlu1 %290 }
  0xac   : > { %1794 = vpow2.f32 %v308_v32  ;;  %v298_v36 = vsub.f32 %v265_v12, %v288_v34  ;;  %v299_v37 = vsub.f32 %v266_v13, %v291_v35 }
  0xad   : > { %1796 = vpow2.f32 %v310_v33 }
  0xae   : > { %v1895_v38 = vpop.eup %1786  ;;  %v312_v39 = vmul.f32 1.442695, %v298_v36  ;;  %v314_v40 = vmul.f32 1.442695, %v299_v37 }
  0xaf   : > { %v1897_v41 = vpop.eup %1788  ;;  %v316_v42 = vsel %vm267_vm0, %v1895_v38, 0.0 }
  0xb0   : > { %1798 = vpow2.f32 %v312_v39  ;;  %317 = vadd.xlane.f32.xlu0 %v316_v42  ;;  %v322_v43 = vsel %vm267_vm0, %v1897_v41, 0.0 }
  0xb1   : > { %1800 = vpow2.f32 %v314_v40 }
  0xb2   : > { %v1903_v44 = vpop.eup %1790 }
  0xb3   : > { %v1905_v45 = vpop.eup %1792  ;;  %v319_v46 = vsel %vm267_vm0, %v1903_v44, 0.0 }
  0xb4   : > { %323 = vadd.xlane.f32.xlu0 %v322_v43  ;;  %320 = vadd.xlane.f32.xlu1 %v319_v46  ;;  %v325_v47 = vsel %vm267_vm0, %v1905_v45, 0.0 }
  0xb6   : > { %v1911_v48 = vpop.eup %1794 }
  0xb7   : > { %v1913_v49 = vpop.eup %1796  ;;  %v328_v50 = vsel %vm267_vm0, %v1911_v48, 0.0 }
  0xb8   : > { %326 = vadd.xlane.f32.xlu1 %v325_v47  ;;  %329 = vadd.xlane.f32.xlu0 %v328_v50  ;;  %v331_v51 = vsel %vm267_vm0, %v1913_v49, 0.0 }
  0xba   : > { %v1919_v52 = vpop.eup %1798 }
  0xbb   : > { %v1921_v53 = vpop.eup %1800  ;;  %v334_v54 = vsel %vm267_vm0, %v1919_v52, 0.0 }
  0xbc   : > { %332 = vadd.xlane.f32.xlu1 %v331_v51  ;;  %335 = vadd.xlane.f32.xlu0 %v334_v54  ;;  %v337_v55 = vsel %vm267_vm0, %v1921_v53, 0.0 }
  0xc0   : > { %338 = vadd.xlane.f32.xlu1 %v337_v55 }
 0x13d   : > { %v318_v57 = vpop.xlane.xlu0 %317 }
 0x13e   : > { %1802 = vrcp.f32 %v318_v57  ;;  %v484_v57 = vld [vmem:[%s2160_s2 + $0x4] sm:$0xf] }
 0x13f   : > { %1767 = vmatprep.subr.msk.bf16.mxu1 %vm528_vm3, %v484_v57 }
 0x141   : > { %v321_v58 = vpop.xlane.xlu1 %320  ;;  %v324_v59 = vpop.xlane.xlu0 %323 }
 0x142   : > { %1804 = vrcp.f32 %v321_v58  ;;  %v530_v58 = vsel %vm528_vm3, %v484_v57, 0 }
 0x143   : > { %1806 = vrcp.f32 %v324_v59  ;;  %1612 = vmatpush3.bf16.msra.mxu1 %v530_v58  ;;  %v1993_v59 = vld [vmem:[%s2160_s2 + $0x10] sm:$0xf]  ;;  %v492_v58 = vld [vmem:[#allocation2] sm:$0xff] }
 0x144   : > { %1771 = vmatprep.subr.msk.bf16.mxu0 %vm528_vm3, %v1993_v59 }
 0x145   : > { %v327_v60 = vpop.xlane.xlu1 %326  ;;  %v330_v61 = vpop.xlane.xlu0 %329 }
 0x146   : > { %1808 = vrcp.f32 %v327_v60  ;;  %v1999_v60 = vsel %vm528_vm3, %v1993_v59, 0 }
 0x147   : > { %1810 = vrcp.f32 %v330_v61  ;;  %1652 = vmatpush3.bf16.msra.mxu0 %v1999_v60  ;;  %v483_v61 = vld [vmem:[%s2160_s2] sm:$0xf] }
 0x148   : > { %v1803_v62 = vpop.eup %1802  ;;  %1768 = vmatprep.subr.msk.bf16.mxu1 %vm528_vm3, %v483_v61 }
 0x149   : > { %v333_v63 = vpop.xlane.xlu1 %332  ;;  %v336_v0 = vpop.xlane.xlu0 %335  ;;  %v348_v1 = vmul.f32 %v1803_v62, %v1895_v38  ;;  %v2008_v62 = vld [vmem:[%s2160_s2 + $0x14] sm:$0xf] }
 0x14a   : > { %1812 = vrcp.f32 %v333_v63  ;;  %1773 = vmatprep.subr.msk.bf16.mxu0 %vm528_vm3, %v2008_v62 }
 0x14b   : > { %1814 = vrcp.f32 %v336_v0  ;;  %v364_v2 = vadd.f32 1e-07, %v348_v1  ;;  %356 = vst.msk [vmem:[%s1951_s26] sm:$0xff] %vm267_vm0, %v348_v1 }
 0x14c   : > { %v1805_v3 = vpop.eup %1804 }
 0x14d   : > { %v1807_v4 = vpop.eup %1806  ;;  %v339_v5 = vpop.xlane.xlu1 %338  ;;  %1816 = vlog2.f32 %v364_v2  ;;  %v349_v6 = vmul.f32 %v1805_v3, %v1903_v44 }
 0x14e   : > { %1818 = vrcp.f32 %v339_v5  ;;  %v350_v7 = vmul.f32 %v1807_v4, %v1897_v41 }
 0x14f   : > { %v365_v8 = vadd.f32 1e-07, %v349_v6  ;;  %357 = vst.msk [vmem:[%s1951_s26 + $0x8] sm:$0xff] %vm267_vm0, %v349_v6 }
 0x150   : > { %v1809_v9 = vpop.eup %1808  ;;  %v366_v10 = vadd.f32 1e-07, %v350_v7  ;;  %358 = vst.msk [vmem:[%s1951_s26 + $0x10] sm:$0xff] %vm267_vm0, %v350_v7 }
 0x151   : > { %v1811_v11 = vpop.eup %1810  ;;  %1820 = vlog2.f32 %v365_v8  ;;  %v351_v12 = vmul.f32 %v1809_v9, %v1905_v45 }
 0x152   : > { %1822 = vlog2.f32 %v366_v10  ;;  %v352_v13 = vmul.f32 %v1811_v11, %v1911_v48  ;;  %v438_v10 = vld [vmem:[%s2017_s12 + $0x10] sm:$0xff] }
 0x153   : > { %v367_v14 = vadd.f32 1e-07, %v351_v12  ;;  %359 = vst.msk [vmem:[%s1951_s26 + $0x18] sm:$0xff] %vm267_vm0, %v351_v12 }
 0x154   : > { %v1813_v15 = vpop.eup %1812  ;;  %v368_v16 = vadd.f32 1e-07, %v352_v13  ;;  %360 = vst.msk [vmem:[%s1951_s26 + $0x20] sm:$0xff] %vm267_vm0, %v352_v13 }
 0x155   : > { %v1815_v17 = vpop.eup %1814  ;;  %1824 = vlog2.f32 %v367_v14  ;;  %v353_v18 = vmul.f32 %v1813_v15, %v1913_v49 }
 0x156   : > { %1826 = vlog2.f32 %v368_v16  ;;  %v354_v19 = vmul.f32 %v1815_v17, %v1919_v52  ;;  %v439_v17 = vld [vmem:[%s2017_s12 + $0x18] sm:$0xff] }
 0x157   : > { %v1817_v20 = vpop.eup %1816  ;;  %v369_v21 = vadd.f32 1e-07, %v353_v18  ;;  %361 = vst.msk [vmem:[%s1951_s26 + $0x28] sm:$0xff] %vm267_vm0, %v353_v18 }
 0x158   : > { %v1819_v22 = vpop.eup %1818  ;;  %v373_v23 = vmul.f32 0.6931472, %v1817_v20  ;;  %v370_v24 = vadd.f32 1e-07, %v354_v19  ;;  %362 = vst.msk [vmem:[%s1951_s26 + $0x30] sm:$0xff] %vm267_vm0, %v354_v19  ;;  %v440_v20 = vld [vmem:[%s2017_s12 + $0x20] sm:$0xff] }
 0x159   : > { %1828 = vlog2.f32 %v369_v21  ;;  %v355_v25 = vmul.f32 %v1819_v22, %v1921_v53 }
 0x15a   : > { %v388_v26 = vmul.f32 %v373_v23, %v348_v1  ;;  %1830 = vlog2.f32 %v370_v24  ;;  %v436_v1 = vld [vmem:[%s2017_s12] sm:$0xff] }
 0x15b   : > { %v1821_v27 = vpop.eup %1820  ;;  %v371_v28 = vadd.f32 1e-07, %v355_v25  ;;  %363 = vst.msk [vmem:[%s1951_s26 + $0x38] sm:$0xff] %vm267_vm0, %v355_v25  ;;  %v504_v23 = vld [vmem:[#allocation2 + $0x1] sm:$0xff] }
 0x15c   : > { %v1823_v29 = vpop.eup %1822  ;;  %v396_v30 = vsel %vm267_vm0, %v388_v26, 0.0  ;;  %v375_v31 = vmul.f32 0.6931472, %v1821_v27 }
 0x15d   : > { %397 = vadd.xlane.f32.xlu0 %v396_v30  ;;  %v377_v32 = vmul.f32 0.6931472, %v1823_v29  ;;  %1832 = vlog2.f32 %v371_v28  ;;  %v441_v28 = vld [vmem:[%s2017_s12 + $0x28] sm:$0xff] }
 0x15e   : > { %v389_v33 = vmul.f32 %v375_v31, %v349_v6 }
 0x15f   : > { %v1825_v34 = vpop.eup %1824  ;;  %v390_v35 = vmul.f32 %v377_v32, %v350_v7  ;;  %v437_v7 = vld [vmem:[%s2017_s12 + $0x8] sm:$0xff]  ;;  %v442_v32 = vld [vmem:[%s2017_s12 + $0x30] sm:$0xff] }
 0x160   : > { %v1827_v36 = vpop.eup %1826  ;;  %v399_v37 = vsel %vm267_vm0, %v389_v33, 0.0  ;;  %v379_v38 = vmul.f32 0.6931472, %v1825_v34 }
 0x161   : > { %400 = vadd.xlane.f32.xlu1 %v399_v37  ;;  %v402_v39 = vsel %vm267_vm0, %v390_v35, 0.0  ;;  %v381_v40 = vmul.f32 0.6931472, %v1827_v36 }
 0x162   : > { %403 = vadd.xlane.f32.xlu0 %v402_v39  ;;  %v391_v41 = vmul.f32 %v379_v38, %v351_v12  ;;  %v443_v39 = vld [vmem:[%s2017_s12 + $0x38] sm:$0xff] }
 0x163   : > { %v1829_v42 = vpop.eup %1828  ;;  %v392_v43 = vmul.f32 %v381_v40, %v352_v13 }
 0x164   : > { %v1831_v44 = vpop.eup %1830  ;;  %v405_v45 = vsel %vm267_vm0, %v391_v41, 0.0  ;;  %v383_v46 = vmul.f32 0.6931472, %v1829_v42 }
 0x165   : > { %406 = vadd.xlane.f32.xlu1 %v405_v45  ;;  %v408_v47 = vsel %vm267_vm0, %v392_v43, 0.0  ;;  %v385_v48 = vmul.f32 0.6931472, %v1831_v44  ;;  %v610_v45 = vsel %vm528_vm3, %v483_v61, 0 }
 0x166   : > { %409 = vadd.xlane.f32.xlu0 %v408_v47  ;;  %v393_v49 = vmul.f32 %v383_v46, %v353_v18  ;;  %v485_v47 = vld [vmem:[%s2160_s2 + $0x8] sm:$0xf] }
 0x167   : > { %v1833_v50 = vpop.eup %1832  ;;  %v394_v51 = vmul.f32 %v385_v48, %v354_v19 }
 0x168   : > { %v411_v52 = vsel %vm267_vm0, %v393_v49, 0.0  ;;  %v387_v53 = vmul.f32 0.6931472, %v1833_v50 }
 0x169   : > { %412 = vadd.xlane.f32.xlu1 %v411_v52  ;;  %v414_v54 = vsel %vm267_vm0, %v394_v51, 0.0  ;;  %v1002_v52 = vsel %vm528_vm3, %v2008_v62, 0 }
 0x16a   : > { %415 = vadd.xlane.f32.xlu0 %v414_v54  ;;  %v395_v55 = vmul.f32 %v387_v53, %v355_v25 }
 0x16c   : > { %v417_v56 = vsel %vm267_vm0, %v395_v55, 0.0  ;;  %v489_v55 = vld [vmem:[%s2160_s2 + $0x18] sm:$0xf] }
 0x16d   : > { %418 = vadd.xlane.f32.xlu1 %v417_v56 }
 0x1ea   : > { %v398_v63 = vpop.xlane.xlu0 %397 }
 0x1eb   : > { %v420_v0 = vsub.f32 0.0, %v398_v63 }
 0x1ed   : > { %v428_v2 = vmax.f32 %v420_v0, 1.0 }
 0x1ee   : > { %v401_v3 = vpop.xlane.xlu1 %400 }
 0x1ef   : > { %v444_v4 = vmul.f32 %v436_v1, %v428_v2  ;;  %v421_v5 = vsub.f32 0.0, %v401_v3  ;;  %v404_v6 = vpop.xlane.xlu0 %403 }
 0x1f0   : > { %v422_v8 = vsub.f32 0.0, %v404_v6 }
 0x1f1   : > { %475 = vst.msk [vmem:[#allocation2 + $0x11] sm:$0xff] %vm452_vm1, %v444_v4  ;;  %v429_v9 = vmax.f32 %v421_v5, 1.0 }
 0x1f2   : > { %v430_v11 = vmax.f32 %v422_v8, 1.0  ;;  %v407_v12 = vpop.xlane.xlu1 %406 }
 0x1f3   : > { %v445_v13 = vmul.f32 %v437_v7, %v429_v9  ;;  %v423_v14 = vsub.f32 0.0, %v407_v12  ;;  %v410_v15 = vpop.xlane.xlu0 %409  ;;  %v1103_v9 = vsel %vm528_vm3, %v489_v55, 0 }
 0x1f4   : > { %v446_v16 = vmul.f32 %v438_v10, %v430_v11  ;;  %v424_v18 = vsub.f32 0.0, %v410_v15  ;;  %v490_v15 = vld [vmem:[%s2160_s2 + $0x1c] sm:$0xf] }
 0x1f5   : > { %476 = vst.msk [vmem:[#allocation2 + $0x21] sm:$0xff] %vm452_vm1, %v445_v13  ;;  %v431_v19 = vmax.f32 %v423_v14, 1.0  ;;  %v702_v14 = vsel %vm528_vm3, %v485_v47, 0 }
 0x1f6   : > { %477 = vst.msk [vmem:[#allocation2 + $0x31] sm:$0xff] %vm452_vm1, %v446_v16  ;;  %v432_v21 = vmax.f32 %v424_v18, 1.0  ;;  %v413_v22 = vpop.xlane.xlu1 %412  ;;  %v486_v16 = vld [vmem:[%s2160_s2 + $0xc] sm:$0xf] }
 0x1f7   : > { %v447_v24 = vmul.f32 %v439_v17, %v431_v19  ;;  %v425_v25 = vsub.f32 0.0, %v413_v22  ;;  %v416_v26 = vpop.xlane.xlu0 %415 }
 0x1f8   : > { %v448_v27 = vmul.f32 %v440_v20, %v432_v21  ;;  %v426_v29 = vsub.f32 0.0, %v416_v26  ;;  %v505_v30 = vld [vmem:[#allocation2 + $0x11] sm:$0xff]  ;;  %v677_v21 = vld [vmem:[#allocation2 + $0x2] sm:$0xff] }
 0x1f9   : > { %478 = vst.msk [vmem:[#allocation2 + $0x41] sm:$0xff] %vm452_vm1, %v447_v24  ;;  %v433_v31 = vmax.f32 %v425_v25, 1.0  ;;  %v512_v33 = vpack.c.bf16 %v505_v30, %v504_v23  ;;  %v977_v54 = vld [vmem:[#allocation2 + $0x12] sm:$0xff]  ;;  %v1203_v25 = vsel %vm528_vm3, %v490_v15, 0 }
 0x1fa   : > { %479 = vst.msk [vmem:[#allocation2 + $0x51] sm:$0xff] %vm452_vm1, %v448_v27  ;;  %v434_v34 = vmax.f32 %v426_v29, 1.0  ;;  %v419_v35 = vpop.xlane.xlu1 %418  ;;  %v2061_v61 = vld [vmem:[#allocation2 + $0x10] sm:$0xff]  ;;  %v685_v24 = vpack.c.bf16 %v977_v54, %v677_v21  ;;  %v491_v29 = vld [vmem:[%s2160_s2 + $0x20] sm:$0xf] }
 0x1fb   : > { %v449_v36 = vmul.f32 %v441_v28, %v433_v31  ;;  %v427_v37 = vsub.f32 0.0, %v419_v35  ;;  %1613 = vmatprep.mubr.msk.bf16.mxu1 %vm452_vm1, %v512_v33  ;;  %v500_v0 = vpack.c.bf16 %v2061_v61, %v492_v58  ;;  %v802_v28 = vsel %vm528_vm3, %v486_v16, 0  ;;  %v1085_v31 = vld [vmem:[#allocation2 + $0x90] sm:$0xff] }
 0x1fc   : > { %v450_v38 = vmul.f32 %v442_v32, %v434_v34  ;;  %v506_v40 = vld [vmem:[#allocation2 + $0x21] sm:$0xff]  ;;  %v1303_v35 = vsel %vm528_vm3, %v491_v29, 0 }
 0x1fd   : > { %480 = vst.msk [vmem:[#allocation2 + $0x61] sm:$0xff] %vm452_vm1, %v449_v36  ;;  %v435_v41 = vmax.f32 %v427_v37, 1.0  ;;  %v507_v42 = vld [vmem:[#allocation2 + $0x31] sm:$0xff]  ;;  %v885_v43 = vpack.c.bf16 %v506_v40, %v505_v30  ;;  %v978_v49 = vld [vmem:[#allocation2 + $0x22] sm:$0xff] }
 0x1fe   : > { %481 = vst.msk [vmem:[#allocation2 + $0x71] sm:$0xff] %vm452_vm1, %v450_v38  ;;  %v2035_v44 = vpack.c.bf16 %v507_v42, %v506_v40  ;;  %v985_v56 = vpack.c.bf16 %v978_v49, %v977_v54  ;;  %v494_v2 = vld [vmem:[#allocation2 + $0x20] sm:$0xff]  ;;  %v495_v3 = vld [vmem:[#allocation2 + $0x30] sm:$0xff] }
 0x1ff   : > { %v451_v46 = vmul.f32 %v443_v39, %v435_v41  ;;  %1653 = vmatprep.mubr.msk.bf16.mxu0 %vm452_vm1, %v885_v43  ;;  %v979_v4 = vld [vmem:[#allocation2 + $0x32] sm:$0xff]  ;;  %v501_v10 = vpack.c.bf16 %v495_v3, %v494_v2  ;;  %v785_v34 = vpack.c.bf16 %v494_v2, %v2061_v61 }
 0x200   : > { %1614 = vmatmul.mubr.msk.bf16.vlgmr.msra.gmra.mrb[0].mxu1 %vm452_vm1, %v2035_v44  ;;  %v508_v48 = vld [vmem:[#allocation2 + $0x41] sm:$0xff]  ;;  %v686_v26 = vpack.c.bf16 %v979_v4, %v978_v49  ;;  %v1185_v38 = vld [vmem:[#allocation2 + $0x91] sm:$0xff]  ;;  %v1559_v49 = vld [vmem:[%s2161_s3] ss:$0 sm:$0xff] }
 0x201   : > { %482 = vst.msk [vmem:[#allocation2 + $0x81] sm:$0xff] %vm452_vm1, %v451_v46  ;;  %v2045_v50 = vld [vmem:[#allocation2 + $0x51] sm:$0xff]  ;;  %1622 = vmatpush3.bf16.msra.mxu1 %v610_v45  ;;  %v886_v51 = vpack.c.bf16 %v508_v48, %v507_v42  ;;  %v980_v1 = vld [vmem:[#allocation2 + $0x42] sm:$0xff] }
 0x202   : > { %v2050_v53 = vpack.c.bf16 %v2045_v50, %v508_v48  ;;  %1769 = vmatprep.subr.msk.bf16.mxu1 %vm528_vm3, %v485_v47  ;;  %v496_v5 = vld [vmem:[#allocation2 + $0x40] sm:$0xff]  ;;  %v497_v6 = vld [vmem:[#allocation2 + $0x50] sm:$0xff]  ;;  %v986_v8 = vpack.c.bf16 %v980_v1, %v979_v4 }
 0x203   : > { %1654 = vmatmul.mubr.msk.bf16.vlgmr.msra.gmra.mrb[0].mxu0 %vm452_vm1, %v886_v51  ;;  %v981_v11 = vld [vmem:[#allocation2 + $0x52] sm:$0xff]  ;;  %v502_v12 = vpack.c.bf16 %v497_v6, %v496_v5  ;;  %v786_v36 = vpack.c.bf16 %v496_v5, %v495_v3 }
 0x204   : > { %1617 = vmatprep.mubr.msk.bf16.mxu1 %vm452_vm1, %v2050_v53  ;;  %1662 = vmatpush3.bf16.msra.mxu0 %v1002_v52  ;;  %v2059_v57 = vld [vmem:[#allocation2 + $0x61] sm:$0xff]  ;;  %v687_v27 = vpack.c.bf16 %v981_v11, %v980_v1  ;;  %v1285_v42 = vld [vmem:[#allocation2 + $0x92] sm:$0xff] }
 0x205   : > { %1663 = vmatprep.mubr.msk.bf16.mxu0 %vm452_vm1, %v985_v56  ;;  %v2064_v62 = vld [vmem:[#allocation2 + $0x71] sm:$0xff]  ;;  %1774 = vmatprep.subr.msk.bf16.mxu0 %vm528_vm3, %v489_v55  ;;  %v982_v7 = vld [vmem:[#allocation2 + $0x62] sm:$0xff]  ;;  %v887_v41 = vpack.c.bf16 %v2059_v57, %v2045_v50 }
 0x206   : > { %v2069_v63 = vpack.c.bf16 %v2064_v62, %v2059_v57  ;;  %v987_v13 = vpack.c.bf16 %v982_v7, %v981_v11  ;;  %v498_v18 = vld [vmem:[#allocation2 + $0x60] sm:$0xff]  ;;  %v499_v19 = vld [vmem:[#allocation2 + $0x70] sm:$0xff] }
 0x207   : > { %v983_v20 = vld [vmem:[#allocation2 + $0x72] sm:$0xff]  ;;  %v503_v23 = vpack.c.bf16 %v499_v19, %v498_v18 }
 0x208   : > { %1618 = vmatmul.mubr.msk.bf16.gmra.mrb[4].mxu1 %vm452_vm1, %v2069_v63  ;;  %v984_v17 = vld [vmem:[#allocation2 + $0x82] sm:$0xff]  ;;  %v688_v33 = vpack.c.bf16 %v983_v20, %v982_v7 }
 0x209   : > { %1623 = vmatprep.mubr.msk.bf16.mxu1 %vm452_vm1, %v500_v0  ;;  %v988_v22 = vpack.c.bf16 %v984_v17, %v983_v20  ;;  %v1084_v30 = vld [vmem:[#allocation2 + $0x80] sm:$0xff]  ;;  %v1289_v43 = vpack.c.bf16 %v1285_v42, %v984_v17 }
 0x20a   : > { %v1089_v32 = vpack.c.bf16 %v1085_v31, %v1084_v30  ;;  %v1184_v37 = vld [vmem:[#allocation2 + $0x81] sm:$0xff]  ;;  %v788_v40 = vpack.c.bf16 %v1084_v30, %v499_v19 }
 0x20b   : > { %v1189_v39 = vpack.c.bf16 %v1185_v38, %v1184_v37 }
 0x20f   : > { %1664 = vmatmul.mubr.msk.bf16.vlgmr.msra.gmra.mrb[0].mxu0 %vm452_vm1, %v986_v8 }
 0x210   : > { %1624 = vmatmul.mubr.msk.bf16.vlgmr.msra.gmra.mrb[0].mxu1 %vm452_vm1, %v501_v10  ;;  %1672 = vmatpush3.bf16.msra.mxu0 %v1103_v9 }
 0x211   : > { %1627 = vmatprep.mubr.msk.bf16.mxu1 %vm452_vm1, %v502_v12  ;;  %1667 = vmatprep.mubr.msk.bf16.mxu0 %vm452_vm1, %v987_v13 }
 0x212   : > { %1632 = vmatpush3.bf16.msra.mxu1 %v702_v14  ;;  %1775 = vmatprep.subr.msk.bf16.mxu0 %vm528_vm3, %v490_v15 }
 0x213   : > { %1770 = vmatprep.subr.msk.bf16.mxu1 %vm528_vm3, %v486_v16 }
 0x217   : > { %1668 = vmatmul.mubr.msk.bf16.gmra.mrb[4].mxu0 %vm452_vm1, %v988_v22 }
 0x218   : > { %1628 = vmatmul.mubr.msk.bf16.gmra.mrb[4].mxu1 %vm452_vm1, %v503_v23  ;;  %1673 = vmatprep.mubr.msk.bf16.mxu0 %vm452_vm1, %v501_v10 }
 0x219   : > { %1633 = vmatprep.mubr.msk.bf16.mxu1 %vm452_vm1, %v685_v24 }
 0x21f   : > { %1674 = vmatmul.mubr.msk.bf16.vlgmr.msra.gmra.mrb[0].mxu0 %vm452_vm1, %v502_v12 }
 0x220   : > { %1634 = vmatmul.mubr.msk.bf16.vlgmr.msra.gmra.mrb[0].mxu1 %vm452_vm1, %v686_v26  ;;  %1682 = vmatpush3.bf16.msra.mxu0 %v1203_v25 }
 0x221   : > { %1637 = vmatprep.mubr.msk.bf16.mxu1 %vm452_vm1, %v687_v27  ;;  %1677 = vmatprep.mubr.msk.bf16.mxu0 %vm452_vm1, %v503_v23 }
 0x222   : > { %1642 = vmatpush3.bf16.msra.mxu1 %v802_v28  ;;  %1776 = vmatprep.subr.msk.bf16.mxu0 %vm528_vm3, %v491_v29 }
 0x223   : > { %1772 = vmatprep.subr.msk.bf16.mxu1 %vm528_vm3, %v1993_v59  ;;  %v787_v59 = vpack.c.bf16 %v498_v18, %v497_v6 }
 0x227   : > { %1678 = vmatmul.mubr.msk.bf16.gmra.mrb[4].mxu0 %vm452_vm1, %v1089_v32 }
 0x228   : > { %1638 = vmatmul.mubr.msk.bf16.gmra.mrb[4].mxu1 %vm452_vm1, %v688_v33  ;;  %1683 = vmatprep.mubr.msk.bf16.mxu0 %vm452_vm1, %v2035_v44 }
 0x229   : > { %1643 = vmatprep.mubr.msk.bf16.mxu1 %vm452_vm1, %v785_v34 }
 0x22f   : > { %1684 = vmatmul.mubr.msk.bf16.vlgmr.msra.gmra.mrb[0].mxu0 %vm452_vm1, %v2050_v53 }
 0x230   : > { %1644 = vmatmul.mubr.msk.bf16.vlgmr.msra.gmra.mrb[0].mxu1 %vm452_vm1, %v786_v36  ;;  %1692 = vmatpush3.bf16.msra.mxu0 %v1303_v35 }
 0x231   : > { %1647 = vmatprep.mubr.msk.bf16.mxu1 %vm452_vm1, %v787_v59  ;;  %1687 = vmatprep.mubr.msk.bf16.mxu0 %vm452_vm1, %v2069_v63 }
 0x232   : > { %1702 = vmatpush3.bf16.msra.mxu1 %v1999_v60  ;;  %v888_v60 = vpack.c.bf16 %v1184_v37, %v2064_v62 }
 0x237   : > { %1688 = vmatmul.mubr.msk.bf16.gmra.mrb[4].mxu0 %vm452_vm1, %v1189_v39 }
 0x238   : > { %1648 = vmatmul.mubr.msk.bf16.gmra.mrb[4].mxu1 %vm452_vm1, %v788_v40  ;;  %1693 = vmatprep.mubr.msk.bf16.mxu0 %vm452_vm1, %v686_v26 }
 0x239   : > { %1657 = vmatprep.mubr.msk.bf16.mxu1 %vm452_vm1, %v887_v41 }
 0x23f   : > { %1694 = vmatmul.mubr.msk.bf16.vlgmr.msra.gmra.mrb[0].mxu0 %vm452_vm1, %v687_v27 }
 0x240   : > { %1697 = vmatprep.mubr.msk.bf16.mxu0 %vm452_vm1, %v688_v33 }
 0x244   : > { %1658 = vmatmul.mubr.msk.bf16.vlgmr.msra.gmra.mrb[4].mxu1 %vm452_vm1, %v888_v60 }
 0x247   : > { %1698 = vmatmul.mubr.msk.bf16.gmra.mrb[4].mxu0 %vm452_vm1, %v1289_v43 }
 0x303   : > { %v1645_v44 = vpop.f32.mrb[0].mxu1 }
 0x304   : > { %v838_v45 = vpop.f32.mrb[1].mxu1 }
 0x305   : > { %v1646_v46 = vpop.f32.mrb[2].mxu1 }
 0x306   : > { %v841_v47 = vpop.f32.mrb[3].mxu1 }
 0x312   : > { %v1695_v48 = vpop.f32.mrb[0].mxu0 }
 0x313   : > { %v1703_v50 = vadd.f32 %v1695_v48, %v1645_v44  ;;  %v1339_v51 = vpop.f32.mrb[1].mxu0 }
 0x314   : > { %v1704_v52 = vadd.f32 %v1339_v51, %v838_v45  ;;  %v1696_v53 = vpop.f32.mrb[2].mxu0 }
 0x315   : > { %v1387_v54 = vadd.f32 %v1703_v50, %v1559_v49  ;;  %v1705_v55 = vadd.f32 %v1696_v53, %v1646_v46  ;;  %v1342_v56 = vpop.f32.mrb[3].mxu0 }
 0x316   : > { %v1385_v57 = vadd.f32 %v1704_v52, %v1559_v49  ;;  %v1706_v58 = vadd.f32 %v1342_v56, %v841_v47 }
 0x317   : > { %v1395_v61 = vmax.f32 %v1387_v54, 0.0  ;;  %v1388_v62 = vadd.f32 %v1705_v55, %v1559_v49  ;;  %v1659_v63 = vpop.f32.mrb[4].mxu1 }
 0x318   : > { %v1393_v0 = vmax.f32 %v1385_v57, 0.0  ;;  %v1386_v1 = vadd.f32 %v1706_v58, %v1559_v49  ;;  %v954_v2 = vpop.f32.mrb[5].mxu1 }
 0x319   : > { %1404 = vst.msk [vmem:[%s2137_s29 + $0x10] sm:$0xff] %vm1401_vm4, %v1395_v61  ;;  %v1396_v3 = vmax.f32 %v1388_v62, 0.0  ;;  %v1660_v4 = vpop.f32.mrb[6].mxu1 }
 0x31a   : > { %1402 = vst.msk [vmem:[%s2137_s29] sm:$0xff] %vm1401_vm4, %v1393_v0  ;;  %v1394_v5 = vmax.f32 %v1386_v1, 0.0  ;;  %v957_v6 = vpop.f32.mrb[7].mxu1  ;;  %v1699_v7 = vpop.f32.mrb[4].mxu0 }
 0x31b   : > { %1405 = vst.msk [vmem:[%s2137_s29 + $0x18] sm:$0xff] %vm1401_vm4, %v1396_v3  ;;  %v1707_v8 = vadd.f32 %v1699_v7, %v1659_v63  ;;  %v1355_v9 = vpop.f32.mrb[5].mxu0 }
 0x31c   : > { %1403 = vst.msk [vmem:[%s2137_s29 + $0x8] sm:$0xff] %vm1401_vm4, %v1394_v5  ;;  %v1708_v10 = vadd.f32 %v1355_v9, %v954_v2  ;;  %v1700_v11 = vpop.f32.mrb[6].mxu0 }
 0x31d   : > { %v1391_v12 = vadd.f32 %v1707_v8, %v1559_v49  ;;  %v1709_v13 = vadd.f32 %v1700_v11, %v1660_v4  ;;  %v1358_v14 = vpop.f32.mrb[7].mxu0 }
 0x31e   : > { %v1389_v15 = vadd.f32 %v1708_v10, %v1559_v49  ;;  %v1710_v16 = vadd.f32 %v1358_v14, %v957_v6 }
 0x31f   : > { %v1399_v17 = vmax.f32 %v1391_v12, 0.0  ;;  %v1392_v18 = vadd.f32 %v1709_v13, %v1559_v49 }
 0x320   : > { %v1397_v19 = vmax.f32 %v1389_v15, 0.0  ;;  %v1390_v20 = vadd.f32 %v1710_v16, %v1559_v49 }
 0x321   : > { %1408 = vst.msk [vmem:[%s2137_s29 + $0x30] sm:$0xff] %vm1401_vm4, %v1399_v17  ;;  %v1400_v21 = vmax.f32 %v1392_v18, 0.0 }
 0x322   : > { %1406 = vst.msk [vmem:[%s2137_s29 + $0x20] sm:$0xff] %vm1401_vm4, %v1397_v19  ;;  %v1398_v22 = vmax.f32 %v1390_v20, 0.0 }
 0x323   : > { %1409 = vst.msk [vmem:[%s2137_s29 + $0x38] sm:$0xff] %vm1401_vm4, %v1400_v21 }
 0x324   : > { %1407 = vst.msk [vmem:[%s2137_s29 + $0x28] sm:$0xff] %vm1401_vm4, %v1398_v22 }
 0x325 PF: > { %s16_s18 = sadd.s32 1, %s1840_s18  }
 0x326   : > { %p13_p4 = scmp.ge.s32.totalorder %s16_s18, 4  }
 0x328   :  { %15 = sbr.rel (!%p13_p4) target bundleno = 1 (0x1), region = 83 }

// kernel: multiclass_uafm_forward.4
= control target key start
LH: loop header
LB: loop body
LE: loop exit
PB: predicated region body
PF: predicated region fallthrough
CT: control target
= control target key end

     0   :  { %s6569_s15 = smov 0   ;;  %s8361_s0 = inlined_call_operand.vmem [shape: f32[2,8,8,5], index: 0, kind: input, shape index: {}]   ;;  %s8362_s1 = inlined_call_operand.vmem [shape: f32[2,16,16,6], index: 1, kind: input, shape index: {}]   ;;  %s8363_s2 = inlined_call_operand.vmem [shape: bf16[3,3,6,16], index: 2, kind: input, shape index: {}]   ;;  %s8364_s3 = inlined_call_operand.vmem [shape: f32[1,16], index: 3, kind: input, shape index: {}]   ;;  %s8365_s4 = inlined_call_operand.vmem [shape: f32[2,16,16,16], index: 4, kind: output, shape index: {}]  }
   0x1 LB: > { %s5571_s16 = sadd.s32 4294967295, %s6541_s15   ;;  %p5575_p0 = scmp.ge.s32.totalorder %s6541_s15, 1  ;;  %s6541_s15 = sphi %s6569_s15, %s14_s15  }
   0x2   : > { %p172_p1 = scmp.lt.s32.totalorder %s6541_s15, 3 }
   0x4   : > { %p173_p2 = pnand %p5575_p0, %p172_p1 }
   0x5   : > { %p203_p3 = scmp.lt.s32.totalorder (!%p173_p2), %s5571_s16, 1  ;;  %vm2153_vm0 = vcmask (!%p173_p2), 1040384   ;;  %vm2170_vm1 = vcmask (!%p173_p2), 1041408   ;;  %vm2187_vm2 = vcmask (!%p173_p2), 1042432   ;;  %vm2204_vm3 = vcmask (!%p173_p2), 1043456  }
   0x6   : > { %176 = sbr.rel (%p173_p2) target bundleno = 982 (0x3d6), region = 36  ;;  %vm2221_vm4 = vcmask (!%p173_p2), 1044480   ;;  %vm2238_vm5 = vcmask (!%p173_p2), 1045504   ;;  %vm2255_vm6 = vcmask (!%p173_p2), 1046528   ;;  %vm2512_vm7 = vcmask (!%p173_p2), 39936  }
   0x7   : > { %vm2737_vm8 = vcmask (!%p173_p2), 48128   ;;  %vm2740_vm9 = vcmask (!%p173_p2), 41984   ;;  %vm5471_vm10 = vcmask (!%p173_p2), 130048  }
   0xd   : > { %s8367_s16 = smov (!%p203_p3, %s5571_s16), 1 }
   0xe   : > { %s5729_s17 = sshll.u32 %s8367_s16, 6  ;;  %s5730_s25 = sshll.u32 %s8367_s16, 8 }
   0xf   : > { %s6583_s20 = scalar_lea.vmem %s8361_s0, %s5729_s17  ;;  %s7636_s28 = scalar_lea.vmem %s8362_s1, %s5730_s25 }
  0x10   : > { %v6586_v0 = vld [vmem:[%s6583_s20] sm:$0xff]  ;;  %v220_v1 = vld [vmem:[%s6583_s20 + $0x8] sm:$0xff]  ;;  %v221_v2 = vld [vmem:[%s6583_s20 + $0x10] sm:$0xff] }
  0x11   : > { %v6591_v3 = vmul.f32 0.5333333, %v6586_v0  ;;  %v222_v4 = vld [vmem:[%s6583_s20 + $0x18] sm:$0xff]  ;;  %v223_v5 = vld [vmem:[%s6583_s20 + $0x20] sm:$0xff]  ;;  %v228_v6 = vmul.f32 0.46666667, %v220_v1 }
  0x12   : > { %v230_v7 = vmul.f32 0.06666666, %v6586_v0  ;;  %v231_v8 = vmul.f32 0.93333334, %v220_v1  ;;  %v233_v9 = vmul.f32 0.6, %v220_v1 }
  0x13   : > { %v234_v10 = vmul.f32 0.4, %v221_v2  ;;  %v236_v11 = vmul.f32 0.13333333, %v220_v1  ;;  %v237_v12 = vmul.f32 0.8666667, %v221_v2  ;;  %v6597_v14 = vadd.f32 %v228_v6, %v6591_v3 }
  0x14   : > { %v239_v13 = vmul.f32 0.6666666, %v221_v2  ;;  %v224_v15 = vld [vmem:[%s6583_s20 + $0x28] sm:$0xff]  ;;  %v225_v16 = vld [vmem:[%s6583_s20 + $0x30] sm:$0xff]  ;;  %v6601_v17 = vadd.f32 %v231_v8, %v230_v7  ;;  %v240_v19 = vmul.f32 0.33333334, %v222_v4 }
  0x15   : > { %v6603_v18 = vadd.f32 %v234_v10, %v233_v9  ;;  %v242_v20 = vmul.f32 0.19999999, %v221_v2  ;;  %v6605_v21 = vadd.f32 %v237_v12, %v236_v11  ;;  %v243_v22 = vmul.f32 0.8, %v222_v4  ;;  %v226_v29 = vld [vmem:[%s6583_s20 + $0x38] sm:$0xff] }
  0x16   : > { %v245_v23 = vmul.f32 0.73333335, %v222_v4  ;;  %v246_v24 = vmul.f32 0.26666668, %v223_v5  ;;  %v6607_v25 = vadd.f32 %v240_v19, %v239_v13  ;;  %v248_v26 = vmul.f32 0.26666665, %v222_v4 }
  0x17   : > { %v249_v27 = vmul.f32 0.73333335, %v223_v5  ;;  %v251_v28 = vmul.f32 0.8, %v223_v5  ;;  %v6610_v30 = vadd.f32 %v243_v22, %v242_v20  ;;  %v252_v32 = vmul.f32 0.2, %v224_v15 }
  0x18   : > { %v6612_v31 = vadd.f32 %v246_v24, %v245_v23  ;;  %v254_v33 = vmul.f32 0.3333333, %v223_v5  ;;  %v255_v35 = vmul.f32 0.6666667, %v224_v15  ;;  %v257_v36 = vmul.f32 0.8666667, %v224_v15 }
  0x19   : > { %v6614_v34 = vadd.f32 %v249_v27, %v248_v26  ;;  %v258_v37 = vmul.f32 0.13333334, %v225_v16  ;;  %v6616_v38 = vadd.f32 %v252_v32, %v251_v28  ;;  %v260_v39 = vmul.f32 0.39999998, %v224_v15 }
  0x1a   : > { %v261_v40 = vmul.f32 0.6, %v225_v16  ;;  %v263_v41 = vmul.f32 0.93333334, %v225_v16  ;;  %v6618_v42 = vadd.f32 %v255_v35, %v254_v33  ;;  %v6622_v44 = vmul.f32 0.06666667, %v226_v29 }
  0x1b   : > { %v6620_v43 = vadd.f32 %v258_v37, %v257_v36  ;;  %v266_v45 = vmul.f32 0.46666664, %v225_v16  ;;  %v6626_v47 = vmul.f32 0.53333336, %v226_v29  ;;  %v284_v48 = vmul.f32 0.46666667, %v6586_v0 }
  0x1c   : > { %v6624_v46 = vadd.f32 %v261_v40, %v260_v39  ;;  %v6630_v49 = vmul.f32 0.93333334, %v6586_v0  ;;  %v6633_v50 = vadd.f32 %v6622_v44, %v263_v41  ;;  %v6636_v51 = vmul.f32 0.6, %v6586_v0 }
  0x1d   : > { %v475_v52 = vmul.f32 0.4, %v6586_v0  ;;  %v555_v53 = vmul.f32 0.13333333, %v6586_v0  ;;  %v6641_v54 = vadd.f32 %v6626_v47, %v266_v45  ;;  %v316_v55 = vrot.slane %v284_v48, 1 }
  0x1e   : > { %v411_v56 = vrot.slane %v6630_v49, 1  ;;  %v571_v57 = vmul.f32 0.8666667, %v6586_v0  ;;  %v651_v59 = vmul.f32 0.6666666, %v6586_v0  ;;  %v1307_v61 = vrot.slane %v6636_v51, 1 }
  0x1f   : > { %v507_v58 = vrot.slane %v475_v52, 1  ;;  %v667_v60 = vmul.f32 0.33333334, %v6586_v0  ;;  %v348_v62 = vadd.f32 %v316_v55, %v6591_v3  ;;  %v747_v2 = vmul.f32 0.19999999, %v6586_v0 }
  0x20   : > { %v443_v63 = vadd.f32 %v411_v56, %v230_v7  ;;  %v603_v1 = vrot.slane %v571_v57, 1  ;;  %v763_v6 = vmul.f32 0.8, %v6586_v0  ;;  %v843_v8 = vmul.f32 0.73333335, %v6586_v0 }
  0x21   : > { %v539_v4 = vadd.f32 %v507_v58, %v6636_v51  ;;  %v699_v5 = vrot.slane %v667_v60, 1  ;;  %v859_v10 = vmul.f32 0.26666668, %v6586_v0  ;;  %v939_v11 = vmul.f32 0.26666665, %v6586_v0 }
  0x22   : > { %v635_v9 = vadd.f32 %v603_v1, %v555_v53  ;;  %v1019_v3 = vmul.f32 0.2, %v6586_v0  ;;  %v795_v12 = vrot.slane %v763_v6, 1  ;;  %v971_v13 = vrot.slane %v843_v8, 1 }
  0x23   : > { %v731_v7 = vadd.f32 %v699_v5, %v651_v59  ;;  %v1545_v15 = vrot.slane %v348_v62, 7  ;;  %v891_v16 = vrot.slane %v859_v10, 1  ;;  %v1593_v20 = vrot.slane %v443_v63, 6 }
  0x24   : > { %v1051_v19 = vrot.slane %v1019_v3, 1  ;;  %v1641_v22 = vrot.slane %v539_v4, 6  ;;  %v827_v23 = vadd.f32 %v795_v12, %v747_v2  ;;  %v1003_v24 = vadd.f32 %v971_v13, %v939_v11 }
  0x25   : > { %v1689_v26 = vrot.slane %v635_v9, 5  ;;  %v1737_v27 = vrot.slane %v731_v7, 5  ;;  %v923_v28 = vadd.f32 %v891_v16, %v843_v8  ;;  %v2154_v32 = vsel %vm2153_vm0, %v6586_v0, %v1545_v15 }
  0x26   : > { %v1083_v29 = vadd.f32 %v1051_v19, %v763_v6  ;;  %v1099_v33 = vmul.f32 0.3333333, %v6586_v0  ;;  %v1785_v35 = vrot.slane %v827_v23, 4  ;;  %v1881_v36 = vrot.slane %v1003_v24, 3 }
  0x27   : > { %v2171_v37 = vsel %vm2170_vm1, %v2154_v32, %v1593_v20  ;;  %v1115_v39 = vmul.f32 0.6666667, %v6586_v0  ;;  %v1833_v40 = vrot.slane %v923_v28, 4  ;;  %v1195_v48 = vmul.f32 0.13333334, %v6586_v0 }
  0x28   : > { %v1929_v41 = vrot.slane %v1083_v29, 3  ;;  %v2188_v45 = vsel %vm2187_vm2, %v2171_v37, %v1641_v22  ;;  %v1275_v53 = vmul.f32 0.39999998, %v6586_v0  ;;  %v1355_v55 = vmul.f32 0.06666667, %v6586_v0 }
  0x29   : > { %v2205_v51 = vsel %vm2204_vm3, %v2188_v45, %v1689_v26  ;;  %v1147_v52 = vrot.slane %v1115_v39, 1  ;;  %v1227_v58 = vrot.slane %v1195_v48, 1  ;;  %v1434_v59 = vmul.f32 0.46666664, %v6586_v0 }
  0x2a   : > { %v2222_v56 = vsel %vm2221_vm4, %v2205_v51, %v1737_v27  ;;  %v1450_v60 = vmul.f32 0.53333336, %v6586_v0  ;;  %v1339_v1 = vadd.f32 %v1307_v61, %v1275_v53  ;;  %v1386_v2 = vrot.slane %v1355_v55, 1 }
  0x2b   : > { %v2239_v62 = vsel %vm2238_vm5, %v2222_v56, %v1785_v35  ;;  %v1179_v63 = vadd.f32 %v1147_v52, %v1099_v33  ;;  %v1259_v5 = vadd.f32 %v1227_v58, %v571_v57  ;;  %v2272_v8 = vsel %vm2153_vm0, %v1881_v36, %v1929_v41 }
  0x2c   : > { %v6671_v4 = vsel %vm2255_vm6, %v2239_v62, %v1833_v40  ;;  %v1481_v6 = vrot.slane %v1450_v60, 1  ;;  %v1418_v10 = vadd.f32 %v1386_v2, %v6630_v49  ;;  %v2073_v3 = vrot.slane %v1339_v1, 1 }
  0x2d   : > { %v2384_v9 = vadd.f32 1e-07, %v6671_v4  ;;  %v1977_v11 = vrot.slane %v1179_v63, 2  ;;  %v2025_v12 = vrot.slane %v1259_v5, 2  ;;  %v269_v13 = vmul.f32 0.5333333, %v6597_v14 }
  0x2e   : > { %v1513_v7 = vadd.f32 %v1481_v6, %v1434_v59  ;;  %v285_v61 = vmul.f32 0.46666667, %v6597_v14  ;;  %v2121_v15 = vrot.slane %v1418_v10, 1  ;;  %v364_v57 = vmul.f32 0.06666666, %v6597_v14 }
  0x2f   : > { %6468 = vlog2.f32 %v2384_v9  ;;  %v2288_v16 = vsel %vm2170_vm1, %v2272_v8, %v1977_v11  ;;  %v6682_v22 = vmul.f32 0.93333334, %v6597_v14  ;;  %v6685_v49 = vmul.f32 0.6, %v6597_v14 }
  0x30   : > { %v2304_v19 = vsel %vm2187_vm2, %v2288_v16, %v2025_v12  ;;  %v317_v20 = vrot.slane %v285_v61, 1  ;;  %v476_v24 = vmul.f32 0.4, %v6597_v14  ;;  %v556_v26 = vmul.f32 0.13333333, %v6597_v14 }
  0x31   : > { %v2320_v23 = vsel %vm2204_vm3, %v2304_v19, %v2073_v3  ;;  %v6691_v27 = vmul.f32 0.8666667, %v6597_v14  ;;  %v412_v32 = vrot.slane %v6682_v22, 1  ;;  %v652_v33 = vmul.f32 0.6666666, %v6597_v14 }
  0x32   : > { %v2336_v28 = vsel %vm2221_vm4, %v2320_v23, %v2121_v15  ;;  %v349_v29 = vadd.f32 %v317_v20, %v269_v13  ;;  %v508_v36 = vrot.slane %v476_v24, 1  ;;  %v668_v39 = vmul.f32 0.33333334, %v6597_v14 }
  0x33   : > { %v2352_v35 = vsel %vm2238_vm5, %v2336_v28, %v1513_v7  ;;  %v604_v37 = vrot.slane %v6691_v27, 1  ;;  %v444_v41 = vadd.f32 %v412_v32, %v364_v57  ;;  %v748_v45 = vmul.f32 0.19999999, %v6597_v14 }
  0x34   : > { %v6701_v40 = vsel %vm2255_vm6, %v2352_v35, %v6586_v0  ;;  %v764_v48 = vmul.f32 0.8, %v6597_v14  ;;  %v540_v52 = vadd.f32 %v508_v36, %v6685_v49  ;;  %v700_v55 = vrot.slane %v668_v39, 1 }
  0x35   : > { %v2385_v51 = vadd.f32 1e-07, %v6701_v40  ;;  %v636_v53 = vadd.f32 %v604_v37, %v556_v26  ;;  %v844_v58 = vmul.f32 0.73333335, %v6597_v14  ;;  %v860_v59 = vmul.f32 0.26666668, %v6597_v14 }
  0x36   : > { %v796_v56 = vrot.slane %v764_v48, 1  ;;  %v1546_v60 = vrot.slane %v349_v29, 7  ;;  %v732_v0 = vadd.f32 %v700_v55, %v652_v33  ;;  %v940_v62 = vmul.f32 0.26666665, %v6597_v14 }
  0x37   : > { %6470 = vlog2.f32 %v2385_v51  ;;  %v1020_v63 = vmul.f32 0.2, %v6597_v14  ;;  %v892_v2 = vrot.slane %v860_v59, 1  ;;  %v972_v5 = vrot.slane %v844_v58, 1 }
  0x38   : > { %v828_v1 = vadd.f32 %v796_v56, %v748_v45  ;;  %v1594_v6 = vrot.slane %v444_v41, 6  ;;  %v1642_v10 = vrot.slane %v540_v52, 6  ;;  %v1690_v11 = vrot.slane %v636_v53, 5 }
  0x39   : > { %v6469_v8 = vpop.eup %6468  ;;  %v1052_v9 = vrot.slane %v1020_v63, 1  ;;  %v1738_v3 = vrot.slane %v732_v0, 5  ;;  %v924_v12 = vadd.f32 %v892_v2, %v844_v58  ;;  %v1004_v13 = vadd.f32 %v972_v5, %v940_v62 }
  0x3a   : > { %v2417_v7 = vmul.f32 0.6931472, %v6469_v8  ;;  %v1786_v61 = vrot.slane %v828_v1, 4  ;;  %v2155_v16 = vsel %vm2153_vm0, %v6597_v14, %v1546_v60  ;;  %v1100_v57 = vmul.f32 0.3333333, %v6597_v14 }
  0x3b   : > { %v1084_v15 = vadd.f32 %v1052_v9, %v764_v48  ;;  %v1116_v19 = vmul.f32 0.6666667, %v6597_v14  ;;  %v1834_v23 = vrot.slane %v924_v12, 4  ;;  %v1882_v24 = vrot.slane %v1004_v13, 3 }
  0x3c   : > { %v2480_v20 = vmul.f32 %v2417_v7, %v6671_v4  ;;  %v2172_v26 = vsel %vm2170_vm1, %v2155_v16, %v1594_v6  ;;  %v1196_v33 = vmul.f32 0.13333334, %v6597_v14  ;;  %v1276_v37 = vmul.f32 0.39999998, %v6597_v14 }
  0x3d   : > { %v1930_v28 = vrot.slane %v1084_v15, 3  ;;  %v2189_v29 = vsel %vm2187_vm2, %v2172_v26, %v1642_v10  ;;  %v1148_v32 = vrot.slane %v1116_v19, 1  ;;  %v1308_v39 = vrot.slane %v6685_v49, 1 }
  0x3e   : > { %v2513_v35 = vsel %vm2512_vm7, %v2480_v20, 0.0  ;;  %v2206_v36 = vsel %vm2204_vm3, %v2189_v29, %v1690_v11  ;;  %v1228_v45 = vrot.slane %v1196_v33, 1  ;;  %v1356_v48 = vmul.f32 0.06666667, %v6597_v14 }
  0x3f   : > { %2514 = vadd.xlane.f32.xlu0 %v2513_v35  ;;  %v2223_v4 = vsel %vm2221_vm4, %v2206_v36, %v1738_v3  ;;  %v1180_v41 = vadd.f32 %v1148_v32, %v1100_v57  ;;  %v1340_v52 = vadd.f32 %v1308_v39, %v1276_v37  ;;  %v1435_v53 = vmul.f32 0.46666664, %v6597_v14 }
  0x40   : > { %v2240_v51 = vsel %vm2238_vm5, %v2223_v4, %v1786_v61  ;;  %v1451_v55 = vmul.f32 0.53333336, %v6597_v14  ;;  %v1260_v49 = vadd.f32 %v1228_v45, %v6691_v27  ;;  %v1387_v59 = vrot.slane %v1356_v48, 1 }
  0x41   : > { %v6471_v56 = vpop.eup %6470  ;;  %v6729_v58 = vsel %vm2255_vm6, %v2240_v51, %v1834_v23  ;;  %v1978_v60 = vrot.slane %v1180_v41, 2  ;;  %v2074_v1 = vrot.slane %v1340_v52, 1  ;;  %v2273_v6 = vsel %vm2153_vm0, %v1882_v24, %v1930_v28 }
  0x42   : > { %v2419_v0 = vmul.f32 0.6931472, %v6471_v56  ;;  %v2386_v62 = vadd.f32 1e-07, %v6729_v58  ;;  %v1482_v63 = vrot.slane %v1451_v55, 1  ;;  %v1419_v2 = vadd.f32 %v1387_v59, %v6682_v22 }
  0x43   : > { %v2026_v5 = vrot.slane %v1260_v49, 2  ;;  %v270_v8 = vmul.f32 0.5333333, %v6601_v17  ;;  %v2289_v27 = vsel %vm2170_vm1, %v2273_v6, %v1978_v60  ;;  %v286_v7 = vmul.f32 0.46666667, %v6601_v17 }
  0x44   : > { %v2481_v9 = vmul.f32 %v2419_v0, %v6701_v40  ;;  %6472 = vlog2.f32 %v2386_v62  ;;  %v1514_v10 = vadd.f32 %v1482_v63, %v1435_v53  ;;  %v2122_v11 = vrot.slane %v1419_v2, 1 }
  0x45   : > { %v2305_v3 = vsel %vm2187_vm2, %v2289_v27, %v2026_v5  ;;  %v365_v12 = vmul.f32 0.06666666, %v6601_v17  ;;  %v6744_v61 = vmul.f32 0.93333334, %v6601_v17  ;;  %v6747_v40 = vmul.f32 0.6, %v6601_v17 }
  0x46   : > { %v2516_v22 = vsel %vm2512_vm7, %v2481_v9, 0.0  ;;  %v2321_v13 = vsel %vm2204_vm3, %v2305_v3, %v2074_v1  ;;  %v318_v16 = vrot.slane %v286_v7, 1  ;;  %v477_v57 = vmul.f32 0.4, %v6601_v17 }
  0x47   : > { %2517 = vadd.xlane.f32.xlu0 %v2516_v22  ;;  %v2337_v15 = vsel %vm2221_vm4, %v2321_v13, %v2122_v11  ;;  %v557_v19 = vmul.f32 0.13333333, %v6601_v17  ;;  %v413_v23 = vrot.slane %v6744_v61, 1  ;;  %v6755_v24 = vmul.f32 0.8666667, %v6601_v17 }
  0x48   : > { %v2353_v20 = vsel %vm2238_vm5, %v2337_v15, %v1514_v10  ;;  %v653_v26 = vmul.f32 0.6666666, %v6601_v17  ;;  %v350_v29 = vadd.f32 %v318_v16, %v270_v8  ;;  %v509_v32 = vrot.slane %v477_v57, 1 }
  0x49   : > { %v6760_v28 = vsel %vm2255_vm6, %v2353_v20, %v6597_v14  ;;  %v669_v33 = vmul.f32 0.33333334, %v6601_v17  ;;  %v445_v36 = vadd.f32 %v413_v23, %v365_v12  ;;  %v605_v37 = vrot.slane %v6755_v24, 1 }
  0x4a   : > { %v2387_v35 = vadd.f32 1e-07, %v6760_v28  ;;  %v749_v39 = vmul.f32 0.19999999, %v6601_v17  ;;  %v541_v4 = vadd.f32 %v509_v32, %v6747_v40  ;;  %v765_v45 = vmul.f32 0.8, %v6601_v17 }
  0x4b   : > { %v701_v41 = vrot.slane %v669_v33, 1  ;;  %v845_v48 = vmul.f32 0.73333335, %v6601_v17  ;;  %v637_v14 = vadd.f32 %v605_v37, %v557_v19  ;;  %v861_v51 = vmul.f32 0.26666668, %v6601_v17 }
  0x4c   : > { %6474 = vlog2.f32 %v2387_v35  ;;  %v941_v52 = vmul.f32 0.26666665, %v6601_v17  ;;  %v797_v55 = vrot.slane %v765_v45, 1  ;;  %v1021_v49 = vmul.f32 0.2, %v6601_v17 }
  0x4d   : > { %v733_v53 = vadd.f32 %v701_v41, %v653_v26  ;;  %v973_v56 = vrot.slane %v845_v48, 1  ;;  %v893_v60 = vrot.slane %v861_v51, 1  ;;  %v1547_v0 = vrot.slane %v350_v29, 7 }
  0x4e   : > { %v6473_v59 = vpop.eup %6472  ;;  %v1595_v62 = vrot.slane %v445_v36, 6  ;;  %v1643_v63 = vrot.slane %v541_v4, 6  ;;  %v829_v2 = vadd.f32 %v797_v55, %v749_v39  ;;  %v1053_v6 = vrot.slane %v1021_v49, 1 }
  0x4f   : > { %v2421_v1 = vmul.f32 0.6931472, %v6473_v59  ;;  %v1005_v5 = vadd.f32 %v973_v56, %v941_v52  ;;  %v925_v8 = vadd.f32 %v893_v60, %v845_v48  ;;  %v1691_v9 = vrot.slane %v637_v14, 5 }
  0x50   : > { %v1739_v10 = vrot.slane %v733_v53, 5  ;;  %v2156_v27 = vsel %vm2153_vm0, %v6601_v17, %v1547_v0  ;;  %v1085_v3 = vadd.f32 %v1053_v6, %v765_v45  ;;  %v1787_v7 = vrot.slane %v829_v2, 4 }
  0x51   : > { %v2482_v11 = vmul.f32 %v2421_v1, %v6729_v58  ;;  %v1883_v12 = vrot.slane %v1005_v5, 3  ;;  %v1835_v22 = vrot.slane %v925_v8, 4  ;;  %v2173_v13 = vsel %vm2170_vm1, %v2156_v27, %v1595_v62 }
  0x52   : > { %v1101_v15 = vmul.f32 0.3333333, %v6601_v17  ;;  %v1117_v16 = vmul.f32 0.6666667, %v6601_v17  ;;  %v1931_v19 = vrot.slane %v1085_v3, 3  ;;  %v2190_v20 = vsel %vm2187_vm2, %v2173_v13, %v1643_v63 }
  0x53   : > { %v2519_v57 = vsel %vm2512_vm7, %v2482_v11, 0.0  ;;  %v1197_v23 = vmul.f32 0.13333334, %v6601_v17  ;;  %v2207_v58 = vsel %vm2204_vm3, %v2190_v20, %v1691_v9  ;;  %v1277_v29 = vmul.f32 0.39999998, %v6601_v17 }
  0x54   : > { %2520 = vadd.xlane.f32.xlu1 %v2519_v57  ;;  %v1149_v26 = vrot.slane %v1117_v16, 1  ;;  %v1309_v32 = vrot.slane %v6747_v40, 1  ;;  %v2224_v33 = vsel %vm2221_vm4, %v2207_v58, %v1739_v10  ;;  %v1357_v36 = vmul.f32 0.06666667, %v6601_v17 }
  0x55   : > { %v1229_v35 = vrot.slane %v1197_v23, 1  ;;  %v1436_v37 = vmul.f32 0.46666664, %v6601_v17  ;;  %v2241_v4 = vsel %vm2238_vm5, %v2224_v33, %v1787_v7  ;;  %v1452_v48 = vmul.f32 0.53333336, %v6601_v17 }
  0x56   : > { %v6475_v39 = vpop.eup %6474  ;;  %v1181_v41 = vadd.f32 %v1149_v26, %v1101_v15  ;;  %v1341_v45 = vadd.f32 %v1309_v32, %v1277_v29  ;;  %v6790_v51 = vsel %vm2255_vm6, %v2241_v4, %v1835_v22  ;;  %v1388_v52 = vrot.slane %v1357_v36, 1 }
  0x57   : > { %v2423_v14 = vmul.f32 0.6931472, %v6475_v39  ;;  %v1261_v40 = vadd.f32 %v1229_v35, %v6755_v24  ;;  %v2388_v53 = vadd.f32 1e-07, %v6790_v51  ;;  %v1483_v55 = vrot.slane %v1452_v48, 1 }
  0x58   : > { %v1979_v56 = vrot.slane %v1181_v41, 2  ;;  %v2075_v49 = vrot.slane %v1341_v45, 1  ;;  %v1420_v60 = vadd.f32 %v1388_v52, %v6744_v61  ;;  %v2274_v62 = vsel %vm2153_vm0, %v1883_v12, %v1931_v19 }
  0x59   : > { %v2483_v59 = vmul.f32 %v2423_v14, %v6760_v28  ;;  %v2027_v0 = vrot.slane %v1261_v40, 2  ;;  %6476 = vlog2.f32 %v2388_v53  ;;  %v1515_v63 = vadd.f32 %v1483_v55, %v1436_v37 }
  0x5a   : > { %v2290_v1 = vsel %vm2170_vm1, %v2274_v62, %v1979_v56  ;;  %v271_v2 = vmul.f32 0.5333333, %v6603_v18  ;;  %v2123_v5 = vrot.slane %v1420_v60, 1  ;;  %v287_v8 = vmul.f32 0.46666667, %v6603_v18 }
  0x5b   : > { %v2522_v24 = vsel %vm2512_vm7, %v2483_v59, 0.0  ;;  %v2306_v6 = vsel %vm2187_vm2, %v2290_v1, %v2027_v0  ;;  %v366_v61 = vmul.f32 0.06666666, %v6603_v18  ;;  %v6805_v9 = vmul.f32 0.93333334, %v6603_v18 }
  0x5c   : > { %2523 = vadd.xlane.f32.xlu1 %v2522_v24  ;;  %v2322_v28 = vsel %vm2204_vm3, %v2306_v6, %v2075_v49  ;;  %v6808_v10 = vmul.f32 0.6, %v6603_v18  ;;  %v319_v11 = vrot.slane %v287_v8, 1  ;;  %v478_v3 = vmul.f32 0.4, %v6603_v18 }
  0x5d   : > { %v2338_v27 = vsel %vm2221_vm4, %v2322_v28, %v2123_v5  ;;  %v558_v7 = vmul.f32 0.13333333, %v6603_v18  ;;  %v414_v22 = vrot.slane %v6805_v9, 1  ;;  %v6816_v13 = vmul.f32 0.8666667, %v6603_v18 }
  0x5e   : > { %v2354_v12 = vsel %vm2238_vm5, %v2338_v27, %v1515_v63  ;;  %v654_v15 = vmul.f32 0.6666666, %v6603_v18  ;;  %v351_v57 = vadd.f32 %v319_v11, %v271_v2  ;;  %v510_v19 = vrot.slane %v478_v3, 1 }
  0x5f   : > { %v6821_v16 = vsel %vm2255_vm6, %v2354_v12, %v6601_v17  ;;  %v670_v20 = vmul.f32 0.33333334, %v6603_v18  ;;  %v446_v58 = vadd.f32 %v414_v22, %v366_v61  ;;  %v606_v26 = vrot.slane %v6816_v13, 1 }
  0x60   : > { %v2389_v23 = vadd.f32 1e-07, %v6821_v16  ;;  %v750_v29 = vmul.f32 0.19999999, %v6603_v18  ;;  %v542_v32 = vadd.f32 %v510_v19, %v6808_v10  ;;  %v766_v35 = vmul.f32 0.8, %v6603_v18 }
  0x61   : > { %v702_v33 = vrot.slane %v670_v20, 1  ;;  %v846_v36 = vmul.f32 0.73333335, %v6603_v18  ;;  %v638_v17 = vadd.f32 %v606_v26, %v558_v7  ;;  %v862_v37 = vmul.f32 0.26666668, %v6603_v18 }
  0x62   : > { %6478 = vlog2.f32 %v2389_v23  ;;  %v942_v39 = vmul.f32 0.26666665, %v6603_v18  ;;  %v798_v41 = vrot.slane %v766_v35, 1  ;;  %v1022_v48 = vmul.f32 0.2, %v6603_v18 }
  0x63   : > { %v734_v4 = vadd.f32 %v702_v33, %v654_v15  ;;  %v974_v45 = vrot.slane %v846_v36, 1  ;;  %v6477_v14 = vpop.eup %6476  ;;  %v894_v40 = vrot.slane %v862_v37, 1  ;;  %v1548_v52 = vrot.slane %v351_v57, 7 }
  0x64   : > { %v1596_v53 = vrot.slane %v446_v58, 6  ;;  %v1644_v55 = vrot.slane %v542_v32, 6  ;;  %v2425_v56 = vmul.f32 0.6931472, %v6477_v14  ;;  %v830_v49 = vadd.f32 %v798_v41, %v750_v29 }
  0x65   : > { %v1006_v59 = vadd.f32 %v974_v45, %v942_v39  ;;  %v1054_v60 = vrot.slane %v1022_v48, 1  ;;  %v926_v0 = vadd.f32 %v894_v40, %v846_v36  ;;  %v1692_v62 = vrot.slane %v638_v17, 5 }
  0x66   : > { %v1740_v63 = vrot.slane %v734_v4, 5  ;;  %v2157_v1 = vsel %vm2153_vm0, %v6603_v18, %v1548_v52  ;;  %v2484_v2 = vmul.f32 %v2425_v56, %v6790_v51  ;;  %v1788_v5 = vrot.slane %v830_v49, 4 }
  0x67   : > { %v1086_v24 = vadd.f32 %v1054_v60, %v766_v35  ;;  %v1884_v6 = vrot.slane %v1006_v59, 3  ;;  %v1836_v8 = vrot.slane %v926_v0, 4  ;;  %v2174_v28 = vsel %vm2170_vm1, %v2157_v1, %v1596_v53 }
  0x68   : > { %v1102_v61 = vmul.f32 0.3333333, %v6603_v18  ;;  %v1118_v27 = vmul.f32 0.6666667, %v6603_v18  ;;  %v2525_v11 = vsel %vm2512_vm7, %v2484_v2, 0.0  ;;  %v2191_v7 = vsel %vm2187_vm2, %v2174_v28, %v1644_v55 }
  0x69   : > { %v1932_v3 = vrot.slane %v1086_v24, 3  ;;  %v1198_v12 = vmul.f32 0.13333334, %v6603_v18  ;;  %2526 = vadd.xlane.f32.xlu0 %v2525_v11  ;;  %v2208_v51 = vsel %vm2204_vm3, %v2191_v7, %v1692_v62  ;;  %v1278_v15 = vmul.f32 0.39999998, %v6603_v18 }
  0x6a   : > { %v1150_v22 = vrot.slane %v1118_v27, 1  ;;  %v1310_v57 = vrot.slane %v6808_v10, 1  ;;  %v2225_v19 = vsel %vm2221_vm4, %v2208_v51, %v1740_v63  ;;  %v1358_v23 = vmul.f32 0.06666667, %v6603_v18 }
  0x6b   : > { %v1230_v20 = vrot.slane %v1198_v12, 1  ;;  %v1437_v58 = vmul.f32 0.46666664, %v6603_v18  ;;  %v2242_v29 = vsel %vm2238_vm5, %v2225_v19, %v1788_v5  ;;  %v1453_v35 = vmul.f32 0.53333336, %v6603_v18 }
  0x6c   : > { %v6479_v26 = vpop.eup %6478  ;;  %v1182_v32 = vadd.f32 %v1150_v22, %v1102_v61  ;;  %v1342_v33 = vadd.f32 %v1310_v57, %v1278_v15  ;;  %v6851_v17 = vsel %vm2255_vm6, %v2242_v29, %v1836_v8  ;;  %v1389_v37 = vrot.slane %v1358_v23, 1 }
  0x6d   : > { %v2427_v36 = vmul.f32 0.6931472, %v6479_v26  ;;  %v1262_v10 = vadd.f32 %v1230_v20, %v6816_v13  ;;  %v2390_v39 = vadd.f32 1e-07, %v6851_v17  ;;  %v1484_v4 = vrot.slane %v1453_v35, 1 }
  0x6e   : > { %v1980_v41 = vrot.slane %v1182_v32, 2  ;;  %v2076_v45 = vrot.slane %v1342_v33, 1  ;;  %v1421_v14 = vadd.f32 %v1389_v37, %v6805_v9  ;;  %v2275_v52 = vsel %vm2153_vm0, %v1884_v6, %v1932_v3 }
  0x6f   : > { %v2485_v48 = vmul.f32 %v2427_v36, %v6821_v16  ;;  %v2028_v40 = vrot.slane %v1262_v10, 2  ;;  %6480 = vlog2.f32 %v2390_v39  ;;  %v1516_v53 = vadd.f32 %v1484_v4, %v1437_v58 }
  0x70   : > { %v2291_v55 = vsel %vm2170_vm1, %v2275_v52, %v1980_v41  ;;  %v272_v56 = vmul.f32 0.5333333, %v6605_v21  ;;  %v2124_v49 = vrot.slane %v1421_v14, 1  ;;  %v288_v60 = vmul.f32 0.46666667, %v6605_v21 }
  0x71   : > { %v2528_v13 = vsel %vm2512_vm7, %v2485_v48, 0.0  ;;  %v2307_v59 = vsel %vm2187_vm2, %v2291_v55, %v2028_v40  ;;  %v367_v9 = vmul.f32 0.06666666, %v6605_v21  ;;  %v6866_v0 = vmul.f32 0.93333334, %v6605_v21 }
  0x72   : > { %2529 = vadd.xlane.f32.xlu1 %v2528_v13  ;;  %v2323_v16 = vsel %vm2204_vm3, %v2307_v59, %v2076_v45  ;;  %v6869_v62 = vmul.f32 0.6, %v6605_v21  ;;  %v320_v1 = vrot.slane %v288_v60, 1  ;;  %v479_v2 = vmul.f32 0.4, %v6605_v21 }
  0x73   : > { %v2339_v63 = vsel %vm2221_vm4, %v2323_v16, %v2124_v49  ;;  %v559_v24 = vmul.f32 0.13333333, %v6605_v21  ;;  %v415_v6 = vrot.slane %v6866_v0, 1  ;;  %v6877_v8 = vmul.f32 0.8666667, %v6605_v21 }
  0x74   : > { %v2355_v5 = vsel %vm2238_vm5, %v2339_v63, %v1516_v53  ;;  %v655_v28 = vmul.f32 0.6666666, %v6605_v21  ;;  %v352_v27 = vadd.f32 %v320_v1, %v272_v56  ;;  %v511_v11 = vrot.slane %v479_v2, 1 }
  0x75   : > { %v6882_v61 = vsel %vm2255_vm6, %v2355_v5, %v6603_v18  ;;  %v671_v3 = vmul.f32 0.33333334, %v6605_v21  ;;  %v447_v12 = vadd.f32 %v415_v6, %v367_v9  ;;  %v607_v51 = vrot.slane %v6877_v8, 1 }
  0x76   : > { %v2391_v7 = vadd.f32 1e-07, %v6882_v61  ;;  %v751_v22 = vmul.f32 0.19999999, %v6605_v21  ;;  %v543_v15 = vadd.f32 %v511_v11, %v6869_v62  ;;  %v767_v19 = vmul.f32 0.8, %v6605_v21 }
  0x77   : > { %v703_v57 = vrot.slane %v671_v3, 1  ;;  %v847_v20 = vmul.f32 0.73333335, %v6605_v21  ;;  %v639_v18 = vadd.f32 %v607_v51, %v559_v24  ;;  %v863_v23 = vmul.f32 0.26666668, %v6605_v21 }
  0x78   : > { %6482 = vlog2.f32 %v2391_v7  ;;  %v943_v58 = vmul.f32 0.26666665, %v6605_v21  ;;  %v799_v29 = vrot.slane %v767_v19, 1  ;;  %v1023_v33 = vmul.f32 0.2, %v6605_v21 }
  0x79   : > { %v735_v26 = vadd.f32 %v703_v57, %v655_v28  ;;  %v975_v32 = vrot.slane %v847_v20, 1  ;;  %v6481_v35 = vpop.eup %6480  ;;  %v895_v36 = vrot.slane %v863_v23, 1  ;;  %v1549_v10 = vrot.slane %v352_v27, 7 }
  0x7a   : > { %v1597_v37 = vrot.slane %v447_v12, 6  ;;  %v1645_v39 = vrot.slane %v543_v15, 6  ;;  %v2429_v4 = vmul.f32 0.6931472, %v6481_v35  ;;  %v831_v41 = vadd.f32 %v799_v29, %v751_v22 }
  0x7b   : > { %v1007_v45 = vadd.f32 %v975_v32, %v943_v58  ;;  %v1055_v48 = vrot.slane %v1023_v33, 1  ;;  %v927_v14 = vadd.f32 %v895_v36, %v847_v20  ;;  %v1693_v40 = vrot.slane %v639_v18, 5 }
  0x7c   : > { %v1741_v52 = vrot.slane %v735_v26, 5  ;;  %v2158_v53 = vsel %vm2153_vm0, %v6605_v21, %v1549_v10  ;;  %v2486_v55 = vmul.f32 %v2429_v4, %v6851_v17  ;;  %v1789_v13 = vrot.slane %v831_v41, 4 }
  0x7d   : > { %v1087_v56 = vadd.f32 %v1055_v48, %v767_v19  ;;  %v1885_v49 = vrot.slane %v1007_v45, 3  ;;  %v1837_v59 = vrot.slane %v927_v14, 4  ;;  %v2175_v60 = vsel %vm2170_vm1, %v2158_v53, %v1597_v37 }
  0x7e   : > { %v1103_v16 = vmul.f32 0.3333333, %v6605_v21  ;;  %v1119_v9 = vmul.f32 0.6666667, %v6605_v21  ;;  %v2531_v63 = vsel %vm2512_vm7, %v2486_v55, 0.0  ;;  %v2192_v2 = vsel %vm2187_vm2, %v2175_v60, %v1645_v39 }
  0x7f   : > { %v1933_v1 = vrot.slane %v1087_v56, 3  ;;  %v1199_v24 = vmul.f32 0.13333334, %v6605_v21  ;;  %2532 = vadd.xlane.f32.xlu0 %v2531_v63  ;;  %v2209_v17 = vsel %vm2204_vm3, %v2192_v2, %v1693_v40  ;;  %v1279_v6 = vmul.f32 0.39999998, %v6605_v21 }
  0x80   : > { %v1151_v5 = vrot.slane %v1119_v9, 1  ;;  %v1311_v28 = vrot.slane %v6869_v62, 1  ;;  %v2226_v27 = vsel %vm2221_vm4, %v2209_v17, %v1741_v52  ;;  %v1359_v3 = vmul.f32 0.06666667, %v6605_v21 }
  0x81   : > { %v1231_v11 = vrot.slane %v1199_v24, 1  ;;  %v1438_v7 = vmul.f32 0.46666664, %v6605_v21  ;;  %v2243_v51 = vsel %vm2238_vm5, %v2226_v27, %v1789_v13  ;;  %v1454_v57 = vmul.f32 0.53333336, %v6605_v21 }
  0x82   : > { %v6483_v12 = vpop.eup %6482  ;;  %v1183_v22 = vadd.f32 %v1151_v5, %v1103_v16  ;;  %v1343_v15 = vadd.f32 %v1311_v28, %v1279_v6  ;;  %v6912_v20 = vsel %vm2255_vm6, %v2243_v51, %v1837_v59  ;;  %v1390_v18 = vrot.slane %v1359_v3, 1 }
  0x83   : > { %v2431_v19 = vmul.f32 0.6931472, %v6483_v12  ;;  %v1263_v62 = vadd.f32 %v1231_v11, %v6877_v8  ;;  %v2392_v23 = vadd.f32 1e-07, %v6912_v20  ;;  %v1485_v58 = vrot.slane %v1454_v57, 1 }
  0x84   : > { %v1981_v26 = vrot.slane %v1183_v22, 2  ;;  %v2077_v29 = vrot.slane %v1343_v15, 1  ;;  %v1422_v33 = vadd.f32 %v1390_v18, %v6866_v0  ;;  %v2276_v36 = vsel %vm2153_vm0, %v1885_v49, %v1933_v1 }
  0x85   : > { %v2487_v32 = vmul.f32 %v2431_v19, %v6882_v61  ;;  %v2029_v35 = vrot.slane %v1263_v62, 2  ;;  %6484 = vlog2.f32 %v2392_v23  ;;  %v1517_v10 = vadd.f32 %v1485_v58, %v1438_v7 }
  0x86   : > { %v2292_v37 = vsel %vm2170_vm1, %v2276_v36, %v1981_v26  ;;  %v273_v39 = vmul.f32 0.5333333, %v6607_v25  ;;  %v2125_v4 = vrot.slane %v1422_v33, 1  ;;  %v289_v45 = vmul.f32 0.46666667, %v6607_v25 }
  0x87   : > { %v2534_v8 = vsel %vm2512_vm7, %v2487_v32, 0.0  ;;  %v2308_v41 = vsel %vm2187_vm2, %v2292_v37, %v2029_v35  ;;  %v368_v0 = vmul.f32 0.06666666, %v6607_v25  ;;  %v6927_v48 = vmul.f32 0.93333334, %v6607_v25 }
  0x88   : > { %2535 = vadd.xlane.f32.xlu1 %v2534_v8  ;;  %v2324_v61 = vsel %vm2204_vm3, %v2308_v41, %v2077_v29  ;;  %v6930_v14 = vmul.f32 0.6, %v6607_v25  ;;  %v321_v52 = vrot.slane %v289_v45, 1  ;;  %v480_v53 = vmul.f32 0.4, %v6607_v25 }
  0x89   : > { %v2340_v40 = vsel %vm2221_vm4, %v2324_v61, %v2125_v4  ;;  %v560_v55 = vmul.f32 0.13333333, %v6607_v25  ;;  %v416_v13 = vrot.slane %v6927_v48, 1  ;;  %v6938_v49 = vmul.f32 0.8666667, %v6607_v25 }
  0x8a   : > { %v2356_v56 = vsel %vm2238_vm5, %v2340_v40, %v1517_v10  ;;  %v656_v59 = vmul.f32 0.6666666, %v6607_v25  ;;  %v353_v16 = vadd.f32 %v321_v52, %v273_v39  ;;  %v512_v9 = vrot.slane %v480_v53, 1 }
  0x8b   : > { %v6943_v60 = vsel %vm2255_vm6, %v2356_v56, %v6605_v21  ;;  %v672_v63 = vmul.f32 0.33333334, %v6607_v25  ;;  %v448_v2 = vadd.f32 %v416_v13, %v368_v0  ;;  %v608_v24 = vrot.slane %v6938_v49, 1 }
  0x8c   : > { %v2393_v1 = vadd.f32 1e-07, %v6943_v60  ;;  %v752_v17 = vmul.f32 0.19999999, %v6607_v25  ;;  %v544_v5 = vadd.f32 %v512_v9, %v6930_v14  ;;  %v768_v28 = vmul.f32 0.8, %v6607_v25 }
  0x8d   : > { %v704_v6 = vrot.slane %v672_v63, 1  ;;  %v848_v27 = vmul.f32 0.73333335, %v6607_v25  ;;  %v640_v21 = vadd.f32 %v608_v24, %v560_v55  ;;  %v864_v11 = vmul.f32 0.26666668, %v6607_v25 }
  0x8e   : > { %6486 = vlog2.f32 %v2393_v1  ;;  %v944_v3 = vmul.f32 0.26666665, %v6607_v25  ;;  %v800_v12 = vrot.slane %v768_v28, 1  ;;  %v1024_v22 = vmul.f32 0.2, %v6607_v25 }
  0x8f   : > { %v736_v7 = vadd.f32 %v704_v6, %v656_v59  ;;  %v976_v51 = vrot.slane %v848_v27, 1  ;;  %v6485_v15 = vpop.eup %6484  ;;  %v896_v57 = vrot.slane %v864_v11, 1  ;;  %v1550_v19 = vrot.slane %v353_v16, 7 }
  0x90   : > { %v1598_v62 = vrot.slane %v448_v2, 6  ;;  %v1646_v18 = vrot.slane %v544_v5, 6  ;;  %v2433_v23 = vmul.f32 0.6931472, %v6485_v15  ;;  %v832_v58 = vadd.f32 %v800_v12, %v752_v17 }
  0x91   : > { %v1008_v26 = vadd.f32 %v976_v51, %v944_v3  ;;  %v1056_v29 = vrot.slane %v1024_v22, 1  ;;  %v928_v32 = vadd.f32 %v896_v57, %v848_v27  ;;  %v1694_v33 = vrot.slane %v640_v21, 5 }
  0x92   : > { %v1742_v35 = vrot.slane %v736_v7, 5  ;;  %v2159_v36 = vsel %vm2153_vm0, %v6607_v25, %v1550_v19  ;;  %v2488_v10 = vmul.f32 %v2433_v23, %v6912_v20  ;;  %v1790_v39 = vrot.slane %v832_v58, 4 }
  0x93   : > { %v1088_v37 = vadd.f32 %v1056_v29, %v768_v28  ;;  %v1886_v8 = vrot.slane %v1008_v26, 3  ;;  %v1838_v4 = vrot.slane %v928_v32, 4  ;;  %v2176_v41 = vsel %vm2170_vm1, %v2159_v36, %v1598_v62 }
  0x94   : > { %v1104_v45 = vmul.f32 0.3333333, %v6607_v25  ;;  %v1120_v61 = vmul.f32 0.6666667, %v6607_v25  ;;  %v2537_v0 = vsel %vm2512_vm7, %v2488_v10, 0.0  ;;  %v2193_v52 = vsel %vm2187_vm2, %v2176_v41, %v1646_v18 }
  0x95   : > { %v1934_v40 = vrot.slane %v1088_v37, 3  ;;  %v1200_v53 = vmul.f32 0.13333334, %v6607_v25  ;;  %2538 = vadd.xlane.f32.xlu0 %v2537_v0  ;;  %v2210_v20 = vsel %vm2204_vm3, %v2193_v52, %v1694_v33  ;;  %v1280_v56 = vmul.f32 0.39999998, %v6607_v25 }
  0x96   : > { %v1152_v55 = vrot.slane %v1120_v61, 1  ;;  %v1312_v13 = vrot.slane %v6930_v14, 1  ;;  %v2227_v59 = vsel %vm2221_vm4, %v2210_v20, %v1742_v35  ;;  %v1360_v9 = vmul.f32 0.06666667, %v6607_v25 }
  0x97   : > { %v1232_v16 = vrot.slane %v1200_v53, 1  ;;  %v1439_v63 = vmul.f32 0.46666664, %v6607_v25  ;;  %v2244_v2 = vsel %vm2238_vm5, %v2227_v59, %v1790_v39  ;;  %v1455_v5 = vmul.f32 0.53333336, %v6607_v25 }
  0x98   : > { %v6487_v1 = vpop.eup %6486  ;;  %v1184_v24 = vadd.f32 %v1152_v55, %v1104_v45  ;;  %v1344_v17 = vadd.f32 %v1312_v13, %v1280_v56  ;;  %v6973_v28 = vsel %vm2255_vm6, %v2244_v2, %v1838_v4  ;;  %v1391_v27 = vrot.slane %v1360_v9, 1 }
  0x99   : > { %v2435_v6 = vmul.f32 0.6931472, %v6487_v1  ;;  %v1264_v14 = vadd.f32 %v1232_v16, %v6938_v49  ;;  %v2394_v21 = vadd.f32 1e-07, %v6973_v28  ;;  %v1486_v11 = vrot.slane %v1455_v5, 1 }
  0x9a   : > { %v1982_v3 = vrot.slane %v1184_v24, 2  ;;  %v2078_v7 = vrot.slane %v1344_v17, 1  ;;  %v1423_v51 = vadd.f32 %v1391_v27, %v6927_v48  ;;  %v2277_v15 = vsel %vm2153_vm0, %v1886_v8, %v1934_v40 }
  0x9b   : > { %v2489_v12 = vmul.f32 %v2435_v6, %v6943_v60  ;;  %v2030_v22 = vrot.slane %v1264_v14, 2  ;;  %6488 = vlog2.f32 %v2394_v21  ;;  %v1518_v57 = vadd.f32 %v1486_v11, %v1439_v63 }
  0x9c   : > { %v2293_v19 = vsel %vm2170_vm1, %v2277_v15, %v1982_v3  ;;  %v274_v62 = vmul.f32 0.5333333, %v6610_v30  ;;  %v2126_v18 = vrot.slane %v1423_v51, 1  ;;  %v290_v58 = vmul.f32 0.46666667, %v6610_v30 }
  0x9d   : > { %v2540_v49 = vsel %vm2512_vm7, %v2489_v12, 0.0  ;;  %v2309_v23 = vsel %vm2187_vm2, %v2293_v19, %v2030_v22  ;;  %v369_v48 = vmul.f32 0.06666666, %v6610_v30  ;;  %v6988_v26 = vmul.f32 0.93333334, %v6610_v30 }
  0x9e   : > { %2541 = vadd.xlane.f32.xlu1 %v2540_v49  ;;  %v2325_v60 = vsel %vm2204_vm3, %v2309_v23, %v2078_v7  ;;  %v6991_v29 = vmul.f32 0.6, %v6610_v30  ;;  %v322_v33 = vrot.slane %v290_v58, 1  ;;  %v481_v35 = vmul.f32 0.4, %v6610_v30 }
  0x9f   : > { %v2341_v32 = vsel %vm2221_vm4, %v2325_v60, %v2126_v18  ;;  %v561_v36 = vmul.f32 0.13333333, %v6610_v30  ;;  %v417_v37 = vrot.slane %v6988_v26, 1  ;;  %v6999_v39 = vmul.f32 0.8666667, %v6610_v30 }
  0xa0   : > { %v2357_v10 = vsel %vm2238_vm5, %v2341_v32, %v1518_v57  ;;  %v657_v8 = vmul.f32 0.6666666, %v6610_v30  ;;  %v354_v41 = vadd.f32 %v322_v33, %v274_v62  ;;  %v513_v45 = vrot.slane %v481_v35, 1 }
  0xa1   : > { %v7004_v4 = vsel %vm2255_vm6, %v2357_v10, %v6607_v25  ;;  %v673_v61 = vmul.f32 0.33333334, %v6610_v30  ;;  %v449_v40 = vadd.f32 %v417_v37, %v369_v48  ;;  %v609_v52 = vrot.slane %v6999_v39, 1 }
  0xa2   : > { %v2395_v0 = vadd.f32 1e-07, %v7004_v4  ;;  %v753_v53 = vmul.f32 0.19999999, %v6610_v30  ;;  %v545_v20 = vadd.f32 %v513_v45, %v6991_v29  ;;  %v769_v56 = vmul.f32 0.8, %v6610_v30 }
  0xa3   : > { %v705_v55 = vrot.slane %v673_v61, 1  ;;  %v849_v13 = vmul.f32 0.73333335, %v6610_v30  ;;  %v641_v25 = vadd.f32 %v609_v52, %v561_v36  ;;  %v865_v59 = vmul.f32 0.26666668, %v6610_v30 }
  0xa4   : > { %6490 = vlog2.f32 %v2395_v0  ;;  %v945_v16 = vmul.f32 0.26666665, %v6610_v30  ;;  %v801_v63 = vrot.slane %v769_v56, 1  ;;  %v1025_v2 = vmul.f32 0.2, %v6610_v30 }
  0xa5   : > { %v737_v9 = vadd.f32 %v705_v55, %v657_v8  ;;  %v977_v1 = vrot.slane %v849_v13, 1  ;;  %v6489_v24 = vpop.eup %6488  ;;  %v897_v17 = vrot.slane %v865_v59, 1  ;;  %v1551_v5 = vrot.slane %v354_v41, 7 }
  0xa6   : > { %v1599_v6 = vrot.slane %v449_v40, 6  ;;  %v1647_v14 = vrot.slane %v545_v20, 6  ;;  %v2437_v27 = vmul.f32 0.6931472, %v6489_v24  ;;  %v833_v21 = vadd.f32 %v801_v63, %v753_v53 }
  0xa7   : > { %v1009_v11 = vadd.f32 %v977_v1, %v945_v16  ;;  %v1057_v3 = vrot.slane %v1025_v2, 1  ;;  %v929_v7 = vadd.f32 %v897_v17, %v849_v13  ;;  %v1695_v12 = vrot.slane %v641_v25, 5 }
  0xa8   : > { %v1743_v51 = vrot.slane %v737_v9, 5  ;;  %v2160_v22 = vsel %vm2153_vm0, %v6610_v30, %v1551_v5  ;;  %v2490_v15 = vmul.f32 %v2437_v27, %v6973_v28  ;;  %v1791_v19 = vrot.slane %v833_v21, 4 }
  0xa9   : > { %v1089_v57 = vadd.f32 %v1057_v3, %v769_v56  ;;  %v1887_v62 = vrot.slane %v1009_v11, 3  ;;  %v1839_v49 = vrot.slane %v929_v7, 4  ;;  %v2177_v18 = vsel %vm2170_vm1, %v2160_v22, %v1599_v6 }
  0xaa   : > { %v1105_v23 = vmul.f32 0.3333333, %v6610_v30  ;;  %v1121_v58 = vmul.f32 0.6666667, %v6610_v30  ;;  %v2543_v60 = vsel %vm2512_vm7, %v2490_v15, 0.0  ;;  %v2194_v32 = vsel %vm2187_vm2, %v2177_v18, %v1647_v14 }
  0xab   : > { %v1935_v48 = vrot.slane %v1089_v57, 3  ;;  %v1201_v33 = vmul.f32 0.13333334, %v6610_v30  ;;  %2544 = vadd.xlane.f32.xlu0 %v2543_v60  ;;  %v2211_v28 = vsel %vm2204_vm3, %v2194_v32, %v1695_v12  ;;  %v1281_v36 = vmul.f32 0.39999998, %v6610_v30 }
  0xac   : > { %v1153_v35 = vrot.slane %v1121_v58, 1  ;;  %v1313_v10 = vrot.slane %v6991_v29, 1  ;;  %v2228_v37 = vsel %vm2221_vm4, %v2211_v28, %v1743_v51  ;;  %v1361_v41 = vmul.f32 0.06666667, %v6610_v30 }
  0xad   : > { %v1233_v8 = vrot.slane %v1201_v33, 1  ;;  %v1440_v45 = vmul.f32 0.46666664, %v6610_v30  ;;  %v2245_v0 = vsel %vm2238_vm5, %v2228_v37, %v1791_v19  ;;  %v1456_v53 = vmul.f32 0.53333336, %v6610_v30 }
  0xae   : > { %v6491_v61 = vpop.eup %6490  ;;  %v1185_v40 = vadd.f32 %v1153_v35, %v1105_v23  ;;  %v1345_v52 = vadd.f32 %v1313_v10, %v1281_v36  ;;  %v7034_v55 = vsel %vm2255_vm6, %v2245_v0, %v1839_v49  ;;  %v1392_v56 = vrot.slane %v1361_v41, 1 }
  0xaf   : > { %v2439_v20 = vmul.f32 0.6931472, %v6491_v61  ;;  %v1265_v29 = vadd.f32 %v1233_v8, %v6999_v39  ;;  %v2396_v13 = vadd.f32 1e-07, %v7034_v55  ;;  %v1487_v25 = vrot.slane %v1456_v53, 1 }
  0xb0   : > { %v1983_v59 = vrot.slane %v1185_v40, 2  ;;  %v2079_v16 = vrot.slane %v1345_v52, 1  ;;  %v1424_v63 = vadd.f32 %v1392_v56, %v6988_v26  ;;  %v2278_v2 = vsel %vm2153_vm0, %v1887_v62, %v1935_v48 }
  0xb1   : > { %v2491_v9 = vmul.f32 %v2439_v20, %v7004_v4  ;;  %v2031_v1 = vrot.slane %v1265_v29, 2  ;;  %6492 = vlog2.f32 %v2396_v13  ;;  %v1519_v24 = vadd.f32 %v1487_v25, %v1440_v45 }
  0xb2   : > { %v2294_v17 = vsel %vm2170_vm1, %v2278_v2, %v1983_v59  ;;  %v275_v5 = vmul.f32 0.5333333, %v6612_v31  ;;  %v2127_v6 = vrot.slane %v1424_v63, 1  ;;  %v291_v27 = vmul.f32 0.46666667, %v6612_v31 }
  0xb3   : > { %v2546_v39 = vsel %vm2512_vm7, %v2491_v9, 0.0  ;;  %v2310_v14 = vsel %vm2187_vm2, %v2294_v17, %v2031_v1  ;;  %v370_v26 = vmul.f32 0.06666666, %v6612_v31  ;;  %v7049_v21 = vmul.f32 0.93333334, %v6612_v31 }
  0xb4   : > { %2547 = vadd.xlane.f32.xlu1 %v2546_v39  ;;  %v2326_v4 = vsel %vm2204_vm3, %v2310_v14, %v2079_v16  ;;  %v7052_v11 = vmul.f32 0.6, %v6612_v31  ;;  %v323_v7 = vrot.slane %v291_v27, 1  ;;  %v482_v12 = vmul.f32 0.4, %v6612_v31 }
  0xb5   : > { %v2342_v3 = vsel %vm2221_vm4, %v2326_v4, %v2127_v6  ;;  %v562_v51 = vmul.f32 0.13333333, %v6612_v31  ;;  %v418_v15 = vrot.slane %v7049_v21, 1  ;;  %v7060_v57 = vmul.f32 0.8666667, %v6612_v31 }
  0xb6   : > { %v2358_v22 = vsel %vm2238_vm5, %v2342_v3, %v1519_v24  ;;  %v658_v19 = vmul.f32 0.6666666, %v6612_v31  ;;  %v355_v49 = vadd.f32 %v323_v7, %v275_v5  ;;  %v514_v18 = vrot.slane %v482_v12, 1 }
  0xb7   : > { %v7065_v62 = vsel %vm2255_vm6, %v2358_v22, %v6610_v30  ;;  %v674_v23 = vmul.f32 0.33333334, %v6612_v31  ;;  %v450_v60 = vadd.f32 %v418_v15, %v370_v26  ;;  %v610_v48 = vrot.slane %v7060_v57, 1 }
  0xb8   : > { %v2397_v58 = vadd.f32 1e-07, %v7065_v62  ;;  %v754_v32 = vmul.f32 0.19999999, %v6612_v31  ;;  %v546_v33 = vadd.f32 %v514_v18, %v7052_v11  ;;  %v770_v35 = vmul.f32 0.8, %v6612_v31 }
  0xb9   : > { %v706_v28 = vrot.slane %v674_v23, 1  ;;  %v850_v36 = vmul.f32 0.73333335, %v6612_v31  ;;  %v642_v30 = vadd.f32 %v610_v48, %v562_v51  ;;  %v866_v10 = vmul.f32 0.26666668, %v6612_v31 }
  0xba   : > { %6494 = vlog2.f32 %v2397_v58  ;;  %v946_v37 = vmul.f32 0.26666665, %v6612_v31  ;;  %v802_v41 = vrot.slane %v770_v35, 1  ;;  %v1026_v61 = vmul.f32 0.2, %v6612_v31 }
  0xbb   : > { %v738_v8 = vadd.f32 %v706_v28, %v658_v19  ;;  %v978_v45 = vrot.slane %v850_v36, 1  ;;  %v6493_v0 = vpop.eup %6492  ;;  %v898_v40 = vrot.slane %v866_v10, 1  ;;  %v1552_v52 = vrot.slane %v355_v49, 7 }
  0xbc   : > { %v1600_v53 = vrot.slane %v450_v60, 6  ;;  %v1648_v20 = vrot.slane %v546_v33, 6  ;;  %v2441_v29 = vmul.f32 0.6931472, %v6493_v0  ;;  %v834_v56 = vadd.f32 %v802_v41, %v754_v32 }
  0xbd   : > { %v1010_v13 = vadd.f32 %v978_v45, %v946_v37  ;;  %v1058_v25 = vrot.slane %v1026_v61, 1  ;;  %v930_v59 = vadd.f32 %v898_v40, %v850_v36  ;;  %v1696_v16 = vrot.slane %v642_v30, 5 }
  0xbe   : > { %v1744_v9 = vrot.slane %v738_v8, 5  ;;  %v2161_v63 = vsel %vm2153_vm0, %v6612_v31, %v1552_v52  ;;  %v2492_v1 = vmul.f32 %v2441_v29, %v7034_v55  ;;  %v1792_v24 = vrot.slane %v834_v56, 4 }
  0xbf   : > { %v1090_v2 = vadd.f32 %v1058_v25, %v770_v35  ;;  %v1888_v17 = vrot.slane %v1010_v13, 3  ;;  %v1840_v5 = vrot.slane %v930_v59, 4  ;;  %v2178_v39 = vsel %vm2170_vm1, %v2161_v63, %v1600_v53 }
  0xc0   : > { %v1106_v6 = vmul.f32 0.3333333, %v6612_v31  ;;  %v1122_v14 = vmul.f32 0.6666667, %v6612_v31  ;;  %v2549_v27 = vsel %vm2512_vm7, %v2492_v1, 0.0  ;;  %v2195_v26 = vsel %vm2187_vm2, %v2178_v39, %v1648_v20 }
  0xc1   : > { %v1936_v4 = vrot.slane %v1090_v2, 3  ;;  %v1202_v3 = vmul.f32 0.13333334, %v6612_v31  ;;  %2550 = vadd.xlane.f32.xlu0 %v2549_v27  ;;  %v2212_v55 = vsel %vm2204_vm3, %v2195_v26, %v1696_v16  ;;  %v1282_v12 = vmul.f32 0.39999998, %v6612_v31 }
  0xc2   : > { %v1154_v7 = vrot.slane %v1122_v14, 1  ;;  %v1314_v51 = vrot.slane %v7052_v11, 1  ;;  %v2229_v22 = vsel %vm2221_vm4, %v2212_v55, %v1744_v9  ;;  %v1362_v19 = vmul.f32 0.06666667, %v6612_v31 }
  0xc3   : > { %v1234_v15 = vrot.slane %v1202_v3, 1  ;;  %v1441_v49 = vmul.f32 0.46666664, %v6612_v31  ;;  %v2246_v23 = vsel %vm2238_vm5, %v2229_v22, %v1792_v24  ;;  %v1457_v48 = vmul.f32 0.53333336, %v6612_v31 }
  0xc4   : > { %v6495_v18 = vpop.eup %6494  ;;  %v1186_v58 = vadd.f32 %v1154_v7, %v1106_v6  ;;  %v1346_v60 = vadd.f32 %v1314_v51, %v1282_v12  ;;  %v7095_v33 = vsel %vm2255_vm6, %v2246_v23, %v1840_v5  ;;  %v1393_v28 = vrot.slane %v1362_v19, 1 }
  0xc5   : > { %v2443_v32 = vmul.f32 0.6931472, %v6495_v18  ;;  %v1266_v11 = vadd.f32 %v1234_v15, %v7060_v57  ;;  %v2398_v35 = vadd.f32 1e-07, %v7095_v33  ;;  %v1488_v36 = vrot.slane %v1457_v48, 1 }
  0xc6   : > { %v1984_v30 = vrot.slane %v1186_v58, 2  ;;  %v2080_v10 = vrot.slane %v1346_v60, 1  ;;  %v1425_v8 = vadd.f32 %v1393_v28, %v7049_v21  ;;  %v2279_v45 = vsel %vm2153_vm0, %v1888_v17, %v1936_v4 }
  0xc7   : > { %v2493_v37 = vmul.f32 %v2443_v32, %v7065_v62  ;;  %v2032_v41 = vrot.slane %v1266_v11, 2  ;;  %6496 = vlog2.f32 %v2398_v35  ;;  %v1520_v61 = vadd.f32 %v1488_v36, %v1441_v49 }
  0xc8   : > { %v2295_v0 = vsel %vm2170_vm1, %v2279_v45, %v1984_v30  ;;  %v276_v40 = vmul.f32 0.5333333, %v6614_v34  ;;  %v2128_v52 = vrot.slane %v1425_v8, 1  ;;  %v292_v20 = vmul.f32 0.46666667, %v6614_v34 }
  0xc9   : > { %v2552_v57 = vsel %vm2512_vm7, %v2493_v37, 0.0  ;;  %v2311_v53 = vsel %vm2187_vm2, %v2295_v0, %v2032_v41  ;;  %v371_v21 = vmul.f32 0.06666666, %v6614_v34  ;;  %v7110_v29 = vmul.f32 0.93333334, %v6614_v34 }
  0xca   : > { %2553 = vadd.xlane.f32.xlu1 %v2552_v57  ;;  %v2327_v62 = vsel %vm2204_vm3, %v2311_v53, %v2080_v10  ;;  %v7113_v56 = vmul.f32 0.6, %v6614_v34  ;;  %v324_v25 = vrot.slane %v292_v20, 1  ;;  %v483_v59 = vmul.f32 0.4, %v6614_v34 }
  0xcb   : > { %v2343_v13 = vsel %vm2221_vm4, %v2327_v62, %v2128_v52  ;;  %v563_v16 = vmul.f32 0.13333333, %v6614_v34  ;;  %v419_v63 = vrot.slane %v7110_v29, 1  ;;  %v7121_v1 = vmul.f32 0.8666667, %v6614_v34 }
  0xcc   : > { %v2359_v9 = vsel %vm2238_vm5, %v2343_v13, %v1520_v61  ;;  %v659_v2 = vmul.f32 0.6666666, %v6614_v34  ;;  %v356_v17 = vadd.f32 %v324_v25, %v276_v40  ;;  %v515_v5 = vrot.slane %v483_v59, 1 }
  0xcd   : > { %v7126_v24 = vsel %vm2255_vm6, %v2359_v9, %v6612_v31  ;;  %v675_v39 = vmul.f32 0.33333334, %v6614_v34  ;;  %v451_v14 = vadd.f32 %v419_v63, %v371_v21  ;;  %v611_v27 = vrot.slane %v7121_v1, 1 }
  0xce   : > { %v2399_v6 = vadd.f32 1e-07, %v7126_v24  ;;  %v755_v4 = vmul.f32 0.19999999, %v6614_v34  ;;  %v547_v26 = vadd.f32 %v515_v5, %v7113_v56  ;;  %v771_v55 = vmul.f32 0.8, %v6614_v34 }
  0xcf   : > { %v707_v3 = vrot.slane %v675_v39, 1  ;;  %v851_v7 = vmul.f32 0.73333335, %v6614_v34  ;;  %v643_v31 = vadd.f32 %v611_v27, %v563_v16  ;;  %v867_v12 = vmul.f32 0.26666668, %v6614_v34 }
  0xd0   : > { %6498 = vlog2.f32 %v2399_v6  ;;  %v947_v51 = vmul.f32 0.26666665, %v6614_v34  ;;  %v803_v15 = vrot.slane %v771_v55, 1  ;;  %v1027_v49 = vmul.f32 0.2, %v6614_v34 }
  0xd1   : > { %v739_v22 = vadd.f32 %v707_v3, %v659_v2  ;;  %v979_v19 = vrot.slane %v851_v7, 1  ;;  %v6497_v18 = vpop.eup %6496  ;;  %v899_v23 = vrot.slane %v867_v12, 1  ;;  %v1553_v58 = vrot.slane %v356_v17, 7 }
  0xd2   : > { %v1601_v60 = vrot.slane %v451_v14, 6  ;;  %v1649_v48 = vrot.slane %v547_v26, 6  ;;  %v2445_v32 = vmul.f32 0.6931472, %v6497_v18  ;;  %v835_v11 = vadd.f32 %v803_v15, %v755_v4 }
  0xd3   : > { %v1011_v28 = vadd.f32 %v979_v19, %v947_v51  ;;  %v1059_v35 = vrot.slane %v1027_v49, 1  ;;  %v931_v36 = vadd.f32 %v899_v23, %v851_v7  ;;  %v1697_v30 = vrot.slane %v643_v31, 5 }
  0xd4   : > { %v1745_v10 = vrot.slane %v739_v22, 5  ;;  %v2162_v37 = vsel %vm2153_vm0, %v6614_v34, %v1553_v58  ;;  %v2494_v8 = vmul.f32 %v2445_v32, %v7095_v33  ;;  %v1793_v45 = vrot.slane %v835_v11, 4 }
  0xd5   : > { %v1091_v41 = vadd.f32 %v1059_v35, %v771_v55  ;;  %v1889_v61 = vrot.slane %v1011_v28, 3  ;;  %v1841_v0 = vrot.slane %v931_v36, 4  ;;  %v2179_v40 = vsel %vm2170_vm1, %v2162_v37, %v1601_v60 }
  0xd6   : > { %v1107_v57 = vmul.f32 0.3333333, %v6614_v34  ;;  %v1123_v52 = vmul.f32 0.6666667, %v6614_v34  ;;  %v2555_v53 = vsel %vm2512_vm7, %v2494_v8, 0.0  ;;  %v2196_v62 = vsel %vm2187_vm2, %v2179_v40, %v1649_v48 }
  0xd7   : > { %v1937_v20 = vrot.slane %v1091_v41, 3  ;;  %v1203_v21 = vmul.f32 0.13333334, %v6614_v34  ;;  %2556 = vadd.xlane.f32.xlu0 %v2555_v53  ;;  %v2213_v33 = vsel %vm2204_vm3, %v2196_v62, %v1697_v30  ;;  %v1283_v25 = vmul.f32 0.39999998, %v6614_v34 }
  0xd8   : > { %v1155_v13 = vrot.slane %v1123_v52, 1  ;;  %v1315_v59 = vrot.slane %v7113_v56, 1  ;;  %v2230_v16 = vsel %vm2221_vm4, %v2213_v33, %v1745_v10  ;;  %v1363_v63 = vmul.f32 0.06666667, %v6614_v34 }
  0xd9   : > { %v1235_v9 = vrot.slane %v1203_v21, 1  ;;  %v1442_v2 = vmul.f32 0.46666664, %v6614_v34  ;;  %v2247_v5 = vsel %vm2238_vm5, %v2230_v16, %v1793_v45  ;;  %v1458_v14 = vmul.f32 0.53333336, %v6614_v34 }
  0xda   : > { %v6499_v17 = vpop.eup %6498  ;;  %v1187_v39 = vadd.f32 %v1155_v13, %v1107_v57  ;;  %v1347_v6 = vadd.f32 %v1315_v59, %v1283_v25  ;;  %v7156_v4 = vsel %vm2255_vm6, %v2247_v5, %v1841_v0  ;;  %v1394_v26 = vrot.slane %v1363_v63, 1 }
  0xdb   : > { %v2447_v27 = vmul.f32 0.6931472, %v6499_v17  ;;  %v1267_v56 = vadd.f32 %v1235_v9, %v7121_v1  ;;  %v2400_v3 = vadd.f32 1e-07, %v7156_v4  ;;  %v1489_v55 = vrot.slane %v1458_v14, 1 }
  0xdc   : > { %v1985_v7 = vrot.slane %v1187_v39, 2  ;;  %v2081_v31 = vrot.slane %v1347_v6, 1  ;;  %v1426_v51 = vadd.f32 %v1394_v26, %v7110_v29  ;;  %v2280_v15 = vsel %vm2153_vm0, %v1889_v61, %v1937_v20 }
  0xdd   : > { %v2495_v12 = vmul.f32 %v2447_v27, %v7126_v24  ;;  %v2033_v22 = vrot.slane %v1267_v56, 2  ;;  %6500 = vlog2.f32 %v2400_v3  ;;  %v1521_v19 = vadd.f32 %v1489_v55, %v1442_v2 }
  0xde   : > { %v2296_v49 = vsel %vm2170_vm1, %v2280_v15, %v1985_v7  ;;  %v277_v18 = vmul.f32 0.5333333, %v6616_v38  ;;  %v2129_v23 = vrot.slane %v1426_v51, 1  ;;  %v293_v60 = vmul.f32 0.46666667, %v6616_v38 }
  0xdf   : > { %v2558_v1 = vsel %vm2512_vm7, %v2495_v12, 0.0  ;;  %v2312_v58 = vsel %vm2187_vm2, %v2296_v49, %v2033_v22  ;;  %v372_v29 = vmul.f32 0.06666666, %v6616_v38  ;;  %v7171_v48 = vmul.f32 0.93333334, %v6616_v38 }
  0xe0   : > { %2559 = vadd.xlane.f32.xlu1 %v2558_v1  ;;  %v2328_v24 = vsel %vm2204_vm3, %v2312_v58, %v2081_v31  ;;  %v7174_v32 = vmul.f32 0.6, %v6616_v38  ;;  %v325_v28 = vrot.slane %v293_v60, 1  ;;  %v484_v35 = vmul.f32 0.4, %v6616_v38 }
  0xe1   : > { %v2344_v11 = vsel %vm2221_vm4, %v2328_v24, %v2129_v23  ;;  %v564_v36 = vmul.f32 0.13333333, %v6616_v38  ;;  %v420_v10 = vrot.slane %v7171_v48, 1  ;;  %v7182_v37 = vmul.f32 0.8666667, %v6616_v38 }
  0xe2   : > { %v2360_v30 = vsel %vm2238_vm5, %v2344_v11, %v1521_v19  ;;  %v660_v8 = vmul.f32 0.6666666, %v6616_v38  ;;  %v357_v45 = vadd.f32 %v325_v28, %v277_v18  ;;  %v516_v61 = vrot.slane %v484_v35, 1 }
  0xe3   : > { %v7187_v41 = vsel %vm2255_vm6, %v2360_v30, %v6614_v34  ;;  %v676_v0 = vmul.f32 0.33333334, %v6616_v38  ;;  %v452_v57 = vadd.f32 %v420_v10, %v372_v29  ;;  %v612_v52 = vrot.slane %v7182_v37, 1 }
  0xe4   : > { %v2401_v40 = vadd.f32 1e-07, %v7187_v41  ;;  %v756_v53 = vmul.f32 0.19999999, %v6616_v38  ;;  %v548_v20 = vadd.f32 %v516_v61, %v7174_v32  ;;  %v772_v21 = vmul.f32 0.8, %v6616_v38 }
  0xe5   : > { %v708_v62 = vrot.slane %v676_v0, 1  ;;  %v852_v33 = vmul.f32 0.73333335, %v6616_v38  ;;  %v644_v34 = vadd.f32 %v612_v52, %v564_v36  ;;  %v868_v13 = vmul.f32 0.26666668, %v6616_v38 }
  0xe6   : > { %6502 = vlog2.f32 %v2401_v40  ;;  %v948_v25 = vmul.f32 0.26666665, %v6616_v38  ;;  %v804_v16 = vrot.slane %v772_v21, 1  ;;  %v1028_v63 = vmul.f32 0.2, %v6616_v38 }
  0xe7   : > { %v740_v59 = vadd.f32 %v708_v62, %v660_v8  ;;  %v980_v9 = vrot.slane %v852_v33, 1  ;;  %v6501_v2 = vpop.eup %6500  ;;  %v900_v17 = vrot.slane %v868_v13, 1  ;;  %v1554_v5 = vrot.slane %v357_v45, 7 }
  0xe8   : > { %v1602_v39 = vrot.slane %v452_v57, 6  ;;  %v1650_v6 = vrot.slane %v548_v20, 6  ;;  %v2449_v14 = vmul.f32 0.6931472, %v6501_v2  ;;  %v836_v27 = vadd.f32 %v804_v16, %v756_v53 }
  0xe9   : > { %v1012_v56 = vadd.f32 %v980_v9, %v948_v25  ;;  %v1060_v26 = vrot.slane %v1028_v63, 1  ;;  %v932_v3 = vadd.f32 %v900_v17, %v852_v33  ;;  %v1698_v55 = vrot.slane %v644_v34, 5 }
  0xea   : > { %v1746_v7 = vrot.slane %v740_v59, 5  ;;  %v2163_v31 = vsel %vm2153_vm0, %v6616_v38, %v1554_v5  ;;  %v2496_v12 = vmul.f32 %v2449_v14, %v7156_v4  ;;  %v1794_v22 = vrot.slane %v836_v27, 4 }
  0xeb   : > { %v1092_v51 = vadd.f32 %v1060_v26, %v772_v21  ;;  %v1890_v15 = vrot.slane %v1012_v56, 3  ;;  %v1842_v19 = vrot.slane %v932_v3, 4  ;;  %v2180_v49 = vsel %vm2170_vm1, %v2163_v31, %v1602_v39 }
  0xec   : > { %v1108_v18 = vmul.f32 0.3333333, %v6616_v38  ;;  %v1124_v1 = vmul.f32 0.6666667, %v6616_v38  ;;  %v2561_v23 = vsel %vm2512_vm7, %v2496_v12, 0.0  ;;  %v2197_v60 = vsel %vm2187_vm2, %v2180_v49, %v1650_v6 }
  0xed   : > { %v1938_v58 = vrot.slane %v1092_v51, 3  ;;  %v1204_v24 = vmul.f32 0.13333334, %v6616_v38  ;;  %2562 = vadd.xlane.f32.xlu0 %v2561_v23  ;;  %v2214_v4 = vsel %vm2204_vm3, %v2197_v60, %v1698_v55  ;;  %v1284_v11 = vmul.f32 0.39999998, %v6616_v38 }
  0xee   : > { %v1156_v29 = vrot.slane %v1124_v1, 1  ;;  %v1316_v28 = vrot.slane %v7174_v32, 1  ;;  %v2231_v35 = vsel %vm2221_vm4, %v2214_v4, %v1746_v7  ;;  %v1364_v30 = vmul.f32 0.06666667, %v6616_v38 }
  0xef   : > { %v1236_v36 = vrot.slane %v1204_v24, 1  ;;  %v1443_v10 = vmul.f32 0.46666664, %v6616_v38  ;;  %v2248_v45 = vsel %vm2238_vm5, %v2231_v35, %v1794_v22  ;;  %v1459_v40 = vmul.f32 0.53333336, %v6616_v38 }
  0xf0   : > { %v6503_v8 = vpop.eup %6502  ;;  %v1188_v61 = vadd.f32 %v1156_v29, %v1108_v18  ;;  %v1348_v0 = vadd.f32 %v1316_v28, %v1284_v11  ;;  %v7217_v52 = vsel %vm2255_vm6, %v2248_v45, %v1842_v19  ;;  %v1395_v53 = vrot.slane %v1364_v30, 1 }
  0xf1   : > { %v2451_v57 = vmul.f32 0.6931472, %v6503_v8  ;;  %v1268_v32 = vadd.f32 %v1236_v36, %v7182_v37  ;;  %v2402_v20 = vadd.f32 1e-07, %v7217_v52  ;;  %v1490_v62 = vrot.slane %v1459_v40, 1 }
  0xf2   : > { %v1986_v21 = vrot.slane %v1188_v61, 2  ;;  %v2082_v33 = vrot.slane %v1348_v0, 1  ;;  %v1427_v13 = vadd.f32 %v1395_v53, %v7171_v48  ;;  %v2281_v59 = vsel %vm2153_vm0, %v1890_v15, %v1938_v58 }
  0xf3   : > { %v2497_v34 = vmul.f32 %v2451_v57, %v7187_v41  ;;  %v2034_v25 = vrot.slane %v1268_v32, 2  ;;  %6504 = vlog2.f32 %v2402_v20  ;;  %v1522_v16 = vadd.f32 %v1490_v62, %v1443_v10 }
  0xf4   : > { %v2297_v9 = vsel %vm2170_vm1, %v2281_v59, %v1986_v21  ;;  %v278_v63 = vmul.f32 0.5333333, %v6618_v42  ;;  %v2130_v2 = vrot.slane %v1427_v13, 1  ;;  %v294_v5 = vmul.f32 0.46666667, %v6618_v42 }
  0xf5   : > { %v2564_v37 = vsel %vm2512_vm7, %v2497_v34, 0.0  ;;  %v2313_v17 = vsel %vm2187_vm2, %v2297_v9, %v2034_v25  ;;  %v373_v48 = vmul.f32 0.06666666, %v6618_v42  ;;  %v7232_v39 = vmul.f32 0.93333334, %v6618_v42 }
  0xf6   : > { %2565 = vadd.xlane.f32.xlu1 %v2564_v37  ;;  %v2329_v41 = vsel %vm2204_vm3, %v2313_v17, %v2082_v33  ;;  %v7235_v6 = vmul.f32 0.6, %v6618_v42  ;;  %v326_v27 = vrot.slane %v294_v5, 1  ;;  %v485_v56 = vmul.f32 0.4, %v6618_v42 }
  0xf7   : > { %v2345_v14 = vsel %vm2221_vm4, %v2329_v41, %v2130_v2  ;;  %v565_v26 = vmul.f32 0.13333333, %v6618_v42  ;;  %v421_v55 = vrot.slane %v7232_v39, 1  ;;  %v7243_v7 = vmul.f32 0.8666667, %v6618_v42 }
  0xf8   : > { %v2361_v3 = vsel %vm2238_vm5, %v2345_v14, %v1522_v16  ;;  %v661_v31 = vmul.f32 0.6666666, %v6618_v42  ;;  %v358_v51 = vadd.f32 %v326_v27, %v278_v63  ;;  %v517_v22 = vrot.slane %v485_v56, 1 }
  0xf9   : > { %v7248_v12 = vsel %vm2255_vm6, %v2361_v3, %v6616_v38  ;;  %v677_v15 = vmul.f32 0.33333334, %v6618_v42  ;;  %v453_v49 = vadd.f32 %v421_v55, %v373_v48  ;;  %v613_v18 = vrot.slane %v7243_v7, 1 }
  0xfa   : > { %v2403_v19 = vadd.f32 1e-07, %v7248_v12  ;;  %v757_v1 = vmul.f32 0.19999999, %v6618_v42  ;;  %v549_v23 = vadd.f32 %v517_v22, %v7235_v6  ;;  %v773_v60 = vmul.f32 0.8, %v6618_v42 }
  0xfb   : > { %v709_v58 = vrot.slane %v677_v15, 1  ;;  %v853_v24 = vmul.f32 0.73333335, %v6618_v42  ;;  %v645_v38 = vadd.f32 %v613_v18, %v565_v26  ;;  %v869_v4 = vmul.f32 0.26666668, %v6618_v42 }
  0xfc   : > { %6506 = vlog2.f32 %v2403_v19  ;;  %v949_v29 = vmul.f32 0.26666665, %v6618_v42  ;;  %v805_v28 = vrot.slane %v773_v60, 1  ;;  %v1029_v36 = vmul.f32 0.2, %v6618_v42 }
  0xfd   : > { %v741_v11 = vadd.f32 %v709_v58, %v661_v31  ;;  %v981_v35 = vrot.slane %v853_v24, 1  ;;  %v6505_v30 = vpop.eup %6504  ;;  %v901_v10 = vrot.slane %v869_v4, 1  ;;  %v1555_v8 = vrot.slane %v358_v51, 7 }
  0xfe   : > { %v1603_v45 = vrot.slane %v453_v49, 6  ;;  %v1651_v61 = vrot.slane %v549_v23, 6  ;;  %v2453_v0 = vmul.f32 0.6931472, %v6505_v30  ;;  %v837_v40 = vadd.f32 %v805_v28, %v757_v1 }
  0xff   : > { %v1013_v57 = vadd.f32 %v981_v35, %v949_v29  ;;  %v1061_v32 = vrot.slane %v1029_v36, 1  ;;  %v933_v53 = vadd.f32 %v901_v10, %v853_v24  ;;  %v1699_v20 = vrot.slane %v645_v38, 5 }
 0x100   : > { %v1747_v62 = vrot.slane %v741_v11, 5  ;;  %v2164_v21 = vsel %vm2153_vm0, %v6618_v42, %v1555_v8  ;;  %v2498_v33 = vmul.f32 %v2453_v0, %v7217_v52  ;;  %v1795_v13 = vrot.slane %v837_v40, 4 }
 0x101   : > { %v1093_v34 = vadd.f32 %v1061_v32, %v773_v60  ;;  %v1891_v25 = vrot.slane %v1013_v57, 3  ;;  %v1843_v59 = vrot.slane %v933_v53, 4  ;;  %v2181_v16 = vsel %vm2170_vm1, %v2164_v21, %v1603_v45 }
 0x102   : > { %v1109_v9 = vmul.f32 0.3333333, %v6618_v42  ;;  %v1125_v63 = vmul.f32 0.6666667, %v6618_v42  ;;  %v2567_v37 = vsel %vm2512_vm7, %v2498_v33, 0.0  ;;  %v2198_v17 = vsel %vm2187_vm2, %v2181_v16, %v1651_v61 }
 0x103   : > { %v1939_v2 = vrot.slane %v1093_v34, 3  ;;  %v1205_v5 = vmul.f32 0.13333334, %v6618_v42  ;;  %2568 = vadd.xlane.f32.xlu0 %v2567_v37  ;;  %v2215_v52 = vsel %vm2204_vm3, %v2198_v17, %v1699_v20  ;;  %v1285_v48 = vmul.f32 0.39999998, %v6618_v42 }
 0x104   : > { %v1157_v41 = vrot.slane %v1125_v63, 1  ;;  %v1317_v14 = vrot.slane %v7235_v6, 1  ;;  %v2232_v27 = vsel %vm2221_vm4, %v2215_v52, %v1747_v62  ;;  %v1365_v26 = vmul.f32 0.06666667, %v6618_v42 }
 0x105   : > { %v1237_v56 = vrot.slane %v1205_v5, 1  ;;  %v1444_v3 = vmul.f32 0.46666664, %v6618_v42  ;;  %v2249_v31 = vsel %vm2238_vm5, %v2232_v27, %v1795_v13  ;;  %v1460_v15 = vmul.f32 0.53333336, %v6618_v42 }
 0x106   : > { %v6507_v55 = vpop.eup %6506  ;;  %v1189_v51 = vadd.f32 %v1157_v41, %v1109_v9  ;;  %v1349_v22 = vadd.f32 %v1317_v14, %v1285_v48  ;;  %v7278_v49 = vsel %vm2255_vm6, %v2249_v31, %v1843_v59  ;;  %v1396_v18 = vrot.slane %v1365_v26, 1 }
 0x107   : > { %v2455_v19 = vmul.f32 0.6931472, %v6507_v55  ;;  %v1269_v6 = vadd.f32 %v1237_v56, %v7243_v7  ;;  %v2404_v1 = vadd.f32 1e-07, %v7278_v49  ;;  %v1491_v23 = vrot.slane %v1460_v15, 1 }
 0x108   : > { %v1987_v58 = vrot.slane %v1189_v51, 2  ;;  %v2083_v60 = vrot.slane %v1349_v22, 1  ;;  %v1428_v38 = vadd.f32 %v1396_v18, %v7232_v39  ;;  %v2282_v29 = vsel %vm2153_vm0, %v1891_v25, %v1939_v2 }
 0x109   : > { %v2499_v24 = vmul.f32 %v2455_v19, %v7248_v12  ;;  %v2035_v4 = vrot.slane %v1269_v6, 2  ;;  %6508 = vlog2.f32 %v2404_v1  ;;  %v1523_v11 = vadd.f32 %v1491_v23, %v1444_v3  ;;  %v2827_v6 = vld [vmem:[%s8363_s2 + $0x4] sm:$0x7] }
 0x10a   : > { %v2298_v28 = vsel %vm2170_vm1, %v2282_v29, %v1987_v58  ;;  %v279_v35 = vmul.f32 0.5333333, %v6620_v43  ;;  %v2131_v36 = vrot.slane %v1428_v38, 1  ;;  %v295_v10 = vmul.f32 0.46666667, %v6620_v43  ;;  %6449 = vmatprep.subr.msk.bf16.mxu1 %vm2187_vm2, %v2827_v6 }
 0x10b   : > { %v2570_v7 = vsel %vm2512_vm7, %v2499_v24, 0.0  ;;  %v2314_v30 = vsel %vm2187_vm2, %v2298_v28, %v2035_v4  ;;  %v374_v39 = vmul.f32 0.06666666, %v6620_v43  ;;  %v7293_v8 = vmul.f32 0.93333334, %v6620_v43 }
 0x10c   : > { %2571 = vadd.xlane.f32.xlu1 %v2570_v7  ;;  %v2330_v12 = vsel %vm2204_vm3, %v2314_v30, %v2083_v60  ;;  %v7296_v45 = vmul.f32 0.6, %v6620_v43  ;;  %v327_v0 = vrot.slane %v295_v10, 1  ;;  %v486_v40 = vmul.f32 0.4, %v6620_v43 }
 0x10d   : > { %v2346_v61 = vsel %vm2221_vm4, %v2330_v12, %v2131_v36  ;;  %v566_v57 = vmul.f32 0.13333333, %v6620_v43  ;;  %v422_v53 = vrot.slane %v7293_v8, 1  ;;  %v7304_v20 = vmul.f32 0.8666667, %v6620_v43 }
 0x10e   : > { %v2362_v32 = vsel %vm2238_vm5, %v2346_v61, %v1523_v11  ;;  %v662_v62 = vmul.f32 0.6666666, %v6620_v43  ;;  %v359_v33 = vadd.f32 %v327_v0, %v279_v35  ;;  %v518_v34 = vrot.slane %v486_v40, 1  ;;  %v2830_v60 = vld [vmem:[%s8363_s2 + $0x10] sm:$0x7] }
 0x10f   : > { %v7309_v21 = vsel %vm2255_vm6, %v2362_v32, %v6618_v42  ;;  %v678_v13 = vmul.f32 0.33333334, %v6620_v43  ;;  %v454_v59 = vadd.f32 %v422_v53, %v374_v39  ;;  %v614_v16 = vrot.slane %v7304_v20, 1  ;;  %6453 = vmatprep.subr.msk.bf16.mxu0 %vm2187_vm2, %v2830_v60 }
 0x110   : > { %v2405_v25 = vadd.f32 1e-07, %v7309_v21  ;;  %v758_v9 = vmul.f32 0.19999999, %v6620_v43  ;;  %v550_v63 = vadd.f32 %v518_v34, %v7296_v45  ;;  %v774_v2 = vmul.f32 0.8, %v6620_v43 }
 0x111   : > { %v710_v37 = vrot.slane %v678_v13, 1  ;;  %v854_v17 = vmul.f32 0.73333335, %v6620_v43  ;;  %v646_v42 = vadd.f32 %v614_v16, %v566_v57  ;;  %v870_v5 = vmul.f32 0.26666668, %v6620_v43 }
 0x112   : > { %6510 = vlog2.f32 %v2405_v25  ;;  %v950_v52 = vmul.f32 0.26666665, %v6620_v43  ;;  %v806_v48 = vrot.slane %v774_v2, 1  ;;  %v1030_v27 = vmul.f32 0.2, %v6620_v43 }
 0x113   : > { %v742_v41 = vadd.f32 %v710_v37, %v662_v62  ;;  %v982_v14 = vrot.slane %v854_v17, 1  ;;  %v6509_v56 = vpop.eup %6508  ;;  %v902_v26 = vrot.slane %v870_v5, 1  ;;  %v1556_v3 = vrot.slane %v359_v33, 7 }
 0x114   : > { %v1604_v55 = vrot.slane %v454_v59, 6  ;;  %v1652_v31 = vrot.slane %v550_v63, 6  ;;  %v2457_v51 = vmul.f32 0.6931472, %v6509_v56  ;;  %v838_v22 = vadd.f32 %v806_v48, %v758_v9 }
 0x115   : > { %v1014_v15 = vadd.f32 %v982_v14, %v950_v52  ;;  %v1062_v19 = vrot.slane %v1030_v27, 1  ;;  %v934_v18 = vadd.f32 %v902_v26, %v854_v17  ;;  %v1700_v1 = vrot.slane %v646_v42, 5 }
 0x116   : > { %v1748_v23 = vrot.slane %v742_v41, 5  ;;  %v2165_v58 = vsel %vm2153_vm0, %v6620_v43, %v1556_v3  ;;  %v2500_v24 = vmul.f32 %v2457_v51, %v7278_v49  ;;  %v1796_v4 = vrot.slane %v838_v22, 4 }
 0x117   : > { %v1094_v38 = vadd.f32 %v1062_v19, %v774_v2  ;;  %v1892_v29 = vrot.slane %v1014_v15, 3  ;;  %v1844_v11 = vrot.slane %v934_v18, 4  ;;  %v2182_v28 = vsel %vm2170_vm1, %v2165_v58, %v1604_v55 }
 0x118   : > { %v1110_v35 = vmul.f32 0.3333333, %v6620_v43  ;;  %v1126_v7 = vmul.f32 0.6666667, %v6620_v43  ;;  %v2573_v36 = vsel %vm2512_vm7, %v2500_v24, 0.0  ;;  %v2199_v10 = vsel %vm2187_vm2, %v2182_v28, %v1652_v31 }
 0x119   : > { %v1940_v30 = vrot.slane %v1094_v38, 3  ;;  %v1206_v12 = vmul.f32 0.13333334, %v6620_v43  ;;  %2574 = vadd.xlane.f32.xlu0 %v2573_v36  ;;  %v2216_v49 = vsel %vm2204_vm3, %v2199_v10, %v1700_v1  ;;  %v1286_v61 = vmul.f32 0.39999998, %v6620_v43 }
 0x11a   : > { %v1158_v39 = vrot.slane %v1126_v7, 1  ;;  %v1318_v0 = vrot.slane %v7296_v45, 1  ;;  %v2233_v40 = vsel %vm2221_vm4, %v2216_v49, %v1748_v23  ;;  %v1366_v32 = vmul.f32 0.06666667, %v6620_v43 }
 0x11b   : > { %v1238_v57 = vrot.slane %v1206_v12, 1  ;;  %v1445_v53 = vmul.f32 0.46666664, %v6620_v43  ;;  %v2250_v33 = vsel %vm2238_vm5, %v2233_v40, %v1796_v4  ;;  %v1461_v25 = vmul.f32 0.53333336, %v6620_v43 }
 0x11c   : > { %v6511_v62 = vpop.eup %6510  ;;  %v1190_v34 = vadd.f32 %v1158_v39, %v1110_v35  ;;  %v1350_v13 = vadd.f32 %v1318_v0, %v1286_v61  ;;  %v7347_v16 = vsel %vm2255_vm6, %v2250_v33, %v1844_v11  ;;  %v1397_v9 = vrot.slane %v1366_v32, 1 }
 0x11d   : > { %v2459_v59 = vmul.f32 0.6931472, %v6511_v62  ;;  %v1270_v45 = vadd.f32 %v1238_v57, %v7304_v20  ;;  %v2406_v63 = vadd.f32 1e-07, %v7347_v16  ;;  %v1492_v37 = vrot.slane %v1461_v25, 1 }
 0x11e   : > { %v1988_v2 = vrot.slane %v1190_v34, 2  ;;  %v2084_v17 = vrot.slane %v1350_v13, 1  ;;  %v1429_v5 = vadd.f32 %v1397_v9, %v7293_v8  ;;  %v2283_v41 = vsel %vm2153_vm0, %v1892_v29, %v1940_v30 }
 0x11f   : > { %v2501_v42 = vmul.f32 %v2459_v59, %v7309_v21  ;;  %v2036_v52 = vrot.slane %v1270_v45, 2  ;;  %6512 = vlog2.f32 %v2406_v63  ;;  %v1524_v48 = vadd.f32 %v1492_v37, %v1445_v53 }
 0x120   : > { %v2299_v14 = vsel %vm2170_vm1, %v2283_v41, %v1988_v2  ;;  %v280_v27 = vmul.f32 0.5333333, %v6624_v46  ;;  %v2132_v56 = vrot.slane %v1429_v5, 1  ;;  %v296_v3 = vmul.f32 0.46666667, %v6624_v46 }
 0x121   : > { %v2576_v20 = vsel %vm2512_vm7, %v2501_v42, 0.0  ;;  %v2315_v26 = vsel %vm2187_vm2, %v2299_v14, %v2036_v52  ;;  %v375_v8 = vmul.f32 0.06666666, %v6624_v46  ;;  %v7362_v55 = vmul.f32 0.93333334, %v6624_v46 }
 0x122   : > { %2577 = vadd.xlane.f32.xlu1 %v2576_v20  ;;  %v2331_v21 = vsel %vm2204_vm3, %v2315_v26, %v2084_v17  ;;  %v7365_v31 = vmul.f32 0.6, %v6624_v46  ;;  %v328_v22 = vrot.slane %v296_v3, 1  ;;  %v487_v15 = vmul.f32 0.4, %v6624_v46 }
 0x123   : > { %v2347_v51 = vsel %vm2221_vm4, %v2331_v21, %v2132_v56  ;;  %v567_v19 = vmul.f32 0.13333333, %v6624_v46  ;;  %v423_v18 = vrot.slane %v7362_v55, 1  ;;  %v7373_v1 = vmul.f32 0.8666667, %v6624_v46 }
 0x124   : > { %v2363_v6 = vsel %vm2238_vm5, %v2347_v51, %v1524_v48  ;;  %v663_v23 = vmul.f32 0.6666666, %v6624_v46  ;;  %v360_v60 = vadd.f32 %v328_v22, %v280_v27  ;;  %v519_v24 = vrot.slane %v487_v15, 1 }
 0x125   : > { %v7378_v58 = vsel %vm2255_vm6, %v2363_v6, %v6620_v43  ;;  %v679_v38 = vmul.f32 0.33333334, %v6624_v46  ;;  %v455_v29 = vadd.f32 %v423_v18, %v375_v8  ;;  %v615_v11 = vrot.slane %v7373_v1, 1 }
 0x126   : > { %v2407_v4 = vadd.f32 1e-07, %v7378_v58  ;;  %v759_v28 = vmul.f32 0.19999999, %v6624_v46  ;;  %v551_v35 = vadd.f32 %v519_v24, %v7365_v31  ;;  %v775_v36 = vmul.f32 0.8, %v6624_v46 }
 0x127   : > { %v711_v7 = vrot.slane %v679_v38, 1  ;;  %v855_v30 = vmul.f32 0.73333335, %v6624_v46  ;;  %v647_v43 = vadd.f32 %v615_v11, %v567_v19  ;;  %v871_v10 = vmul.f32 0.26666668, %v6624_v46 }
 0x128   : > { %6514 = vlog2.f32 %v2407_v4  ;;  %v951_v12 = vmul.f32 0.26666665, %v6624_v46  ;;  %v807_v39 = vrot.slane %v775_v36, 1  ;;  %v1031_v0 = vmul.f32 0.2, %v6624_v46 }
 0x129   : > { %v743_v49 = vadd.f32 %v711_v7, %v663_v23  ;;  %v983_v61 = vrot.slane %v855_v30, 1  ;;  %v6513_v40 = vpop.eup %6512  ;;  %v903_v57 = vrot.slane %v871_v10, 1  ;;  %v1557_v32 = vrot.slane %v360_v60, 7 }
 0x12a   : > { %v1605_v53 = vrot.slane %v455_v29, 6  ;;  %v1653_v62 = vrot.slane %v551_v35, 6  ;;  %v2461_v33 = vmul.f32 0.6931472, %v6513_v40  ;;  %v839_v34 = vadd.f32 %v807_v39, %v759_v28 }
 0x12b   : > { %v1015_v13 = vadd.f32 %v983_v61, %v951_v12  ;;  %v1063_v25 = vrot.slane %v1031_v0, 1  ;;  %v935_v59 = vadd.f32 %v903_v57, %v855_v30  ;;  %v1701_v45 = vrot.slane %v647_v43, 5 }
 0x12c   : > { %v1749_v9 = vrot.slane %v743_v49, 5  ;;  %v2166_v63 = vsel %vm2153_vm0, %v6624_v46, %v1557_v32  ;;  %v2502_v37 = vmul.f32 %v2461_v33, %v7347_v16  ;;  %v1797_v17 = vrot.slane %v839_v34, 4 }
 0x12d   : > { %v1095_v2 = vadd.f32 %v1063_v25, %v775_v36  ;;  %v1893_v42 = vrot.slane %v1015_v13, 3  ;;  %v1845_v5 = vrot.slane %v935_v59, 4  ;;  %v2183_v52 = vsel %vm2170_vm1, %v2166_v63, %v1605_v53 }
 0x12e   : > { %v1111_v41 = vmul.f32 0.3333333, %v6624_v46  ;;  %v1127_v48 = vmul.f32 0.6666667, %v6624_v46  ;;  %v2579_v14 = vsel %vm2512_vm7, %v2502_v37, 0.0  ;;  %v2200_v20 = vsel %vm2187_vm2, %v2183_v52, %v1653_v62 }
 0x12f   : > { %v1941_v27 = vrot.slane %v1095_v2, 3  ;;  %v1207_v56 = vmul.f32 0.13333334, %v6624_v46  ;;  %2580 = vadd.xlane.f32.xlu0 %v2579_v14  ;;  %v2217_v16 = vsel %vm2204_vm3, %v2200_v20, %v1701_v45  ;;  %v1287_v3 = vmul.f32 0.39999998, %v6624_v46 }
 0x130   : > { %v1159_v26 = vrot.slane %v1127_v48, 1  ;;  %v1319_v21 = vrot.slane %v7365_v31, 1  ;;  %v2234_v8 = vsel %vm2221_vm4, %v2217_v16, %v1749_v9  ;;  %v1367_v22 = vmul.f32 0.06666667, %v6624_v46 }
 0x131   : > { %v1239_v51 = vrot.slane %v1207_v56, 1  ;;  %v1446_v15 = vmul.f32 0.46666664, %v6624_v46  ;;  %v2251_v6 = vsel %vm2238_vm5, %v2234_v8, %v1797_v17  ;;  %v1462_v60 = vmul.f32 0.53333336, %v6624_v46 }
 0x132   : > { %v6515_v19 = vpop.eup %6514  ;;  %v1191_v18 = vadd.f32 %v1159_v26, %v1111_v41  ;;  %v1351_v23 = vadd.f32 %v1319_v21, %v1287_v3  ;;  %v7408_v38 = vsel %vm2255_vm6, %v2251_v6, %v1845_v5  ;;  %v1398_v4 = vrot.slane %v1367_v22, 1 }
 0x133   : > { %v2463_v24 = vmul.f32 0.6931472, %v6515_v19  ;;  %v1271_v31 = vadd.f32 %v1239_v51, %v7373_v1  ;;  %v2408_v29 = vadd.f32 1e-07, %v7408_v38  ;;  %v1493_v11 = vrot.slane %v1462_v60, 1 }
 0x134   : > { %v1989_v28 = vrot.slane %v1191_v18, 2  ;;  %v2085_v35 = vrot.slane %v1351_v23, 1  ;;  %v1430_v36 = vadd.f32 %v1398_v4, %v7362_v55  ;;  %v2284_v43 = vsel %vm2153_vm0, %v1893_v42, %v1941_v27 }
 0x135   : > { %v2503_v7 = vmul.f32 %v2463_v24, %v7378_v58  ;;  %v2037_v30 = vrot.slane %v1271_v31, 2  ;;  %6516 = vlog2.f32 %v2408_v29  ;;  %v1525_v10 = vadd.f32 %v1493_v11, %v1446_v15 }
 0x136   : > { %v2300_v12 = vsel %vm2170_vm1, %v2284_v43, %v1989_v28  ;;  %v281_v49 = vmul.f32 0.5333333, %v6633_v50  ;;  %v2133_v39 = vrot.slane %v1430_v36, 1  ;;  %v297_v0 = vmul.f32 0.46666667, %v6633_v50 }
 0x137   : > { %v2582_v1 = vsel %vm2512_vm7, %v2503_v7, 0.0  ;;  %v2316_v61 = vsel %vm2187_vm2, %v2300_v12, %v2037_v30  ;;  %v376_v55 = vmul.f32 0.06666666, %v6633_v50  ;;  %v7423_v40 = vmul.f32 0.93333334, %v6633_v50 }
 0x138   : > { %2583 = vadd.xlane.f32.xlu1 %v2582_v1  ;;  %v2332_v58 = vsel %vm2204_vm3, %v2316_v61, %v2085_v35  ;;  %v7426_v57 = vmul.f32 0.6, %v6633_v50  ;;  %v329_v53 = vrot.slane %v297_v0, 1  ;;  %v488_v62 = vmul.f32 0.4, %v6633_v50 }
 0x139   : > { %v2348_v32 = vsel %vm2221_vm4, %v2332_v58, %v2133_v39  ;;  %v568_v33 = vmul.f32 0.13333333, %v6633_v50  ;;  %v424_v13 = vrot.slane %v7423_v40, 1  ;;  %v7434_v25 = vmul.f32 0.8666667, %v6633_v50 }
 0x13a   : > { %v2364_v34 = vsel %vm2238_vm5, %v2348_v32, %v1525_v10  ;;  %v664_v59 = vmul.f32 0.6666666, %v6633_v50  ;;  %v361_v9 = vadd.f32 %v329_v53, %v281_v49  ;;  %v520_v63 = vrot.slane %v488_v62, 1 }
 0x13b   : > { %v7439_v45 = vsel %vm2255_vm6, %v2364_v34, %v6624_v46  ;;  %v680_v37 = vmul.f32 0.33333334, %v6633_v50  ;;  %v456_v17 = vadd.f32 %v424_v13, %v376_v55  ;;  %v616_v42 = vrot.slane %v7434_v25, 1 }
 0x13c   : > { %v2409_v2 = vadd.f32 1e-07, %v7439_v45  ;;  %v760_v5 = vmul.f32 0.19999999, %v6633_v50  ;;  %v552_v52 = vadd.f32 %v520_v63, %v7426_v57  ;;  %v776_v48 = vmul.f32 0.8, %v6633_v50 }
 0x13d   : > { %v712_v41 = vrot.slane %v680_v37, 1  ;;  %v856_v14 = vmul.f32 0.73333335, %v6633_v50  ;;  %v648_v46 = vadd.f32 %v616_v42, %v568_v33  ;;  %v872_v27 = vmul.f32 0.26666668, %v6633_v50 }
 0x13e   : > { %6518 = vlog2.f32 %v2409_v2  ;;  %v952_v20 = vmul.f32 0.26666665, %v6633_v50  ;;  %v808_v16 = vrot.slane %v776_v48, 1  ;;  %v1032_v3 = vmul.f32 0.2, %v6633_v50 }
 0x13f   : > { %v744_v56 = vadd.f32 %v712_v41, %v664_v59  ;;  %v984_v26 = vrot.slane %v856_v14, 1  ;;  %v6517_v21 = vpop.eup %6516  ;;  %v904_v8 = vrot.slane %v872_v27, 1  ;;  %v1558_v51 = vrot.slane %v361_v9, 7 }
 0x140   : > { %v1606_v22 = vrot.slane %v456_v17, 6  ;;  %v1654_v15 = vrot.slane %v552_v52, 6  ;;  %v2465_v19 = vmul.f32 0.6931472, %v6517_v21  ;;  %v840_v6 = vadd.f32 %v808_v16, %v760_v5 }
 0x141   : > { %v1016_v18 = vadd.f32 %v984_v26, %v952_v20  ;;  %v1064_v23 = vrot.slane %v1032_v3, 1  ;;  %v936_v60 = vadd.f32 %v904_v8, %v856_v14  ;;  %v1702_v24 = vrot.slane %v648_v46, 5 }
 0x142   : > { %v1750_v31 = vrot.slane %v744_v56, 5  ;;  %v2167_v4 = vsel %vm2153_vm0, %v6633_v50, %v1558_v51  ;;  %v2504_v29 = vmul.f32 %v2465_v19, %v7408_v38  ;;  %v1798_v28 = vrot.slane %v840_v6, 4 }
 0x143   : > { %v1096_v11 = vadd.f32 %v1064_v23, %v776_v48  ;;  %v1894_v35 = vrot.slane %v1016_v18, 3  ;;  %v1846_v7 = vrot.slane %v936_v60, 4  ;;  %v2184_v36 = vsel %vm2170_vm1, %v2167_v4, %v1606_v22 }
 0x144   : > { %v1112_v30 = vmul.f32 0.3333333, %v6633_v50  ;;  %v1128_v43 = vmul.f32 0.6666667, %v6633_v50  ;;  %v2585_v10 = vsel %vm2512_vm7, %v2504_v29, 0.0  ;;  %v2201_v49 = vsel %vm2187_vm2, %v2184_v36, %v1654_v15 }
 0x145   : > { %v1942_v12 = vrot.slane %v1096_v11, 3  ;;  %v1208_v1 = vmul.f32 0.13333334, %v6633_v50  ;;  %2586 = vadd.xlane.f32.xlu0 %v2585_v10  ;;  %v2218_v38 = vsel %vm2204_vm3, %v2201_v49, %v1702_v24  ;;  %v1288_v61 = vmul.f32 0.39999998, %v6633_v50 }
 0x146   : > { %v1160_v39 = vrot.slane %v1128_v43, 1  ;;  %v1320_v0 = vrot.slane %v7426_v57, 1  ;;  %v2235_v58 = vsel %vm2221_vm4, %v2218_v38, %v1750_v31  ;;  %v1368_v32 = vmul.f32 0.06666667, %v6633_v50 }
 0x147   : > { %v1240_v55 = vrot.slane %v1208_v1, 1  ;;  %v1447_v53 = vmul.f32 0.46666664, %v6633_v50  ;;  %v2252_v33 = vsel %vm2238_vm5, %v2235_v58, %v1798_v28  ;;  %v1463_v59 = vmul.f32 0.53333336, %v6633_v50 }
 0x148   : > { %v6519_v62 = vpop.eup %6518  ;;  %v1192_v34 = vadd.f32 %v1160_v39, %v1112_v30  ;;  %v1352_v13 = vadd.f32 %v1320_v0, %v1288_v61  ;;  %v7469_v63 = vsel %vm2255_vm6, %v2252_v33, %v1846_v7  ;;  %v1399_v37 = vrot.slane %v1368_v32, 1 }
 0x149   : > { %v2467_v9 = vmul.f32 0.6931472, %v6519_v62  ;;  %v1272_v57 = vadd.f32 %v1240_v55, %v7434_v25  ;;  %v2410_v2 = vadd.f32 1e-07, %v7469_v63  ;;  %v1494_v17 = vrot.slane %v1463_v59, 1  ;;  %v7514_v59 = vpop.xlane.xlu1 %2520 }
 0x14a   : > { %v1990_v42 = vrot.slane %v1192_v34, 2  ;;  %v2086_v5 = vrot.slane %v1352_v13, 1  ;;  %v1431_v41 = vadd.f32 %v1399_v37, %v7423_v40  ;;  %v2285_v14 = vsel %vm2153_vm0, %v1894_v35, %v1942_v12 }
 0x14b   : > { %v2505_v52 = vmul.f32 %v2467_v9, %v7439_v45  ;;  %v2038_v48 = vrot.slane %v1272_v57, 2  ;;  %6520 = vlog2.f32 %v2410_v2  ;;  %v1526_v46 = vadd.f32 %v1494_v17, %v1447_v53  ;;  %v7512_v53 = vpop.xlane.xlu0 %2514 }
 0x14c   : > { %v2301_v27 = vsel %vm2170_vm1, %v2285_v14, %v1990_v42  ;;  %v282_v20 = vmul.f32 0.5333333, %v6641_v54  ;;  %v2134_v56 = vrot.slane %v1431_v41, 1  ;;  %v298_v26 = vmul.f32 0.46666667, %v6641_v54 }
 0x14d   : > { %v2588_v25 = vsel %vm2512_vm7, %v2505_v52, 0.0  ;;  %v2317_v16 = vsel %vm2187_vm2, %v2301_v27, %v2038_v48  ;;  %v377_v40 = vmul.f32 0.06666666, %v6641_v54  ;;  %v7484_v3 = vmul.f32 0.93333334, %v6641_v54 }
 0x14e   : > { %2589 = vadd.xlane.f32.xlu1 %v2588_v25  ;;  %v2333_v45 = vsel %vm2204_vm3, %v2317_v16, %v2086_v5  ;;  %v7487_v21 = vmul.f32 0.6, %v6641_v54  ;;  %v330_v51 = vrot.slane %v298_v26, 1  ;;  %v489_v22 = vmul.f32 0.4, %v6641_v54 }
 0x14f   : > { %v2349_v8 = vsel %vm2221_vm4, %v2333_v45, %v2134_v56  ;;  %v569_v15 = vmul.f32 0.13333333, %v6641_v54  ;;  %v425_v6 = vrot.slane %v7484_v3, 1  ;;  %v7495_v18 = vmul.f32 0.8666667, %v6641_v54 }
 0x150   : > { %v2365_v19 = vsel %vm2238_vm5, %v2349_v8, %v1526_v46  ;;  %v665_v23 = vmul.f32 0.6666666, %v6641_v54  ;;  %v362_v24 = vadd.f32 %v330_v51, %v282_v20  ;;  %v521_v31 = vrot.slane %v489_v22, 1 }
 0x151   : > { %v7500_v60 = vsel %vm2255_vm6, %v2365_v19, %v6633_v50  ;;  %v681_v4 = vmul.f32 0.33333334, %v6641_v54  ;;  %v457_v11 = vadd.f32 %v425_v6, %v377_v40  ;;  %v617_v28 = vrot.slane %v7495_v18, 1  ;;  %v7528_v40 = vpop.xlane.xlu0 %2517  ;;  %v7533_v19 = vpop.xlane.xlu1 %2523 }
 0x152   : > { %v2411_v29 = vadd.f32 1e-07, %v7500_v60  ;;  %v761_v35 = vmul.f32 0.19999999, %v6641_v54  ;;  %v553_v7 = vadd.f32 %v521_v31, %v7487_v21  ;;  %v777_v30 = vmul.f32 0.8, %v6641_v54 }
 0x153   : > { %v713_v36 = vrot.slane %v681_v4, 1  ;;  %v857_v43 = vmul.f32 0.73333335, %v6641_v54  ;;  %v649_v50 = vadd.f32 %v617_v28, %v569_v15  ;;  %v873_v10 = vmul.f32 0.26666668, %v6641_v54 }
 0x154   : > { %6522 = vlog2.f32 %v2411_v29  ;;  %v953_v12 = vmul.f32 0.26666665, %v6641_v54  ;;  %v809_v1 = vrot.slane %v777_v30, 1  ;;  %v1033_v39 = vmul.f32 0.2, %v6641_v54 }
 0x155   : > { %v745_v49 = vadd.f32 %v713_v36, %v665_v23  ;;  %v985_v38 = vrot.slane %v857_v43, 1  ;;  %v6521_v61 = vpop.eup %6520  ;;  %v905_v0 = vrot.slane %v873_v10, 1  ;;  %v1559_v58 = vrot.slane %v362_v24, 7 }
 0x156   : > { %v1607_v55 = vrot.slane %v457_v11, 6  ;;  %v1655_v32 = vrot.slane %v553_v7, 6  ;;  %v2469_v62 = vmul.f32 0.6931472, %v6521_v61  ;;  %v841_v33 = vadd.f32 %v809_v1, %v761_v35 }
 0x157   : > { %v1017_v34 = vadd.f32 %v985_v38, %v953_v12  ;;  %v1065_v13 = vrot.slane %v1033_v39, 1  ;;  %v937_v9 = vadd.f32 %v905_v0, %v857_v43  ;;  %v1703_v57 = vrot.slane %v649_v50, 5  ;;  %v7542_v43 = vpop.xlane.xlu0 %2526 }
 0x158   : > { %v1751_v37 = vrot.slane %v745_v49, 5  ;;  %v2168_v2 = vsel %vm2153_vm0, %v6641_v54, %v1559_v58  ;;  %v2506_v17 = vmul.f32 %v2469_v62, %v7469_v63  ;;  %v1799_v5 = vrot.slane %v841_v33, 4 }
 0x159   : > { %v1097_v42 = vadd.f32 %v1065_v13, %v777_v30  ;;  %v1895_v52 = vrot.slane %v1017_v34, 3  ;;  %v1847_v41 = vrot.slane %v937_v9, 4  ;;  %v2185_v48 = vsel %vm2170_vm1, %v2168_v2, %v1607_v55  ;;  %v7555_v55 = vpop.xlane.xlu1 %2529 }
 0x15a   : > { %v1113_v14 = vmul.f32 0.3333333, %v6641_v54  ;;  %v1129_v46 = vmul.f32 0.6666667, %v6641_v54  ;;  %v2591_v27 = vsel %vm2512_vm7, %v2506_v17, 0.0  ;;  %v2202_v25 = vsel %vm2187_vm2, %v2185_v48, %v1655_v32 }
 0x15b   : > { %v1943_v20 = vrot.slane %v1097_v42, 3  ;;  %v1209_v56 = vmul.f32 0.13333334, %v6641_v54  ;;  %2592 = vadd.xlane.f32.xlu0 %v2591_v27  ;;  %v2219_v63 = vsel %vm2204_vm3, %v2202_v25, %v1703_v57  ;;  %v1289_v26 = vmul.f32 0.39999998, %v6641_v54 }
 0x15c   : > { %v1161_v16 = vrot.slane %v1129_v46, 1  ;;  %v1321_v45 = vrot.slane %v7487_v21, 1  ;;  %v2236_v8 = vsel %vm2221_vm4, %v2219_v63, %v1751_v37  ;;  %v1369_v22 = vmul.f32 0.06666667, %v6641_v54 }
 0x15d   : > { %v1241_v51 = vrot.slane %v1209_v56, 1  ;;  %v1448_v15 = vmul.f32 0.46666664, %v6641_v54  ;;  %v2253_v23 = vsel %vm2238_vm5, %v2236_v8, %v1799_v5  ;;  %v1464_v4 = vmul.f32 0.53333336, %v6641_v54  ;;  %v7574_v5 = vpop.xlane.xlu0 %2532 }
 0x15e   : > { %v6523_v6 = vpop.eup %6522  ;;  %v1193_v24 = vadd.f32 %v1161_v16, %v1113_v14  ;;  %v1353_v31 = vadd.f32 %v1321_v45, %v1289_v26  ;;  %v7538_v21 = vsel %vm2255_vm6, %v2253_v23, %v1847_v41  ;;  %v1400_v28 = vrot.slane %v1369_v22, 1 }
 0x15f   : > { %v2471_v29 = vmul.f32 0.6931472, %v6523_v6  ;;  %v1273_v11 = vadd.f32 %v1241_v51, %v7495_v18  ;;  %v2412_v35 = vadd.f32 1e-07, %v7538_v21  ;;  %v1495_v7 = vrot.slane %v1464_v4, 1  ;;  %v7549_v18 = vld [vmem:[%s6583_s20 + $0x38] sm:$0xff] }
 0x160   : > { %v1991_v36 = vrot.slane %v1193_v24, 2  ;;  %v2087_v30 = vrot.slane %v1353_v31, 1  ;;  %v1432_v10 = vadd.f32 %v1400_v28, %v7484_v3  ;;  %v2286_v49 = vsel %vm2153_vm0, %v1895_v52, %v1943_v20 }
 0x161   : > { %v2507_v50 = vmul.f32 %v2471_v29, %v7500_v60  ;;  %v2039_v12 = vrot.slane %v1273_v11, 2  ;;  %6524 = vlog2.f32 %v2412_v35  ;;  %v1527_v1 = vadd.f32 %v1495_v7, %v1448_v15  ;;  %v7592_v28 = vpop.xlane.xlu0 %2538 }
 0x162   : > { %v2302_v38 = vsel %vm2170_vm1, %v2286_v49, %v1991_v36  ;;  %v283_v39 = vmul.f32 0.5333333, %v7549_v18  ;;  %v2135_v0 = vrot.slane %v1432_v10, 1  ;;  %v299_v60 = vmul.f32 0.46666667, %v7549_v18 }
 0x163   : > { %v2594_v61 = vsel %vm2512_vm7, %v2507_v50, 0.0  ;;  %v2318_v58 = vsel %vm2187_vm2, %v2302_v38, %v2039_v12  ;;  %v378_v32 = vmul.f32 0.06666666, %v7549_v18  ;;  %v7560_v62 = vmul.f32 0.93333334, %v7549_v18 }
 0x164   : > { %2595 = vadd.xlane.f32.xlu1 %v2594_v61  ;;  %v2334_v3 = vsel %vm2204_vm3, %v2318_v58, %v2087_v30  ;;  %v7563_v33 = vmul.f32 0.6, %v7549_v18  ;;  %v331_v13 = vrot.slane %v299_v60, 1  ;;  %v490_v9 = vmul.f32 0.4, %v7549_v18 }
 0x165   : > { %v2350_v34 = vsel %vm2221_vm4, %v2334_v3, %v2135_v0  ;;  %v570_v57 = vmul.f32 0.13333333, %v7549_v18  ;;  %v426_v2 = vrot.slane %v7560_v62, 1  ;;  %v7571_v17 = vmul.f32 0.8666667, %v7549_v18 }
 0x166   : > { %v2366_v37 = vsel %vm2238_vm5, %v2350_v34, %v1527_v1  ;;  %v666_v42 = vmul.f32 0.6666666, %v7549_v18  ;;  %v363_v41 = vadd.f32 %v331_v13, %v283_v39  ;;  %v522_v48 = vrot.slane %v490_v9, 1 }
 0x167   : > { %v7578_v52 = vsel %vm2255_vm6, %v2366_v37, %v6641_v54  ;;  %v682_v14 = vmul.f32 0.33333334, %v7549_v18  ;;  %v458_v27 = vadd.f32 %v426_v2, %v378_v32  ;;  %v618_v20 = vrot.slane %v7571_v17, 1  ;;  %v7587_v54 = vpop.xlane.xlu1 %2535 }
 0x168   : > { %v2413_v46 = vadd.f32 1e-07, %v7578_v52  ;;  %v762_v25 = vmul.f32 0.19999999, %v7549_v18  ;;  %v554_v56 = vadd.f32 %v522_v48, %v7563_v33  ;;  %v778_v16 = vmul.f32 0.8, %v7549_v18 }
 0x169   : > { %v714_v63 = vrot.slane %v682_v14, 1  ;;  %v858_v26 = vmul.f32 0.73333335, %v7549_v18  ;;  %v650_v45 = vadd.f32 %v618_v20, %v570_v57  ;;  %v874_v8 = vmul.f32 0.26666668, %v7549_v18 }
 0x16a   : > { %6526 = vlog2.f32 %v2413_v46  ;;  %v954_v51 = vmul.f32 0.26666665, %v7549_v18  ;;  %v810_v15 = vrot.slane %v778_v16, 1  ;;  %v1034_v23 = vmul.f32 0.2, %v7549_v18 }
 0x16b   : > { %v746_v22 = vadd.f32 %v714_v63, %v666_v42  ;;  %v986_v6 = vrot.slane %v858_v26, 1  ;;  %v6525_v24 = vpop.eup %6524  ;;  %v906_v31 = vrot.slane %v874_v8, 1  ;;  %v1560_v4 = vrot.slane %v363_v41, 7  ;;  %v7597_v0 = vpop.xlane.xlu1 %2541 }
 0x16c   : > { %v1608_v29 = vrot.slane %v458_v27, 6  ;;  %v1656_v11 = vrot.slane %v554_v56, 6  ;;  %v2473_v35 = vmul.f32 0.6931472, %v6525_v24  ;;  %v842_v7 = vadd.f32 %v810_v15, %v762_v25  ;;  %v7608_v41 = vpop.xlane.xlu0 %2544 }
 0x16d   : > { %v1018_v36 = vadd.f32 %v986_v6, %v954_v51  ;;  %v1066_v30 = vrot.slane %v1034_v23, 1  ;;  %v938_v50 = vadd.f32 %v906_v31, %v858_v26  ;;  %v1704_v10 = vrot.slane %v650_v45, 5 }
 0x16e   : > { %v1752_v12 = vrot.slane %v746_v22, 5  ;;  %v2169_v49 = vsel %vm2153_vm0, %v7549_v18, %v1560_v4  ;;  %v2508_v1 = vmul.f32 %v2473_v35, %v7538_v21  ;;  %v1800_v39 = vrot.slane %v842_v7, 4  ;;  %v2673_v35 = vld [vmem:[%s7636_s28] sm:$0xff] }
 0x16f   : > { %v1098_v38 = vadd.f32 %v1066_v30, %v778_v16  ;;  %v1896_v61 = vrot.slane %v1018_v36, 3  ;;  %v1848_v58 = vrot.slane %v938_v50, 4  ;;  %v2186_v60 = vsel %vm2170_vm1, %v2169_v49, %v1608_v29  ;;  %v7625_v8 = vpop.xlane.xlu1 %2547  ;;  %v2676_v49 = vld [vmem:[%s7636_s28 + $0x18] sm:$0xff] }
 0x170   : > { %v1114_v3 = vmul.f32 0.3333333, %v7549_v18  ;;  %v1130_v32 = vmul.f32 0.6666667, %v7549_v18  ;;  %v2597_v34 = vsel %vm2512_vm7, %v2508_v1, 0.0  ;;  %v2203_v9 = vsel %vm2187_vm2, %v2186_v60, %v1656_v11  ;;  %v7642_v31 = vpop.xlane.xlu0 %2550  ;;  %v2677_v60 = vld [vmem:[%s7636_s28 + $0x20] sm:$0xff] }
 0x171   : > { %v1944_v13 = vrot.slane %v1098_v38, 3  ;;  %v1210_v21 = vmul.f32 0.13333334, %v7549_v18  ;;  %2598 = vadd.xlane.f32.xlu0 %v2597_v34  ;;  %v2220_v57 = vsel %vm2204_vm3, %v2203_v9, %v1704_v10  ;;  %v1290_v2 = vmul.f32 0.39999998, %v7549_v18  ;;  %v2674_v10 = vld [vmem:[%s7636_s28 + $0x8] sm:$0xff] }
 0x172   : > { %v1162_v37 = vrot.slane %v1130_v32, 1  ;;  %v1322_v42 = vrot.slane %v7563_v33, 1  ;;  %v2237_v48 = vsel %vm2221_vm4, %v2220_v57, %v1752_v12  ;;  %v1401_v46 = vrot.slane %v6622_v44, 1  ;;  %v2675_v12 = vld [vmem:[%s7636_s28 + $0x10] sm:$0xff] }
 0x173   : > { %v1242_v14 = vrot.slane %v1210_v21, 1  ;;  %v1449_v27 = vmul.f32 0.46666664, %v7549_v18  ;;  %v2254_v25 = vsel %vm2238_vm5, %v2237_v48, %v1800_v39  ;;  %v1496_v16 = vrot.slane %v6626_v47, 1  ;;  %v7714_v39 = vpop.xlane.xlu1 %2553 }
 0x174   : > { %v6527_v20 = vpop.eup %6526  ;;  %v1194_v56 = vadd.f32 %v1162_v37, %v1114_v3  ;;  %v7615_v63 = vadd.f32 %v1322_v42, %v1290_v2  ;;  %v7619_v26 = vsel %vm2255_vm6, %v2254_v25, %v1848_v58  ;;  %v7623_v44 = vadd.f32 %v1401_v46, %v7560_v62  ;;  %v2678_v3 = vld [vmem:[%s7636_s28 + $0x28] sm:$0xff]  ;;  %v2679_v37 = vld [vmem:[%s7636_s28 + $0x30] sm:$0xff]  ;;  %v7726_v2 = vpop.xlane.xlu0 %2556 }
 0x175   : > { %v2475_v33 = vmul.f32 0.6931472, %v6527_v20  ;;  %v1274_v45 = vadd.f32 %v1242_v14, %v7571_v17  ;;  %v2414_v51 = vadd.f32 1e-07, %v7619_v26  ;;  %v7628_v22 = vadd.f32 %v1496_v16, %v1449_v27  ;;  %v2681_v27 = vld [vmem:[%s7636_s28 + $0x40] sm:$0xff] }
 0x176   : > { %v1992_v15 = vrot.slane %v1194_v56, 2  ;;  %v2088_v6 = vrot.slane %v7615_v63, 1  ;;  %v2136_v62 = vrot.slane %v7623_v44, 1  ;;  %v2287_v23 = vsel %vm2153_vm0, %v1896_v61, %v1944_v13  ;;  %v2826_v20 = vld [vmem:[%s8363_s2] sm:$0x7] }
 0x177   : > { %v2509_v47 = vmul.f32 %v2475_v33, %v7578_v52  ;;  %v2040_v17 = vrot.slane %v1274_v45, 2  ;;  %6528 = vlog2.f32 %v2414_v51  ;;  %v6543_v11 = vmov 0.0   ;;  %v7748_v16 = vld [vmem:[%s8363_s2 + $0x14] sm:$0x7]  ;;  %v2682_v51 = vld [vmem:[%s7636_s28 + $0x48] sm:$0xff] }
 0x178   : > { %v2303_v24 = vsel %vm2170_vm1, %v2287_v23, %v1992_v15  ;;  %2742 = vst.msk [vmem:[#allocation2 + $0x18] sm:$0xff] %vm2737_vm8, %v6543_v11  ;;  %2743 = vst.msk [vmem:[#allocation2 + $0x20] sm:$0xff] %vm2737_vm8, %v6543_v11  ;;  %v2609_v52 = vsub.f32 0.0, %v7512_v53  ;;  %v2610_v7 = vsub.f32 0.0, %v7528_v40  ;;  %v2611_v40 = vsub.f32 0.0, %v7514_v59  ;;  %v2560_v15 = vpop.xlane.xlu1 %2559  ;;  %v2683_v23 = vld [vmem:[%s7636_s28 + $0x50] sm:$0xff] }
 0x179   : > { %v2600_v4 = vsel %vm2512_vm7, %v2509_v47, 0.0  ;;  %v2319_v29 = vsel %vm2187_vm2, %v2303_v24, %v2040_v17  ;;  %2738 = vst.msk [vmem:[#allocation2] sm:$0xff] %vm2737_vm8, %v6543_v11  ;;  %2739 = vst.msk [vmem:[#allocation2 + $0x8] sm:$0xff] %vm2737_vm8, %v6543_v11  ;;  %v2612_v36 = vsub.f32 0.0, %v7533_v19  ;;  %v2613_v1 = vsub.f32 0.0, %v7542_v43 }
 0x17a   : > { %2745 = vst.msk [vmem:[#allocation2 + $0x30] sm:$0xff] %vm2737_vm8, %v6543_v11  ;;  %2746 = vst.msk [vmem:[#allocation2 + $0x38] sm:$0xff] %vm2737_vm8, %v6543_v11  ;;  %2601 = vadd.xlane.f32.xlu1 %v2600_v4  ;;  %v2335_v53 = vsel %vm2204_vm3, %v2319_v29, %v2088_v6  ;;  %v2641_v50 = vmax.f32 %v2609_v52, 1.0  ;;  %v2614_v38 = vsub.f32 0.0, %v7555_v55  ;;  %v2642_v61 = vmax.f32 %v2610_v7, 1.0  ;;  %v2684_v52 = vld [vmem:[%s7636_s28 + $0x58] sm:$0xff] }
 0x17b   : > { %2748 = vst.msk [vmem:[#allocation2 + $0x48] sm:$0xff] %vm2737_vm8, %v6543_v11  ;;  %2749 = vst.msk [vmem:[#allocation2 + $0x50] sm:$0xff] %vm2737_vm8, %v6543_v11  ;;  %v2351_v30 = vsel %vm2221_vm4, %v2335_v53, %v2136_v62  ;;  %v2643_v19 = vmax.f32 %v2611_v40, 1.0  ;;  %v2644_v58 = vmax.f32 %v2612_v36, 1.0  ;;  %v2645_v34 = vmax.f32 %v2613_v1, 1.0  ;;  %v2563_v40 = vpop.xlane.xlu0 %2562 }
 0x17c   : > { %2751 = vst.msk [vmem:[#allocation2 + $0x60] sm:$0xff] %vm2737_vm8, %v6543_v11  ;;  %2752 = vst.msk [vmem:[#allocation2 + $0x68] sm:$0xff] %vm2737_vm8, %v6543_v11  ;;  %v2367_v59 = vsel %vm2238_vm5, %v2351_v30, %v7628_v22  ;;  %v2705_v43 = vmul.f32 %v2673_v35, %v2641_v50  ;;  %v2646_v55 = vmax.f32 %v2614_v38, 1.0  ;;  %v2706_v9 = vmul.f32 %v2674_v10, %v2642_v61  ;;  %v2685_v50 = vld [vmem:[%s7636_s28 + $0x60] sm:$0xff]  ;;  %v2688_v61 = vld [vmem:[%s7636_s28 + $0x78] sm:$0xff] }
 0x17d   : > { %2754 = vst.msk [vmem:[#allocation2 + $0x78] sm:$0xff] %vm2737_vm8, %v6543_v11  ;;  %2755 = vst.msk [vmem:[#allocation2 + $0x80] sm:$0xff] %vm2737_vm8, %v6543_v11  ;;  %v7722_v32 = vsel %vm2255_vm6, %v2367_v59, %v7549_v18  ;;  %v2707_v21 = vmul.f32 %v2675_v12, %v2643_v19  ;;  %v2708_v57 = vmul.f32 %v2676_v49, %v2644_v58  ;;  %v2615_v14 = vsub.f32 0.0, %v7574_v5  ;;  %v2680_v18 = vld [vmem:[%s7636_s28 + $0x38] sm:$0xff]  ;;  %v6533_v5 = vld [vmem:[%s8363_s2 + $0x4] sm:$0x7] }
 0x17e   : > { %2757 = vst.msk [vmem:[#allocation2 + $0x90] sm:$0xff] %vm2737_vm8, %v6543_v11  ;;  %2758 = vst.msk [vmem:[#allocation2 + $0x98] sm:$0xff] %vm2737_vm8, %v6543_v11  ;;  %v2415_v13 = vadd.f32 1e-07, %v7722_v32  ;;  %v2709_v42 = vmul.f32 %v2677_v60, %v2645_v34  ;;  %v2710_v48 = vmul.f32 %v2678_v3, %v2646_v55  ;;  %v2616_v46 = vsub.f32 0.0, %v7587_v54  ;;  %v2686_v12 = vld [vmem:[%s7636_s28 + $0x68] sm:$0xff] }
 0x17f   : > { %2760 = vst.msk [vmem:[#allocation2 + $0xa8] sm:$0xff] %vm2737_vm8, %v6543_v11  ;;  %2761 = vst.msk [vmem:[#allocation2 + $0xb0] sm:$0xff] %vm2737_vm8, %v6543_v11  ;;  %v2980_v25 = vsel %vm2187_vm2, %v6533_v5, 0  ;;  %v2617_v56 = vsub.f32 0.0, %v7592_v28  ;;  %v2618_v63 = vsub.f32 0.0, %v7597_v0  ;;  %v2647_v33 = vmax.f32 %v2615_v14, 1.0 }
 0x180   : > { %2763 = vst.msk [vmem:[#allocation2 + $0xc0] sm:$0xff] %vm2737_vm8, %v6543_v11  ;;  %2764 = vst.msk [vmem:[#allocation2 + $0xc8] sm:$0xff] %vm2737_vm8, %v6543_v11  ;;  %6530 = vlog2.f32 %v2415_v13  ;;  %v2883_v54 = vld [vmem:[#allocation2 + $0x1] sm:$0xff]  ;;  %v2648_v45 = vmax.f32 %v2616_v46, 1.0  ;;  %5886 = vmatpush3.bf16.msra.mxu1 %v2980_v25  ;;  %v7756_v28 = vld [vmem:[%s8363_s2 + $0x10] sm:$0x7] }
 0x181   : > { %2766 = vst.msk [vmem:[#allocation2 + $0xd8] sm:$0xff] %vm2737_vm8, %v6543_v11  ;;  %2767 = vst.msk [vmem:[#allocation2 + $0xe0] sm:$0xff] %vm2737_vm8, %v6543_v11  ;;  %v7760_v0 = vsel %vm2187_vm2, %v7756_v28, 0  ;;  %v2619_v22 = vsub.f32 0.0, %v7608_v41  ;;  %v6529_v6 = vpop.eup %6528  ;;  %v2649_v17 = vmax.f32 %v2617_v56, 1.0  ;;  %v2650_v62 = vmax.f32 %v2618_v63, 1.0  ;;  %6450 = vmatprep.subr.msk.bf16.mxu1 %vm2187_vm2, %v2826_v20 }
 0x182   : > { %2769 = vst.msk [vmem:[#allocation2 + $0xf0] sm:$0xff] %vm2737_vm8, %v6543_v11  ;;  %2770 = vst.msk [vmem:[#allocation2 + $0xf8] sm:$0xff] %vm2737_vm8, %v6543_v11  ;;  %6022 = vmatpush3.bf16.msra.mxu0 %v7760_v0  ;;  %v2620_v24 = vsub.f32 0.0, %v7625_v8  ;;  %v2477_v4 = vmul.f32 0.6931472, %v6529_v6  ;;  %v2711_v29 = vmul.f32 %v2679_v37, %v2647_v33  ;;  %v3192_v30 = vsel %vm2187_vm2, %v2826_v20, 0 }
 0x183   : > { %2772 = vst.msk [vmem:[#allocation2 + $0x108] sm:$0xff] %vm2737_vm8, %v6543_v11  ;;  %2773 = vst.msk [vmem:[#allocation2 + $0x110] sm:$0xff] %vm2737_vm8, %v6543_v11  ;;  %6455 = vmatprep.subr.msk.bf16.mxu0 %vm2187_vm2, %v7748_v16  ;;  %v2651_v41 = vmax.f32 %v2619_v22, 1.0  ;;  %v2713_v53 = vmul.f32 %v2681_v27, %v2649_v17  ;;  %v2714_v35 = vmul.f32 %v2682_v51, %v2650_v62  ;;  %v2621_v10 = vsub.f32 0.0, %v7642_v31  ;;  %v2566_v55 = vpop.xlane.xlu1 %2565  ;;  %v2690_v33 = vld [vmem:[%s7636_s28 + $0x88] sm:$0xff] }
 0x184   : > { %2775 = vst.msk [vmem:[#allocation2 + $0x120] sm:$0xff] %vm2737_vm8, %v6543_v11  ;;  %2776 = vst.msk [vmem:[#allocation2 + $0x128] sm:$0xff] %vm2737_vm8, %v6543_v11  ;;  %v2652_v7 = vmax.f32 %v2620_v24, 1.0  ;;  %v2510_v8 = vmul.f32 %v2477_v4, %v7619_v26  ;;  %v2622_v38 = vsub.f32 0.0, %v7714_v39  ;;  %v2687_v26 = vld [vmem:[%s7636_s28 + $0x70] sm:$0xff]  ;;  %v2623_v59 = vsub.f32 0.0, %v7726_v2 }
 0x185   : > { %2778 = vst.msk [vmem:[#allocation2 + $0x138] sm:$0xff] %vm2737_vm8, %v6543_v11  ;;  %2779 = vst.msk [vmem:[#allocation2 + $0x140] sm:$0xff] %vm2737_vm8, %v6543_v11  ;;  %v2715_v36 = vmul.f32 %v2683_v23, %v2651_v41  ;;  %v2624_v19 = vsub.f32 0.0, %v2560_v15  ;;  %v2625_v34 = vsub.f32 0.0, %v2563_v40  ;;  %v2689_v2 = vld [vmem:[%s7636_s28 + $0x80] sm:$0xff]  ;;  %v4328_v27 = vsel %vm2187_vm2, %v7748_v16, 0 }
 0x186   : > { %2781 = vst.msk [vmem:[#allocation2 + $0x150] sm:$0xff] %vm2737_vm8, %v6543_v11  ;;  %2782 = vst.msk [vmem:[#allocation2 + $0x158] sm:$0xff] %vm2737_vm8, %v6543_v11  ;;  %v2716_v1 = vmul.f32 %v2684_v52, %v2652_v7  ;;  %v2603_v58 = vsel %vm2512_vm7, %v2510_v8, 0.0  ;;  %v2655_v37 = vmax.f32 %v2623_v59, 1.0  ;;  %v2626_v25 = vsub.f32 0.0, %v2566_v55  ;;  %v2691_v4 = vld [vmem:[%s7636_s28 + $0x90] sm:$0xff] }
 0x187   : > { %2784 = vst.msk [vmem:[#allocation2 + $0x168] sm:$0xff] %vm2737_vm8, %v6543_v11  ;;  %2785 = vst.msk [vmem:[#allocation2 + $0x170] sm:$0xff] %vm2737_vm8, %v6543_v11  ;;  %2604 = vadd.xlane.f32.xlu0 %v2603_v58  ;;  %v2656_v14 = vmax.f32 %v2624_v19, 1.0  ;;  %v7851_v59 = vld [vmem:[%s8363_s2 + $0x8] sm:$0x7] }
 0x188   : > { %2787 = vst.msk [vmem:[#allocation2 + $0x180] sm:$0xff] %vm2737_vm8, %v6543_v11  ;;  %2788 = vst.msk [vmem:[#allocation2 + $0x188] sm:$0xff] %vm2737_vm8, %v6543_v11  ;;  %v2719_v5 = vmul.f32 %v2687_v26, %v2655_v37  ;;  %v2658_v51 = vmax.f32 %v2626_v25, 1.0  ;;  %v2693_v37 = vld [vmem:[%s7636_s28 + $0xa0] sm:$0xff] }
 0x189   : > { %2790 = vst.msk [vmem:[#allocation2 + $0x198] sm:$0xff] %vm2737_vm8, %v6543_v11  ;;  %2791 = vst.msk [vmem:[#allocation2 + $0x1a0] sm:$0xff] %vm2737_vm8, %v6543_v11  ;;  %v2720_v56 = vmul.f32 %v2688_v61, %v2656_v14 }
 0x18a   : > { %2744 = vst.msk [vmem:[#allocation2 + $0x28] sm:$0x3] %vm2740_vm9, %v6543_v11  ;;  %2741 = vst.msk [vmem:[#allocation2 + $0x10] sm:$0x3] %vm2740_vm9, %v6543_v11  ;;  %v6531_v46 = vpop.eup %6530  ;;  %v2722_v15 = vmul.f32 %v2690_v33, %v2658_v51 }
 0x18b   : > { %2747 = vst.msk [vmem:[#allocation2 + $0x40] sm:$0x3] %vm2740_vm9, %v6543_v11  ;;  %2750 = vst.msk [vmem:[#allocation2 + $0x58] sm:$0x3] %vm2740_vm9, %v6543_v11 }
 0x18c   : > { %2753 = vst.msk [vmem:[#allocation2 + $0x70] sm:$0x3] %vm2740_vm9, %v6543_v11  ;;  %2756 = vst.msk [vmem:[#allocation2 + $0x88] sm:$0x3] %vm2740_vm9, %v6543_v11 }
 0x18d   : > { %2759 = vst.msk [vmem:[#allocation2 + $0xa0] sm:$0x3] %vm2740_vm9, %v6543_v11  ;;  %2762 = vst.msk [vmem:[#allocation2 + $0xb8] sm:$0x3] %vm2740_vm9, %v6543_v11 }
 0x18e   : > { %2765 = vst.msk [vmem:[#allocation2 + $0xd0] sm:$0x3] %vm2740_vm9, %v6543_v11  ;;  %2768 = vst.msk [vmem:[#allocation2 + $0xe8] sm:$0x3] %vm2740_vm9, %v6543_v11 }
 0x18f   : > { %2771 = vst.msk [vmem:[#allocation2 + $0x100] sm:$0x3] %vm2740_vm9, %v6543_v11  ;;  %2774 = vst.msk [vmem:[#allocation2 + $0x118] sm:$0x3] %vm2740_vm9, %v6543_v11 }
 0x190   : > { %2777 = vst.msk [vmem:[#allocation2 + $0x130] sm:$0x3] %vm2740_vm9, %v6543_v11  ;;  %2780 = vst.msk [vmem:[#allocation2 + $0x148] sm:$0x3] %vm2740_vm9, %v6543_v11  ;;  %v2569_v23 = vpop.xlane.xlu0 %2568 }
 0x191   : > { %2783 = vst.msk [vmem:[#allocation2 + $0x160] sm:$0x3] %vm2740_vm9, %v6543_v11  ;;  %2786 = vst.msk [vmem:[#allocation2 + $0x178] sm:$0x3] %vm2740_vm9, %v6543_v11  ;;  %v2884_v44 = vld [vmem:[#allocation2 + $0x9] sm:$0xff]  ;;  %v2627_v24 = vsub.f32 0.0, %v2569_v23 }
 0x192   : > { %2789 = vst.msk [vmem:[#allocation2 + $0x190] sm:$0x3] %vm2740_vm9, %v6543_v11  ;;  %2792 = vst.msk [vmem:[#allocation2 + $0x1a8] sm:$0x3] %vm2740_vm9, %v6543_v11  ;;  %v2915_v47 = vpack.c.bf16 %v2884_v44, %v2883_v54  ;;  %v2712_v11 = vmul.f32 %v2680_v18, %v2648_v45  ;;  %v2657_v18 = vmax.f32 %v2625_v34, 1.0 }
 0x193   : > { %2794 = vst.msk [vmem:[#allocation2 + $0x19] sm:$0xff] %vm2737_vm8, %v2705_v43  ;;  %2795 = vst.msk [vmem:[#allocation2 + $0x21] sm:$0xff] %vm2737_vm8, %v2706_v9  ;;  %v2653_v43 = vmax.f32 %v2621_v10, 1.0  ;;  %v2654_v9 = vmax.f32 %v2622_v38, 1.0  ;;  %v2479_v54 = vmul.f32 0.6931472, %v6531_v46 }
 0x194   : > { %2796 = vst.msk [vmem:[#allocation2 + $0x31] sm:$0xff] %vm2737_vm8, %v2707_v21  ;;  %2797 = vst.msk [vmem:[#allocation2 + $0x39] sm:$0xff] %vm2737_vm8, %v2708_v57  ;;  %5887 = vmatprep.mubr.msk.bf16.mxu1 %vm2737_vm8, %v2915_v47  ;;  %v2721_v63 = vmul.f32 %v2689_v2, %v2657_v18  ;;  %v7803_v45 = vld [vmem:[%s8363_s2 + $0x18] sm:$0x7] }
 0x195   : > { %2798 = vst.msk [vmem:[#allocation2 + $0x49] sm:$0xff] %vm2737_vm8, %v2709_v42  ;;  %2799 = vst.msk [vmem:[#allocation2 + $0x51] sm:$0xff] %vm2737_vm8, %v2710_v48  ;;  %v2717_v42 = vmul.f32 %v2685_v50, %v2653_v43  ;;  %v2718_v20 = vmul.f32 %v2686_v12, %v2654_v9  ;;  %v2511_v22 = vmul.f32 %v2479_v54, %v7722_v32  ;;  %v4621_v14 = vsel %vm2187_vm2, %v7803_v45, 0 }
 0x196   : > { %2800 = vst.msk [vmem:[#allocation2 + $0x61] sm:$0xff] %vm2737_vm8, %v2711_v29  ;;  %2801 = vst.msk [vmem:[#allocation2 + $0x69] sm:$0xff] %vm2737_vm8, %v2712_v11  ;;  %v2659_v29 = vmax.f32 %v2627_v24, 1.0 }
 0x197   : > { %2802 = vst.msk [vmem:[#allocation2 + $0x79] sm:$0xff] %vm2737_vm8, %v2713_v53  ;;  %2803 = vst.msk [vmem:[#allocation2 + $0x81] sm:$0xff] %vm2737_vm8, %v2714_v35  ;;  %v2606_v17 = vsel %vm2512_vm7, %v2511_v22, 0.0 }
 0x198   : > { %2804 = vst.msk [vmem:[#allocation2 + $0x91] sm:$0xff] %vm2737_vm8, %v2715_v36  ;;  %2805 = vst.msk [vmem:[#allocation2 + $0x99] sm:$0xff] %vm2737_vm8, %v2716_v1  ;;  %2607 = vadd.xlane.f32.xlu1 %v2606_v17  ;;  %v2723_v52 = vmul.f32 %v2691_v4, %v2659_v29 }
 0x199   : > { %2806 = vst.msk [vmem:[#allocation2 + $0xa9] sm:$0xff] %vm2737_vm8, %v2717_v42  ;;  %2807 = vst.msk [vmem:[#allocation2 + $0xb1] sm:$0xff] %vm2737_vm8, %v2718_v20  ;;  %v2572_v40 = vpop.xlane.xlu1 %2571 }
 0x19a   : > { %v2885_v49 = vld [vmem:[#allocation2 + $0x19] sm:$0xff]  ;;  %v2886_v60 = vld [vmem:[#allocation2 + $0x21] sm:$0xff]  ;;  %2808 = vst.msk [vmem:[#allocation2 + $0xc1] sm:$0xff] %vm2737_vm8, %v2719_v5  ;;  %2809 = vst.msk [vmem:[#allocation2 + $0xc9] sm:$0xff] %vm2737_vm8, %v2720_v56  ;;  %v2628_v36 = vsub.f32 0.0, %v2572_v40 }
 0x19b   : > { %v2887_v31 = vld [vmem:[#allocation2 + $0x31] sm:$0xff]  ;;  %v2888_v3 = vld [vmem:[#allocation2 + $0x39] sm:$0xff]  ;;  %v2916_v13 = vpack.c.bf16 %v2886_v60, %v2885_v49  ;;  %2810 = vst.msk [vmem:[#allocation2 + $0xd9] sm:$0xff] %vm2737_vm8, %v2721_v63  ;;  %2811 = vst.msk [vmem:[#allocation2 + $0xe1] sm:$0xff] %vm2737_vm8, %v2722_v15 }
 0x19c   : > { %v7787_v39 = vpack.c.bf16 %v2888_v3, %v2887_v31  ;;  %v2889_v21 = vld [vmem:[#allocation2 + $0x49] sm:$0xff]  ;;  %v2890_v57 = vld [vmem:[#allocation2 + $0x51] sm:$0xff]  ;;  %2812 = vst.msk [vmem:[#allocation2 + $0xf1] sm:$0xff] %vm2737_vm8, %v2723_v52  ;;  %v2660_v50 = vmax.f32 %v2628_v36, 1.0  ;;  %v4231_v38 = vld [vmem:[#allocation2 + $0x1a] sm:$0xff] }
 0x19d   : > { %v7790_v48 = vpack.c.bf16 %v2890_v57, %v2889_v21  ;;  %5888 = vmatmul.mubr.msk.bf16.vlgmr.msra.gmra.mrb[0].mxu1 %vm2737_vm8, %v2916_v13  ;;  %6023 = vmatprep.mubr.msk.bf16.mxu0 %vm2737_vm8, %v2916_v13  ;;  %v2891_v16 = vld [vmem:[#allocation2 + $0x61] sm:$0xff]  ;;  %v2892_v44 = vld [vmem:[#allocation2 + $0x69] sm:$0xff]  ;;  %v4233_v43 = vld [vmem:[#allocation2 + $0x32] sm:$0xff] }
 0x19e   : > { %5891 = vmatprep.mubr.msk.bf16.mxu1 %vm2737_vm8, %v7787_v39  ;;  %5920 = vmatpush3.bf16.msra.mxu1 %v3192_v30  ;;  %v2893_v6 = vld [vmem:[#allocation2 + $0x79] sm:$0xff]  ;;  %v2894_v47 = vld [vmem:[#allocation2 + $0x81] sm:$0xff]  ;;  %v7817_v62 = vpack.c.bf16 %v2892_v44, %v2891_v16  ;;  %v4235_v9 = vld [vmem:[#allocation2 + $0x4a] sm:$0xff] }
 0x19f   : > { %6024 = vmatmul.mubr.msk.bf16.vlgmr.msra.gmra.mrb[0].mxu0 %vm2737_vm8, %v7787_v39  ;;  %v7820_v32 = vpack.c.bf16 %v2894_v47, %v2893_v6  ;;  %v2895_v11 = vld [vmem:[#allocation2 + $0x91] sm:$0xff]  ;;  %v2896_v41 = vld [vmem:[#allocation2 + $0x99] sm:$0xff]  ;;  %v4232_v26 = vld [vmem:[#allocation2 + $0x22] sm:$0xff]  ;;  %6451 = vmatprep.subr.msk.bf16.mxu1 %vm2187_vm2, %v7851_v59 }
 0x1a0   : > { %6056 = vmatpush3.bf16.msra.mxu0 %v4328_v27  ;;  %6027 = vmatprep.mubr.msk.bf16.mxu0 %vm2737_vm8, %v7790_v48  ;;  %v2897_v53 = vld [vmem:[#allocation2 + $0xa9] sm:$0xff]  ;;  %v2898_v35 = vld [vmem:[#allocation2 + $0xb1] sm:$0xff]  ;;  %v7831_v7 = vpack.c.bf16 %v2896_v41, %v2895_v11  ;;  %v7859_v61 = vpack.c.bf16 %v4232_v26, %v4231_v38  ;;  %v4234_v34 = vld [vmem:[#allocation2 + $0x3a] sm:$0xff] }
 0x1a1   : > { %6456 = vmatprep.subr.msk.bf16.mxu0 %vm2187_vm2, %v7803_v45  ;;  %v7834_v8 = vpack.c.bf16 %v2898_v35, %v2897_v53  ;;  %v2692_v30 = vld [vmem:[%s7636_s28 + $0x98] sm:$0xff]  ;;  %v2899_v10 = vld [vmem:[#allocation2 + $0xc1] sm:$0xff]  ;;  %v2900_v12 = vld [vmem:[#allocation2 + $0xc9] sm:$0xff]  ;;  %v7872_v42 = vpack.c.bf16 %v4234_v34, %v4233_v43 }
 0x1a2   : > { %v2724_v49 = vmul.f32 %v2692_v30, %v2660_v50  ;;  %v7845_v1 = vpack.c.bf16 %v2900_v12, %v2899_v10  ;;  %v2901_v19 = vld [vmem:[#allocation2 + $0xd9] sm:$0xff]  ;;  %v2902_v58 = vld [vmem:[#allocation2 + $0xe1] sm:$0xff]  ;;  %v4238_v5 = vld [vmem:[#allocation2 + $0x6a] sm:$0xff] }
 0x1a3   : > { %v2903_v60 = vld [vmem:[#allocation2 + $0xf1] sm:$0xff]  ;;  %v7865_v31 = vpack.c.bf16 %v2902_v58, %v2901_v19  ;;  %v4237_v20 = vld [vmem:[#allocation2 + $0x62] sm:$0xff]  ;;  %v4239_v54 = vld [vmem:[#allocation2 + $0x7a] sm:$0xff] }
 0x1a4   : > { %2813 = vst.msk [vmem:[#allocation2 + $0xf9] sm:$0xff] %vm2737_vm8, %v2724_v49  ;;  %v4236_v21 = vld [vmem:[#allocation2 + $0x52] sm:$0xff]  ;;  %v4240_v56 = vld [vmem:[#allocation2 + $0x82] sm:$0xff]  ;;  %v7886_v45 = vpack.c.bf16 %v4238_v5, %v4237_v20  ;;  %v4242_v22 = vld [vmem:[#allocation2 + $0x9a] sm:$0xff] }
 0x1a5   : > { %5892 = vmatmul.mubr.msk.bf16.gmra.mrb[4].mxu1 %vm2737_vm8, %v7790_v48  ;;  %v7876_v18 = vpack.c.bf16 %v4236_v21, %v4235_v9  ;;  %v2694_v63 = vld [vmem:[%s7636_s28 + $0xa8] sm:$0xff]  ;;  %v7888_v16 = vpack.c.bf16 %v4240_v56, %v4239_v54  ;;  %v4241_v51 = vld [vmem:[#allocation2 + $0x92] sm:$0xff]  ;;  %v4247_v40 = vld [vmem:[#allocation2 + $0xda] sm:$0xff] }
 0x1a6   : > { %5895 = vmatprep.mubr.msk.bf16.mxu1 %vm2737_vm8, %v7817_v62  ;;  %v2575_v3 = vpop.xlane.xlu0 %2574  ;;  %v4243_v15 = vld [vmem:[#allocation2 + $0xaa] sm:$0xff]  ;;  %v4244_v6 = vld [vmem:[#allocation2 + $0xb2] sm:$0xff]  ;;  %v7895_v47 = vpack.c.bf16 %v4242_v22, %v4241_v51  ;;  %v4245_v52 = vld [vmem:[#allocation2 + $0xc2] sm:$0xff] }
 0x1a7   : > { %6028 = vmatmul.mubr.msk.bf16.gmra.mrb[4].mxu0 %vm2737_vm8, %v7817_v62  ;;  %v2629_v13 = vsub.f32 0.0, %v2575_v3  ;;  %v7897_v23 = vpack.c.bf16 %v4244_v6, %v4243_v15  ;;  %v2695_v41 = vld [vmem:[%s7636_s28 + $0xb0] sm:$0xff]  ;;  %v4248_v36 = vld [vmem:[#allocation2 + $0xe2] sm:$0xff]  ;;  %v7911_v30 = vld [vmem:[%s8363_s2 + $0x1c] sm:$0x7] }
 0x1a8   : > { %6031 = vmatprep.mubr.msk.bf16.mxu0 %vm2737_vm8, %v7820_v32  ;;  %v4246_v53 = vld [vmem:[#allocation2 + $0xca] sm:$0xff]  ;;  %v7917_v12 = vpack.c.bf16 %v4248_v36, %v4247_v40  ;;  %v2696_v26 = vld [vmem:[%s7636_s28 + $0xb8] sm:$0xff]  ;;  %v2697_v5 = vld [vmem:[%s7636_s28 + $0xc0] sm:$0xff] }
 0x1a9   : > { %v2661_v2 = vmax.f32 %v2629_v13, 1.0  ;;  %v7913_v10 = vpack.c.bf16 %v4246_v53, %v4245_v52  ;;  %v2699_v52 = vld [vmem:[%s7636_s28 + $0xd0] sm:$0xff] }
 0x1ab   : > { %v2904_v55 = vld [vmem:[#allocation2 + $0xf9] sm:$0xff]  ;;  %v2725_v46 = vmul.f32 %v2693_v37, %v2661_v2 }
 0x1ac   : > { %v7867_v57 = vpack.c.bf16 %v2904_v55, %v2903_v60  ;;  %v4249_v19 = vld [vmem:[#allocation2 + $0xf2] sm:$0xff]  ;;  %v4250_v58 = vld [vmem:[#allocation2 + $0xfa] sm:$0xff] }
 0x1ad   : > { %5896 = vmatmul.mubr.msk.bf16.gmra.mrb[8].mxu1 %vm2737_vm8, %v7820_v32  ;;  %2814 = vst.msk [vmem:[#allocation2 + $0x109] sm:$0xff] %vm2737_vm8, %v2725_v46  ;;  %v7925_v55 = vpack.c.bf16 %v4250_v58, %v4249_v19 }
 0x1ae   : > { %5899 = vmatprep.mubr.msk.bf16.mxu1 %vm2737_vm8, %v7831_v7 }
 0x1af   : > { %6032 = vmatmul.mubr.msk.bf16.gmra.mrb[8].mxu0 %vm2737_vm8, %v7831_v7  ;;  %v2578_v27 = vpop.xlane.xlu1 %2577 }
 0x1b0   : > { %6035 = vmatprep.mubr.msk.bf16.mxu0 %vm2737_vm8, %v7834_v8  ;;  %v2630_v25 = vsub.f32 0.0, %v2578_v27 }
 0x1b2   : > { %v2662_v33 = vmax.f32 %v2630_v25, 1.0 }
 0x1b4   : > { %v2726_v44 = vmul.f32 %v2694_v63, %v2662_v33  ;;  %v2905_v17 = vld [vmem:[#allocation2 + $0x109] sm:$0xff] }
 0x1b5   : > { %5900 = vmatmul.mubr.msk.bf16.gmra.mrb[12].mxu1 %vm2737_vm8, %v7834_v8  ;;  %v2698_v33 = vld [vmem:[%s7636_s28 + $0xc8] sm:$0xff] }
 0x1b6   : > { %5903 = vmatprep.mubr.msk.bf16.mxu1 %vm2737_vm8, %v7845_v1  ;;  %2815 = vst.msk [vmem:[#allocation2 + $0x111] sm:$0xff] %vm2737_vm8, %v2726_v44 }
 0x1b7   : > { %6036 = vmatmul.mubr.msk.bf16.gmra.mrb[12].mxu0 %vm2737_vm8, %v7845_v1 }
 0x1b8   : > { %6057 = vmatprep.mubr.msk.bf16.mxu0 %vm2737_vm8, %v7859_v61 }
 0x1bc   : > { %v2581_v24 = vpop.xlane.xlu0 %2580 }
 0x1bd   : > { %5904 = vmatmul.mubr.msk.bf16.gmra.mrb[16].mxu1 %vm2737_vm8, %v7865_v31  ;;  %v2906_v4 = vld [vmem:[#allocation2 + $0x111] sm:$0xff]  ;;  %v2631_v29 = vsub.f32 0.0, %v2581_v24 }
 0x1be   : > { %5907 = vmatprep.mubr.msk.bf16.mxu1 %vm2737_vm8, %v7867_v57  ;;  %v7903_v11 = vpack.c.bf16 %v2906_v4, %v2905_v17  ;;  %v4251_v3 = vld [vmem:[#allocation2 + $0x10a] sm:$0xff]  ;;  %v4252_v43 = vld [vmem:[#allocation2 + $0x112] sm:$0xff] }
 0x1bf   : > { %6058 = vmatmul.mubr.msk.bf16.vlgmr.msra.gmra.mrb[0].mxu0 %vm2737_vm8, %v7872_v42  ;;  %v2663_v35 = vmax.f32 %v2631_v29, 1.0  ;;  %v7927_v13 = vpack.c.bf16 %v4252_v43, %v4251_v3 }
 0x1c0   : > { %6090 = vmatpush3.bf16.msra.mxu0 %v4621_v14  ;;  %6061 = vmatprep.mubr.msk.bf16.mxu0 %vm2737_vm8, %v7876_v18 }
 0x1c1   : > { %v2727_v50 = vmul.f32 %v2695_v41, %v2663_v35  ;;  %6457 = vmatprep.subr.msk.bf16.mxu0 %vm2187_vm2, %v7911_v30 }
 0x1c3   : > { %2816 = vst.msk [vmem:[#allocation2 + $0x121] sm:$0xff] %vm2737_vm8, %v2727_v50  ;;  %v2700_v50 = vld [vmem:[%s7636_s28 + $0xd8] sm:$0xff] }
 0x1c5   : > { %5908 = vmatmul.mubr.msk.bf16.gmra.mrb[20].mxu1 %vm2737_vm8, %v7903_v11  ;;  %v2584_v49 = vpop.xlane.xlu1 %2583 }
 0x1c6   : > { %v2632_v38 = vsub.f32 0.0, %v2584_v49 }
 0x1c7   : > { %6062 = vmatmul.mubr.msk.bf16.gmra.mrb[4].mxu0 %vm2737_vm8, %v7886_v45 }
 0x1c8   : > { %6065 = vmatprep.mubr.msk.bf16.mxu0 %vm2737_vm8, %v7888_v16  ;;  %v2664_v60 = vmax.f32 %v2632_v38, 1.0 }
 0x1ca   : > { %v2728_v34 = vmul.f32 %v2696_v26, %v2664_v60  ;;  %v2907_v9 = vld [vmem:[#allocation2 + $0x121] sm:$0xff] }
 0x1cc   : > { %2817 = vst.msk [vmem:[#allocation2 + $0x129] sm:$0xff] %vm2737_vm8, %v2728_v34 }
 0x1cf   : > { %6066 = vmatmul.mubr.msk.bf16.gmra.mrb[8].mxu0 %vm2737_vm8, %v7895_v47 }
 0x1d0   : > { %6069 = vmatprep.mubr.msk.bf16.mxu0 %vm2737_vm8, %v7897_v23 }
 0x1d2   : > { %v2587_v21 = vpop.xlane.xlu0 %2586 }
 0x1d3   : > { %v2908_v37 = vld [vmem:[#allocation2 + $0x129] sm:$0xff]  ;;  %v2633_v46 = vsub.f32 0.0, %v2587_v21  ;;  %v2701_v21 = vld [vmem:[%s7636_s28 + $0xe0] sm:$0xff] }
 0x1d4   : > { %v4253_v2 = vld [vmem:[#allocation2 + $0x122] sm:$0xff]  ;;  %v4254_v14 = vld [vmem:[#allocation2 + $0x12a] sm:$0xff]  ;;  %v7934_v27 = vpack.c.bf16 %v2908_v37, %v2907_v9 }
 0x1d5   : > { %v7936_v20 = vpack.c.bf16 %v4254_v14, %v4253_v2  ;;  %v2665_v25 = vmax.f32 %v2633_v46, 1.0 }
 0x1d6   : > { %5911 = vmatprep.mubr.msk.bf16.mxu1 %vm2737_vm8, %v7934_v27 }
 0x1d7   : > { %6070 = vmatmul.mubr.msk.bf16.gmra.mrb[12].mxu0 %vm2737_vm8, %v7913_v10  ;;  %v2729_v54 = vmul.f32 %v2697_v5, %v2665_v25  ;;  %v2702_v5 = vld [vmem:[%s7636_s28 + $0xe8] sm:$0xff] }
 0x1d8   : > { %6073 = vmatprep.mubr.msk.bf16.mxu0 %vm2737_vm8, %v7917_v12 }
 0x1d9   : > { %2818 = vst.msk [vmem:[#allocation2 + $0x139] sm:$0xff] %vm2737_vm8, %v2729_v54 }
 0x1db   : > { %v2590_v56 = vpop.xlane.xlu1 %2589 }
 0x1dc   : > { %v2634_v63 = vsub.f32 0.0, %v2590_v56  ;;  %v2835_v56 = vld [vmem:[#allocation2] sm:$0xff] }
 0x1de   : > { %v2666_v44 = vmax.f32 %v2634_v63, 1.0  ;;  %v2836_v63 = vld [vmem:[#allocation2 + $0x8] sm:$0xff] }
 0x1df   : > { %6074 = vmatmul.mubr.msk.bf16.gmra.mrb[16].mxu0 %vm2737_vm8, %v7925_v55 }
 0x1e0   : > { %6077 = vmatprep.mubr.msk.bf16.mxu0 %vm2737_vm8, %v7927_v13  ;;  %v2730_v51 = vmul.f32 %v2698_v33, %v2666_v44  ;;  %v2909_v22 = vld [vmem:[#allocation2 + $0x139] sm:$0xff] }
 0x1e2   : > { %2819 = vst.msk [vmem:[#allocation2 + $0x141] sm:$0xff] %vm2737_vm8, %v2730_v51  ;;  %v2867_v51 = vpack.c.bf16 %v2836_v63, %v2835_v56  ;;  %v2846_v56 = vld [vmem:[#allocation2 + $0x80] sm:$0xff] }
 0x1e7   : > { %6078 = vmatmul.mubr.msk.bf16.gmra.mrb[20].mxu0 %vm2737_vm8, %v7936_v20 }
 0x1e8   : > { %v2593_v15 = vpop.xlane.xlu0 %2592 }
 0x1e9   : > { %v2910_v6 = vld [vmem:[#allocation2 + $0x141] sm:$0xff]  ;;  %v2635_v4 = vsub.f32 0.0, %v2593_v15 }
 0x1ea   : > { %v4255_v17 = vld [vmem:[#allocation2 + $0x13a] sm:$0xff]  ;;  %v4256_v24 = vld [vmem:[#allocation2 + $0x142] sm:$0xff]  ;;  %v7946_v29 = vpack.c.bf16 %v2910_v6, %v2909_v22 }
 0x1eb   : > { %v7948_v41 = vpack.c.bf16 %v4256_v24, %v4255_v17  ;;  %v2667_v53 = vmax.f32 %v2635_v4, 1.0 }
 0x1ec   : > { %5912 = vmatmul.mubr.msk.bf16.gmra.mrb[24].mxu1 %vm2737_vm8, %v7946_v29 }
 0x1ed   : > { %6081 = vmatprep.mubr.msk.bf16.mxu0 %vm2737_vm8, %v7948_v41  ;;  %v2731_v35 = vmul.f32 %v2699_v52, %v2667_v53  ;;  %v2703_v52 = vld [vmem:[%s7636_s28 + $0xf0] sm:$0xff] }
 0x1ef   : > { %2820 = vst.msk [vmem:[#allocation2 + $0x151] sm:$0xff] %vm2737_vm8, %v2731_v35 }
 0x1f1   : > { %v2596_v40 = vpop.xlane.xlu1 %2595 }
 0x1f2   : > { %v2636_v36 = vsub.f32 0.0, %v2596_v40  ;;  %v2837_v40 = vld [vmem:[#allocation2 + $0x18] sm:$0xff] }
 0x1f4   : > { %v2668_v49 = vmax.f32 %v2636_v36, 1.0  ;;  %v2838_v36 = vld [vmem:[#allocation2 + $0x20] sm:$0xff] }
 0x1f6   : > { %v2732_v38 = vmul.f32 %v2700_v50, %v2668_v49  ;;  %v2911_v26 = vld [vmem:[#allocation2 + $0x151] sm:$0xff] }
 0x1f7   : > { %v2840_v50 = vld [vmem:[#allocation2 + $0x38] sm:$0xff] }
 0x1f8   : > { %2821 = vst.msk [vmem:[#allocation2 + $0x159] sm:$0xff] %vm2737_vm8, %v2732_v38  ;;  %v7981_v38 = vpack.c.bf16 %v2838_v36, %v2837_v40  ;;  %v4913_v40 = vsel %vm2187_vm2, %v7911_v30, 0  ;;  %v8027_v36 = vld [vmem:[%s8363_s2 + $0x20] sm:$0x7]  ;;  %v2853_v30 = vld [vmem:[#allocation2 + $0xd8] sm:$0xff] }
 0x1fe   : > { %v2599_v19 = vpop.xlane.xlu0 %2598 }
 0x1ff   : > { %v2912_v58 = vld [vmem:[#allocation2 + $0x159] sm:$0xff]  ;;  %v2637_v43 = vsub.f32 0.0, %v2599_v19  ;;  %v3452_v19 = vsel %vm2187_vm2, %v7851_v59, 0  ;;  %v2841_v59 = vld [vmem:[#allocation2 + $0x48] sm:$0xff] }
 0x200   : > { %v4257_v60 = vld [vmem:[#allocation2 + $0x152] sm:$0xff]  ;;  %v4258_v3 = vld [vmem:[#allocation2 + $0x15a] sm:$0xff]  ;;  %v7958_v34 = vpack.c.bf16 %v2912_v58, %v2911_v26 }
 0x201   : > { %v7960_v9 = vpack.c.bf16 %v4258_v3, %v4257_v60  ;;  %v2669_v37 = vmax.f32 %v2637_v43, 1.0  ;;  %v2839_v26 = vld [vmem:[#allocation2 + $0x30] sm:$0xff]  ;;  %v2704_v3 = vld [vmem:[%s7636_s28 + $0xf8] sm:$0xff]  ;;  %v7991_v43 = vld [vmem:[%s8363_s2 + $0xc] sm:$0x7]  ;;  %s8259_s28 = scalar_lea.vmem %s8365_s4, %s5730_s25 }
 0x202   : > { %5915 = vmatprep.mubr.msk.bf16.mxu1 %vm2737_vm8, %v7958_v34  ;;  %v7985_v60 = vpack.c.bf16 %v2840_v50, %v2839_v26  ;;  %v2854_v26 = vld [vmem:[#allocation2 + $0xe0] sm:$0xff] }
 0x203   : > { %6082 = vmatmul.mubr.msk.bf16.gmra.mrb[24].mxu0 %vm2737_vm8, %v7960_v9  ;;  %v2733_v2 = vmul.f32 %v2701_v21, %v2669_v37 }
 0x205   : > { %2822 = vst.msk [vmem:[#allocation2 + $0x169] sm:$0xff] %vm2737_vm8, %v2733_v2  ;;  %v2842_v2 = vld [vmem:[#allocation2 + $0x50] sm:$0xff] }
 0x207   : > { %v2602_v14 = vpop.xlane.xlu1 %2601 }
 0x208   : > { %v2638_v46 = vsub.f32 0.0, %v2602_v14  ;;  %v2843_v14 = vld [vmem:[#allocation2 + $0x60] sm:$0xff] }
 0x20a   : > { %v2670_v25 = vmax.f32 %v2638_v46, 1.0  ;;  %v2844_v46 = vld [vmem:[#allocation2 + $0x68] sm:$0xff] }
 0x20c   : > { %v2734_v54 = vmul.f32 %v2702_v5, %v2670_v25  ;;  %v2913_v33 = vld [vmem:[#allocation2 + $0x169] sm:$0xff]  ;;  %v8000_v5 = vpack.c.bf16 %v2842_v2, %v2841_v59  ;;  %v8002_v25 = vpack.c.bf16 %v2844_v46, %v2843_v14  ;;  %v2859_v2 = vld [vmem:[#allocation2 + $0x120] sm:$0xff] }
 0x20d   : > { %v2858_v59 = vld [vmem:[#allocation2 + $0x110] sm:$0xff]  ;;  %v2860_v14 = vld [vmem:[#allocation2 + $0x128] sm:$0xff] }
 0x20e   : > { %2823 = vst.msk [vmem:[#allocation2 + $0x171] sm:$0xff] %vm2737_vm8, %v2734_v54  ;;  %v2845_v54 = vld [vmem:[#allocation2 + $0x78] sm:$0xff] }
 0x214   : > { %v2605_v22 = vpop.xlane.xlu0 %2604 }
 0x215   : > { %v2914_v44 = vld [vmem:[#allocation2 + $0x171] sm:$0xff]  ;;  %v2639_v24 = vsub.f32 0.0, %v2605_v22 }
 0x216   : > { %v4259_v15 = vld [vmem:[#allocation2 + $0x16a] sm:$0xff]  ;;  %v4260_v6 = vld [vmem:[#allocation2 + $0x172] sm:$0xff]  ;;  %v7970_v17 = vpack.c.bf16 %v2914_v44, %v2913_v33 }
 0x217   : > { %v7972_v4 = vpack.c.bf16 %v4260_v6, %v4259_v15  ;;  %v2671_v53 = vmax.f32 %v2639_v24, 1.0  ;;  %v2847_v44 = vld [vmem:[#allocation2 + $0x90] sm:$0xff]  ;;  %v8010_v15 = vpack.c.bf16 %v2846_v56, %v2845_v54  ;;  %v2849_v24 = vld [vmem:[#allocation2 + $0xa8] sm:$0xff]  ;;  %v8059_v54 = vpack.c.bf16 %v2860_v14, %v2859_v2  ;;  %v2861_v56 = vld [vmem:[#allocation2 + $0x138] sm:$0xff] }
 0x218   : > { %5916 = vmatmul.mubr.msk.bf16.gmra.mrb[28].mxu1 %vm2737_vm8, %v7970_v17  ;;  %v4555_v2 = vld [vmem:[#allocation2 + $0x1a0] sm:$0xff] }
 0x219   : > { %6085 = vmatprep.mubr.msk.bf16.mxu0 %vm2737_vm8, %v7972_v4  ;;  %5921 = vmatprep.mubr.msk.bf16.mxu1 %vm2737_vm8, %v2867_v51  ;;  %v2735_v35 = vmul.f32 %v2703_v52, %v2671_v53  ;;  %v2848_v51 = vld [vmem:[#allocation2 + $0x98] sm:$0xff]  ;;  %v2850_v52 = vld [vmem:[#allocation2 + $0xb0] sm:$0xff]  ;;  %v2851_v53 = vld [vmem:[#allocation2 + $0xc0] sm:$0xff] }
 0x21a   : > { %v8014_v6 = vpack.c.bf16 %v2848_v51, %v2847_v44  ;;  %v8029_v50 = vpack.c.bf16 %v2850_v52, %v2849_v24  ;;  %v2864_v44 = vld [vmem:[#allocation2 + $0x158] sm:$0xff]  ;;  %v3355_v52 = vld [vmem:[#allocation2 + $0x2] sm:$0xff] }
 0x21b   : > { %2824 = vst.msk [vmem:[#allocation2 + $0x181] sm:$0xff] %vm2737_vm8, %v2735_v35  ;;  %v2852_v35 = vld [vmem:[#allocation2 + $0xc8] sm:$0xff] }
 0x220   : > { %5922 = vmatmul.mubr.msk.bf16.vlgmr.msra.gmra.mrb[0].mxu1 %vm2737_vm8, %v7981_v38 }
 0x221   : > { %5925 = vmatprep.mubr.msk.bf16.mxu1 %vm2737_vm8, %v7985_v60  ;;  %5954 = vmatpush3.bf16.msra.mxu1 %v3452_v19  ;;  %v2855_v19 = vld [vmem:[#allocation2 + $0xf0] sm:$0xff] }
 0x222   : > { %6452 = vmatprep.subr.msk.bf16.mxu1 %vm2187_vm2, %v7991_v43 }
 0x225   : > { %v2608_v49 = vpop.xlane.xlu1 %2607 }
 0x226   : > { %v2640_v58 = vsub.f32 0.0, %v2608_v49  ;;  %v8033_v49 = vpack.c.bf16 %v2852_v35, %v2851_v53  ;;  %v3356_v53 = vld [vmem:[#allocation2 + $0xa] sm:$0xff] }
 0x227   : > { %v2865_v35 = vld [vmem:[#allocation2 + $0x168] sm:$0xff] }
 0x228   : > { %v2672_v21 = vmax.f32 %v2640_v58, 1.0  ;;  %5926 = vmatmul.mubr.msk.bf16.gmra.mrb[4].mxu1 %vm2737_vm8, %v8000_v5  ;;  %v2856_v58 = vld [vmem:[#allocation2 + $0xf8] sm:$0xff] }
 0x229   : > { %5929 = vmatprep.mubr.msk.bf16.mxu1 %vm2737_vm8, %v8002_v25 }
 0x22a   : > { %v2736_v37 = vmul.f32 %v2704_v3, %v2672_v21  ;;  %v8043_v3 = vpack.c.bf16 %v2854_v26, %v2853_v30  ;;  %v8047_v21 = vpack.c.bf16 %v2856_v58, %v2855_v19  ;;  %v3387_v30 = vpack.c.bf16 %v3356_v53, %v3355_v52  ;;  %v4552_v58 = vld [vmem:[#allocation2 + $0x180] sm:$0xff] }
 0x22b   : > { %v3744_v19 = vsel %vm2187_vm2, %v7991_v43, 0  ;;  %v4554_v43 = vld [vmem:[#allocation2 + $0x198] sm:$0xff] }
 0x22c   : > { %2825 = vst.msk [vmem:[#allocation2 + $0x189] sm:$0xff] %vm2737_vm8, %v2736_v37  ;;  %v2857_v37 = vld [vmem:[#allocation2 + $0x108] sm:$0xff] }
 0x22d   : > { %v8055_v46 = vpack.c.bf16 %v2858_v59, %v2857_v37 }
 0x230   : > { %5930 = vmatmul.mubr.msk.bf16.gmra.mrb[8].mxu1 %vm2737_vm8, %v8010_v15 }
 0x231   : > { %5933 = vmatprep.mubr.msk.bf16.mxu1 %vm2737_vm8, %v8014_v6 }
 0x233   : > { %v4261_v63 = vld [vmem:[#allocation2 + $0x182] sm:$0xff]  ;;  %v4262_v33 = vld [vmem:[#allocation2 + $0x18a] sm:$0xff] }
 0x234   : > { %v8008_v22 = vpack.c.bf16 %v4262_v33, %v4261_v63  ;;  %v2862_v63 = vld [vmem:[#allocation2 + $0x140] sm:$0xff]  ;;  %v2863_v33 = vld [vmem:[#allocation2 + $0x150] sm:$0xff]  ;;  %v4553_v37 = vld [vmem:[#allocation2 + $0x188] sm:$0xff] }
 0x235   : > { %v8067_v51 = vpack.c.bf16 %v2862_v63, %v2861_v56  ;;  %v8071_v24 = vpack.c.bf16 %v2864_v44, %v2863_v33  ;;  %v8100_v59 = vpack.c.bf16 %v4553_v37, %v4552_v58 }
 0x236   : > { %6086 = vmatmul.mubr.msk.bf16.gmra.mrb[28].mxu0 %vm2737_vm8, %v8008_v22 }
 0x237   : > { %6091 = vmatprep.mubr.msk.bf16.mxu0 %vm2737_vm8, %v7985_v60 }
 0x238   : > { %5934 = vmatmul.mubr.msk.bf16.gmra.mrb[12].mxu1 %vm2737_vm8, %v8029_v50 }
 0x239   : > { %5937 = vmatprep.mubr.msk.bf16.mxu1 %vm2737_vm8, %v8033_v49 }
 0x23e   : > { %6092 = vmatmul.mubr.msk.bf16.vlgmr.msra.gmra.mrb[0].mxu0 %vm2737_vm8, %v8000_v5 }
 0x23f   : > { %6124 = vmatpush3.bf16.msra.mxu0 %v4913_v40  ;;  %6095 = vmatprep.mubr.msk.bf16.mxu0 %vm2737_vm8, %v8002_v25  ;;  %v2866_v40 = vld [vmem:[#allocation2 + $0x170] sm:$0xff] }
 0x240   : > { %6458 = vmatprep.subr.msk.bf16.mxu0 %vm2187_vm2, %v8027_v36  ;;  %5938 = vmatmul.mubr.msk.bf16.gmra.mrb[16].mxu1 %vm2737_vm8, %v8043_v3  ;;  %v8079_v26 = vpack.c.bf16 %v2866_v40, %v2865_v35 }
 0x241   : > { %5941 = vmatprep.mubr.msk.bf16.mxu1 %vm2737_vm8, %v8047_v21 }
 0x246   : > { %6096 = vmatmul.mubr.msk.bf16.gmra.mrb[4].mxu0 %vm2737_vm8, %v8010_v15 }
 0x247   : > { %6099 = vmatprep.mubr.msk.bf16.mxu0 %vm2737_vm8, %v8014_v6 }
 0x248   : > { %5942 = vmatmul.mubr.msk.bf16.gmra.mrb[20].mxu1 %vm2737_vm8, %v8055_v46 }
 0x249   : > { %5945 = vmatprep.mubr.msk.bf16.mxu1 %vm2737_vm8, %v8059_v54 }
 0x24e   : > { %6100 = vmatmul.mubr.msk.bf16.gmra.mrb[8].mxu0 %vm2737_vm8, %v8029_v50 }
 0x24f   : > { %6103 = vmatprep.mubr.msk.bf16.mxu0 %vm2737_vm8, %v8033_v49 }
 0x250   : > { %5946 = vmatmul.mubr.msk.bf16.gmra.mrb[24].mxu1 %vm2737_vm8, %v8067_v51 }
 0x251   : > { %5949 = vmatprep.mubr.msk.bf16.mxu1 %vm2737_vm8, %v8071_v24 }
 0x256   : > { %6104 = vmatmul.mubr.msk.bf16.gmra.mrb[12].mxu0 %vm2737_vm8, %v8043_v3 }
 0x257   : > { %6107 = vmatprep.mubr.msk.bf16.mxu0 %vm2737_vm8, %v8047_v21 }
 0x258   : > { %5950 = vmatmul.mubr.msk.bf16.gmra.mrb[28].mxu1 %vm2737_vm8, %v8079_v26 }
 0x259   : > { %5955 = vmatprep.mubr.msk.bf16.mxu1 %vm2737_vm8, %v3387_v30 }
 0x25e   : > { %6108 = vmatmul.mubr.msk.bf16.gmra.mrb[16].mxu0 %vm2737_vm8, %v8055_v46 }
 0x25f   : > { %6111 = vmatprep.mubr.msk.bf16.mxu0 %vm2737_vm8, %v8059_v54 }
 0x260   : > { %5956 = vmatmul.mubr.msk.bf16.vlgmr.msra.gmra.mrb[0].mxu1 %vm2737_vm8, %v7859_v61  ;;  %v4571_v61 = vpack.c.bf16 %v4555_v2, %v4554_v43 }
 0x261   : > { %5959 = vmatprep.mubr.msk.bf16.mxu1 %vm2737_vm8, %v7872_v42  ;;  %5988 = vmatpush3.bf16.msra.mxu1 %v3744_v19 }
 0x262   : > { %6454 = vmatprep.subr.msk.bf16.mxu1 %vm2187_vm2, %v7756_v28  ;;  %v5205_v28 = vsel %vm2187_vm2, %v8027_v36, 0 }
 0x266   : > { %6112 = vmatmul.mubr.msk.bf16.gmra.mrb[20].mxu0 %vm2737_vm8, %v8067_v51 }
 0x267   : > { %6115 = vmatprep.mubr.msk.bf16.mxu0 %vm2737_vm8, %v8071_v24 }
 0x268   : > { %5960 = vmatmul.mubr.msk.bf16.gmra.mrb[4].mxu1 %vm2737_vm8, %v7876_v18 }
 0x269   : > { %5963 = vmatprep.mubr.msk.bf16.mxu1 %vm2737_vm8, %v7886_v45 }
 0x26e   : > { %6116 = vmatmul.mubr.msk.bf16.gmra.mrb[24].mxu0 %vm2737_vm8, %v8079_v26 }
 0x26f   : > { %6119 = vmatprep.mubr.msk.bf16.mxu0 %vm2737_vm8, %v8100_v59 }
 0x270   : > { %5964 = vmatmul.mubr.msk.bf16.gmra.mrb[8].mxu1 %vm2737_vm8, %v7888_v16 }
 0x271   : > { %5967 = vmatprep.mubr.msk.bf16.mxu1 %vm2737_vm8, %v7895_v47 }
 0x276   : > { %6120 = vmatmul.mubr.msk.bf16.gmra.mrb[28].mxu0 %vm2737_vm8, %v4571_v61 }
 0x277   : > { %6125 = vmatprep.mubr.msk.bf16.mxu0 %vm2737_vm8, %v7787_v39  ;;  %v4844_v39 = vld [vmem:[#allocation2 + $0x181] sm:$0xff] }
 0x278   : > { %5968 = vmatmul.mubr.msk.bf16.gmra.mrb[12].mxu1 %vm2737_vm8, %v7897_v23 }
 0x279   : > { %5971 = vmatprep.mubr.msk.bf16.mxu1 %vm2737_vm8, %v7913_v10 }
 0x27e   : > { %6126 = vmatmul.mubr.msk.bf16.vlgmr.msra.gmra.mrb[0].mxu0 %vm2737_vm8, %v7790_v48  ;;  %v4845_v48 = vld [vmem:[#allocation2 + $0x189] sm:$0xff] }
 0x27f   : > { %6158 = vmatpush3.bf16.msra.mxu0 %v5205_v28  ;;  %6129 = vmatprep.mubr.msk.bf16.mxu0 %vm2737_vm8, %v7817_v62  ;;  %v4862_v62 = vpack.c.bf16 %v4845_v48, %v4844_v39 }
 0x280   : > { %5972 = vmatmul.mubr.msk.bf16.gmra.mrb[16].mxu1 %vm2737_vm8, %v7917_v12 }
 0x281   : > { %5975 = vmatprep.mubr.msk.bf16.mxu1 %vm2737_vm8, %v7925_v55 }
 0x286   : > { %6130 = vmatmul.mubr.msk.bf16.gmra.mrb[4].mxu0 %vm2737_vm8, %v7820_v32  ;;  %v4846_v32 = vld [vmem:[#allocation2 + $0x199] sm:$0xff] }
 0x287   : > { %6133 = vmatprep.mubr.msk.bf16.mxu0 %vm2737_vm8, %v7831_v7  ;;  %v4847_v7 = vld [vmem:[#allocation2 + $0x1a1] sm:$0xff] }
 0x288   : > { %5976 = vmatmul.mubr.msk.bf16.gmra.mrb[20].mxu1 %vm2737_vm8, %v7927_v13 }
 0x289   : > { %5979 = vmatprep.mubr.msk.bf16.mxu1 %vm2737_vm8, %v7936_v20 }
 0x28e   : > { %6134 = vmatmul.mubr.msk.bf16.gmra.mrb[8].mxu0 %vm2737_vm8, %v7834_v8  ;;  %v4863_v8 = vpack.c.bf16 %v4847_v7, %v4846_v32 }
 0x28f   : > { %6137 = vmatprep.mubr.msk.bf16.mxu0 %vm2737_vm8, %v7845_v1  ;;  %v5139_v1 = vld [vmem:[#allocation2 + $0x1a2] sm:$0xff] }
 0x290   : > { %5980 = vmatmul.mubr.msk.bf16.gmra.mrb[24].mxu1 %vm2737_vm8, %v7948_v41 }
 0x291   : > { %5983 = vmatprep.mubr.msk.bf16.mxu1 %vm2737_vm8, %v7960_v9 }
 0x296   : > { %6138 = vmatmul.mubr.msk.bf16.gmra.mrb[12].mxu0 %vm2737_vm8, %v7865_v31 }
 0x297   : > { %6141 = vmatprep.mubr.msk.bf16.mxu0 %vm2737_vm8, %v7867_v57 }
 0x298   : > { %5984 = vmatmul.mubr.msk.bf16.gmra.mrb[28].mxu1 %vm2737_vm8, %v7972_v4 }
 0x299   : > { %5989 = vmatprep.mubr.msk.bf16.mxu1 %vm2737_vm8, %v7981_v38 }
 0x29e   : > { %6142 = vmatmul.mubr.msk.bf16.gmra.mrb[16].mxu0 %vm2737_vm8, %v7903_v11 }
 0x29f   : > { %6145 = vmatprep.mubr.msk.bf16.mxu0 %vm2737_vm8, %v7934_v27 }
 0x2a0   : > { %5990 = vmatmul.mubr.msk.bf16.vlgmr.msra.gmra.mrb[0].mxu1 %vm2737_vm8, %v7985_v60 }
 0x2a1   : > { %5993 = vmatprep.mubr.msk.bf16.mxu1 %vm2737_vm8, %v8000_v5  ;;  %6192 = vmatpush3.bf16.msra.mxu1 %v7760_v0  ;;  %v5138_v0 = vld [vmem:[#allocation2 + $0x19a] sm:$0xff] }
 0x2a6   : > { %6146 = vmatmul.mubr.msk.bf16.gmra.mrb[20].mxu0 %vm2737_vm8, %v7946_v29 }
 0x2a7   : > { %6149 = vmatprep.mubr.msk.bf16.mxu0 %vm2737_vm8, %v7958_v34 }
 0x2a8   : > { %5994 = vmatmul.mubr.msk.bf16.gmra.mrb[4].mxu1 %vm2737_vm8, %v8002_v25 }
 0x2a9   : > { %5997 = vmatprep.mubr.msk.bf16.mxu1 %vm2737_vm8, %v8010_v15 }
 0x2ae   : > { %6150 = vmatmul.mubr.msk.bf16.gmra.mrb[24].mxu0 %vm2737_vm8, %v7970_v17 }
 0x2af   : > { %6153 = vmatprep.mubr.msk.bf16.mxu0 %vm2737_vm8, %v4862_v62 }
 0x2b0   : > { %5998 = vmatmul.mubr.msk.bf16.gmra.mrb[8].mxu1 %vm2737_vm8, %v8014_v6 }
 0x2b1   : > { %6001 = vmatprep.mubr.msk.bf16.mxu1 %vm2737_vm8, %v8029_v50 }
 0x2b6   : > { %6154 = vmatmul.mubr.msk.bf16.gmra.mrb[28].mxu0 %vm2737_vm8, %v4863_v8 }
 0x2b7   : > { %6159 = vmatprep.mubr.msk.bf16.mxu0 %vm2737_vm8, %v7872_v42 }
 0x2b8   : > { %6002 = vmatmul.mubr.msk.bf16.gmra.mrb[12].mxu1 %vm2737_vm8, %v8033_v49 }
 0x2b9   : > { %6005 = vmatprep.mubr.msk.bf16.mxu1 %vm2737_vm8, %v8043_v3 }
 0x2be   : > { %6160 = vmatmul.mubr.msk.bf16.vlgmr.msra.gmra.mrb[0].mxu0 %vm2737_vm8, %v7876_v18 }
 0x2bf   : > { %6163 = vmatprep.mubr.msk.bf16.mxu0 %vm2737_vm8, %v7886_v45 }
 0x2c0   : > { %6006 = vmatmul.mubr.msk.bf16.gmra.mrb[16].mxu1 %vm2737_vm8, %v8047_v21 }
 0x2c1   : > { %6009 = vmatprep.mubr.msk.bf16.mxu1 %vm2737_vm8, %v8055_v46 }
 0x2c6   : > { %6164 = vmatmul.mubr.msk.bf16.gmra.mrb[4].mxu0 %vm2737_vm8, %v7888_v16 }
 0x2c7   : > { %6167 = vmatprep.mubr.msk.bf16.mxu0 %vm2737_vm8, %v7895_v47 }
 0x2c8   : > { %6010 = vmatmul.mubr.msk.bf16.gmra.mrb[20].mxu1 %vm2737_vm8, %v8059_v54 }
 0x2c9   : > { %6013 = vmatprep.mubr.msk.bf16.mxu1 %vm2737_vm8, %v8067_v51 }
 0x2ce   : > { %6168 = vmatmul.mubr.msk.bf16.gmra.mrb[8].mxu0 %vm2737_vm8, %v7897_v23 }
 0x2cf   : > { %6171 = vmatprep.mubr.msk.bf16.mxu0 %vm2737_vm8, %v7913_v10 }
 0x2d0   : > { %6014 = vmatmul.mubr.msk.bf16.gmra.mrb[24].mxu1 %vm2737_vm8, %v8071_v24 }
 0x2d1   : > { %6017 = vmatprep.mubr.msk.bf16.mxu1 %vm2737_vm8, %v8079_v26 }
 0x2d6   : > { %6172 = vmatmul.mubr.msk.bf16.gmra.mrb[12].mxu0 %vm2737_vm8, %v7917_v12 }
 0x2d7   : > { %6175 = vmatprep.mubr.msk.bf16.mxu0 %vm2737_vm8, %v7925_v55 }
 0x2d8   : > { %6018 = vmatmul.mubr.msk.bf16.gmra.mrb[28].mxu1 %vm2737_vm8, %v8100_v59 }
 0x2d9   : > { %6039 = vmatprep.mubr.msk.bf16.mxu1 %vm2737_vm8, %v7865_v31  ;;  %v5155_v31 = vpack.c.bf16 %v5139_v1, %v5138_v0 }
 0x2de   : > { %6176 = vmatmul.mubr.msk.bf16.gmra.mrb[16].mxu0 %vm2737_vm8, %v7927_v13 }
 0x2df   : > { %6179 = vmatprep.mubr.msk.bf16.mxu0 %vm2737_vm8, %v7936_v20  ;;  %v8247_v20 = vld [vmem:[%s8364_s3] ss:$0 sm:$0xff] }
 0x2e0   : > { %6040 = vmatmul.mubr.msk.bf16.vlgmr.msra.gmra.mrb[16].mxu1 %vm2737_vm8, %v7867_v57 }
 0x2e1   : > { %6043 = vmatprep.mubr.msk.bf16.mxu1 %vm2737_vm8, %v7903_v11 }
 0x2e6   : > { %6180 = vmatmul.mubr.msk.bf16.gmra.mrb[20].mxu0 %vm2737_vm8, %v7948_v41 }
 0x2e7   : > { %6183 = vmatprep.mubr.msk.bf16.mxu0 %vm2737_vm8, %v7960_v9 }
 0x2e8   : > { %6044 = vmatmul.mubr.msk.bf16.gmra.mrb[20].mxu1 %vm2737_vm8, %v7934_v27 }
 0x2e9   : > { %6047 = vmatprep.mubr.msk.bf16.mxu1 %vm2737_vm8, %v7946_v29 }
 0x2ee   : > { %6184 = vmatmul.mubr.msk.bf16.gmra.mrb[24].mxu0 %vm2737_vm8, %v7972_v4 }
 0x2ef   : > { %6187 = vmatprep.mubr.msk.bf16.mxu0 %vm2737_vm8, %v8008_v22 }
 0x2f0   : > { %6048 = vmatmul.mubr.msk.bf16.gmra.mrb[24].mxu1 %vm2737_vm8, %v7958_v34 }
 0x2f1   : > { %6051 = vmatprep.mubr.msk.bf16.mxu1 %vm2737_vm8, %v7970_v17 }
 0x2f6   : > { %6188 = vmatmul.mubr.msk.bf16.gmra.mrb[28].mxu0 %vm2737_vm8, %v5155_v31 }
 0x2f8   : > { %6052 = vmatmul.mubr.msk.bf16.gmra.mrb[28].mxu1 %vm2737_vm8, %v4862_v62 }
 0x373   : > { %v5991_v57 = vpop.f32.mrb[0].mxu1 }
 0x374   : > { %v3780_v42 = vpop.f32.mrb[1].mxu1 }
 0x375   : > { %v5992_v18 = vpop.f32.mrb[2].mxu1 }
 0x376   : > { %v3783_v45 = vpop.f32.mrb[3].mxu1 }
 0x37b   : > { %v5995_v16 = vpop.f32.mrb[4].mxu1 }
 0x37c   : > { %v3796_v47 = vpop.f32.mrb[5].mxu1 }
 0x37d   : > { %v5996_v23 = vpop.f32.mrb[6].mxu1 }
 0x37e   : > { %v3799_v11 = vpop.f32.mrb[7].mxu1 }
 0x383   : > { %v5999_v10 = vpop.f32.mrb[8].mxu1 }
 0x384   : > { %v3812_v12 = vpop.f32.mrb[9].mxu1 }
 0x385   : > { %v6000_v55 = vpop.f32.mrb[10].mxu1 }
 0x386   : > { %v3815_v13 = vpop.f32.mrb[11].mxu1 }
 0x38b   : > { %v8249_v34 = vpop.f32.mrb[12].mxu1 }
 0x38c   : > { %v8251_v4 = vpop.f32.mrb[13].mxu1 }
 0x38d   : > { %v6004_v25 = vpop.f32.mrb[14].mxu1 }
 0x38e   : > { %v3831_v6 = vpop.f32.mrb[15].mxu1 }
 0x391   : > { %v6161_v27 = vpop.f32.mrb[0].mxu0 }
 0x392   : > { %v6193_v29 = vadd.f32 %v6161_v27, %v5991_v57  ;;  %v5241_v41 = vpop.f32.mrb[1].mxu0 }
 0x393   : > { %v6194_v9 = vadd.f32 %v5241_v41, %v3780_v42  ;;  %v6162_v17 = vpop.f32.mrb[2].mxu0 }
 0x394   : > { %v5409_v38 = vadd.f32 %v6193_v29, %v8247_v20  ;;  %v6195_v60 = vadd.f32 %v6162_v17, %v5992_v18  ;;  %v5244_v5 = vpop.f32.mrb[3].mxu0 }
 0x395   : > { %v5407_v22 = vadd.f32 %v6194_v9, %v8247_v20  ;;  %v6196_v15 = vadd.f32 %v5244_v5, %v3783_v45 }
 0x396   : > { %v5441_v36 = vmax.f32 %v5409_v38, 0.0  ;;  %v5410_v50 = vadd.f32 %v6195_v60, %v8247_v20 }
 0x397   : > { %v5439_v49 = vmax.f32 %v5407_v22, 0.0  ;;  %v5408_v3 = vadd.f32 %v6196_v15, %v8247_v20 }
 0x398   : > { %5474 = vst.msk [vmem:[%s8259_s28 + $0x10] sm:$0xff] %vm5471_vm10, %v5441_v36  ;;  %v5442_v21 = vmax.f32 %v5410_v50, 0.0 }
 0x399   : > { %5472 = vst.msk [vmem:[%s8259_s28] sm:$0xff] %vm5471_vm10, %v5439_v49  ;;  %v5440_v14 = vmax.f32 %v5408_v3, 0.0  ;;  %v6165_v46 = vpop.f32.mrb[4].mxu0 }
 0x39a   : > { %5475 = vst.msk [vmem:[%s8259_s28 + $0x18] sm:$0xff] %vm5471_vm10, %v5442_v21  ;;  %v6197_v54 = vadd.f32 %v6165_v46, %v5995_v16  ;;  %v5257_v56 = vpop.f32.mrb[5].mxu0 }
 0x39b   : > { %5473 = vst.msk [vmem:[%s8259_s28 + $0x8] sm:$0xff] %vm5471_vm10, %v5440_v14  ;;  %v6198_v63 = vadd.f32 %v5257_v56, %v3796_v47  ;;  %v6166_v33 = vpop.f32.mrb[6].mxu0 }
 0x39c   : > { %v5413_v44 = vadd.f32 %v6197_v54, %v8247_v20  ;;  %v6199_v51 = vadd.f32 %v6166_v33, %v5996_v23  ;;  %v5260_v24 = vpop.f32.mrb[7].mxu0 }
 0x39d   : > { %v5411_v52 = vadd.f32 %v6198_v63, %v8247_v20  ;;  %v6200_v53 = vadd.f32 %v5260_v24, %v3799_v11 }
 0x39e   : > { %v5445_v35 = vmax.f32 %v5413_v44, 0.0  ;;  %v5414_v40 = vadd.f32 %v6199_v51, %v8247_v20 }
 0x39f   : > { %v5443_v30 = vmax.f32 %v5411_v52, 0.0  ;;  %v5412_v26 = vadd.f32 %v6200_v53, %v8247_v20 }
 0x3a0   : > { %5478 = vst.msk [vmem:[%s8259_s28 + $0x30] sm:$0xff] %vm5471_vm10, %v5445_v35  ;;  %v5446_v19 = vmax.f32 %v5414_v40, 0.0 }
 0x3a1   : > { %5476 = vst.msk [vmem:[%s8259_s28 + $0x20] sm:$0xff] %vm5471_vm10, %v5443_v30  ;;  %v5444_v58 = vmax.f32 %v5412_v26, 0.0  ;;  %v6169_v37 = vpop.f32.mrb[8].mxu0 }
 0x3a2   : > { %5479 = vst.msk [vmem:[%s8259_s28 + $0x38] sm:$0xff] %vm5471_vm10, %v5446_v19  ;;  %v6201_v59 = vadd.f32 %v6169_v37, %v5999_v10  ;;  %v5273_v43 = vpop.f32.mrb[9].mxu0 }
 0x3a3   : > { %5477 = vst.msk [vmem:[%s8259_s28 + $0x28] sm:$0xff] %vm5471_vm10, %v5444_v58  ;;  %v6202_v2 = vadd.f32 %v5273_v43, %v3812_v12  ;;  %v6170_v61 = vpop.f32.mrb[10].mxu0 }
 0x3a4   : > { %v5417_v28 = vadd.f32 %v6201_v59, %v8247_v20  ;;  %v6203_v39 = vadd.f32 %v6170_v61, %v6000_v55  ;;  %v5276_v48 = vpop.f32.mrb[11].mxu0 }
 0x3a5   : > { %v5415_v62 = vadd.f32 %v6202_v2, %v8247_v20  ;;  %v6204_v32 = vadd.f32 %v5276_v48, %v3815_v13 }
 0x3a6   : > { %v5449_v7 = vmax.f32 %v5417_v28, 0.0  ;;  %v5418_v8 = vadd.f32 %v6203_v39, %v8247_v20 }
 0x3a7   : > { %v5447_v0 = vmax.f32 %v5415_v62, 0.0  ;;  %v5416_v1 = vadd.f32 %v6204_v32, %v8247_v20 }
 0x3a8   : > { %5482 = vst.msk [vmem:[%s8259_s28 + $0x50] sm:$0xff] %vm5471_vm10, %v5449_v7  ;;  %v5450_v31 = vmax.f32 %v5418_v8, 0.0 }
 0x3a9   : > { %5480 = vst.msk [vmem:[%s8259_s28 + $0x40] sm:$0xff] %vm5471_vm10, %v5447_v0  ;;  %v5448_v57 = vmax.f32 %v5416_v1, 0.0  ;;  %v6173_v42 = vpop.f32.mrb[12].mxu0 }
 0x3aa   : > { %5483 = vst.msk [vmem:[%s8259_s28 + $0x58] sm:$0xff] %vm5471_vm10, %v5450_v31  ;;  %v6205_v18 = vadd.f32 %v6173_v42, %v8249_v34  ;;  %v5289_v45 = vpop.f32.mrb[13].mxu0 }
 0x3ab   : > { %5481 = vst.msk [vmem:[%s8259_s28 + $0x48] sm:$0xff] %vm5471_vm10, %v5448_v57  ;;  %v6206_v16 = vadd.f32 %v5289_v45, %v8251_v4  ;;  %v6174_v47 = vpop.f32.mrb[14].mxu0 }
 0x3ac   : > { %v5421_v23 = vadd.f32 %v6205_v18, %v8247_v20  ;;  %v6207_v11 = vadd.f32 %v6174_v47, %v6004_v25  ;;  %v5292_v10 = vpop.f32.mrb[15].mxu0 }
 0x3ad   : > { %v5419_v12 = vadd.f32 %v6206_v16, %v8247_v20  ;;  %v6208_v55 = vadd.f32 %v5292_v10, %v3831_v6 }
 0x3ae   : > { %v5453_v13 = vmax.f32 %v5421_v23, 0.0  ;;  %v5422_v27 = vadd.f32 %v6207_v11, %v8247_v20 }
 0x3af   : > { %v5451_v29 = vmax.f32 %v5419_v12, 0.0  ;;  %v5420_v41 = vadd.f32 %v6208_v55, %v8247_v20 }
 0x3b0   : > { %5486 = vst.msk [vmem:[%s8259_s28 + $0x70] sm:$0xff] %vm5471_vm10, %v5453_v13  ;;  %v5454_v34 = vmax.f32 %v5422_v27, 0.0 }
 0x3b1   : > { %5484 = vst.msk [vmem:[%s8259_s28 + $0x60] sm:$0xff] %vm5471_vm10, %v5451_v29  ;;  %v5452_v9 = vmax.f32 %v5420_v41, 0.0  ;;  %v6177_v17 = vpop.f32.mrb[16].mxu0 }
 0x3b2   : > { %5487 = vst.msk [vmem:[%s8259_s28 + $0x78] sm:$0xff] %vm5471_vm10, %v5454_v34  ;;  %v5305_v4 = vpop.f32.mrb[17].mxu0 }
 0x3b3   : > { %5485 = vst.msk [vmem:[%s8259_s28 + $0x68] sm:$0xff] %vm5471_vm10, %v5452_v9  ;;  %v6178_v38 = vpop.f32.mrb[18].mxu0  ;;  %v6041_v22 = vpop.f32.mrb[16].mxu1 }
 0x3b4   : > { %v5308_v60 = vpop.f32.mrb[19].mxu0  ;;  %v4136_v6 = vpop.f32.mrb[17].mxu1  ;;  %v6209_v36 = vadd.f32 %v6177_v17, %v6041_v22 }
 0x3b5   : > { %v6042_v49 = vpop.f32.mrb[18].mxu1  ;;  %v6210_v3 = vadd.f32 %v5305_v4, %v4136_v6 }
 0x3b6   : > { %v4139_v21 = vpop.f32.mrb[19].mxu1  ;;  %v5425_v14 = vadd.f32 %v6209_v36, %v8247_v20  ;;  %v6211_v46 = vadd.f32 %v6178_v38, %v6042_v49 }
 0x3b7   : > { %v5423_v54 = vadd.f32 %v6210_v3, %v8247_v20  ;;  %v6212_v56 = vadd.f32 %v5308_v60, %v4139_v21 }
 0x3b8   : > { %v5457_v63 = vmax.f32 %v5425_v14, 0.0  ;;  %v5426_v33 = vadd.f32 %v6211_v46, %v8247_v20 }
 0x3b9   : > { %v6181_v5 = vpop.f32.mrb[20].mxu0  ;;  %v5455_v44 = vmax.f32 %v5423_v54, 0.0  ;;  %v5424_v51 = vadd.f32 %v6212_v56, %v8247_v20 }
 0x3ba   : > { %v5321_v25 = vpop.f32.mrb[21].mxu0  ;;  %5490 = vst.msk [vmem:[%s8259_s28 + $0x90] sm:$0xff] %vm5471_vm10, %v5457_v63  ;;  %v5458_v52 = vmax.f32 %v5426_v33, 0.0 }
 0x3bb   : > { %v6182_v15 = vpop.f32.mrb[22].mxu0  ;;  %5488 = vst.msk [vmem:[%s8259_s28 + $0x80] sm:$0xff] %vm5471_vm10, %v5455_v44  ;;  %v5456_v35 = vmax.f32 %v5424_v51, 0.0  ;;  %v6045_v40 = vpop.f32.mrb[20].mxu1 }
 0x3bc   : > { %v5324_v50 = vpop.f32.mrb[23].mxu0  ;;  %5491 = vst.msk [vmem:[%s8259_s28 + $0x98] sm:$0xff] %vm5471_vm10, %v5458_v52  ;;  %v4152_v26 = vpop.f32.mrb[21].mxu1  ;;  %v6213_v19 = vadd.f32 %v6181_v5, %v6045_v40 }
 0x3bd   : > { %5489 = vst.msk [vmem:[%s8259_s28 + $0x88] sm:$0xff] %vm5471_vm10, %v5456_v35  ;;  %v6046_v37 = vpop.f32.mrb[22].mxu1  ;;  %v6214_v59 = vadd.f32 %v5321_v25, %v4152_v26 }
 0x3be   : > { %v4155_v43 = vpop.f32.mrb[23].mxu1  ;;  %v5429_v2 = vadd.f32 %v6213_v19, %v8247_v20  ;;  %v6215_v61 = vadd.f32 %v6182_v15, %v6046_v37 }
 0x3bf   : > { %v5427_v28 = vadd.f32 %v6214_v59, %v8247_v20  ;;  %v6216_v39 = vadd.f32 %v5324_v50, %v4155_v43 }
 0x3c0   : > { %v5461_v48 = vmax.f32 %v5429_v2, 0.0  ;;  %v5430_v62 = vadd.f32 %v6215_v61, %v8247_v20 }
 0x3c1   : > { %v6185_v24 = vpop.f32.mrb[24].mxu0  ;;  %v5459_v32 = vmax.f32 %v5427_v28, 0.0  ;;  %v5428_v7 = vadd.f32 %v6216_v39, %v8247_v20 }
 0x3c2   : > { %v5337_v53 = vpop.f32.mrb[25].mxu0  ;;  %5494 = vst.msk [vmem:[%s8259_s28 + $0xb0] sm:$0xff] %vm5471_vm10, %v5461_v48  ;;  %v5462_v0 = vmax.f32 %v5430_v62, 0.0 }
 0x3c3   : > { %v6186_v30 = vpop.f32.mrb[26].mxu0  ;;  %5492 = vst.msk [vmem:[%s8259_s28 + $0xa0] sm:$0xff] %vm5471_vm10, %v5459_v32  ;;  %v5460_v31 = vmax.f32 %v5428_v7, 0.0  ;;  %v6049_v57 = vpop.f32.mrb[24].mxu1 }
 0x3c4   : > { %v5340_v58 = vpop.f32.mrb[27].mxu0  ;;  %5495 = vst.msk [vmem:[%s8259_s28 + $0xb8] sm:$0xff] %vm5471_vm10, %v5462_v0  ;;  %v4168_v18 = vpop.f32.mrb[25].mxu1  ;;  %v6217_v45 = vadd.f32 %v6185_v24, %v6049_v57 }
 0x3c5   : > { %5493 = vst.msk [vmem:[%s8259_s28 + $0xa8] sm:$0xff] %vm5471_vm10, %v5460_v31  ;;  %v6050_v47 = vpop.f32.mrb[26].mxu1  ;;  %v6218_v23 = vadd.f32 %v5337_v53, %v4168_v18 }
 0x3c6   : > { %v4171_v11 = vpop.f32.mrb[27].mxu1  ;;  %v5433_v10 = vadd.f32 %v6217_v45, %v8247_v20  ;;  %v6219_v12 = vadd.f32 %v6186_v30, %v6050_v47 }
 0x3c7   : > { %v5431_v55 = vadd.f32 %v6218_v23, %v8247_v20  ;;  %v6220_v13 = vadd.f32 %v5340_v58, %v4171_v11 }
 0x3c8   : > { %v5465_v27 = vmax.f32 %v5433_v10, 0.0  ;;  %v5434_v29 = vadd.f32 %v6219_v12, %v8247_v20 }
 0x3c9   : > { %v6189_v8 = vpop.f32.mrb[28].mxu0  ;;  %v5463_v41 = vmax.f32 %v5431_v55, 0.0  ;;  %v5432_v34 = vadd.f32 %v6220_v13, %v8247_v20 }
 0x3ca   : > { %v5353_v1 = vpop.f32.mrb[29].mxu0  ;;  %5498 = vst.msk [vmem:[%s8259_s28 + $0xd0] sm:$0xff] %vm5471_vm10, %v5465_v27  ;;  %v5466_v9 = vmax.f32 %v5434_v29, 0.0 }
 0x3cb   : > { %v6190_v42 = vpop.f32.mrb[30].mxu0  ;;  %5496 = vst.msk [vmem:[%s8259_s28 + $0xc0] sm:$0xff] %vm5471_vm10, %v5463_v41  ;;  %v5464_v17 = vmax.f32 %v5432_v34, 0.0  ;;  %v6053_v4 = vpop.f32.mrb[28].mxu1 }
 0x3cc   : > { %v5356_v16 = vpop.f32.mrb[31].mxu0  ;;  %5499 = vst.msk [vmem:[%s8259_s28 + $0xd8] sm:$0xff] %vm5471_vm10, %v5466_v9  ;;  %v4184_v38 = vpop.f32.mrb[29].mxu1  ;;  %v6221_v60 = vadd.f32 %v6189_v8, %v6053_v4 }
 0x3cd   : > { %5497 = vst.msk [vmem:[%s8259_s28 + $0xc8] sm:$0xff] %vm5471_vm10, %v5464_v17  ;;  %v6054_v5 = vpop.f32.mrb[30].mxu1  ;;  %v6222_v25 = vadd.f32 %v5353_v1, %v4184_v38 }
 0x3ce   : > { %v4187_v22 = vpop.f32.mrb[31].mxu1  ;;  %v5437_v15 = vadd.f32 %v6221_v60, %v8247_v20  ;;  %v6223_v6 = vadd.f32 %v6190_v42, %v6054_v5 }
 0x3cf   : > { %v5435_v36 = vadd.f32 %v6222_v25, %v8247_v20  ;;  %v6224_v50 = vadd.f32 %v5356_v16, %v4187_v22 }
 0x3d0   : > { %v5469_v49 = vmax.f32 %v5437_v15, 0.0  ;;  %v5438_v3 = vadd.f32 %v6223_v6, %v8247_v20 }
 0x3d1   : > { %v5467_v21 = vmax.f32 %v5435_v36, 0.0  ;;  %v5436_v14 = vadd.f32 %v6224_v50, %v8247_v20 }
 0x3d2   : > { %5502 = vst.msk [vmem:[%s8259_s28 + $0xf0] sm:$0xff] %vm5471_vm10, %v5469_v49  ;;  %v5470_v46 = vmax.f32 %v5438_v3, 0.0 }
 0x3d3   : > { %5500 = vst.msk [vmem:[%s8259_s28 + $0xe0] sm:$0xff] %vm5471_vm10, %v5467_v21  ;;  %v5468_v54 = vmax.f32 %v5436_v14, 0.0 }
 0x3d4   : > { %5503 = vst.msk [vmem:[%s8259_s28 + $0xf8] sm:$0xff] %vm5471_vm10, %v5470_v46 }
 0x3d5   : > { %5501 = vst.msk [vmem:[%s8259_s28 + $0xe8] sm:$0xff] %vm5471_vm10, %v5468_v54 }
 0x3d6 PF: > { %s14_s15 = sadd.s32 1, %s6541_s15  }
 0x3d7   : > { %p11_p4 = scmp.ge.s32.totalorder %s14_s15, 4  }
 0x3d9   :  { %13 = sbr.rel (!%p11_p4) target bundleno = 1 (0x1), region = 71 }

// kernel: multiclass_uafm_forward.5
= control target key start
LH: loop header
LB: loop body
LE: loop exit
PB: predicated region body
PF: predicated region fallthrough
CT: control target
= control target key end

     0   :  { %s10528_s27 = smov 0   ;;  %s12876_s0 = inlined_call_operand.vmem [shape: f32[2,8,8,16], index: 0, kind: input, shape index: {}]   ;;  %s12877_s1 = inlined_call_operand.vmem [shape: f32[2,16,16,16], index: 1, kind: input, shape index: {}]   ;;  %s12878_s2 = inlined_call_operand.vmem [shape: bf16[3,3,16,16], index: 2, kind: input, shape index: {}]   ;;  %s12879_s3 = inlined_call_operand.vmem [shape: bf16[3,3,16,16], index: 3, kind: input, shape index: {}]   ;;  %s12880_s4 = inlined_call_operand.vmem [shape: f32[1,16], index: 4, kind: input, shape index: {}]   ;;  %s12881_s5 = inlined_call_operand.vmem [shape: f32[16,5], index: 5, kind: input, shape index: {}]   ;;  %s12882_s6 = inlined_call_operand.vmem [shape: f32[1,5], index: 6, kind: input, shape index: {}]   ;;  %s12883_s7 = inlined_call_operand.vmem [shape: f32[2,16,16,16], index: 7, kind: output, shape index: {0}]   ;;  %s12884_s8 = inlined_call_operand.vmem [shape: f32[2,16,16,5], index: 8, kind: output, shape index: {1}]  }
   0x1 LB: > { %s8531_s28 = sadd.s32 4294967295, %s10480_s27   ;;  %p8535_p0 = scmp.ge.s32.totalorder %s10480_s27, 1  ;;  %s10480_s27 = sphi %s10528_s27, %s19_s27  }
   0x2   : > { %p275_p1 = scmp.lt.s32.totalorder %s10480_s27, 3 }
   0x4   : > { %p276_p2 = pnand %p8535_p0, %p275_p1 }
   0x6   : > { %279 = sbr.rel (%p276_p2) target bundleno = 1333 (0x535), region = 48 }
   0xd   : > { %v10539_v0 = vld [vmem:[%s12878_s2 + $0x8] sm:$0xff]   ;;  %vm2505_vm0 = vcmask 130048   ;;  %vm2508_vm1 = vcmask 123904   ;;  %p10543_p3 = scmp.lt.s32.totalorder %s8531_s28, 1  ;;  %v10550_v1 = vld [vmem:[%s12878_s2 + $0x40] sm:$0xff]   ;;  %v10482_v2 = vmov 0.0  }
   0xe   : > { %9230 = vmatprep.subr.bf16.mxu1 %v10539_v0  ;;  %2506 = vst.msk [vmem:[#allocation2] sm:$0xff] %vm2505_vm0, %v10482_v2  ;;  %2507 = vst.msk [vmem:[#allocation2 + $0x8] sm:$0xff] %vm2505_vm0, %v10482_v2  ;;  %9502 = vmatprep.subr.bf16.mxu0 %v10550_v1  ;;  %v10781_v3 = vld [vmem:[%s12879_s3] sm:$0xff]   ;;  %vm2274_vm2 = vcmask 1040384   ;;  %vm2291_vm3 = vcmask 1041408   ;;  %vm2308_vm4 = vcmask 1042432  }
   0xf   : > { %2509 = vst.msk [vmem:[#allocation2 + $0x10] sm:$0x3] %vm2508_vm1, %v10482_v2  ;;  %2512 = vst.msk [vmem:[#allocation2 + $0x28] sm:$0x3] %vm2508_vm1, %v10482_v2  ;;  %9231 = vmatpush3.bf16.msra.mxu1 %v10539_v0  ;;  %s12932_s28 = smov (!%p10543_p3, %s8531_s28), 1  ;;  %9503 = vmatpush3.bf16.msra.mxu0 %v10550_v1  ;;  %vm2325_vm5 = vcmask 1043456  }
  0x10   : > { %2510 = vst.msk [vmem:[#allocation2 + $0x18] sm:$0xff] %vm2505_vm0, %v10482_v2  ;;  %2511 = vst.msk [vmem:[#allocation2 + $0x20] sm:$0xff] %vm2505_vm0, %v10482_v2  ;;  %s8886_s14 = sshll.u32 %s12932_s28, 6  ;;  %9536 = vmatprep.subr.bf16.mxu0 %v10781_v3  ;;  %vm2342_vm6 = vcmask 1044480   ;;  %vm2359_vm7 = vcmask 1045504   ;;  %vm2376_vm8 = vcmask 1046528  }
  0x11   : > { %2513 = vst.msk [vmem:[#allocation2 + $0x30] sm:$0xff] %vm2505_vm0, %v10482_v2  ;;  %2514 = vst.msk [vmem:[#allocation2 + $0x38] sm:$0xff] %vm2505_vm0, %v10482_v2  ;;  %s10787_s17 = scalar_lea.vmem %s12876_s0, %s8886_s14  ;;  %s10984_s18 = sshll.u32 %s12932_s28, 8  ;;  %vm8398_vm9 = vcmask 39936  }
  0x12   : > { %2515 = vst.msk [vmem:[#allocation2 + $0x40] sm:$0x3] %vm2508_vm1, %v10482_v2  ;;  %2518 = vst.msk [vmem:[#allocation2 + $0x58] sm:$0x3] %vm2508_vm1, %v10482_v2  ;;  %v10791_v4 = vld [vmem:[%s10787_s17] sm:$0xff]  ;;  %v341_v5 = vld [vmem:[%s10787_s17 + $0x8] sm:$0xff]  ;;  %s11007_s21 = scalar_lea.vmem %s12877_s1, %s10984_s18  ;;  %s12604_s24 = scalar_lea.vmem %s12883_s7, %s10984_s18 }
  0x13   : > { %2516 = vst.msk [vmem:[#allocation2 + $0x48] sm:$0xff] %vm2505_vm0, %v10482_v2  ;;  %2517 = vst.msk [vmem:[#allocation2 + $0x50] sm:$0xff] %vm2505_vm0, %v10482_v2  ;;  %v342_v6 = vld [vmem:[%s10787_s17 + $0x10] sm:$0xff]  ;;  %v348_v7 = vmul.f32 0.5333333, %v10791_v4  ;;  %v343_v10 = vld [vmem:[%s10787_s17 + $0x18] sm:$0xff]  ;;  %s12775_s30 = scalar_lea.vmem %s12884_s8, %s10984_s18 }
  0x14   : > { %2519 = vst.msk [vmem:[#allocation2 + $0x60] sm:$0xff] %vm2505_vm0, %v10482_v2  ;;  %2520 = vst.msk [vmem:[#allocation2 + $0x68] sm:$0xff] %vm2505_vm0, %v10482_v2  ;;  %v349_v11 = vmul.f32 0.46666667, %v341_v5  ;;  %v344_v13 = vld [vmem:[%s10787_s17 + $0x20] sm:$0xff]  ;;  %v345_v14 = vld [vmem:[%s10787_s17 + $0x28] sm:$0xff] }
  0x15   : > { %2521 = vst.msk [vmem:[#allocation2 + $0x70] sm:$0x3] %vm2508_vm1, %v10482_v2  ;;  %2524 = vst.msk [vmem:[#allocation2 + $0x88] sm:$0x3] %vm2508_vm1, %v10482_v2  ;;  %v2779_v8 = vld [vmem:[#allocation2 + $0x1] sm:$0xff]  ;;  %v346_v20 = vld [vmem:[%s10787_s17 + $0x30] sm:$0xff] }
  0x16   : > { %2522 = vst.msk [vmem:[#allocation2 + $0x78] sm:$0xff] %vm2505_vm0, %v10482_v2  ;;  %2523 = vst.msk [vmem:[#allocation2 + $0x80] sm:$0xff] %vm2505_vm0, %v10482_v2  ;;  %v2780_v9 = vld [vmem:[#allocation2 + $0x9] sm:$0xff]  ;;  %v351_v15 = vmul.f32 0.06666666, %v10791_v4  ;;  %v10802_v21 = vadd.f32 %v349_v11, %v348_v7  ;;  %v347_v25 = vld [vmem:[%s10787_s17 + $0x38] sm:$0xff] }
  0x17   : > { %2525 = vst.msk [vmem:[#allocation2 + $0x90] sm:$0xff] %vm2505_vm0, %v10482_v2  ;;  %2526 = vst.msk [vmem:[#allocation2 + $0x98] sm:$0xff] %vm2505_vm0, %v10482_v2  ;;  %v2811_v12 = vpack.c.bf16 %v2780_v9, %v2779_v8  ;;  %v352_v16 = vmul.f32 0.93333334, %v341_v5  ;;  %v354_v17 = vmul.f32 0.6, %v341_v5 }
  0x18   : > { %2527 = vst.msk [vmem:[#allocation2 + $0xa0] sm:$0x3] %vm2508_vm1, %v10482_v2  ;;  %2530 = vst.msk [vmem:[#allocation2 + $0xb8] sm:$0x3] %vm2508_vm1, %v10482_v2  ;;  %v355_v18 = vmul.f32 0.4, %v342_v6 }
  0x19   : > { %2528 = vst.msk [vmem:[#allocation2 + $0xa8] sm:$0xff] %vm2505_vm0, %v10482_v2  ;;  %2529 = vst.msk [vmem:[#allocation2 + $0xb0] sm:$0xff] %vm2505_vm0, %v10482_v2  ;;  %v357_v19 = vmul.f32 0.13333333, %v341_v5  ;;  %9232 = vmatprep.mubr.msk.bf16.mxu1 %vm2505_vm0, %v2811_v12  ;;  %v358_v22 = vmul.f32 0.8666667, %v342_v6  ;;  %v10805_v26 = vadd.f32 %v352_v16, %v351_v15 }
  0x1a   : > { %2531 = vst.msk [vmem:[#allocation2 + $0xc0] sm:$0xff] %vm2505_vm0, %v10482_v2  ;;  %2532 = vst.msk [vmem:[#allocation2 + $0xc8] sm:$0xff] %vm2505_vm0, %v10482_v2  ;;  %v360_v23 = vmul.f32 0.6666666, %v342_v6  ;;  %v361_v24 = vmul.f32 0.33333334, %v343_v10  ;;  %v10807_v30 = vadd.f32 %v355_v18, %v354_v17 }
  0x1b   : > { %2533 = vst.msk [vmem:[#allocation2 + $0xd0] sm:$0x3] %vm2508_vm1, %v10482_v2  ;;  %2536 = vst.msk [vmem:[#allocation2 + $0xe8] sm:$0x3] %vm2508_vm1, %v10482_v2  ;;  %v363_v27 = vmul.f32 0.19999999, %v342_v6  ;;  %v10809_v31 = vadd.f32 %v358_v22, %v357_v19 }
  0x1c   : > { %2534 = vst.msk [vmem:[#allocation2 + $0xd8] sm:$0xff] %vm2505_vm0, %v10482_v2  ;;  %2535 = vst.msk [vmem:[#allocation2 + $0xe0] sm:$0xff] %vm2505_vm0, %v10482_v2  ;;  %v364_v28 = vmul.f32 0.8, %v343_v10  ;;  %v366_v29 = vmul.f32 0.73333335, %v343_v10  ;;  %v10811_v34 = vadd.f32 %v361_v24, %v360_v23 }
  0x1d   : > { %2537 = vst.msk [vmem:[#allocation2 + $0xf0] sm:$0xff] %vm2505_vm0, %v10482_v2  ;;  %2538 = vst.msk [vmem:[#allocation2 + $0xf8] sm:$0xff] %vm2505_vm0, %v10482_v2  ;;  %v367_v32 = vmul.f32 0.26666668, %v344_v13  ;;  %v369_v33 = vmul.f32 0.26666665, %v343_v10 }
  0x1e   : > { %2539 = vst.msk [vmem:[#allocation2 + $0x100] sm:$0x3] %vm2508_vm1, %v10482_v2  ;;  %2542 = vst.msk [vmem:[#allocation2 + $0x118] sm:$0x3] %vm2508_vm1, %v10482_v2  ;;  %v370_v35 = vmul.f32 0.73333335, %v344_v13  ;;  %v10813_v38 = vadd.f32 %v364_v28, %v363_v27 }
  0x1f   : > { %2540 = vst.msk [vmem:[#allocation2 + $0x108] sm:$0xff] %vm2505_vm0, %v10482_v2  ;;  %2541 = vst.msk [vmem:[#allocation2 + $0x110] sm:$0xff] %vm2505_vm0, %v10482_v2  ;;  %v372_v36 = vmul.f32 0.8, %v344_v13  ;;  %v373_v37 = vmul.f32 0.2, %v345_v14  ;;  %v10815_v42 = vadd.f32 %v367_v32, %v366_v29 }
  0x20   : > { %2543 = vst.msk [vmem:[#allocation2 + $0x120] sm:$0xff] %vm2505_vm0, %v10482_v2  ;;  %2544 = vst.msk [vmem:[#allocation2 + $0x128] sm:$0xff] %vm2505_vm0, %v10482_v2  ;;  %v375_v39 = vmul.f32 0.3333333, %v344_v13  ;;  %v376_v40 = vmul.f32 0.6666667, %v345_v14  ;;  %v10817_v43 = vadd.f32 %v370_v35, %v369_v33 }
  0x21   : > { %2545 = vst.msk [vmem:[#allocation2 + $0x130] sm:$0x3] %vm2508_vm1, %v10482_v2  ;;  %2548 = vst.msk [vmem:[#allocation2 + $0x148] sm:$0x3] %vm2508_vm1, %v10482_v2  ;;  %v378_v41 = vmul.f32 0.8666667, %v345_v14  ;;  %v10819_v46 = vadd.f32 %v373_v37, %v372_v36 }
  0x22   : > { %2546 = vst.msk [vmem:[#allocation2 + $0x138] sm:$0xff] %vm2505_vm0, %v10482_v2  ;;  %2547 = vst.msk [vmem:[#allocation2 + $0x140] sm:$0xff] %vm2505_vm0, %v10482_v2  ;;  %v379_v44 = vmul.f32 0.13333334, %v346_v20  ;;  %v381_v45 = vmul.f32 0.39999998, %v345_v14  ;;  %v10823_v50 = vadd.f32 %v376_v40, %v375_v39 }
  0x23   : > { %2549 = vst.msk [vmem:[#allocation2 + $0x150] sm:$0xff] %vm2505_vm0, %v10482_v2  ;;  %2550 = vst.msk [vmem:[#allocation2 + $0x158] sm:$0xff] %vm2505_vm0, %v10482_v2  ;;  %v382_v47 = vmul.f32 0.6, %v346_v20  ;;  %v384_v48 = vmul.f32 0.93333334, %v346_v20 }
  0x24   : > { %2551 = vst.msk [vmem:[#allocation2 + $0x160] sm:$0x3] %vm2508_vm1, %v10482_v2  ;;  %2554 = vst.msk [vmem:[#allocation2 + $0x178] sm:$0x3] %vm2508_vm1, %v10482_v2  ;;  %v10821_v49 = vmul.f32 0.06666667, %v347_v25  ;;  %v10830_v54 = vadd.f32 %v379_v44, %v378_v41 }
  0x25   : > { %2552 = vst.msk [vmem:[#allocation2 + $0x168] sm:$0xff] %vm2505_vm0, %v10482_v2  ;;  %2553 = vst.msk [vmem:[#allocation2 + $0x170] sm:$0xff] %vm2505_vm0, %v10482_v2  ;;  %v10825_v51 = vmul.f32 0.46666664, %v346_v20  ;;  %v10827_v52 = vmul.f32 0.53333336, %v347_v25  ;;  %v10832_v55 = vadd.f32 %v382_v47, %v381_v45 }
  0x26   : > { %2555 = vst.msk [vmem:[#allocation2 + $0x180] sm:$0xff] %vm2505_vm0, %v10482_v2  ;;  %2556 = vst.msk [vmem:[#allocation2 + $0x188] sm:$0xff] %vm2505_vm0, %v10482_v2  ;;  %v405_v53 = vmul.f32 0.46666667, %v10791_v4  ;;  %v500_v56 = vmul.f32 0.93333334, %v10791_v4  ;;  %v10837_v58 = vadd.f32 %v10821_v49, %v384_v48 }
  0x27   : > { %2557 = vst.msk [vmem:[#allocation2 + $0x190] sm:$0x3] %vm2508_vm1, %v10482_v2  ;;  %2560 = vst.msk [vmem:[#allocation2 + $0x1a8] sm:$0x3] %vm2508_vm1, %v10482_v2  ;;  %v580_v57 = vmul.f32 0.6, %v10791_v4 }
  0x28   : > { %2558 = vst.msk [vmem:[#allocation2 + $0x198] sm:$0xff] %vm2505_vm0, %v10482_v2  ;;  %2559 = vst.msk [vmem:[#allocation2 + $0x1a0] sm:$0xff] %vm2505_vm0, %v10482_v2  ;;  %v437_v59 = vrot.slane %v405_v53, 1  ;;  %v596_v60 = vmul.f32 0.4, %v10791_v4  ;;  %v532_v62 = vrot.slane %v500_v56, 1 }
  0x29   : > { %2626 = vst.msk [vmem:[#allocation3] sm:$0xff] %vm2505_vm0, %v10482_v2  ;;  %2627 = vst.msk [vmem:[#allocation3 + $0x8] sm:$0xff] %vm2505_vm0, %v10482_v2  ;;  %v676_v61 = vmul.f32 0.13333333, %v10791_v4  ;;  %v692_v63 = vmul.f32 0.8666667, %v10791_v4 }
  0x2a   : > { %2628 = vst.msk [vmem:[#allocation3 + $0x10] sm:$0x3] %vm2508_vm1, %v10482_v2  ;;  %2631 = vst.msk [vmem:[#allocation3 + $0x28] sm:$0x3] %vm2508_vm1, %v10482_v2  ;;  %v772_v0 = vmul.f32 0.6666666, %v10791_v4  ;;  %v564_v9 = vadd.f32 %v532_v62, %v351_v15 }
  0x2b   : > { %2629 = vst.msk [vmem:[#allocation3 + $0x18] sm:$0xff] %vm2505_vm0, %v10482_v2  ;;  %2630 = vst.msk [vmem:[#allocation3 + $0x20] sm:$0xff] %vm2505_vm0, %v10482_v2  ;;  %v1428_v1 = vrot.slane %v580_v57, 1  ;;  %v628_v5 = vrot.slane %v596_v60, 1  ;;  %v788_v6 = vmul.f32 0.33333334, %v10791_v4 }
  0x2c   : > { %2632 = vst.msk [vmem:[#allocation3 + $0x30] sm:$0xff] %vm2505_vm0, %v10482_v2  ;;  %2633 = vst.msk [vmem:[#allocation3 + $0x38] sm:$0xff] %vm2505_vm0, %v10482_v2  ;;  %v868_v8 = vmul.f32 0.19999999, %v10791_v4  ;;  %v724_v10 = vrot.slane %v692_v63, 1 }
  0x2d   : > { %2634 = vst.msk [vmem:[#allocation3 + $0x40] sm:$0x3] %vm2508_vm1, %v10482_v2  ;;  %2637 = vst.msk [vmem:[#allocation3 + $0x58] sm:$0x3] %vm2508_vm1, %v10482_v2  ;;  %v884_v11 = vmul.f32 0.8, %v10791_v4  ;;  %v660_v13 = vadd.f32 %v628_v5, %v580_v57 }
  0x2e   : > { %2635 = vst.msk [vmem:[#allocation3 + $0x48] sm:$0xff] %vm2505_vm0, %v10482_v2  ;;  %2636 = vst.msk [vmem:[#allocation3 + $0x50] sm:$0xff] %vm2505_vm0, %v10482_v2  ;;  %v964_v12 = vmul.f32 0.73333335, %v10791_v4  ;;  %v820_v14 = vrot.slane %v788_v6, 1  ;;  %v756_v18 = vadd.f32 %v724_v10, %v676_v61 }
  0x2f   : > { %2638 = vst.msk [vmem:[#allocation3 + $0x60] sm:$0xff] %vm2505_vm0, %v10482_v2  ;;  %2639 = vst.msk [vmem:[#allocation3 + $0x68] sm:$0xff] %vm2505_vm0, %v10482_v2  ;;  %v980_v16 = vmul.f32 0.26666668, %v10791_v4  ;;  %v1060_v17 = vmul.f32 0.26666665, %v10791_v4 }
  0x30   : > { %2640 = vst.msk [vmem:[#allocation3 + $0x70] sm:$0x3] %vm2508_vm1, %v10482_v2  ;;  %2643 = vst.msk [vmem:[#allocation3 + $0x88] sm:$0x3] %vm2508_vm1, %v10482_v2  ;;  %v1092_v19 = vrot.slane %v964_v12, 1  ;;  %v852_v22 = vadd.f32 %v820_v14, %v772_v0  ;;  %v1762_v60 = vrot.slane %v660_v13, 6 }
  0x31   : > { %2641 = vst.msk [vmem:[#allocation3 + $0x78] sm:$0xff] %vm2505_vm0, %v10482_v2  ;;  %2642 = vst.msk [vmem:[#allocation3 + $0x80] sm:$0xff] %vm2505_vm0, %v10482_v2  ;;  %v1140_v20 = vmul.f32 0.2, %v10791_v4  ;;  %v1012_v15 = vrot.slane %v980_v16, 1  ;;  %v1810_v62 = vrot.slane %v756_v18, 5 }
  0x32   : > { %2644 = vst.msk [vmem:[#allocation3 + $0x90] sm:$0xff] %vm2505_vm0, %v10482_v2  ;;  %2645 = vst.msk [vmem:[#allocation3 + $0x98] sm:$0xff] %vm2505_vm0, %v10482_v2  ;;  %v1220_v23 = vmul.f32 0.3333333, %v10791_v4  ;;  %v1236_v24 = vmul.f32 0.6666667, %v10791_v4  ;;  %v1124_v27 = vadd.f32 %v1092_v19, %v1060_v17 }
  0x33   : > { %2646 = vst.msk [vmem:[#allocation3 + $0xa0] sm:$0x3] %vm2508_vm1, %v10482_v2  ;;  %2649 = vst.msk [vmem:[#allocation3 + $0xb8] sm:$0x3] %vm2508_vm1, %v10482_v2  ;;  %v1172_v28 = vrot.slane %v1140_v20, 1  ;;  %v1044_v32 = vadd.f32 %v1012_v15, %v964_v12  ;;  %v1858_v0 = vrot.slane %v852_v22, 5 }
  0x34   : > { %2647 = vst.msk [vmem:[#allocation3 + $0xa8] sm:$0xff] %vm2505_vm0, %v10482_v2  ;;  %2648 = vst.msk [vmem:[#allocation3 + $0xb0] sm:$0xff] %vm2505_vm0, %v10482_v2  ;;  %v1316_v29 = vmul.f32 0.13333334, %v10791_v4  ;;  %v1268_v33 = vrot.slane %v1236_v24, 1  ;;  %v2002_v10 = vrot.slane %v1124_v27, 3 }
  0x35   : > { %2650 = vst.msk [vmem:[#allocation3 + $0xc0] sm:$0xff] %vm2505_vm0, %v10482_v2  ;;  %2651 = vst.msk [vmem:[#allocation3 + $0xc8] sm:$0xff] %vm2505_vm0, %v10482_v2  ;;  %v1396_v35 = vmul.f32 0.39999998, %v10791_v4  ;;  %v1476_v36 = vmul.f32 0.06666667, %v10791_v4  ;;  %v1204_v37 = vadd.f32 %v1172_v28, %v884_v11  ;;  %v10877_v28 = vadd.f32 %v10827_v52, %v10825_v51 }
  0x36   : > { %2652 = vst.msk [vmem:[#allocation3 + $0xd0] sm:$0x3] %vm2508_vm1, %v10482_v2  ;;  %2655 = vst.msk [vmem:[#allocation3 + $0xe8] sm:$0x3] %vm2508_vm1, %v10482_v2  ;;  %v1348_v39 = vrot.slane %v1316_v29, 1  ;;  %v1300_v44 = vadd.f32 %v1268_v33, %v1220_v23 }
  0x37   : > { %2653 = vst.msk [vmem:[#allocation3 + $0xd8] sm:$0xff] %vm2505_vm0, %v10482_v2  ;;  %2654 = vst.msk [vmem:[#allocation3 + $0xe0] sm:$0xff] %vm2505_vm0, %v10482_v2  ;;  %v1555_v40 = vmul.f32 0.46666664, %v10791_v4  ;;  %v1571_v41 = vmul.f32 0.53333336, %v10791_v4  ;;  %v1460_v45 = vadd.f32 %v1428_v1, %v1396_v35 }
  0x38   : > { %2656 = vst.msk [vmem:[#allocation3 + $0xf0] sm:$0xff] %vm2505_vm0, %v10482_v2  ;;  %2657 = vst.msk [vmem:[#allocation3 + $0xf8] sm:$0xff] %vm2505_vm0, %v10482_v2  ;;  %v1507_v47 = vrot.slane %v1476_v36, 1  ;;  %v1380_v53 = vadd.f32 %v1348_v39, %v692_v63  ;;  %v2098_v12 = vrot.slane %v1300_v44, 2  ;;  %v485_v18 = vmul.f32 0.06666666, %v10802_v21 }
  0x39   : > { %2658 = vst.msk [vmem:[#allocation3 + $0x100] sm:$0x3] %vm2508_vm1, %v10482_v2  ;;  %2661 = vst.msk [vmem:[#allocation3 + $0x118] sm:$0x3] %vm2508_vm1, %v10482_v2  ;;  %v1602_v57 = vrot.slane %v1571_v41, 1  ;;  %v2194_v16 = vrot.slane %v1460_v45, 1 }
  0x3a   : > { %2659 = vst.msk [vmem:[#allocation3 + $0x108] sm:$0xff] %vm2505_vm0, %v10482_v2  ;;  %2660 = vst.msk [vmem:[#allocation3 + $0x110] sm:$0xff] %vm2505_vm0, %v10482_v2  ;;  %v1539_v61 = vadd.f32 %v1507_v47, %v500_v56  ;;  %v2146_v14 = vrot.slane %v1380_v53, 2  ;;  %v406_v56 = vmul.f32 0.46666667, %v10802_v21 }
  0x3b   : > { %2662 = vst.msk [vmem:[#allocation3 + $0x120] sm:$0xff] %vm2505_vm0, %v10482_v2  ;;  %2663 = vst.msk [vmem:[#allocation3 + $0x128] sm:$0xff] %vm2505_vm0, %v10482_v2  ;;  %v1634_v6 = vadd.f32 %v1602_v57, %v1555_v40  ;;  %v581_v15 = vmul.f32 0.6, %v10802_v21  ;;  %v597_v27 = vmul.f32 0.4, %v10802_v21 }
  0x3c   : > { %2664 = vst.msk [vmem:[#allocation3 + $0x130] sm:$0x3] %vm2508_vm1, %v10482_v2  ;;  %2667 = vst.msk [vmem:[#allocation3 + $0x148] sm:$0x3] %vm2508_vm1, %v10482_v2  ;;  %v2242_v17 = vrot.slane %v1539_v61, 1  ;;  %v438_v22 = vrot.slane %v406_v56, 1 }
  0x3d   : > { %2665 = vst.msk [vmem:[#allocation3 + $0x138] sm:$0xff] %vm2505_vm0, %v10482_v2  ;;  %2666 = vst.msk [vmem:[#allocation3 + $0x140] sm:$0xff] %vm2505_vm0, %v10482_v2  ;;  %v677_v33 = vmul.f32 0.13333333, %v10802_v21  ;;  %v629_v39 = vrot.slane %v597_v27, 1 }
  0x3e   : > { %2668 = vst.msk [vmem:[#allocation3 + $0x150] sm:$0xff] %vm2505_vm0, %v10482_v2  ;;  %2669 = vst.msk [vmem:[#allocation3 + $0x158] sm:$0xff] %vm2505_vm0, %v10482_v2  ;;  %v693_v51 = vmul.f32 0.8666667, %v10802_v21  ;;  %v773_v44 = vmul.f32 0.6666666, %v10802_v21 }
  0x3f   : > { %2670 = vst.msk [vmem:[#allocation3 + $0x160] sm:$0x3] %vm2508_vm1, %v10482_v2  ;;  %2673 = vst.msk [vmem:[#allocation3 + $0x178] sm:$0x3] %vm2508_vm1, %v10482_v2  ;;  %v789_v47 = vmul.f32 0.33333334, %v10802_v21 }
  0x40   : > { %2671 = vst.msk [vmem:[#allocation3 + $0x168] sm:$0xff] %vm2505_vm0, %v10482_v2  ;;  %2672 = vst.msk [vmem:[#allocation3 + $0x170] sm:$0xff] %vm2505_vm0, %v10482_v2  ;;  %v885_v53 = vmul.f32 0.8, %v10802_v21  ;;  %v725_v57 = vrot.slane %v693_v51, 1 }
  0x41   : > { %2674 = vst.msk [vmem:[#allocation3 + $0x180] sm:$0xff] %vm2505_vm0, %v10482_v2  ;;  %2675 = vst.msk [vmem:[#allocation3 + $0x188] sm:$0xff] %vm2505_vm0, %v10482_v2  ;;  %v821_v61 = vrot.slane %v789_v47, 1  ;;  %v1397_v56 = vmul.f32 0.39999998, %v10802_v21 }
  0x42   : > { %2676 = vst.msk [vmem:[#allocation3 + $0x190] sm:$0x3] %vm2508_vm1, %v10482_v2  ;;  %2679 = vst.msk [vmem:[#allocation3 + $0x1a8] sm:$0x3] %vm2508_vm1, %v10482_v2 }
  0x43   : > { %2677 = vst.msk [vmem:[#allocation3 + $0x198] sm:$0xff] %vm2505_vm0, %v10482_v2  ;;  %2678 = vst.msk [vmem:[#allocation3 + $0x1a0] sm:$0xff] %vm2505_vm0, %v10482_v2  ;;  %v469_v2 = vadd.f32 %v437_v59, %v348_v7  ;;  %v916_v7 = vrot.slane %v884_v11, 1  ;;  %v1714_v59 = vrot.slane %v564_v9, 6  ;;  %v2050_v11 = vrot.slane %v1204_v37, 3 }
  0x45   : > { %v948_v25 = vadd.f32 %v916_v7, %v868_v8  ;;  %v1666_v48 = vrot.slane %v469_v2, 7  ;;  %v1954_v8 = vrot.slane %v1044_v32, 4  ;;  %v2393_v63 = vsel %vm2274_vm2, %v2002_v10, %v2050_v11 }
  0x46   : > { %v390_v2 = vmul.f32 0.5333333, %v10802_v21  ;;  %v2409_v13 = vsel %vm2291_vm3, %v2393_v63, %v2098_v12  ;;  %v10866_v7 = vmul.f32 0.93333334, %v10802_v21  ;;  %v1221_v11 = vmul.f32 0.3333333, %v10802_v21 }
  0x47   : > { %v1906_v5 = vrot.slane %v948_v25, 4  ;;  %v2275_v1 = vsel %vm2274_vm2, %v10791_v4, %v1666_v48  ;;  %v2425_v20 = vsel %vm2308_vm4, %v2409_v13, %v2146_v14  ;;  %v869_v48 = vmul.f32 0.19999999, %v10802_v21 }
  0x48   : > { %v2292_v9 = vsel %vm2291_vm3, %v2275_v1, %v1714_v59  ;;  %v2441_v24 = vsel %vm2325_vm5, %v2425_v20, %v2194_v16  ;;  %v533_v25 = vrot.slane %v10866_v7, 1  ;;  %v10884_v37 = vadd.f32 %v438_v22, %v390_v2 }
  0x49   : > { %v2309_v19 = vsel %vm2308_vm4, %v2292_v9, %v1762_v60  ;;  %v2457_v32 = vsel %vm2342_vm6, %v2441_v24, %v2242_v17  ;;  %v965_v59 = vmul.f32 0.73333335, %v10802_v21  ;;  %v1429_v60 = vrot.slane %v581_v15, 1 }
  0x4a   : > { %v2326_v23 = vsel %vm2325_vm5, %v2309_v19, %v1810_v62  ;;  %v2473_v36 = vsel %vm2359_vm7, %v2457_v32, %v1634_v6  ;;  %v565_v45 = vadd.f32 %v533_v25, %v485_v18  ;;  %v917_v62 = vrot.slane %v885_v53, 1 }
  0x4b   : > { %v2343_v29 = vsel %vm2342_vm6, %v2326_v23, %v1858_v0  ;;  %v2489_v41 = vsel %vm2376_vm8, %v2473_v36, %v10791_v4  ;;  %v981_v4 = vmul.f32 0.26666668, %v10802_v21  ;;  %v1061_v0 = vmul.f32 0.26666665, %v10802_v21 }
  0x4c   : > { %v2360_v35 = vsel %vm2359_vm7, %v2343_v29, %v1906_v5  ;;  %2563 = vst.msk [vmem:[#allocation2 + $0x21] sm:$0xff] %vm2505_vm0, %v2489_v41  ;;  %v1141_v5 = vmul.f32 0.2, %v10802_v21  ;;  %v661_v6 = vadd.f32 %v629_v39, %v581_v15  ;;  %v1093_v10 = vrot.slane %v965_v59, 1 }
  0x4d   : > { %v2377_v40 = vsel %vm2376_vm8, %v2360_v35, %v1954_v8  ;;  %v1013_v8 = vrot.slane %v981_v4, 1  ;;  %v757_v12 = vadd.f32 %v725_v57, %v677_v33  ;;  %v853_v14 = vadd.f32 %v821_v61, %v773_v44 }
  0x4e   : > { %2562 = vst.msk [vmem:[#allocation2 + $0x19] sm:$0xff] %vm2505_vm0, %v2377_v40  ;;  %v1173_v16 = vrot.slane %v1141_v5, 1  ;;  %v1237_v17 = vmul.f32 0.6666667, %v10802_v21  ;;  %v949_v1 = vadd.f32 %v917_v62, %v869_v48  ;;  %v1317_v2 = vmul.f32 0.13333334, %v10802_v21 }
  0x4f   : > { %v1045_v63 = vadd.f32 %v1013_v8, %v965_v59  ;;  %v1125_v9 = vadd.f32 %v1093_v10, %v1061_v0  ;;  %v1477_v18 = vmul.f32 0.06666667, %v10802_v21  ;;  %v1556_v19 = vmul.f32 0.46666664, %v10802_v21 }
  0x50   : > { %v1269_v13 = vrot.slane %v1237_v17, 1  ;;  %v1205_v15 = vadd.f32 %v1173_v16, %v885_v53  ;;  %v1349_v23 = vrot.slane %v1317_v2, 1  ;;  %v1461_v24 = vadd.f32 %v1429_v60, %v1397_v56 }
  0x51   : > { %v1572_v25 = vmul.f32 0.53333336, %v10802_v21  ;;  %v1508_v32 = vrot.slane %v1477_v18, 1  ;;  %v1667_v33 = vrot.slane %v10884_v37, 7  ;;  %v1715_v39 = vrot.slane %v565_v45, 6 }
  0x52   : > { %v1301_v29 = vadd.f32 %v1269_v13, %v1221_v11  ;;  %v1381_v35 = vadd.f32 %v1349_v23, %v693_v51  ;;  %v1763_v40 = vrot.slane %v661_v6, 6  ;;  %v1811_v44 = vrot.slane %v757_v12, 5 }
  0x53   : > { %v2782_v22 = vld [vmem:[#allocation2 + $0x21] sm:$0xff]  ;;  %v1603_v36 = vrot.slane %v1572_v25, 1  ;;  %v1540_v41 = vadd.f32 %v1508_v32, %v10866_v7  ;;  %v1859_v47 = vrot.slane %v853_v14, 5  ;;  %v1907_v48 = vrot.slane %v949_v1, 4 }
  0x54   : > { %v1955_v53 = vrot.slane %v1045_v63, 4  ;;  %v2003_v57 = vrot.slane %v1125_v9, 3  ;;  %v2051_v59 = vrot.slane %v1205_v15, 3  ;;  %v2099_v4 = vrot.slane %v1301_v29, 2 }
  0x55   : > { %v2781_v20 = vld [vmem:[#allocation2 + $0x19] sm:$0xff]  ;;  %v2147_v60 = vrot.slane %v1381_v35, 2  ;;  %v2195_v61 = vrot.slane %v1461_v24, 1  ;;  %v2243_v62 = vrot.slane %v1540_v41, 1  ;;  %v2276_v37 = vsel %vm2274_vm2, %v10802_v21, %v1667_v33 }
  0x56   : > { %v2812_v27 = vpack.c.bf16 %v2782_v22, %v2781_v20  ;;  %v2293_v51 = vsel %vm2291_vm3, %v2276_v37, %v1715_v39  ;;  %v2394_v45 = vsel %vm2274_vm2, %v2003_v57, %v2051_v59  ;;  %v391_v0 = vmul.f32 0.5333333, %v10805_v26 }
  0x57   : > { %v407_v7 = vmul.f32 0.46666667, %v10805_v26  ;;  %v1635_v5 = vadd.f32 %v1603_v36, %v1556_v19  ;;  %v2310_v6 = vsel %vm2308_vm4, %v2293_v51, %v1763_v40  ;;  %v2410_v8 = vsel %vm2291_vm3, %v2394_v45, %v2099_v4 }
  0x58   : > { %9233 = vmatmul.mubr.msk.bf16.vlgmr.msra.gmra.mrb[0].mxu1 %vm2505_vm0, %v2812_v27  ;;  %v10919_v10 = vmul.f32 0.93333334, %v10805_v26  ;;  %v2327_v11 = vsel %vm2325_vm5, %v2310_v6, %v1811_v44  ;;  %v2426_v12 = vsel %vm2308_vm4, %v2410_v8, %v2147_v60  ;;  %v486_v16 = vmul.f32 0.06666666, %v10805_v26 }
  0x59   : > { %v439_v14 = vrot.slane %v407_v7, 1  ;;  %v2344_v17 = vsel %vm2342_vm6, %v2327_v11, %v1859_v47  ;;  %v2442_v1 = vsel %vm2325_vm5, %v2426_v12, %v2195_v61  ;;  %v598_v2 = vmul.f32 0.4, %v10805_v26 }
  0x5a   : > { %v534_v63 = vrot.slane %v10919_v10, 1  ;;  %v2361_v56 = vsel %vm2359_vm7, %v2344_v17, %v1907_v48  ;;  %v2458_v9 = vsel %vm2342_vm6, %v2442_v1, %v2243_v62  ;;  %v582_v18 = vmul.f32 0.6, %v10805_v26 }
  0x5b   : > { %v10930_v13 = vadd.f32 %v439_v14, %v391_v0  ;;  %v2378_v19 = vsel %vm2376_vm8, %v2361_v56, %v1955_v53  ;;  %v2474_v20 = vsel %vm2359_vm7, %v2458_v9, %v1635_v5  ;;  %v630_v22 = vrot.slane %v598_v2, 1 }
  0x5c   : > { %v678_v15 = vmul.f32 0.13333333, %v10805_v26  ;;  %v2490_v23 = vsel %vm2376_vm8, %v2474_v20, %v10802_v21  ;;  %2564 = vst.msk [vmem:[#allocation2 + $0x31] sm:$0xff] %vm2505_vm0, %v2378_v19  ;;  %v694_v24 = vmul.f32 0.8666667, %v10805_v26  ;;  %v566_v29 = vadd.f32 %v534_v63, %v486_v16 }
  0x5d   : > { %v774_v25 = vmul.f32 0.6666666, %v10805_v26  ;;  %v790_v27 = vmul.f32 0.33333334, %v10805_v26  ;;  %2565 = vst.msk [vmem:[#allocation2 + $0x39] sm:$0xff] %vm2505_vm0, %v2490_v23  ;;  %v662_v41 = vadd.f32 %v630_v22, %v582_v18  ;;  %v1430_v7 = vrot.slane %v582_v18, 1 }
  0x5e   : > { %v870_v32 = vmul.f32 0.19999999, %v10805_v26  ;;  %v886_v33 = vmul.f32 0.8, %v10805_v26  ;;  %v966_v35 = vmul.f32 0.73333335, %v10805_v26 }
  0x5f   : > { %v726_v36 = vrot.slane %v694_v24, 1  ;;  %v822_v39 = vrot.slane %v790_v27, 1  ;;  %v982_v21 = vmul.f32 0.26666668, %v10805_v26  ;;  %v1062_v40 = vmul.f32 0.26666665, %v10805_v26 }
  0x60   : > { %v918_v44 = vrot.slane %v886_v33, 1  ;;  %v1094_v47 = vrot.slane %v966_v35, 1  ;;  %v1142_v48 = vmul.f32 0.2, %v10805_v26  ;;  %v1222_v59 = vmul.f32 0.3333333, %v10805_v26 }
  0x61   : > { %v758_v53 = vadd.f32 %v726_v36, %v678_v15  ;;  %v1014_v57 = vrot.slane %v982_v21, 1  ;;  %v1238_v4 = vmul.f32 0.6666667, %v10805_v26  ;;  %v854_v60 = vadd.f32 %v822_v39, %v774_v25 }
  0x62   : > { %v950_v61 = vadd.f32 %v918_v44, %v870_v32  ;;  %v1174_v62 = vrot.slane %v1142_v48, 1  ;;  %v1318_v37 = vmul.f32 0.13333334, %v10805_v26  ;;  %v1126_v51 = vadd.f32 %v1094_v47, %v1062_v40 }
  0x63   : > { %v1270_v45 = vrot.slane %v1238_v4, 1  ;;  %v1398_v0 = vmul.f32 0.39999998, %v10805_v26  ;;  %v1046_v5 = vadd.f32 %v1014_v57, %v966_v35  ;;  %v1478_v11 = vmul.f32 0.06666667, %v10805_v26  ;;  %v2783_v23 = vld [vmem:[#allocation2 + $0x31] sm:$0xff] }
  0x64   : > { %v1206_v6 = vadd.f32 %v1174_v62, %v886_v33  ;;  %v1350_v8 = vrot.slane %v1318_v37, 1  ;;  %v5028_v12 = vld [vmem:[#allocation2 + $0x32] sm:$0xff]  ;;  %v5029_v14 = vld [vmem:[#allocation2 + $0x3a] sm:$0xff]  ;;  %v1557_v1 = vmul.f32 0.46666664, %v10805_v26  ;;  %v1668_v19 = vrot.slane %v10930_v13, 7 }
  0x65   : > { %v1302_v16 = vadd.f32 %v1270_v45, %v1222_v59  ;;  %v1462_v17 = vadd.f32 %v1430_v7, %v1398_v0  ;;  %v1573_v63 = vmul.f32 0.53333336, %v10805_v26  ;;  %v5060_v2 = vpack.c.bf16 %v5029_v14, %v5028_v12  ;;  %v2784_v25 = vld [vmem:[#allocation2 + $0x39] sm:$0xff] }
  0x66   : > { %v1382_v56 = vadd.f32 %v1350_v8, %v694_v24  ;;  %v1509_v9 = vrot.slane %v1478_v11, 1  ;;  %v1716_v18 = vrot.slane %v566_v29, 6  ;;  %v1764_v22 = vrot.slane %v662_v41, 6 }
  0x67   : > { %v1604_v20 = vrot.slane %v1573_v63, 1  ;;  %v1812_v15 = vrot.slane %v758_v53, 5  ;;  %9504 = vmatprep.mubr.msk.bf16.mxu0 %vm2505_vm0, %v5060_v2  ;;  %v1860_v32 = vrot.slane %v854_v60, 5  ;;  %v1908_v33 = vrot.slane %v950_v61, 4 }
  0x68   : > { %v1541_v27 = vadd.f32 %v1509_v9, %v10919_v10  ;;  %v2004_v35 = vrot.slane %v1126_v51, 3  ;;  %v1956_v36 = vrot.slane %v1046_v5, 4  ;;  %v2052_v39 = vrot.slane %v1206_v6, 3 }
  0x69   : > { %v2100_v21 = vrot.slane %v1302_v16, 2  ;;  %v2148_v24 = vrot.slane %v1382_v56, 2  ;;  %v2196_v40 = vrot.slane %v1462_v17, 1  ;;  %v2277_v13 = vsel %vm2274_vm2, %v10805_v26, %v1668_v19 }
  0x6a   : > { %v2244_v44 = vrot.slane %v1541_v27, 1  ;;  %v2813_v29 = vpack.c.bf16 %v2784_v25, %v2783_v23  ;;  %v2294_v41 = vsel %vm2291_vm3, %v2277_v13, %v1716_v18  ;;  %v2395_v47 = vsel %vm2274_vm2, %v2004_v35, %v2052_v39 }
  0x6b   : > { %v392_v48 = vmul.f32 0.5333333, %v10807_v30  ;;  %v408_v10 = vmul.f32 0.46666667, %v10807_v30  ;;  %v1636_v53 = vadd.f32 %v1604_v20, %v1557_v1  ;;  %v2311_v57 = vsel %vm2308_vm4, %v2294_v41, %v1764_v22  ;;  %v2595_v41 = vld [vmem:[%s11007_s21 + $0x8] sm:$0xff] }
  0x6c   : > { %v2411_v59 = vsel %vm2291_vm3, %v2395_v47, %v2100_v21  ;;  %9236 = vmatprep.mubr.msk.bf16.mxu1 %vm2505_vm0, %v2813_v29  ;;  %v10969_v4 = vmul.f32 0.93333334, %v10807_v30  ;;  %v2328_v60 = vsel %vm2325_vm5, %v2311_v57, %v1812_v15  ;;  %v487_v37 = vmul.f32 0.06666666, %v10807_v30  ;;  %v2594_v29 = vld [vmem:[%s11007_s21] sm:$0xff]  ;;  %2682 = vst.msk [vmem:[#allocation3 + $0x21] sm:$0xff] %vm2505_vm0, %v2595_v41 }
  0x6d   : > { %v2427_v61 = vsel %vm2308_vm4, %v2411_v59, %v2148_v24  ;;  %v440_v62 = vrot.slane %v408_v10, 1  ;;  %v2345_v51 = vsel %vm2342_vm6, %v2328_v60, %v1860_v32  ;;  %v599_v7 = vmul.f32 0.4, %v10807_v30  ;;  %2681 = vst.msk [vmem:[#allocation3 + $0x19] sm:$0xff] %vm2505_vm0, %v2594_v29 }
  0x6e   : > { %v2443_v45 = vsel %vm2325_vm5, %v2427_v61, %v2196_v40  ;;  %v535_v0 = vrot.slane %v10969_v4, 1  ;;  %v2362_v5 = vsel %vm2359_vm7, %v2345_v51, %v1908_v33  ;;  %v583_v11 = vmul.f32 0.6, %v10807_v30 }
  0x6f   : > { %v2459_v6 = vsel %vm2342_vm6, %v2443_v45, %v2244_v44  ;;  %v10980_v8 = vadd.f32 %v440_v62, %v392_v48  ;;  %v2379_v12 = vsel %vm2376_vm8, %v2362_v5, %v1956_v36  ;;  %v631_v16 = vrot.slane %v599_v7, 1 }
  0x70   : > { %v2475_v14 = vsel %vm2359_vm7, %v2459_v6, %v1636_v53  ;;  %v679_v17 = vmul.f32 0.13333333, %v10807_v30  ;;  %2566 = vst.msk [vmem:[#allocation2 + $0x49] sm:$0xff] %vm2505_vm0, %v2379_v12  ;;  %v695_v63 = vmul.f32 0.8666667, %v10807_v30  ;;  %v10996_v9 = vadd.f32 %v535_v0, %v487_v37 }
  0x71   : > { %v2491_v1 = vsel %vm2376_vm8, %v2475_v14, %v10805_v26  ;;  %v775_v2 = vmul.f32 0.6666666, %v10807_v30  ;;  %v791_v56 = vmul.f32 0.33333334, %v10807_v30  ;;  %v871_v19 = vmul.f32 0.19999999, %v10807_v30 }
  0x72   : > { %2567 = vst.msk [vmem:[#allocation2 + $0x51] sm:$0xff] %vm2505_vm0, %v2491_v1  ;;  %v887_v20 = vmul.f32 0.8, %v10807_v30  ;;  %v967_v18 = vmul.f32 0.73333335, %v10807_v30  ;;  %v727_v22 = vrot.slane %v695_v63, 1  ;;  %v11009_v25 = vadd.f32 %v631_v16, %v583_v11 }
  0x73   : > { %v823_v26 = vrot.slane %v791_v56, 1  ;;  %v983_v15 = vmul.f32 0.26666668, %v10807_v30  ;;  %v1063_v23 = vmul.f32 0.26666665, %v10807_v30  ;;  %v1431_v53 = vrot.slane %v583_v11, 1 }
  0x74   : > { %v919_v27 = vrot.slane %v887_v20, 1  ;;  %v1095_v32 = vrot.slane %v967_v18, 1  ;;  %v1143_v33 = vmul.f32 0.2, %v10807_v30  ;;  %v11012_v35 = vadd.f32 %v727_v22, %v679_v17  ;;  %v10456_v17 = vld [vmem:[%s12879_s3 + $0x8] sm:$0xff]  }
  0x75   : > { %v1015_v36 = vrot.slane %v983_v15, 1  ;;  %v1223_v39 = vmul.f32 0.3333333, %v10807_v30  ;;  %v1239_v21 = vmul.f32 0.6666667, %v10807_v30  ;;  %v11016_v24 = vadd.f32 %v823_v26, %v775_v2 }
  0x76   : > { %v11018_v40 = vadd.f32 %v919_v27, %v871_v19  ;;  %v1175_v44 = vrot.slane %v1143_v33, 1  ;;  %v1319_v13 = vmul.f32 0.13333334, %v10807_v30  ;;  %v1127_v47 = vadd.f32 %v1095_v32, %v1063_v23 }
  0x77   : > { %v1271_v48 = vrot.slane %v1239_v21, 1  ;;  %v1399_v10 = vmul.f32 0.39999998, %v10807_v30  ;;  %v2785_v57 = vld [vmem:[#allocation2 + $0x49] sm:$0xff]  ;;  %v1047_v59 = vadd.f32 %v1015_v36, %v967_v18  ;;  %v1479_v62 = vmul.f32 0.06666667, %v10807_v30 }
  0x78   : > { %v1207_v60 = vadd.f32 %v1175_v44, %v887_v20  ;;  %v1351_v61 = vrot.slane %v1319_v13, 1  ;;  %v1574_v5 = vmul.f32 0.53333336, %v10807_v30  ;;  %v1669_v6 = vrot.slane %v10980_v8, 7 }
  0x79   : > { %v5030_v37 = vld [vmem:[#allocation2 + $0x4a] sm:$0xff]  ;;  %v5031_v51 = vld [vmem:[#allocation2 + $0x52] sm:$0xff]  ;;  %v1303_v0 = vadd.f32 %v1271_v48, %v1223_v39  ;;  %v1463_v7 = vadd.f32 %v1431_v53, %v1399_v10  ;;  %v1510_v16 = vrot.slane %v1479_v62, 1  ;;  %v1558_v1 = vmul.f32 0.46666664, %v10807_v30 }
  0x7a   : > { %v2786_v45 = vld [vmem:[#allocation2 + $0x51] sm:$0xff]  ;;  %v5061_v11 = vpack.c.bf16 %v5031_v51, %v5030_v37  ;;  %v1383_v14 = vadd.f32 %v1351_v61, %v695_v63  ;;  %v1605_v2 = vrot.slane %v1574_v5, 1  ;;  %v1717_v56 = vrot.slane %v10996_v9, 6 }
  0x7b   : > { %v2814_v12 = vpack.c.bf16 %v2786_v45, %v2785_v57  ;;  %v1765_v19 = vrot.slane %v11009_v25, 6  ;;  %v1542_v8 = vadd.f32 %v1510_v16, %v10969_v4  ;;  %v1813_v63 = vrot.slane %v11012_v35, 5 }
  0x7c   : > { %9505 = vmatmul.mubr.msk.bf16.vlgmr.msra.gmra.mrb[0].mxu0 %vm2505_vm0, %v5061_v11  ;;  %v1861_v20 = vrot.slane %v11016_v24, 5  ;;  %v1909_v18 = vrot.slane %v11018_v40, 4  ;;  %v1957_v22 = vrot.slane %v1047_v59, 4  ;;  %v2005_v26 = vrot.slane %v1127_v47, 3 }
  0x7d   : > { %9237 = vmatmul.mubr.msk.bf16.gmra.mrb[4].mxu1 %vm2505_vm0, %v2814_v12  ;;  %9537 = vmatpush3.bf16.msra.mxu0 %v10781_v3  ;;  %v2053_v15 = vrot.slane %v1207_v60, 3  ;;  %v2101_v9 = vrot.slane %v1303_v0, 2  ;;  %v2149_v23 = vrot.slane %v1383_v14, 2  ;;  %v2197_v25 = vrot.slane %v1463_v7, 1 }
  0x7e   : > { %v2245_v27 = vrot.slane %v1542_v8, 1  ;;  %v2278_v32 = vsel %vm2274_vm2, %v10807_v30, %v1669_v6  ;;  %9570 = vmatprep.subr.bf16.mxu0 %v10456_v17  ;;  %v393_v35 = vmul.f32 0.5333333, %v10809_v31  ;;  %v409_v36 = vmul.f32 0.46666667, %v10809_v31 }
  0x7f   : > { %v2295_v4 = vsel %vm2291_vm3, %v2278_v32, %v1717_v56  ;;  %v2396_v33 = vsel %vm2274_vm2, %v2005_v26, %v2053_v15  ;;  %v1637_v3 = vadd.f32 %v1605_v2, %v1558_v1  ;;  %v11051_v24 = vmul.f32 0.93333334, %v10809_v31 }
  0x80   : > { %v2312_v39 = vsel %vm2308_vm4, %v2295_v4, %v1765_v19  ;;  %v2412_v21 = vsel %vm2291_vm3, %v2396_v33, %v2101_v9  ;;  %v441_v13 = vrot.slane %v409_v36, 1  ;;  %v488_v29 = vmul.f32 0.06666666, %v10809_v31 }
  0x81   : > { %v2329_v40 = vsel %vm2325_vm5, %v2312_v39, %v1813_v63  ;;  %v2428_v44 = vsel %vm2308_vm4, %v2412_v21, %v2149_v23  ;;  %v536_v48 = vrot.slane %v11051_v24, 1  ;;  %v600_v10 = vmul.f32 0.4, %v10809_v31 }
  0x82   : > { %v2346_v41 = vsel %vm2342_vm6, %v2329_v40, %v1861_v20  ;;  %v2444_v47 = vsel %vm2325_vm5, %v2428_v44, %v2197_v25  ;;  %v11062_v59 = vadd.f32 %v441_v13, %v393_v35  ;;  %v584_v60 = vmul.f32 0.6, %v10809_v31 }
  0x83   : > { %v2363_v53 = vsel %vm2359_vm7, %v2346_v41, %v1909_v18  ;;  %v2460_v57 = vsel %vm2342_vm6, %v2444_v47, %v2245_v27  ;;  %v632_v37 = vrot.slane %v600_v10, 1  ;;  %v680_v51 = vmul.f32 0.13333333, %v10809_v31 }
  0x84   : > { %v2380_v61 = vsel %vm2376_vm8, %v2363_v53, %v1957_v22  ;;  %v2476_v62 = vsel %vm2359_vm7, %v2460_v57, %v1637_v3  ;;  %v696_v0 = vmul.f32 0.8666667, %v10809_v31  ;;  %v776_v7 = vmul.f32 0.6666666, %v10809_v31 }
  0x85   : > { %v2492_v45 = vsel %vm2376_vm8, %v2476_v62, %v10807_v30  ;;  %2568 = vst.msk [vmem:[#allocation2 + $0x61] sm:$0xff] %vm2505_vm0, %v2380_v61  ;;  %v792_v5 = vmul.f32 0.33333334, %v10809_v31  ;;  %v568_v6 = vadd.f32 %v536_v48, %v488_v29  ;;  %v872_v11 = vmul.f32 0.19999999, %v10809_v31 }
  0x86   : > { %2569 = vst.msk [vmem:[#allocation2 + $0x69] sm:$0xff] %vm2505_vm0, %v2492_v45  ;;  %v888_v12 = vmul.f32 0.8, %v10809_v31  ;;  %v968_v14 = vmul.f32 0.73333335, %v10809_v31  ;;  %v728_v16 = vrot.slane %v696_v0, 1  ;;  %v664_v2 = vadd.f32 %v632_v37, %v584_v60 }
  0x87   : > { %v824_v17 = vrot.slane %v792_v5, 1  ;;  %v984_v30 = vmul.f32 0.26666668, %v10809_v31  ;;  %v1064_v1 = vmul.f32 0.26666665, %v10809_v31  ;;  %v1432_v4 = vrot.slane %v584_v60, 1 }
  0x88   : > { %v920_v56 = vrot.slane %v888_v12, 1  ;;  %v1096_v19 = vrot.slane %v968_v14, 1  ;;  %v1144_v8 = vmul.f32 0.2, %v10809_v31  ;;  %v760_v63 = vadd.f32 %v728_v16, %v680_v51 }
  0x89   : > { %v1016_v20 = vrot.slane %v984_v30, 1  ;;  %v1224_v18 = vmul.f32 0.3333333, %v10809_v31  ;;  %v1240_v22 = vmul.f32 0.6666667, %v10809_v31  ;;  %v856_v26 = vadd.f32 %v824_v17, %v776_v7 }
  0x8a   : > { %v952_v15 = vadd.f32 %v920_v56, %v872_v11  ;;  %v1176_v9 = vrot.slane %v1144_v8, 1  ;;  %v1320_v23 = vmul.f32 0.13333334, %v10809_v31  ;;  %v1128_v25 = vadd.f32 %v1096_v19, %v1064_v1 }
  0x8b   : > { %v1272_v27 = vrot.slane %v1240_v22, 1  ;;  %v1400_v32 = vmul.f32 0.39999998, %v10809_v31  ;;  %v1048_v33 = vadd.f32 %v1016_v20, %v968_v14  ;;  %v1480_v3 = vmul.f32 0.06666667, %v10809_v31 }
  0x8c   : > { %v1208_v35 = vadd.f32 %v1176_v9, %v888_v12  ;;  %v1352_v36 = vrot.slane %v1320_v23, 1  ;;  %v1559_v13 = vmul.f32 0.46666664, %v10809_v31  ;;  %v1575_v29 = vmul.f32 0.53333336, %v10809_v31  ;;  %v2787_v62 = vld [vmem:[#allocation2 + $0x61] sm:$0xff] }
  0x8d   : > { %v5032_v39 = vld [vmem:[#allocation2 + $0x62] sm:$0xff]  ;;  %v5033_v21 = vld [vmem:[#allocation2 + $0x6a] sm:$0xff]  ;;  %v1304_v40 = vadd.f32 %v1272_v27, %v1224_v18  ;;  %v1464_v44 = vadd.f32 %v1432_v4, %v1400_v32  ;;  %v1511_v48 = vrot.slane %v1480_v3, 1  ;;  %v1670_v10 = vrot.slane %v11062_v59, 7  ;;  %v2597_v32 = vld [vmem:[%s11007_s21 + $0x18] sm:$0xff] }
  0x8e   : > { %v5062_v41 = vpack.c.bf16 %v5033_v21, %v5032_v39  ;;  %v1384_v47 = vadd.f32 %v1352_v36, %v696_v0  ;;  %v1606_v53 = vrot.slane %v1575_v29, 1  ;;  %v1718_v57 = vrot.slane %v568_v6, 6  ;;  %v2788_v37 = vld [vmem:[#allocation2 + $0x69] sm:$0xff]  ;;  %2684 = vst.msk [vmem:[#allocation3 + $0x39] sm:$0xff] %vm2505_vm0, %v2597_v32  ;;  %v2598_v3 = vld [vmem:[%s11007_s21 + $0x20] sm:$0xff] }
  0x8f   : > { %v1766_v60 = vrot.slane %v664_v2, 6  ;;  %v1814_v61 = vrot.slane %v760_v63, 5  ;;  %v1543_v51 = vadd.f32 %v1511_v48, %v11051_v24  ;;  %v1862_v45 = vrot.slane %v856_v26, 5  ;;  %v2596_v27 = vld [vmem:[%s11007_s21 + $0x10] sm:$0xff]  ;;  %v2599_v39 = vld [vmem:[%s11007_s21 + $0x28] sm:$0xff]  ;;  %2685 = vst.msk [vmem:[#allocation3 + $0x49] sm:$0xff] %vm2505_vm0, %v2598_v3 }
  0x90   : > { %9508 = vmatprep.mubr.msk.bf16.mxu0 %vm2505_vm0, %v5062_v41  ;;  %v1910_v7 = vrot.slane %v952_v15, 4  ;;  %v2006_v5 = vrot.slane %v1128_v25, 3  ;;  %v1958_v11 = vrot.slane %v1048_v33, 4  ;;  %v2054_v12 = vrot.slane %v1208_v35, 3  ;;  %2683 = vst.msk [vmem:[#allocation3 + $0x31] sm:$0xff] %vm2505_vm0, %v2596_v27  ;;  %2686 = vst.msk [vmem:[#allocation3 + $0x51] sm:$0xff] %vm2505_vm0, %v2599_v39 }
  0x91   : > { %v2102_v14 = vrot.slane %v1304_v40, 2  ;;  %v2150_v0 = vrot.slane %v1384_v47, 2  ;;  %v2198_v16 = vrot.slane %v1464_v44, 1  ;;  %v2246_v17 = vrot.slane %v1543_v51, 1 }
  0x92   : > { %v2279_v59 = vsel %vm2274_vm2, %v10809_v31, %v1670_v10  ;;  %v2815_v6 = vpack.c.bf16 %v2788_v37, %v2787_v62  ;;  %v2397_v1 = vsel %vm2274_vm2, %v2006_v5, %v2054_v12  ;;  %v394_v24 = vmul.f32 0.5333333, %v10811_v34 }
  0x93   : > { %v2296_v30 = vsel %vm2291_vm3, %v2279_v59, %v1718_v57  ;;  %v410_v2 = vmul.f32 0.46666667, %v10811_v34  ;;  %v1638_v56 = vadd.f32 %v1606_v53, %v1559_v13  ;;  %v2413_v8 = vsel %vm2291_vm3, %v2397_v1, %v2102_v14 }
  0x94   : > { %v2313_v19 = vsel %vm2308_vm4, %v2296_v30, %v1766_v60  ;;  %9240 = vmatprep.mubr.msk.bf16.mxu1 %vm2505_vm0, %v2815_v6  ;;  %v11101_v63 = vmul.f32 0.93333334, %v10811_v34  ;;  %v2429_v18 = vsel %vm2308_vm4, %v2413_v8, %v2150_v0  ;;  %v489_v26 = vmul.f32 0.06666666, %v10811_v34 }
  0x95   : > { %v2330_v20 = vsel %vm2325_vm5, %v2313_v19, %v1814_v61  ;;  %v442_v22 = vrot.slane %v410_v2, 1  ;;  %v2445_v9 = vsel %vm2325_vm5, %v2429_v18, %v2198_v16  ;;  %v601_v25 = vmul.f32 0.4, %v10811_v34 }
  0x96   : > { %v2347_v15 = vsel %vm2342_vm6, %v2330_v20, %v1862_v45  ;;  %v537_v23 = vrot.slane %v11101_v63, 1  ;;  %v2461_v33 = vsel %vm2342_vm6, %v2445_v9, %v2246_v17  ;;  %v585_v36 = vmul.f32 0.6, %v10811_v34 }
  0x97   : > { %v2364_v4 = vsel %vm2359_vm7, %v2347_v15, %v1910_v7  ;;  %v11114_v35 = vadd.f32 %v442_v22, %v394_v24  ;;  %v2477_v40 = vsel %vm2359_vm7, %v2461_v33, %v1638_v56  ;;  %v633_v44 = vrot.slane %v601_v25, 1 }
  0x98   : > { %v2381_v21 = vsel %vm2376_vm8, %v2364_v4, %v1958_v11  ;;  %v681_v13 = vmul.f32 0.13333333, %v10811_v34  ;;  %v2493_v29 = vsel %vm2376_vm8, %v2477_v40, %v10809_v31  ;;  %v697_v41 = vmul.f32 0.8666667, %v10811_v34 }
  0x99   : > { %2570 = vst.msk [vmem:[#allocation2 + $0x79] sm:$0xff] %vm2505_vm0, %v2381_v21  ;;  %v777_v47 = vmul.f32 0.6666666, %v10811_v34  ;;  %v793_v48 = vmul.f32 0.33333334, %v10811_v34  ;;  %2571 = vst.msk [vmem:[#allocation2 + $0x81] sm:$0xff] %vm2505_vm0, %v2493_v29  ;;  %v569_v10 = vadd.f32 %v537_v23, %v489_v26  ;;  %v665_v51 = vadd.f32 %v633_v44, %v585_v36 }
  0x9a   : > { %v873_v53 = vmul.f32 0.19999999, %v10811_v34  ;;  %v889_v57 = vmul.f32 0.8, %v10811_v34  ;;  %v969_v60 = vmul.f32 0.73333335, %v10811_v34 }
  0x9b   : > { %v729_v61 = vrot.slane %v697_v41, 1  ;;  %v825_v62 = vrot.slane %v793_v48, 1  ;;  %v985_v31 = vmul.f32 0.26666668, %v10811_v34  ;;  %v1065_v37 = vmul.f32 0.26666665, %v10811_v34 }
  0x9c   : > { %v921_v45 = vrot.slane %v889_v57, 1  ;;  %v1097_v7 = vrot.slane %v969_v60, 1  ;;  %v1145_v5 = vmul.f32 0.2, %v10811_v34  ;;  %v1225_v14 = vmul.f32 0.3333333, %v10811_v34 }
  0x9d   : > { %v761_v11 = vadd.f32 %v729_v61, %v681_v13  ;;  %v1017_v12 = vrot.slane %v985_v31, 1  ;;  %v1241_v0 = vmul.f32 0.6666667, %v10811_v34  ;;  %v857_v16 = vadd.f32 %v825_v62, %v777_v47 }
  0x9e   : > { %v953_v17 = vadd.f32 %v921_v45, %v873_v53  ;;  %v1177_v59 = vrot.slane %v1145_v5, 1  ;;  %v1321_v6 = vmul.f32 0.13333334, %v10811_v34  ;;  %v1129_v30 = vadd.f32 %v1097_v7, %v1065_v37 }
  0x9f   : > { %v1273_v1 = vrot.slane %v1241_v0, 1  ;;  %v1401_v24 = vmul.f32 0.39999998, %v10811_v34  ;;  %v1433_v2 = vrot.slane %v585_v36, 1  ;;  %v1049_v19 = vadd.f32 %v1017_v12, %v969_v60 }
  0xa0   : > { %v2789_v56 = vld [vmem:[#allocation2 + $0x79] sm:$0xff]  ;;  %v1209_v8 = vadd.f32 %v1177_v59, %v889_v57  ;;  %v1353_v20 = vrot.slane %v1321_v6, 1  ;;  %v1481_v18 = vmul.f32 0.06666667, %v10811_v34  ;;  %v5035_v26 = vld [vmem:[#allocation2 + $0x82] sm:$0xff]  ;;  %v1671_v27 = vrot.slane %v11114_v35, 7 }
  0xa1   : > { %v5034_v22 = vld [vmem:[#allocation2 + $0x7a] sm:$0xff]  ;;  %v1305_v9 = vadd.f32 %v1273_v1, %v1225_v14  ;;  %v1465_v23 = vadd.f32 %v1433_v2, %v1401_v24  ;;  %v1576_v25 = vmul.f32 0.53333336, %v10811_v34  ;;  %v1560_v36 = vmul.f32 0.46666664, %v10811_v34 }
  0xa2   : > { %v2790_v15 = vld [vmem:[#allocation2 + $0x81] sm:$0xff]  ;;  %v5063_v32 = vpack.c.bf16 %v5035_v26, %v5034_v22  ;;  %v1385_v33 = vadd.f32 %v1353_v20, %v697_v41  ;;  %v1512_v3 = vrot.slane %v1481_v18, 1  ;;  %v1719_v21 = vrot.slane %v569_v10, 6 }
  0xa3   : > { %v2816_v4 = vpack.c.bf16 %v2790_v15, %v2789_v56  ;;  %v1607_v39 = vrot.slane %v1576_v25, 1  ;;  %v1767_v40 = vrot.slane %v665_v51, 6  ;;  %v1815_v13 = vrot.slane %v761_v11, 5 }
  0xa4   : > { %9509 = vmatmul.mubr.msk.bf16.gmra.mrb[4].mxu0 %vm2505_vm0, %v5063_v32  ;;  %v1544_v44 = vadd.f32 %v1512_v3, %v11101_v63  ;;  %v1863_v29 = vrot.slane %v857_v16, 5  ;;  %v1911_v47 = vrot.slane %v953_v17, 4  ;;  %v1959_v48 = vrot.slane %v1049_v19, 4 }
  0xa5   : > { %9241 = vmatmul.mubr.msk.bf16.gmra.mrb[8].mxu1 %vm2505_vm0, %v2816_v4  ;;  %v2007_v35 = vrot.slane %v1129_v30, 3  ;;  %v2055_v53 = vrot.slane %v1209_v8, 3  ;;  %v2103_v57 = vrot.slane %v1305_v9, 2  ;;  %v2151_v41 = vrot.slane %v1385_v33, 2 }
  0xa6   : > { %v2199_v60 = vrot.slane %v1465_v23, 1  ;;  %v2247_v61 = vrot.slane %v1544_v44, 1  ;;  %v2280_v10 = vsel %vm2274_vm2, %v10811_v34, %v1671_v27  ;;  %v395_v37 = vmul.f32 0.5333333, %v10813_v38 }
  0xa7   : > { %v2297_v62 = vsel %vm2291_vm3, %v2280_v10, %v1719_v21  ;;  %v2398_v31 = vsel %vm2274_vm2, %v2007_v35, %v2055_v53  ;;  %v411_v63 = vmul.f32 0.46666667, %v10813_v38  ;;  %v1639_v51 = vadd.f32 %v1607_v39, %v1560_v36 }
  0xa8   : > { %v2314_v45 = vsel %vm2308_vm4, %v2297_v62, %v1767_v40  ;;  %v2414_v7 = vsel %vm2291_vm3, %v2398_v31, %v2103_v57  ;;  %v11159_v5 = vmul.f32 0.93333334, %v10813_v38  ;;  %v490_v0 = vmul.f32 0.06666666, %v10813_v38 }
  0xa9   : > { %v2331_v11 = vsel %vm2325_vm5, %v2314_v45, %v1815_v13  ;;  %v2430_v12 = vsel %vm2308_vm4, %v2414_v7, %v2151_v41  ;;  %v443_v14 = vrot.slane %v411_v63, 1  ;;  %v602_v6 = vmul.f32 0.4, %v10813_v38 }
  0xaa   : > { %v2348_v16 = vsel %vm2342_vm6, %v2331_v11, %v1863_v29  ;;  %v2446_v17 = vsel %vm2325_vm5, %v2430_v12, %v2199_v60  ;;  %v538_v59 = vrot.slane %v11159_v5, 1  ;;  %v586_v2 = vmul.f32 0.6, %v10813_v38 }
  0xab   : > { %v2365_v30 = vsel %vm2359_vm7, %v2348_v16, %v1911_v47  ;;  %v2462_v1 = vsel %vm2342_vm6, %v2446_v17, %v2247_v61  ;;  %v11170_v24 = vadd.f32 %v443_v14, %v395_v37  ;;  %v634_v8 = vrot.slane %v602_v6, 1 }
  0xac   : > { %v2382_v56 = vsel %vm2376_vm8, %v2365_v30, %v1959_v48  ;;  %v2478_v19 = vsel %vm2359_vm7, %v2462_v1, %v1639_v51  ;;  %v682_v20 = vmul.f32 0.13333333, %v10813_v38  ;;  %v698_v22 = vmul.f32 0.8666667, %v10813_v38 }
  0xad   : > { %v2494_v18 = vsel %vm2376_vm8, %v2478_v19, %v10811_v34  ;;  %2572 = vst.msk [vmem:[#allocation2 + $0x91] sm:$0xff] %vm2505_vm0, %v2382_v56  ;;  %v778_v26 = vmul.f32 0.6666666, %v10813_v38  ;;  %v794_v15 = vmul.f32 0.33333334, %v10813_v38  ;;  %v570_v9 = vadd.f32 %v538_v59, %v490_v0 }
  0xae   : > { %2573 = vst.msk [vmem:[#allocation2 + $0x99] sm:$0xff] %vm2505_vm0, %v2494_v18  ;;  %v874_v23 = vmul.f32 0.19999999, %v10813_v38  ;;  %v890_v25 = vmul.f32 0.8, %v10813_v38  ;;  %v730_v32 = vrot.slane %v698_v22, 1  ;;  %v666_v3 = vadd.f32 %v634_v8, %v586_v2 }
  0xaf   : > { %v970_v27 = vmul.f32 0.73333335, %v10813_v38  ;;  %v826_v4 = vrot.slane %v794_v15, 1  ;;  %v986_v34 = vmul.f32 0.26666668, %v10813_v38  ;;  %v1434_v61 = vrot.slane %v586_v2, 1 }
  0xb0   : > { %v1066_v33 = vmul.f32 0.26666665, %v10813_v38  ;;  %v922_v36 = vrot.slane %v890_v25, 1  ;;  %v1146_v21 = vmul.f32 0.2, %v10813_v38  ;;  %v762_v40 = vadd.f32 %v730_v32, %v682_v20 }
  0xb1   : > { %v1098_v39 = vrot.slane %v970_v27, 1  ;;  %v1018_v44 = vrot.slane %v986_v34, 1  ;;  %v1226_v13 = vmul.f32 0.3333333, %v10813_v38  ;;  %v1242_v29 = vmul.f32 0.6666667, %v10813_v38 }
  0xb2   : > { %v858_v47 = vadd.f32 %v826_v4, %v778_v26  ;;  %v11191_v48 = vadd.f32 %v922_v36, %v874_v23  ;;  %v1178_v35 = vrot.slane %v1146_v21, 1  ;;  %v1322_v53 = vmul.f32 0.13333334, %v10813_v38 }
  0xb3   : > { %v1130_v57 = vadd.f32 %v1098_v39, %v1066_v33  ;;  %v1274_v41 = vrot.slane %v1242_v29, 1  ;;  %v1402_v60 = vmul.f32 0.39999998, %v10813_v38  ;;  %v11195_v10 = vadd.f32 %v1018_v44, %v970_v27  ;;  %v2600_v29 = vld [vmem:[%s11007_s21 + $0x30] sm:$0xff] }
  0xb4   : > { %v1210_v62 = vadd.f32 %v1178_v35, %v890_v25  ;;  %v1354_v31 = vrot.slane %v1322_v53, 1  ;;  %v1482_v37 = vmul.f32 0.06666667, %v10813_v38  ;;  %v1561_v11 = vmul.f32 0.46666664, %v10813_v38  ;;  %v2791_v2 = vld [vmem:[#allocation2 + $0x91] sm:$0xff] }
  0xb5   : > { %v5036_v63 = vld [vmem:[#allocation2 + $0x92] sm:$0xff]  ;;  %v5037_v51 = vld [vmem:[#allocation2 + $0x9a] sm:$0xff]  ;;  %v1306_v45 = vadd.f32 %v1274_v41, %v1226_v13  ;;  %v1466_v7 = vadd.f32 %v1434_v61, %v1402_v60  ;;  %v1577_v12 = vmul.f32 0.53333336, %v10813_v38  ;;  %v1672_v17 = vrot.slane %v11170_v24, 7  ;;  %2687 = vst.msk [vmem:[#allocation3 + $0x61] sm:$0xff] %vm2505_vm0, %v2600_v29 }
  0xb6   : > { %v5064_v14 = vpack.c.bf16 %v5037_v51, %v5036_v63  ;;  %v1386_v0 = vadd.f32 %v1354_v31, %v698_v22  ;;  %v1513_v16 = vrot.slane %v1482_v37, 1  ;;  %v1720_v6 = vrot.slane %v570_v9, 6  ;;  %v2792_v56 = vld [vmem:[#allocation2 + $0x99] sm:$0xff]  ;;  %v2603_v60 = vld [vmem:[%s11007_s21 + $0x48] sm:$0xff] }
  0xb7   : > { %v1608_v59 = vrot.slane %v1577_v12, 1  ;;  %v1768_v30 = vrot.slane %v666_v3, 6  ;;  %v1816_v1 = vrot.slane %v762_v40, 5  ;;  %v1864_v8 = vrot.slane %v858_v47, 5  ;;  %v2601_v47 = vld [vmem:[%s11007_s21 + $0x38] sm:$0xff]  ;;  %v2602_v41 = vld [vmem:[%s11007_s21 + $0x40] sm:$0xff] }
  0xb8   : > { %9512 = vmatprep.mubr.msk.bf16.mxu0 %vm2505_vm0, %v5064_v14  ;;  %v1545_v19 = vadd.f32 %v1513_v16, %v11159_v5  ;;  %v1912_v20 = vrot.slane %v11191_v48, 4  ;;  %v2008_v18 = vrot.slane %v1130_v57, 3  ;;  %v1960_v26 = vrot.slane %v11195_v10, 4  ;;  %2688 = vst.msk [vmem:[#allocation3 + $0x69] sm:$0xff] %vm2505_vm0, %v2601_v47  ;;  %2689 = vst.msk [vmem:[#allocation3 + $0x79] sm:$0xff] %vm2505_vm0, %v2602_v41 }
  0xb9   : > { %v2056_v22 = vrot.slane %v1210_v62, 3  ;;  %v2104_v15 = vrot.slane %v1306_v45, 2  ;;  %v2152_v23 = vrot.slane %v1386_v0, 2  ;;  %v2200_v24 = vrot.slane %v1466_v7, 1  ;;  %2690 = vst.msk [vmem:[#allocation3 + $0x81] sm:$0xff] %vm2505_vm0, %v2603_v60 }
  0xba   : > { %v2248_v25 = vrot.slane %v1545_v19, 1  ;;  %v2281_v9 = vsel %vm2274_vm2, %v10813_v38, %v1672_v17  ;;  %v2817_v27 = vpack.c.bf16 %v2792_v56, %v2791_v2  ;;  %v396_v4 = vmul.f32 0.5333333, %v10815_v42 }
  0xbb   : > { %v2298_v32 = vsel %vm2291_vm3, %v2281_v9, %v1720_v6  ;;  %v2399_v5 = vsel %vm2274_vm2, %v2008_v18, %v2056_v22  ;;  %v412_v34 = vmul.f32 0.46666667, %v10815_v42  ;;  %v1640_v33 = vadd.f32 %v1608_v59, %v1561_v11 }
  0xbc   : > { %v2315_v3 = vsel %vm2308_vm4, %v2298_v32, %v1768_v30  ;;  %v2415_v36 = vsel %vm2291_vm3, %v2399_v5, %v2104_v15  ;;  %9244 = vmatprep.mubr.msk.bf16.mxu1 %vm2505_vm0, %v2817_v27  ;;  %v11215_v39 = vmul.f32 0.93333334, %v10815_v42  ;;  %v491_v13 = vmul.f32 0.06666666, %v10815_v42 }
  0xbd   : > { %v2332_v21 = vsel %vm2325_vm5, %v2315_v3, %v1816_v1  ;;  %v2431_v40 = vsel %vm2308_vm4, %v2415_v36, %v2152_v23  ;;  %v444_v44 = vrot.slane %v412_v34, 1  ;;  %v603_v57 = vmul.f32 0.4, %v10815_v42 }
  0xbe   : > { %v2349_v48 = vsel %vm2342_vm6, %v2332_v21, %v1864_v8  ;;  %v2447_v35 = vsel %vm2325_vm5, %v2431_v40, %v2200_v24  ;;  %v539_v53 = vrot.slane %v11215_v39, 1  ;;  %v587_v31 = vmul.f32 0.6, %v10815_v42 }
  0xbf   : > { %v2366_v61 = vsel %vm2359_vm7, %v2349_v48, %v1912_v20  ;;  %v2463_v10 = vsel %vm2342_vm6, %v2447_v35, %v2248_v25  ;;  %v11232_v62 = vadd.f32 %v444_v44, %v396_v4  ;;  %v635_v51 = vrot.slane %v603_v57, 1 }
  0xc0   : > { %v2383_v37 = vsel %vm2376_vm8, %v2366_v61, %v1960_v26  ;;  %v2479_v63 = vsel %vm2359_vm7, %v2463_v10, %v1640_v33  ;;  %v683_v45 = vmul.f32 0.13333333, %v10815_v42  ;;  %v699_v11 = vmul.f32 0.8666667, %v10815_v42 }
  0xc1   : > { %v2495_v7 = vsel %vm2376_vm8, %v2479_v63, %v10813_v38  ;;  %2574 = vst.msk [vmem:[#allocation2 + $0xa9] sm:$0xff] %vm2505_vm0, %v2383_v37  ;;  %v779_v12 = vmul.f32 0.6666666, %v10815_v42  ;;  %v795_v14 = vmul.f32 0.33333334, %v10815_v42  ;;  %v571_v0 = vadd.f32 %v539_v53, %v491_v13 }
  0xc2   : > { %2575 = vst.msk [vmem:[#allocation2 + $0xb1] sm:$0xff] %vm2505_vm0, %v2495_v7  ;;  %v875_v16 = vmul.f32 0.19999999, %v10815_v42  ;;  %v891_v17 = vmul.f32 0.8, %v10815_v42  ;;  %v731_v6 = vrot.slane %v699_v11, 1  ;;  %v667_v2 = vadd.f32 %v635_v51, %v587_v31 }
  0xc3   : > { %v971_v59 = vmul.f32 0.73333335, %v10815_v42  ;;  %v827_v30 = vrot.slane %v795_v14, 1  ;;  %v987_v38 = vmul.f32 0.26666668, %v10815_v42  ;;  %v1435_v5 = vrot.slane %v587_v31, 1 }
  0xc4   : > { %v1067_v1 = vmul.f32 0.26666665, %v10815_v42  ;;  %v923_v56 = vrot.slane %v891_v17, 1  ;;  %v1147_v8 = vmul.f32 0.2, %v10815_v42  ;;  %v763_v20 = vadd.f32 %v731_v6, %v683_v45 }
  0xc5   : > { %v1099_v19 = vrot.slane %v971_v59, 1  ;;  %v1019_v18 = vrot.slane %v987_v38, 1  ;;  %v1227_v26 = vmul.f32 0.3333333, %v10815_v42  ;;  %v1243_v22 = vmul.f32 0.6666667, %v10815_v42 }
  0xc6   : > { %v859_v15 = vadd.f32 %v827_v30, %v779_v12  ;;  %v955_v23 = vadd.f32 %v923_v56, %v875_v16  ;;  %v1179_v24 = vrot.slane %v1147_v8, 1  ;;  %v1323_v25 = vmul.f32 0.13333334, %v10815_v42 }
  0xc7   : > { %v1131_v9 = vadd.f32 %v1099_v19, %v1067_v1  ;;  %v1275_v27 = vrot.slane %v1243_v22, 1  ;;  %v1403_v32 = vmul.f32 0.39999998, %v10815_v42  ;;  %v1051_v34 = vadd.f32 %v1019_v18, %v971_v59 }
  0xc8   : > { %v2793_v4 = vld [vmem:[#allocation2 + $0xa9] sm:$0xff]  ;;  %v1211_v33 = vadd.f32 %v1179_v24, %v891_v17  ;;  %v1355_v3 = vrot.slane %v1323_v25, 1  ;;  %v1483_v36 = vmul.f32 0.06666667, %v10815_v42  ;;  %v1578_v47 = vmul.f32 0.53333336, %v10815_v42 }
  0xc9   : > { %v5038_v21 = vld [vmem:[#allocation2 + $0xaa] sm:$0xff]  ;;  %v5039_v40 = vld [vmem:[#allocation2 + $0xb2] sm:$0xff]  ;;  %v1307_v13 = vadd.f32 %v1275_v27, %v1227_v26  ;;  %v1467_v29 = vadd.f32 %v1435_v5, %v1403_v32  ;;  %v1673_v48 = vrot.slane %v11232_v62, 7  ;;  %v1562_v60 = vmul.f32 0.46666664, %v10815_v42 }
  0xca   : > { %v2794_v44 = vld [vmem:[#allocation2 + $0xb1] sm:$0xff]  ;;  %v5065_v35 = vpack.c.bf16 %v5039_v40, %v5038_v21  ;;  %v1387_v57 = vadd.f32 %v1355_v3, %v699_v11  ;;  %v1514_v41 = vrot.slane %v1483_v36, 1  ;;  %v1609_v61 = vrot.slane %v1578_v47, 1 }
  0xcb   : > { %v2818_v53 = vpack.c.bf16 %v2794_v44, %v2793_v4  ;;  %v1721_v10 = vrot.slane %v571_v0, 6  ;;  %v1769_v31 = vrot.slane %v667_v2, 6  ;;  %v1817_v63 = vrot.slane %v763_v20, 5 }
  0xcc   : > { %9513 = vmatmul.mubr.msk.bf16.gmra.mrb[8].mxu0 %vm2505_vm0, %v5065_v35  ;;  %v1546_v37 = vadd.f32 %v1514_v41, %v11215_v39  ;;  %v1865_v51 = vrot.slane %v859_v15, 5  ;;  %v1913_v45 = vrot.slane %v955_v23, 4  ;;  %v1961_v7 = vrot.slane %v1051_v34, 4 }
  0xcd   : > { %9245 = vmatmul.mubr.msk.bf16.gmra.mrb[12].mxu1 %vm2505_vm0, %v2818_v53  ;;  %v2009_v62 = vrot.slane %v1131_v9, 3  ;;  %v2057_v12 = vrot.slane %v1211_v33, 3  ;;  %v2105_v14 = vrot.slane %v1307_v13, 2  ;;  %v2153_v11 = vrot.slane %v1387_v57, 2 }
  0xce   : > { %v2201_v16 = vrot.slane %v1467_v29, 1  ;;  %v2249_v17 = vrot.slane %v1546_v37, 1  ;;  %v2282_v0 = vsel %vm2274_vm2, %v10815_v42, %v1673_v48  ;;  %v397_v30 = vmul.f32 0.5333333, %v10817_v43 }
  0xcf   : > { %v2299_v59 = vsel %vm2291_vm3, %v2282_v0, %v1721_v10  ;;  %v2400_v6 = vsel %vm2274_vm2, %v2009_v62, %v2057_v12  ;;  %v413_v39 = vmul.f32 0.46666667, %v10817_v43  ;;  %v1641_v38 = vadd.f32 %v1609_v61, %v1562_v60 }
  0xd0   : > { %v2316_v1 = vsel %vm2308_vm4, %v2299_v59, %v1769_v31  ;;  %v2416_v2 = vsel %vm2291_vm3, %v2400_v6, %v2105_v14  ;;  %v11273_v56 = vmul.f32 0.93333334, %v10817_v43  ;;  %v492_v18 = vmul.f32 0.06666666, %v10817_v43 }
  0xd1   : > { %v2333_v19 = vsel %vm2325_vm5, %v2316_v1, %v1817_v63  ;;  %v2432_v8 = vsel %vm2308_vm4, %v2416_v2, %v2153_v11  ;;  %v445_v20 = vrot.slane %v413_v39, 1  ;;  %v604_v23 = vmul.f32 0.4, %v10817_v43 }
  0xd2   : > { %v2350_v26 = vsel %vm2342_vm6, %v2333_v19, %v1865_v51  ;;  %v2448_v22 = vsel %vm2325_vm5, %v2432_v8, %v2201_v16  ;;  %v540_v15 = vrot.slane %v11273_v56, 1  ;;  %v588_v27 = vmul.f32 0.6, %v10817_v43 }
  0xd3   : > { %v2367_v24 = vsel %vm2359_vm7, %v2350_v26, %v1913_v45  ;;  %v2464_v25 = vsel %vm2342_vm6, %v2448_v22, %v2249_v17  ;;  %v11284_v9 = vadd.f32 %v445_v20, %v397_v30  ;;  %v636_v4 = vrot.slane %v604_v23, 1 }
  0xd4   : > { %v2384_v32 = vsel %vm2376_vm8, %v2367_v24, %v1961_v7  ;;  %v2480_v5 = vsel %vm2359_vm7, %v2464_v25, %v1641_v38  ;;  %v684_v34 = vmul.f32 0.13333333, %v10817_v43  ;;  %v700_v3 = vmul.f32 0.8666667, %v10817_v43 }
  0xd5   : > { %v2496_v33 = vsel %vm2376_vm8, %v2480_v5, %v10815_v42  ;;  %2576 = vst.msk [vmem:[#allocation2 + $0xc1] sm:$0xff] %vm2505_vm0, %v2384_v32  ;;  %v780_v36 = vmul.f32 0.6666666, %v10817_v43  ;;  %v796_v21 = vmul.f32 0.33333334, %v10817_v43  ;;  %v11297_v40 = vadd.f32 %v540_v15, %v492_v18 }
  0xd6   : > { %2577 = vst.msk [vmem:[#allocation2 + $0xc9] sm:$0xff] %vm2505_vm0, %v2496_v33  ;;  %v876_v44 = vmul.f32 0.19999999, %v10817_v43  ;;  %v892_v13 = vmul.f32 0.8, %v10817_v43  ;;  %v732_v47 = vrot.slane %v700_v3, 1  ;;  %v668_v53 = vadd.f32 %v636_v4, %v588_v27 }
  0xd7   : > { %v972_v29 = vmul.f32 0.73333335, %v10817_v43  ;;  %v828_v42 = vrot.slane %v796_v21, 1  ;;  %v988_v48 = vmul.f32 0.26666668, %v10817_v43  ;;  %v1436_v11 = vrot.slane %v588_v27, 1 }
  0xd8   : > { %v1068_v35 = vmul.f32 0.26666665, %v10817_v43  ;;  %v924_v57 = vrot.slane %v892_v13, 1  ;;  %v1148_v60 = vmul.f32 0.2, %v10817_v43  ;;  %v764_v61 = vadd.f32 %v732_v47, %v684_v34  ;;  %v11321_v34 = vld [vmem:[#allocation3] sm:$0xff] }
  0xd9   : > { %v1100_v41 = vrot.slane %v972_v29, 1  ;;  %v1020_v10 = vrot.slane %v988_v48, 1  ;;  %v1228_v31 = vmul.f32 0.3333333, %v10817_v43  ;;  %v1244_v37 = vmul.f32 0.6666667, %v10817_v43 }
  0xda   : > { %v860_v63 = vadd.f32 %v828_v42, %v780_v36  ;;  %v11307_v51 = vadd.f32 %v924_v57, %v876_v44  ;;  %v1180_v45 = vrot.slane %v1148_v60, 1  ;;  %v1324_v7 = vmul.f32 0.13333334, %v10817_v43  ;;  %v11323_v33 = vld [vmem:[#allocation3 + $0x8] sm:$0xff]  ;;  %v11330_v47 = vld [vmem:[#allocation3 + $0x20] sm:$0xff] }
  0xdb   : > { %v1132_v62 = vadd.f32 %v1100_v41, %v1068_v35  ;;  %v1276_v12 = vrot.slane %v1244_v37, 1  ;;  %v1404_v14 = vmul.f32 0.39999998, %v10817_v43  ;;  %v11311_v16 = vadd.f32 %v1020_v10, %v972_v29 }
  0xdc   : > { %v1212_v17 = vadd.f32 %v1180_v45, %v892_v13  ;;  %v1356_v0 = vrot.slane %v1324_v7, 1  ;;  %v1484_v59 = vmul.f32 0.06666667, %v10817_v43  ;;  %v1563_v1 = vmul.f32 0.46666664, %v10817_v43  ;;  %v2795_v24 = vld [vmem:[#allocation2 + $0xc1] sm:$0xff] }
  0xdd   : > { %v5040_v6 = vld [vmem:[#allocation2 + $0xc2] sm:$0xff]  ;;  %v5041_v30 = vld [vmem:[#allocation2 + $0xca] sm:$0xff]  ;;  %v1308_v39 = vadd.f32 %v1276_v12, %v1228_v31  ;;  %v1468_v38 = vadd.f32 %v1436_v11, %v1404_v14  ;;  %v1579_v2 = vmul.f32 0.53333336, %v10817_v43  ;;  %v1674_v18 = vrot.slane %v11284_v9, 7  ;;  %v2605_v45 = vld [vmem:[%s11007_s21 + $0x58] sm:$0xff] }
  0xde   : > { %v5066_v19 = vpack.c.bf16 %v5041_v30, %v5040_v6  ;;  %v1388_v8 = vadd.f32 %v1356_v0, %v700_v3  ;;  %v1515_v20 = vrot.slane %v1484_v59, 1  ;;  %v1722_v22 = vrot.slane %v11297_v40, 6  ;;  %v2796_v25 = vld [vmem:[#allocation2 + $0xc9] sm:$0xff]  ;;  %2692 = vst.msk [vmem:[#allocation3 + $0x99] sm:$0xff] %vm2505_vm0, %v2605_v45  ;;  %v2606_v11 = vld [vmem:[%s11007_s21 + $0x60] sm:$0xff] }
  0xdf   : > { %v1610_v26 = vrot.slane %v1579_v2, 1  ;;  %v1770_v15 = vrot.slane %v668_v53, 6  ;;  %v1818_v23 = vrot.slane %v764_v61, 5  ;;  %v1866_v32 = vrot.slane %v860_v63, 5  ;;  %2693 = vst.msk [vmem:[#allocation3 + $0xa9] sm:$0xff] %vm2505_vm0, %v2606_v11  ;;  %v11368_v2 = vld [vmem:[#allocation3 + $0x30] sm:$0xff] }
  0xe0   : > { %9516 = vmatprep.mubr.msk.bf16.mxu0 %vm2505_vm0, %v5066_v19  ;;  %v1547_v27 = vadd.f32 %v1515_v20, %v11273_v56  ;;  %v1914_v5 = vrot.slane %v11307_v51, 4  ;;  %v2010_v4 = vrot.slane %v1132_v62, 3  ;;  %v1962_v9 = vrot.slane %v11311_v16, 4  ;;  %v11328_v56 = vld [vmem:[#allocation3 + $0x18] sm:$0xff]  ;;  %v2604_v51 = vld [vmem:[%s11007_s21 + $0x50] sm:$0xff] }
  0xe1   : > { %v2058_v3 = vrot.slane %v1212_v17, 3  ;;  %v2106_v36 = vrot.slane %v1308_v39, 2  ;;  %v2154_v21 = vrot.slane %v1388_v8, 2  ;;  %v1642_v40 = vadd.f32 %v1610_v26, %v1563_v1  ;;  %2691 = vst.msk [vmem:[#allocation3 + $0x91] sm:$0xff] %vm2505_vm0, %v2604_v51  ;;  %v2607_v16 = vld [vmem:[%s11007_s21 + $0x68] sm:$0xff] }
  0xe2   : > { %v2202_v44 = vrot.slane %v1468_v38, 1  ;;  %v2283_v13 = vsel %vm2274_vm2, %v10817_v43, %v1674_v18  ;;  %v2819_v29 = vpack.c.bf16 %v2796_v25, %v2795_v24  ;;  %v2250_v42 = vrot.slane %v1547_v27, 1  ;;  %2694 = vst.msk [vmem:[#allocation3 + $0xb1] sm:$0xff] %vm2505_vm0, %v2607_v16  ;;  %v11370_v19 = vld [vmem:[#allocation3 + $0x38] sm:$0xff] }
  0xe3   : > { %v2300_v48 = vsel %vm2291_vm3, %v2283_v13, %v1722_v22  ;;  %v2401_v35 = vsel %vm2274_vm2, %v2010_v4, %v2058_v3  ;;  %v5373_v53 = vpack.c.bf16 %v11323_v33, %v11321_v34  ;;  %v398_v60 = vmul.f32 0.5333333, %v10819_v46  ;;  %v10457_v13 = vld [vmem:[%s12878_s2] sm:$0xff]   ;;  %v2612_v33 = vld [vmem:[%s11007_s21 + $0x90] sm:$0xff] }
  0xe4   : > { %v2317_v57 = vsel %vm2308_vm4, %v2300_v48, %v1770_v15  ;;  %v2417_v41 = vsel %vm2291_vm3, %v2401_v35, %v2106_v36  ;;  %9248 = vmatprep.mubr.msk.bf16.mxu1 %vm2505_vm0, %v2819_v29  ;;  %v414_v61 = vmul.f32 0.46666667, %v10819_v46  ;;  %v5374_v37 = vpack.c.bf16 %v11330_v47, %v11328_v56  ;;  %9264 = vmatprep.subr.bf16.mxu1 %v10457_v13 }
  0xe5   : > { %v2334_v10 = vsel %vm2325_vm5, %v2317_v57, %v1818_v23  ;;  %v2433_v31 = vsel %vm2308_vm4, %v2417_v41, %v2154_v21  ;;  %v11346_v63 = vmul.f32 0.93333334, %v10819_v46  ;;  %v493_v14 = vmul.f32 0.06666666, %v10819_v46  ;;  %9265 = vmatpush3.bf16.msra.mxu1 %v10457_v13  ;;  %2699 = vst.msk [vmem:[#allocation3 + $0xf1] sm:$0xff] %vm2505_vm0, %v2612_v33 }
  0xe6   : > { %v2351_v7 = vsel %vm2342_vm6, %v2334_v10, %v1866_v32  ;;  %v2449_v62 = vsel %vm2325_vm5, %v2433_v31, %v2202_v44  ;;  %v446_v12 = vrot.slane %v414_v61, 1  ;;  %v605_v6 = vmul.f32 0.4, %v10819_v46  ;;  %v11404_v10 = vld [vmem:[#allocation3 + $0x48] sm:$0xff]  ;;  %v11406_v31 = vld [vmem:[#allocation3 + $0x50] sm:$0xff] }
  0xe7   : > { %v2368_v17 = vsel %vm2359_vm7, %v2351_v7, %v1914_v5  ;;  %v2465_v0 = vsel %vm2342_vm6, %v2449_v62, %v2250_v42  ;;  %v541_v59 = vrot.slane %v11346_v63, 1  ;;  %v589_v1 = vmul.f32 0.6, %v10819_v46 }
  0xe8   : > { %v2385_v30 = vsel %vm2376_vm8, %v2368_v17, %v1962_v9  ;;  %v2481_v39 = vsel %vm2359_vm7, %v2465_v0, %v1642_v40  ;;  %v11365_v38 = vadd.f32 %v446_v12, %v398_v60  ;;  %v637_v20 = vrot.slane %v605_v6, 1 }
  0xe9   : > { %v2497_v8 = vsel %vm2376_vm8, %v2481_v39, %v10817_v43  ;;  %2578 = vst.msk [vmem:[#allocation2 + $0xd9] sm:$0xff] %vm2505_vm0, %v2385_v30  ;;  %v685_v18 = vmul.f32 0.13333333, %v10819_v46  ;;  %v701_v26 = vmul.f32 0.8666667, %v10819_v46  ;;  %v11378_v22 = vadd.f32 %v541_v59, %v493_v14 }
  0xea   : > { %2579 = vst.msk [vmem:[#allocation2 + $0xe1] sm:$0xff] %vm2505_vm0, %v2497_v8  ;;  %v781_v15 = vmul.f32 0.6666666, %v10819_v46  ;;  %v797_v23 = vmul.f32 0.33333334, %v10819_v46  ;;  %v5375_v32 = vpack.c.bf16 %v11370_v19, %v11368_v2  ;;  %v11387_v5 = vadd.f32 %v637_v20, %v589_v1 }
  0xeb   : > { %v877_v24 = vmul.f32 0.19999999, %v10819_v46  ;;  %v733_v25 = vrot.slane %v701_v26, 1  ;;  %v893_v43 = vmul.f32 0.8, %v10819_v46  ;;  %v1437_v44 = vrot.slane %v589_v1, 1 }
  0xec   : > { %v973_v27 = vmul.f32 0.73333335, %v10819_v46  ;;  %v829_v4 = vrot.slane %v797_v23, 1  ;;  %v989_v9 = vmul.f32 0.26666668, %v10819_v46  ;;  %v1675_v23 = vrot.slane %v11365_v38, 7 }
  0xed   : > { %v1069_v3 = vmul.f32 0.26666665, %v10819_v46  ;;  %v925_v36 = vrot.slane %v893_v43, 1  ;;  %v1149_v40 = vmul.f32 0.2, %v10819_v46  ;;  %v11395_v29 = vadd.f32 %v733_v25, %v685_v18  ;;  %v2609_v25 = vld [vmem:[%s11007_s21 + $0x78] sm:$0xff] }
  0xee   : > { %v1101_v21 = vrot.slane %v973_v27, 1  ;;  %v1021_v42 = vrot.slane %v989_v9, 1  ;;  %v1229_v48 = vmul.f32 0.3333333, %v10819_v46  ;;  %v1245_v35 = vmul.f32 0.6666667, %v10819_v46 }
  0xef   : > { %v11399_v57 = vadd.f32 %v829_v4, %v781_v15  ;;  %v11401_v41 = vadd.f32 %v925_v36, %v877_v24  ;;  %v1181_v60 = vrot.slane %v1149_v40, 1  ;;  %v1325_v61 = vmul.f32 0.13333334, %v10819_v46  ;;  %v2608_v24 = vld [vmem:[%s11007_s21 + $0x70] sm:$0xff]  ;;  %2696 = vst.msk [vmem:[#allocation3 + $0xc9] sm:$0xff] %vm2505_vm0, %v2609_v25  ;;  %v2610_v38 = vld [vmem:[%s11007_s21 + $0x80] sm:$0xff] }
  0xf0   : > { %v2797_v51 = vld [vmem:[#allocation2 + $0xd9] sm:$0xff]  ;;  %v1133_v45 = vadd.f32 %v1101_v21, %v1069_v3  ;;  %v1277_v7 = vrot.slane %v1245_v35, 1  ;;  %v1405_v62 = vmul.f32 0.39999998, %v10819_v46  ;;  %v1485_v12 = vmul.f32 0.06666667, %v10819_v46 }
  0xf1   : > { %v5042_v14 = vld [vmem:[#allocation2 + $0xda] sm:$0xff]  ;;  %v5043_v11 = vld [vmem:[#allocation2 + $0xe2] sm:$0xff]  ;;  %v11410_v17 = vadd.f32 %v1021_v42, %v973_v27  ;;  %v1213_v0 = vadd.f32 %v1181_v60, %v893_v43  ;;  %v1357_v59 = vrot.slane %v1325_v61, 1  ;;  %v1564_v6 = vmul.f32 0.46666664, %v10819_v46  ;;  %2695 = vst.msk [vmem:[#allocation3 + $0xc1] sm:$0xff] %vm2505_vm0, %v2608_v24 }
  0xf2   : > { %v2798_v16 = vld [vmem:[#allocation2 + $0xe1] sm:$0xff]  ;;  %v5067_v30 = vpack.c.bf16 %v5043_v11, %v5042_v14  ;;  %v1309_v1 = vadd.f32 %v1277_v7, %v1229_v48  ;;  %v1469_v8 = vadd.f32 %v1437_v44, %v1405_v62  ;;  %v1516_v18 = vrot.slane %v1485_v12, 1  ;;  %2697 = vst.msk [vmem:[#allocation3 + $0xd9] sm:$0xff] %vm2505_vm0, %v2610_v38  ;;  %v2613_v42 = vld [vmem:[%s11007_s21 + $0x98] sm:$0xff] }
  0xf3   : > { %v2820_v39 = vpack.c.bf16 %v2798_v16, %v2797_v51  ;;  %v1389_v20 = vadd.f32 %v1357_v59, %v701_v26  ;;  %v1580_v15 = vmul.f32 0.53333336, %v10819_v46  ;;  %v1723_v43 = vrot.slane %v11378_v22, 6  ;;  %v2611_v9 = vld [vmem:[%s11007_s21 + $0x88] sm:$0xff]  ;;  %v2614_v48 = vld [vmem:[%s11007_s21 + $0xa0] sm:$0xff]  ;;  %2700 = vst.msk [vmem:[#allocation3 + $0xf9] sm:$0xff] %vm2505_vm0, %v2613_v42 }
  0xf4   : > { %9517 = vmatmul.mubr.msk.bf16.gmra.mrb[12].mxu0 %vm2505_vm0, %v5067_v30  ;;  %v1771_v27 = vrot.slane %v11387_v5, 6  ;;  %v1819_v4 = vrot.slane %v11395_v29, 5  ;;  %v5376_v26 = vpack.c.bf16 %v11406_v31, %v11404_v10  ;;  %v1548_v22 = vadd.f32 %v1516_v18, %v11346_v63  ;;  %2698 = vst.msk [vmem:[#allocation3 + $0xe1] sm:$0xff] %vm2505_vm0, %v2611_v9  ;;  %v2615_v35 = vld [vmem:[%s11007_s21 + $0xa8] sm:$0xff]  ;;  %2701 = vst.msk [vmem:[#allocation3 + $0x109] sm:$0xff] %vm2505_vm0, %v2614_v48 }
  0xf5   : > { %9249 = vmatmul.mubr.msk.bf16.gmra.mrb[16].mxu1 %vm2505_vm0, %v2820_v39  ;;  %9538 = vmatprep.mubr.msk.bf16.mxu0 %vm2505_vm0, %v5373_v53  ;;  %v1611_v5 = vrot.slane %v1580_v15, 1  ;;  %v1867_v3 = vrot.slane %v11399_v57, 5  ;;  %v1915_v36 = vrot.slane %v11401_v41, 4  ;;  %v2011_v21 = vrot.slane %v1133_v45, 3  ;;  %2702 = vst.msk [vmem:[#allocation3 + $0x111] sm:$0xff] %vm2505_vm0, %v2615_v35 }
  0xf6   : > { %v2059_v40 = vrot.slane %v1213_v0, 3  ;;  %v2107_v44 = vrot.slane %v1309_v1, 2  ;;  %v2155_v34 = vrot.slane %v1389_v20, 2  ;;  %v1963_v53 = vrot.slane %v11410_v17, 4  ;;  %v10471_v20 = vld [vmem:[%s12879_s3 + $0x8] sm:$0xff]  }
  0xf7   : > { %v2203_v13 = vrot.slane %v1469_v8, 1  ;;  %v2251_v63 = vrot.slane %v1548_v22, 1  ;;  %v2284_v29 = vsel %vm2274_vm2, %v10819_v46, %v1675_v23  ;;  %v399_v60 = vmul.f32 0.5333333, %v10823_v50 }
  0xf8   : > { %v2301_v57 = vsel %vm2291_vm3, %v2284_v29, %v1723_v43  ;;  %v2402_v41 = vsel %vm2274_vm2, %v2011_v21, %v2059_v40  ;;  %v415_v61 = vmul.f32 0.46666667, %v10823_v50  ;;  %v1643_v51 = vadd.f32 %v1611_v5, %v1564_v6  ;;  %v2617_v29 = vld [vmem:[%s11007_s21 + $0xb8] sm:$0xff] }
  0xf9   : > { %v2318_v45 = vsel %vm2308_vm4, %v2301_v57, %v1771_v27  ;;  %v2418_v7 = vsel %vm2291_vm3, %v2402_v41, %v2107_v44  ;;  %v11455_v62 = vmul.f32 0.93333334, %v10823_v50  ;;  %v494_v16 = vmul.f32 0.06666666, %v10823_v50  ;;  %2704 = vst.msk [vmem:[#allocation3 + $0x129] sm:$0xff] %vm2505_vm0, %v2617_v29  ;;  %v2618_v41 = vld [vmem:[%s11007_s21 + $0xc0] sm:$0xff] }
  0xfa   : > { %v2335_v12 = vsel %vm2325_vm5, %v2318_v45, %v1819_v4  ;;  %v2434_v14 = vsel %vm2308_vm4, %v2418_v7, %v2155_v34  ;;  %v447_v11 = vrot.slane %v415_v61, 1  ;;  %v606_v6 = vmul.f32 0.4, %v10823_v50  ;;  %2705 = vst.msk [vmem:[#allocation3 + $0x139] sm:$0xff] %vm2505_vm0, %v2618_v41 }
  0xfb   : > { %v2352_v17 = vsel %vm2342_vm6, %v2335_v12, %v1867_v3  ;;  %v2450_v0 = vsel %vm2325_vm5, %v2434_v14, %v2203_v13  ;;  %v542_v59 = vrot.slane %v11455_v62, 1  ;;  %v590_v8 = vmul.f32 0.6, %v10823_v50 }
  0xfc   : > { %9539 = vmatmul.mubr.msk.bf16.vlgmr.msra.gmra.mrb[0].mxu0 %vm2505_vm0, %v5374_v37  ;;  %v2369_v30 = vsel %vm2359_vm7, %v2352_v17, %v1915_v36  ;;  %v2466_v39 = vsel %vm2342_vm6, %v2450_v0, %v2251_v63  ;;  %v11470_v1 = vadd.f32 %v447_v11, %v399_v60  ;;  %v638_v56 = vrot.slane %v606_v6, 1  ;;  %v2616_v63 = vld [vmem:[%s11007_s21 + $0xb0] sm:$0xff]  ;;  %v2619_v60 = vld [vmem:[%s11007_s21 + $0xc8] sm:$0xff] }
  0xfd   : > { %9571 = vmatpush3.bf16.msra.mxu0 %v10471_v20  ;;  %v2386_v18 = vsel %vm2376_vm8, %v2369_v30, %v1963_v53  ;;  %v2482_v15 = vsel %vm2359_vm7, %v2466_v39, %v1643_v51  ;;  %v686_v47 = vmul.f32 0.13333333, %v10823_v50  ;;  %9542 = vmatprep.mubr.msk.bf16.mxu0 %vm2505_vm0, %v5375_v32  ;;  %v702_v23 = vmul.f32 0.8666667, %v10823_v50  ;;  %2703 = vst.msk [vmem:[#allocation3 + $0x121] sm:$0xff] %vm2505_vm0, %v2616_v63  ;;  %v2620_v6 = vld [vmem:[%s11007_s21 + $0xd0] sm:$0xff] }
  0xfe   : > { %v2498_v37 = vsel %vm2376_vm8, %v2482_v15, %v10819_v46  ;;  %2580 = vst.msk [vmem:[#allocation2 + $0xf1] sm:$0xff] %vm2505_vm0, %v2386_v18  ;;  %v782_v24 = vmul.f32 0.6666666, %v10823_v50  ;;  %v798_v25 = vmul.f32 0.33333334, %v10823_v50  ;;  %v11490_v43 = vadd.f32 %v542_v59, %v494_v16  ;;  %2706 = vst.msk [vmem:[#allocation3 + $0x141] sm:$0xff] %vm2505_vm0, %v2619_v60 }
  0xff   : > { %2581 = vst.msk [vmem:[#allocation2 + $0xf9] sm:$0xff] %vm2505_vm0, %v2498_v37  ;;  %v878_v27 = vmul.f32 0.19999999, %v10823_v50  ;;  %v894_v2 = vmul.f32 0.8, %v10823_v50  ;;  %v734_v32 = vrot.slane %v702_v23, 1  ;;  %v11497_v9 = vadd.f32 %v638_v56, %v590_v8 }
 0x100   : > { %v974_v19 = vmul.f32 0.73333335, %v10823_v50  ;;  %v830_v46 = vrot.slane %v798_v25, 1  ;;  %v990_v4 = vmul.f32 0.26666668, %v10823_v50  ;;  %v1438_v57 = vrot.slane %v590_v8, 1 }
 0x101   : > { %v1070_v38 = vmul.f32 0.26666665, %v10823_v50  ;;  %v926_v22 = vrot.slane %v894_v2, 1  ;;  %v1150_v3 = vmul.f32 0.2, %v10823_v50  ;;  %v11500_v36 = vadd.f32 %v734_v32, %v686_v47  ;;  %v2621_v18 = vld [vmem:[%s11007_s21 + $0xd8] sm:$0xff] }
 0x102   : > { %v1102_v5 = vrot.slane %v974_v19, 1  ;;  %v1022_v21 = vrot.slane %v990_v4, 1  ;;  %v1230_v40 = vmul.f32 0.3333333, %v10823_v50  ;;  %v1246_v44 = vmul.f32 0.6666667, %v10823_v50 }
 0x103   : > { %v11504_v34 = vadd.f32 %v830_v46, %v782_v24  ;;  %v11506_v33 = vadd.f32 %v926_v22, %v878_v27  ;;  %v1182_v53 = vrot.slane %v1150_v3, 1  ;;  %v1326_v13 = vmul.f32 0.13333334, %v10823_v50  ;;  %2707 = vst.msk [vmem:[#allocation3 + $0x151] sm:$0xff] %vm2505_vm0, %v2620_v6  ;;  %v2622_v15 = vld [vmem:[%s11007_s21 + $0xe0] sm:$0xff]  ;;  %2708 = vst.msk [vmem:[#allocation3 + $0x159] sm:$0xff] %vm2505_vm0, %v2621_v18 }
 0x104   : > { %v1134_v42 = vadd.f32 %v1102_v5, %v1070_v38  ;;  %v1278_v48 = vrot.slane %v1246_v44, 1  ;;  %v1406_v35 = vmul.f32 0.39999998, %v10823_v50  ;;  %9543 = vmatmul.mubr.msk.bf16.gmra.mrb[4].mxu0 %vm2505_vm0, %v5376_v26  ;;  %v1054_v51 = vadd.f32 %v1022_v21, %v974_v19  ;;  %2709 = vst.msk [vmem:[#allocation3 + $0x169] sm:$0xff] %vm2505_vm0, %v2622_v15  ;;  %v11589_v15 = vld [vmem:[%s12879_s3 + $0x10] sm:$0xff]  }
 0x105   : > { %v2799_v61 = vld [vmem:[#allocation2 + $0xf1] sm:$0xff]  ;;  %v1214_v45 = vadd.f32 %v1182_v53, %v894_v2  ;;  %v1358_v7 = vrot.slane %v1326_v13, 1  ;;  %v1486_v12 = vmul.f32 0.06666667, %v10823_v50  ;;  %v1565_v14 = vmul.f32 0.46666664, %v10823_v50  ;;  %9604 = vmatprep.subr.bf16.mxu0 %v11589_v15 }
 0x106   : > { %v2800_v10 = vld [vmem:[#allocation2 + $0xf9] sm:$0xff]  ;;  %v1310_v31 = vadd.f32 %v1278_v48, %v1230_v40  ;;  %v1470_v26 = vadd.f32 %v1438_v57, %v1406_v35  ;;  %v1581_v11 = vmul.f32 0.53333336, %v10823_v50  ;;  %v1676_v59 = vrot.slane %v11470_v1, 7 }
 0x107   : > { %v2821_v16 = vpack.c.bf16 %v2800_v10, %v2799_v61  ;;  %v1390_v17 = vadd.f32 %v1358_v7, %v702_v23  ;;  %v1517_v0 = vrot.slane %v1486_v12, 1  ;;  %v1724_v39 = vrot.slane %v11490_v43, 6  ;;  %v2623_v23 = vld [vmem:[%s11007_s21 + $0xe8] sm:$0xff] }
 0x108   : > { %v1612_v30 = vrot.slane %v1581_v11, 1  ;;  %v1772_v8 = vrot.slane %v11497_v9, 6  ;;  %v1820_v20 = vrot.slane %v11500_v36, 5  ;;  %v1868_v47 = vrot.slane %v11504_v34, 5  ;;  %2710 = vst.msk [vmem:[#allocation3 + $0x171] sm:$0xff] %vm2505_vm0, %v2623_v23 }
 0x109   : > { %9252 = vmatprep.mubr.msk.bf16.mxu1 %vm2505_vm0, %v2821_v16  ;;  %v1549_v56 = vadd.f32 %v1517_v0, %v11455_v62  ;;  %v1916_v1 = vrot.slane %v11506_v33, 4  ;;  %v2012_v37 = vrot.slane %v1134_v42, 3  ;;  %v1964_v24 = vrot.slane %v1054_v51, 4 }
 0x10a   : > { %v2060_v25 = vrot.slane %v1214_v45, 3  ;;  %v2108_v43 = vrot.slane %v1310_v31, 2  ;;  %v2156_v27 = vrot.slane %v1390_v17, 2  ;;  %v1644_v2 = vadd.f32 %v1612_v30, %v1565_v14 }
 0x10b   : > { %v2204_v19 = vrot.slane %v1470_v26, 1  ;;  %v2252_v32 = vrot.slane %v1549_v56, 1  ;;  %v2285_v62 = vsel %vm2274_vm2, %v10823_v50, %v1676_v59  ;;  %v400_v38 = vmul.f32 0.5333333, %v10830_v54 }
 0x10c   : > { %v2302_v46 = vsel %vm2291_vm3, %v2285_v62, %v1724_v39  ;;  %v2403_v4 = vsel %vm2274_vm2, %v2012_v37, %v2060_v25  ;;  %v416_v9 = vmul.f32 0.46666667, %v10830_v54  ;;  %v495_v3 = vmul.f32 0.06666666, %v10830_v54 }
 0x10d   : > { %v2319_v22 = vsel %vm2308_vm4, %v2302_v46, %v1772_v8  ;;  %v2419_v5 = vsel %vm2291_vm3, %v2403_v4, %v2108_v43  ;;  %v11551_v36 = vmul.f32 0.93333334, %v10830_v54  ;;  %v607_v34 = vmul.f32 0.4, %v10830_v54 }
 0x10e   : > { %v2336_v21 = vsel %vm2325_vm5, %v2319_v22, %v1820_v20  ;;  %v2435_v40 = vsel %vm2308_vm4, %v2419_v5, %v2156_v27  ;;  %v448_v44 = vrot.slane %v416_v9, 1  ;;  %v591_v63 = vmul.f32 0.6, %v10830_v54 }
 0x10f   : > { %v2353_v33 = vsel %vm2342_vm6, %v2336_v21, %v1868_v47  ;;  %v2451_v53 = vsel %vm2325_vm5, %v2435_v40, %v2204_v19  ;;  %v543_v13 = vrot.slane %v11551_v36, 1  ;;  %v639_v48 = vrot.slane %v607_v34, 1 }
 0x110   : > { %v2370_v29 = vsel %vm2359_vm7, %v2353_v33, %v1916_v1  ;;  %v2467_v42 = vsel %vm2342_vm6, %v2451_v53, %v2252_v32  ;;  %v687_v35 = vmul.f32 0.13333333, %v10830_v54  ;;  %v11565_v60 = vadd.f32 %v448_v44, %v400_v38 }
 0x111   : > { %v2387_v57 = vsel %vm2376_vm8, %v2370_v29, %v1964_v24  ;;  %v2483_v41 = vsel %vm2359_vm7, %v2467_v42, %v1644_v2  ;;  %v703_v61 = vmul.f32 0.8666667, %v10830_v54  ;;  %v11571_v45 = vadd.f32 %v543_v13, %v495_v3 }
 0x112   : > { %v2499_v51 = vsel %vm2376_vm8, %v2483_v41, %v10823_v50  ;;  %2582 = vst.msk [vmem:[#allocation2 + $0x109] sm:$0xff] %vm2505_vm0, %v2387_v57  ;;  %v783_v7 = vmul.f32 0.6666666, %v10830_v54  ;;  %v799_v12 = vmul.f32 0.33333334, %v10830_v54  ;;  %v11576_v10 = vadd.f32 %v639_v48, %v591_v63 }
 0x113   : > { %2583 = vst.msk [vmem:[#allocation2 + $0x111] sm:$0xff] %vm2505_vm0, %v2499_v51  ;;  %v735_v31 = vrot.slane %v703_v61, 1  ;;  %v879_v26 = vmul.f32 0.19999999, %v10830_v54  ;;  %v895_v14 = vmul.f32 0.8, %v10830_v54 }
 0x114   : > { %v831_v11 = vrot.slane %v799_v12, 1  ;;  %v975_v50 = vmul.f32 0.73333335, %v10830_v54  ;;  %v991_v16 = vmul.f32 0.26666668, %v10830_v54  ;;  %v1439_v17 = vrot.slane %v591_v63, 1 }
 0x115   : > { %v927_v0 = vrot.slane %v895_v14, 1  ;;  %v1071_v59 = vmul.f32 0.26666665, %v10830_v54  ;;  %v1151_v6 = vmul.f32 0.2, %v10830_v54  ;;  %v1677_v30 = vrot.slane %v11565_v60, 7 }
 0x116   : > { %v767_v39 = vadd.f32 %v735_v31, %v687_v35  ;;  %v1023_v8 = vrot.slane %v991_v16, 1  ;;  %v1103_v20 = vrot.slane %v975_v50, 1  ;;  %v1231_v18 = vmul.f32 0.3333333, %v10830_v54 }
 0x117   : > { %v863_v56 = vadd.f32 %v831_v11, %v783_v7  ;;  %v1183_v47 = vrot.slane %v1151_v6, 1  ;;  %v1247_v1 = vmul.f32 0.6666667, %v10830_v54  ;;  %v1327_v37 = vmul.f32 0.13333334, %v10830_v54 }
 0x118   : > { %v959_v23 = vadd.f32 %v927_v0, %v879_v26  ;;  %v1055_v24 = vadd.f32 %v1023_v8, %v975_v50  ;;  %v1407_v25 = vmul.f32 0.39999998, %v10830_v54  ;;  %v1487_v43 = vmul.f32 0.06666667, %v10830_v54 }
 0x119   : > { %v2801_v27 = vld [vmem:[#allocation2 + $0x109] sm:$0xff]  ;;  %v1135_v2 = vadd.f32 %v1103_v20, %v1071_v59  ;;  %v1215_v19 = vadd.f32 %v1183_v47, %v895_v14  ;;  %v1279_v32 = vrot.slane %v1247_v1, 1  ;;  %v1359_v62 = vrot.slane %v1327_v37, 1 }
 0x11a   : > { %v2802_v46 = vld [vmem:[#allocation2 + $0x111] sm:$0xff]  ;;  %v1471_v4 = vadd.f32 %v1439_v17, %v1407_v25  ;;  %v1518_v38 = vrot.slane %v1487_v43, 1  ;;  %v1566_v9 = vmul.f32 0.46666664, %v10830_v54  ;;  %v1582_v22 = vmul.f32 0.53333336, %v10830_v54 }
 0x11b   : > { %v2822_v5 = vpack.c.bf16 %v2802_v46, %v2801_v27  ;;  %v1311_v3 = vadd.f32 %v1279_v32, %v1231_v18  ;;  %v1391_v21 = vadd.f32 %v1359_v62, %v703_v61  ;;  %v1725_v40 = vrot.slane %v11571_v45, 6 }
 0x11c   : > { %v1550_v44 = vadd.f32 %v1518_v38, %v11551_v36  ;;  %v1613_v34 = vrot.slane %v1582_v22, 1  ;;  %v1773_v33 = vrot.slane %v11576_v10, 6  ;;  %v1821_v53 = vrot.slane %v767_v39, 5 }
 0x11d   : > { %9253 = vmatmul.mubr.msk.bf16.gmra.mrb[20].mxu1 %vm2505_vm0, %v2822_v5  ;;  %v1869_v13 = vrot.slane %v863_v56, 5  ;;  %v1917_v63 = vrot.slane %v959_v23, 4  ;;  %v2013_v29 = vrot.slane %v1135_v2, 3  ;;  %v2061_v42 = vrot.slane %v1215_v19, 3 }
 0x11e   : > { %v1965_v48 = vrot.slane %v1055_v24, 4  ;;  %v2109_v35 = vrot.slane %v1311_v3, 2  ;;  %v2157_v57 = vrot.slane %v1391_v21, 2  ;;  %v2205_v41 = vrot.slane %v1471_v4, 1 }
 0x11f   : > { %v1645_v60 = vadd.f32 %v1613_v34, %v1566_v9  ;;  %v2253_v61 = vrot.slane %v1550_v44, 1  ;;  %v2286_v51 = vsel %vm2274_vm2, %v10830_v54, %v1677_v30  ;;  %v2404_v36 = vsel %vm2274_vm2, %v2013_v29, %v2061_v42 }
 0x120   : > { %v2303_v45 = vsel %vm2291_vm3, %v2286_v51, %v1725_v40  ;;  %v2420_v7 = vsel %vm2291_vm3, %v2404_v36, %v2109_v35  ;;  %v401_v12 = vmul.f32 0.5333333, %v10832_v55  ;;  %v417_v10 = vmul.f32 0.46666667, %v10832_v55 }
 0x121   : > { %v2320_v31 = vsel %vm2308_vm4, %v2303_v45, %v1773_v33  ;;  %v2436_v26 = vsel %vm2308_vm4, %v2420_v7, %v2157_v57  ;;  %v496_v14 = vmul.f32 0.06666666, %v10832_v55  ;;  %v11613_v11 = vmul.f32 0.93333334, %v10832_v55  ;;  %v11654_v57 = vld [vmem:[%s12878_s2 + $0x10] sm:$0xff]  }
 0x122   : > { %v2337_v50 = vsel %vm2325_vm5, %v2320_v31, %v1821_v53  ;;  %v2452_v16 = vsel %vm2325_vm5, %v2436_v26, %v2205_v41  ;;  %v449_v17 = vrot.slane %v417_v10, 1  ;;  %v608_v0 = vmul.f32 0.4, %v10832_v55  ;;  %9298 = vmatprep.subr.bf16.mxu1 %v11654_v57 }
 0x123   : > { %v2354_v59 = vsel %vm2342_vm6, %v2337_v50, %v1869_v13  ;;  %v2468_v6 = vsel %vm2342_vm6, %v2452_v16, %v2253_v61  ;;  %v544_v30 = vrot.slane %v11613_v11, 1  ;;  %v592_v39 = vmul.f32 0.6, %v10832_v55 }
 0x124   : > { %v2371_v8 = vsel %vm2359_vm7, %v2354_v59, %v1917_v63  ;;  %v2484_v20 = vsel %vm2359_vm7, %v2468_v6, %v1645_v60  ;;  %v640_v18 = vrot.slane %v608_v0, 1  ;;  %v688_v56 = vmul.f32 0.13333333, %v10832_v55 }
 0x125   : > { %v2388_v47 = vsel %vm2376_vm8, %v2371_v8, %v1965_v48  ;;  %v2500_v1 = vsel %vm2376_vm8, %v2484_v20, %v10830_v54  ;;  %v11628_v37 = vadd.f32 %v449_v17, %v401_v12  ;;  %v704_v23 = vmul.f32 0.8666667, %v10832_v55 }
 0x126   : > { %2584 = vst.msk [vmem:[#allocation2 + $0x121] sm:$0xff] %vm2505_vm0, %v2388_v47  ;;  %2585 = vst.msk [vmem:[#allocation2 + $0x129] sm:$0xff] %vm2505_vm0, %v2500_v1  ;;  %v11633_v24 = vadd.f32 %v544_v30, %v496_v14  ;;  %v784_v25 = vmul.f32 0.6666666, %v10832_v55  ;;  %v800_v43 = vmul.f32 0.33333334, %v10832_v55  ;;  %v11638_v2 = vadd.f32 %v640_v18, %v592_v39 }
 0x127   : > { %v880_v27 = vmul.f32 0.19999999, %v10832_v55  ;;  %v736_v19 = vrot.slane %v704_v23, 1  ;;  %v896_v54 = vmul.f32 0.8, %v10832_v55  ;;  %v1440_v38 = vrot.slane %v592_v39, 1 }
 0x128   : > { %v976_v32 = vmul.f32 0.73333335, %v10832_v55  ;;  %v832_v62 = vrot.slane %v800_v43, 1  ;;  %v992_v46 = vmul.f32 0.26666668, %v10832_v55  ;;  %v1678_v3 = vrot.slane %v11628_v37, 7 }
 0x129   : > { %v1072_v4 = vmul.f32 0.26666665, %v10832_v55  ;;  %v928_v9 = vrot.slane %v896_v54, 1  ;;  %v1152_v5 = vmul.f32 0.2, %v10832_v55  ;;  %v768_v21 = vadd.f32 %v736_v19, %v688_v56  ;;  %v5349_v30 = vld [vmem:[#allocation3 + $0x60] sm:$0xff] }
 0x12a   : > { %v1104_v22 = vrot.slane %v976_v32, 1  ;;  %v1024_v40 = vrot.slane %v992_v46, 1  ;;  %v1232_v44 = vmul.f32 0.3333333, %v10832_v55  ;;  %v1248_v34 = vmul.f32 0.6666667, %v10832_v55 }
 0x12b   : > { %v864_v33 = vadd.f32 %v832_v62, %v784_v25  ;;  %v960_v53 = vadd.f32 %v928_v9, %v880_v27  ;;  %v1184_v13 = vrot.slane %v1152_v5, 1  ;;  %v1328_v63 = vmul.f32 0.13333334, %v10832_v55  ;;  %v5350_v39 = vld [vmem:[#allocation3 + $0x68] sm:$0xff]  ;;  %v5351_v47 = vld [vmem:[#allocation3 + $0x78] sm:$0xff]  ;;  %v5352_v1 = vld [vmem:[#allocation3 + $0x80] sm:$0xff] }
 0x12c   : > { %v1136_v29 = vadd.f32 %v1104_v22, %v1072_v4  ;;  %v1280_v42 = vrot.slane %v1248_v34, 1  ;;  %v1408_v48 = vmul.f32 0.39999998, %v10832_v55  ;;  %v1488_v35 = vmul.f32 0.06666667, %v10832_v55 }
 0x12d   : > { %v2803_v41 = vld [vmem:[#allocation2 + $0x121] sm:$0xff]  ;;  %v2804_v60 = vld [vmem:[#allocation2 + $0x129] sm:$0xff]  ;;  %v1056_v61 = vadd.f32 %v1024_v40, %v976_v32  ;;  %v1216_v51 = vadd.f32 %v1184_v13, %v896_v54  ;;  %v1360_v36 = vrot.slane %v1328_v63, 1  ;;  %v1567_v45 = vmul.f32 0.46666664, %v10832_v55 }
 0x12e   : > { %v2823_v7 = vpack.c.bf16 %v2804_v60, %v2803_v41  ;;  %v1312_v12 = vadd.f32 %v1280_v42, %v1232_v44  ;;  %v1472_v10 = vadd.f32 %v1440_v38, %v1408_v48  ;;  %v1519_v31 = vrot.slane %v1488_v35, 1 }
 0x12f   : > { %v1392_v26 = vadd.f32 %v1360_v36, %v704_v23  ;;  %v1583_v14 = vmul.f32 0.53333336, %v10832_v55  ;;  %v1726_v50 = vrot.slane %v11633_v24, 6  ;;  %v1774_v16 = vrot.slane %v11638_v2, 6 }
 0x130   : > { %9256 = vmatprep.mubr.msk.bf16.mxu1 %vm2505_vm0, %v2823_v7  ;;  %v1551_v17 = vadd.f32 %v1519_v31, %v11613_v11  ;;  %v1822_v0 = vrot.slane %v768_v21, 5  ;;  %v1870_v59 = vrot.slane %v864_v33, 5  ;;  %v1918_v6 = vrot.slane %v960_v53, 4 }
 0x131   : > { %v1614_v8 = vrot.slane %v1583_v14, 1  ;;  %v2014_v20 = vrot.slane %v1136_v29, 3  ;;  %v2062_v18 = vrot.slane %v1216_v51, 3  ;;  %v2110_v56 = vrot.slane %v1312_v12, 2 }
 0x132   : > { %v1966_v37 = vrot.slane %v1056_v61, 4  ;;  %v2158_v23 = vrot.slane %v1392_v26, 2  ;;  %v2206_v24 = vrot.slane %v1472_v10, 1  ;;  %v2287_v25 = vsel %vm2274_vm2, %v10832_v55, %v1678_v3 }
 0x133   : > { %v2254_v43 = vrot.slane %v1551_v17, 1  ;;  %v2304_v11 = vsel %vm2291_vm3, %v2287_v25, %v1726_v50  ;;  %v2405_v27 = vsel %vm2274_vm2, %v2014_v20, %v2062_v18  ;;  %v5377_v2 = vpack.c.bf16 %v5350_v39, %v5349_v30 }
 0x134   : > { %v1646_v19 = vadd.f32 %v1614_v8, %v1567_v45  ;;  %v2321_v54 = vsel %vm2308_vm4, %v2304_v11, %v1774_v16  ;;  %v2421_v32 = vsel %vm2291_vm3, %v2405_v27, %v2110_v56  ;;  %v5378_v62 = vpack.c.bf16 %v5352_v1, %v5351_v47 }
 0x135   : > { %v2338_v46 = vsel %vm2325_vm5, %v2321_v54, %v1822_v0  ;;  %v2437_v4 = vsel %vm2308_vm4, %v2421_v32, %v2158_v23  ;;  %9546 = vmatprep.mubr.msk.bf16.mxu0 %vm2505_vm0, %v5377_v2  ;;  %v402_v38 = vmul.f32 0.5333333, %v10837_v58  ;;  %v418_v9 = vmul.f32 0.46666667, %v10837_v58 }
 0x136   : > { %v2355_v22 = vsel %vm2342_vm6, %v2338_v46, %v1870_v59  ;;  %v2453_v5 = vsel %vm2325_vm5, %v2437_v4, %v2206_v24  ;;  %9547 = vmatmul.mubr.msk.bf16.gmra.mrb[8].mxu0 %vm2505_vm0, %v5378_v62  ;;  %v497_v3 = vmul.f32 0.06666666, %v10837_v58  ;;  %v513_v21 = vmul.f32 0.93333334, %v10837_v58 }
 0x137   : > { %v2372_v40 = vsel %vm2359_vm7, %v2355_v22, %v1918_v6  ;;  %v2469_v44 = vsel %vm2342_vm6, %v2453_v5, %v2254_v43  ;;  %v450_v34 = vrot.slane %v418_v9, 1  ;;  %v609_v33 = vmul.f32 0.4, %v10837_v58 }
 0x138   : > { %v2389_v53 = vsel %vm2376_vm8, %v2372_v40, %v1966_v37  ;;  %v2485_v13 = vsel %vm2359_vm7, %v2469_v44, %v1646_v19  ;;  %v545_v63 = vrot.slane %v513_v21, 1  ;;  %v593_v29 = vmul.f32 0.6, %v10837_v58 }
 0x139   : > { %v2501_v42 = vsel %vm2376_vm8, %v2485_v13, %v10832_v55  ;;  %2586 = vst.msk [vmem:[#allocation2 + $0x139] sm:$0xff] %vm2505_vm0, %v2389_v53  ;;  %v641_v48 = vrot.slane %v609_v33, 1  ;;  %v689_v35 = vmul.f32 0.13333333, %v10837_v58  ;;  %v705_v41 = vmul.f32 0.8666667, %v10837_v58 }
 0x13a   : > { %2587 = vst.msk [vmem:[#allocation2 + $0x141] sm:$0xff] %vm2505_vm0, %v2501_v42  ;;  %v482_v60 = vadd.f32 %v450_v34, %v402_v38  ;;  %v785_v61 = vmul.f32 0.6666666, %v10837_v58  ;;  %v801_v51 = vmul.f32 0.33333334, %v10837_v58  ;;  %v577_v45 = vadd.f32 %v545_v63, %v497_v3 }
 0x13b   : > { %v881_v36 = vmul.f32 0.19999999, %v10837_v58  ;;  %v737_v7 = vrot.slane %v705_v41, 1  ;;  %v897_v55 = vmul.f32 0.8, %v10837_v58  ;;  %v673_v10 = vadd.f32 %v641_v48, %v593_v29 }
 0x13c   : > { %v977_v12 = vmul.f32 0.73333335, %v10837_v58  ;;  %v833_v31 = vrot.slane %v801_v51, 1  ;;  %v993_v26 = vmul.f32 0.26666668, %v10837_v58  ;;  %v1441_v0 = vrot.slane %v593_v29, 1 }
 0x13d   : > { %v1073_v14 = vmul.f32 0.26666665, %v10837_v58  ;;  %v929_v50 = vrot.slane %v897_v55, 1  ;;  %v1153_v17 = vmul.f32 0.2, %v10837_v58  ;;  %v769_v59 = vadd.f32 %v737_v7, %v689_v35 }
 0x13e   : > { %v1105_v16 = vrot.slane %v977_v12, 1  ;;  %v1025_v6 = vrot.slane %v993_v26, 1  ;;  %v1233_v30 = vmul.f32 0.3333333, %v10837_v58  ;;  %v1249_v39 = vmul.f32 0.6666667, %v10837_v58 }
 0x13f   : > { %v865_v8 = vadd.f32 %v833_v31, %v785_v61  ;;  %v961_v20 = vadd.f32 %v929_v50, %v881_v36  ;;  %v1185_v18 = vrot.slane %v1153_v17, 1  ;;  %v1329_v56 = vmul.f32 0.13333334, %v10837_v58 }
 0x140   : > { %v2805_v47 = vld [vmem:[#allocation2 + $0x139] sm:$0xff]  ;;  %v1137_v1 = vadd.f32 %v1105_v16, %v1073_v14  ;;  %v1281_v37 = vrot.slane %v1249_v39, 1  ;;  %v1409_v23 = vmul.f32 0.39999998, %v10837_v58  ;;  %v1489_v24 = vmul.f32 0.06666667, %v10837_v58 }
 0x141   : > { %v2806_v25 = vld [vmem:[#allocation2 + $0x141] sm:$0xff]  ;;  %v1057_v43 = vadd.f32 %v1025_v6, %v977_v12  ;;  %v1361_v11 = vrot.slane %v1329_v56, 1  ;;  %v1568_v27 = vmul.f32 0.46666664, %v10837_v58  ;;  %v1584_v2 = vmul.f32 0.53333336, %v10837_v58 }
 0x142   : > { %v2824_v19 = vpack.c.bf16 %v2806_v25, %v2805_v47  ;;  %v1217_v54 = vadd.f32 %v1185_v18, %v897_v55  ;;  %v1313_v32 = vadd.f32 %v1281_v37, %v1233_v30  ;;  %v1520_v62 = vrot.slane %v1489_v24, 1 }
 0x143   : > { %v1393_v46 = vadd.f32 %v1361_v11, %v705_v41  ;;  %v1473_v4 = vadd.f32 %v1441_v0, %v1409_v23  ;;  %v1615_v38 = vrot.slane %v1584_v2, 1  ;;  %v1679_v9 = vrot.slane %v482_v60, 7 }
 0x144   : > { %9257 = vmatmul.mubr.msk.bf16.gmra.mrb[24].mxu1 %vm2505_vm0, %v2824_v19  ;;  %v1552_v22 = vadd.f32 %v1520_v62, %v513_v21  ;;  %v1727_v5 = vrot.slane %v577_v45, 6  ;;  %v1775_v3 = vrot.slane %v673_v10, 6  ;;  %v1823_v44 = vrot.slane %v769_v59, 5 }
 0x145   : > { %v1647_v40 = vadd.f32 %v1615_v38, %v1568_v27  ;;  %v1871_v34 = vrot.slane %v865_v8, 5  ;;  %v2015_v33 = vrot.slane %v1137_v1, 3  ;;  %v1919_v53 = vrot.slane %v961_v20, 4 }
 0x146   : > { %v2063_v13 = vrot.slane %v1217_v54, 3  ;;  %v2111_v63 = vrot.slane %v1313_v32, 2  ;;  %v2159_v29 = vrot.slane %v1393_v46, 2  ;;  %v1967_v42 = vrot.slane %v1057_v43, 4 }
 0x147   : > { %v2207_v48 = vrot.slane %v1473_v4, 1  ;;  %v2288_v35 = vsel %vm2274_vm2, %v10837_v58, %v1679_v9  ;;  %v419_v41 = vmul.f32 0.46666667, %v10877_v28  ;;  %v2255_v60 = vrot.slane %v1552_v22, 1 }
 0x148   : > { %v2305_v21 = vsel %vm2291_vm3, %v2288_v35, %v1727_v5  ;;  %v2406_v61 = vsel %vm2274_vm2, %v2015_v33, %v2063_v13  ;;  %v11713_v51 = vmul.f32 0.93333334, %v10877_v28  ;;  %v403_v7 = vmul.f32 0.5333333, %v10877_v28 }
 0x149   : > { %v2322_v36 = vsel %vm2308_vm4, %v2305_v21, %v1775_v3  ;;  %v2422_v45 = vsel %vm2291_vm3, %v2406_v61, %v2111_v63  ;;  %v451_v55 = vrot.slane %v419_v41, 1  ;;  %v610_v31 = vmul.f32 0.4, %v10877_v28 }
 0x14a   : > { %v2339_v12 = vsel %vm2325_vm5, %v2322_v36, %v1823_v44  ;;  %v2438_v10 = vsel %vm2308_vm4, %v2422_v45, %v2159_v29  ;;  %v498_v50 = vmul.f32 0.06666666, %v10877_v28  ;;  %v546_v16 = vrot.slane %v11713_v51, 1 }
 0x14b   : > { %v2356_v26 = vsel %vm2342_vm6, %v2339_v12, %v1871_v34  ;;  %v2454_v14 = vsel %vm2325_vm5, %v2438_v10, %v2207_v48  ;;  %v594_v59 = vmul.f32 0.6, %v10877_v28  ;;  %v642_v6 = vrot.slane %v610_v31, 1 }
 0x14c   : > { %v2373_v17 = vsel %vm2359_vm7, %v2356_v26, %v1919_v53  ;;  %v2470_v0 = vsel %vm2342_vm6, %v2454_v14, %v2255_v60  ;;  %v11730_v8 = vadd.f32 %v451_v55, %v403_v7  ;;  %v706_v20 = vmul.f32 0.8666667, %v10877_v28  ;;  %v5353_v55 = vld [vmem:[#allocation3 + $0x90] sm:$0xff]  ;;  %v5354_v14 = vld [vmem:[#allocation3 + $0x98] sm:$0xff] }
 0x14d   : > { %v2390_v30 = vsel %vm2376_vm8, %v2373_v17, %v1967_v42  ;;  %v2486_v39 = vsel %vm2359_vm7, %v2470_v0, %v1647_v40  ;;  %v690_v56 = vmul.f32 0.13333333, %v10877_v28  ;;  %v786_v47 = vmul.f32 0.6666666, %v10877_v28 }
 0x14e   : > { %v2502_v18 = vsel %vm2376_vm8, %v2486_v39, %v10837_v58  ;;  %2588 = vst.msk [vmem:[#allocation2 + $0x151] sm:$0xff] %vm2505_vm0, %v2390_v30  ;;  %v802_v1 = vmul.f32 0.33333334, %v10877_v28  ;;  %v11740_v37 = vadd.f32 %v546_v16, %v498_v50  ;;  %v738_v23 = vrot.slane %v706_v20, 1  ;;  %v5355_v50 = vld [vmem:[#allocation3 + $0xa8] sm:$0xff]  ;;  %v5356_v16 = vld [vmem:[#allocation3 + $0xb0] sm:$0xff] }
 0x14f   : > { %2589 = vst.msk [vmem:[#allocation2 + $0x159] sm:$0xff] %vm2505_vm0, %v2502_v18  ;;  %v882_v24 = vmul.f32 0.19999999, %v10877_v28  ;;  %v978_v25 = vmul.f32 0.73333335, %v10877_v28  ;;  %v11744_v43 = vadd.f32 %v642_v6, %v594_v59  ;;  %v1442_v32 = vrot.slane %v594_v59, 1 }
 0x150   : > { %v834_v58 = vrot.slane %v802_v1, 1  ;;  %v898_v11 = vmul.f32 0.8, %v10877_v28  ;;  %v994_v27 = vmul.f32 0.26666668, %v10877_v28  ;;  %v1680_v38 = vrot.slane %v11730_v8, 7 }
 0x151   : > { %v1074_v2 = vmul.f32 0.26666665, %v10877_v28  ;;  %v1106_v19 = vrot.slane %v978_v25, 1  ;;  %v1154_v54 = vmul.f32 0.2, %v10877_v28  ;;  %v770_v9 = vadd.f32 %v738_v23, %v690_v56  ;;  %v5357_v18 = vld [vmem:[#allocation3 + $0xc0] sm:$0xff] }
 0x152   : > { %v930_v62 = vrot.slane %v898_v11, 1  ;;  %v1234_v46 = vmul.f32 0.3333333, %v10877_v28  ;;  %v1250_v4 = vmul.f32 0.6666667, %v10877_v28  ;;  %v1026_v22 = vrot.slane %v994_v27, 1 }
 0x153   : > { %v1186_v5 = vrot.slane %v1154_v54, 1  ;;  %v1330_v3 = vmul.f32 0.13333334, %v10877_v28  ;;  %v866_v40 = vadd.f32 %v834_v58, %v786_v47  ;;  %v1410_v34 = vmul.f32 0.39999998, %v10877_v28 }
 0x154   : > { %v1282_v44 = vrot.slane %v1250_v4, 1  ;;  %v1490_v33 = vmul.f32 0.06666667, %v10877_v28  ;;  %v1138_v13 = vadd.f32 %v1106_v19, %v1074_v2  ;;  %v1585_v42 = vmul.f32 0.53333336, %v10877_v28  ;;  %v5360_v4 = vld [vmem:[#allocation3 + $0xe0] sm:$0xff] }
 0x155   : > { %v2807_v53 = vld [vmem:[#allocation2 + $0x151] sm:$0xff]  ;;  %v1218_v63 = vadd.f32 %v1186_v5, %v898_v11  ;;  %v1362_v29 = vrot.slane %v1330_v3, 1  ;;  %v962_v35 = vadd.f32 %v930_v62, %v882_v24  ;;  %v1474_v60 = vadd.f32 %v1442_v32, %v1410_v34  ;;  %v5362_v5 = vld [vmem:[#allocation3 + $0xf8] sm:$0xff] }
 0x156   : > { %v2808_v48 = vld [vmem:[#allocation2 + $0x159] sm:$0xff]  ;;  %v1314_v41 = vadd.f32 %v1282_v44, %v1234_v46  ;;  %v1521_v21 = vrot.slane %v1490_v33, 1  ;;  %v1058_v36 = vadd.f32 %v1026_v22, %v978_v25  ;;  %v1569_v7 = vmul.f32 0.46666664, %v10877_v28  ;;  %v5359_v46 = vld [vmem:[#allocation3 + $0xd8] sm:$0xff] }
 0x157   : > { %v2825_v61 = vpack.c.bf16 %v2808_v48, %v2807_v53  ;;  %v1394_v45 = vadd.f32 %v1362_v29, %v706_v20  ;;  %v1616_v10 = vrot.slane %v1585_v42, 1  ;;  %v1728_v31 = vrot.slane %v11740_v37, 6  ;;  %v5361_v22 = vld [vmem:[#allocation3 + $0xf0] sm:$0xff]  ;;  %v2732_v53 = vld [vmem:[#allocation2 + $0x8] sm:$0xff]  ;;  %v5365_v29 = vld [vmem:[#allocation3 + $0x120] sm:$0xff] }
 0x158   : > { %v1553_v12 = vadd.f32 %v1521_v21, %v11713_v51  ;;  %v1776_v26 = vrot.slane %v11744_v43, 6  ;;  %v1824_v17 = vrot.slane %v770_v9, 5  ;;  %v1872_v0 = vrot.slane %v866_v40, 5  ;;  %v5358_v51 = vld [vmem:[#allocation3 + $0xc8] sm:$0xff]  ;;  %v2731_v33 = vld [vmem:[#allocation2] sm:$0xff] }
 0x159   : > { %9260 = vmatprep.mubr.msk.bf16.mxu1 %vm2505_vm0, %v2825_v61  ;;  %v2016_v59 = vrot.slane %v1138_v13, 3  ;;  %v2064_v6 = vrot.slane %v1218_v63, 3  ;;  %v2112_v30 = vrot.slane %v1314_v41, 2  ;;  %v2160_v39 = vrot.slane %v1394_v45, 2  ;;  %v5363_v13 = vld [vmem:[#allocation3 + $0x108] sm:$0xff]  ;;  %v5364_v63 = vld [vmem:[#allocation3 + $0x110] sm:$0xff] }
 0x15a   : > { %v2208_v8 = vrot.slane %v1474_v60, 1  ;;  %v2256_v20 = vrot.slane %v1553_v12, 1  ;;  %v2289_v56 = vsel %vm2274_vm2, %v10877_v28, %v1680_v38  ;;  %v11765_v1 = vpack.c.bf16 %v5354_v14, %v5353_v55  ;;  %v2733_v61 = vld [vmem:[#allocation2 + $0x18] sm:$0xff]  ;;  %v2735_v45 = vld [vmem:[#allocation2 + $0x30] sm:$0xff]  ;;  %v5367_v55 = vld [vmem:[#allocation3 + $0x138] sm:$0xff] }
 0x15b   : > { %v2407_v47 = vsel %vm2274_vm2, %v2016_v59, %v2064_v6  ;;  %v5380_v37 = vpack.c.bf16 %v5356_v16, %v5355_v50  ;;  %v1648_v23 = vadd.f32 %v1616_v10, %v1569_v7  ;;  %v1920_v24 = vrot.slane %v962_v35, 4  ;;  %v2736_v7 = vld [vmem:[#allocation2 + $0x38] sm:$0xff]  ;;  %v5368_v12 = vld [vmem:[#allocation3 + $0x140] sm:$0xff]  ;;  %v2739_v6 = vld [vmem:[#allocation2 + $0x60] sm:$0xff] }
 0x15c   : > { %v2306_v25 = vsel %vm2291_vm3, %v2289_v56, %v1728_v31  ;;  %v2423_v43 = vsel %vm2291_vm3, %v2407_v47, %v2112_v30  ;;  %v1968_v58 = vrot.slane %v1058_v36, 4  ;;  %9550 = vmatprep.mubr.msk.bf16.mxu0 %vm2505_vm0, %v11765_v1  ;;  %v11773_v2 = vpack.c.bf16 %v5358_v51, %v5357_v18  ;;  %v2734_v36 = vld [vmem:[#allocation2 + $0x20] sm:$0xff]  ;;  %v11816_v16 = vld [vmem:[%s12878_s2 + $0x18] sm:$0xff]   ;;  %v2738_v59 = vld [vmem:[#allocation2 + $0x50] sm:$0xff] }
 0x15d   : > { %v2323_v11 = vsel %vm2308_vm4, %v2306_v25, %v1776_v26  ;;  %v2439_v27 = vsel %vm2308_vm4, %v2423_v43, %v2160_v39  ;;  %9551 = vmatmul.mubr.msk.bf16.gmra.mrb[12].mxu0 %vm2505_vm0, %v5380_v37  ;;  %v11789_v44 = vpack.c.bf16 %v5360_v4, %v5359_v46  ;;  %v11791_v34 = vpack.c.bf16 %v5362_v5, %v5361_v22  ;;  %v5369_v31 = vld [vmem:[#allocation3 + $0x150] sm:$0xff]  ;;  %v5370_v26 = vld [vmem:[#allocation3 + $0x158] sm:$0xff]  ;;  %v5371_v39 = vld [vmem:[#allocation3 + $0x168] sm:$0xff] }
 0x15e   : > { %v2340_v19 = vsel %vm2325_vm5, %v2323_v11, %v1824_v17  ;;  %v2455_v54 = vsel %vm2325_vm5, %v2439_v27, %v2208_v8  ;;  %9554 = vmatprep.mubr.msk.bf16.mxu0 %vm2505_vm0, %v11773_v2  ;;  %v2763_v35 = vpack.c.bf16 %v2732_v53, %v2731_v33  ;;  %v11797_v60 = vpack.c.bf16 %v5364_v63, %v5363_v13  ;;  %v2740_v30 = vld [vmem:[#allocation2 + $0x68] sm:$0xff]  ;;  %v5372_v8 = vld [vmem:[#allocation3 + $0x170] sm:$0xff]  ;;  %v5636_v18 = vld [vmem:[#allocation3 + $0x1] sm:$0xff] }
 0x15f   : > { %v2357_v32 = vsel %vm2342_vm6, %v2340_v19, %v1872_v0  ;;  %v2471_v62 = vsel %vm2342_vm6, %v2455_v54, %v2256_v20  ;;  %v11807_v10 = vpack.c.bf16 %v2734_v36, %v2733_v61  ;;  %v11809_v14 = vpack.c.bf16 %v2736_v7, %v2735_v45  ;;  %v2737_v0 = vld [vmem:[#allocation2 + $0x48] sm:$0xff]  ;;  %v5637_v51 = vld [vmem:[#allocation3 + $0x9] sm:$0xff]  ;;  %v5644_v33 = vld [vmem:[#allocation3 + $0x61] sm:$0xff] }
 0x160   : > { %v2374_v38 = vsel %vm2359_vm7, %v2357_v32, %v1920_v24  ;;  %v2487_v9 = vsel %vm2359_vm7, %v2471_v62, %v1648_v23  ;;  %v11811_v50 = vpack.c.bf16 %v5368_v12, %v5367_v55  ;;  %v11818_v17 = vpack.c.bf16 %v5370_v26, %v5369_v31  ;;  %v2741_v37 = vld [vmem:[#allocation2 + $0x78] sm:$0xff]  ;;  %v2742_v23 = vld [vmem:[#allocation2 + $0x80] sm:$0xff]  ;;  %v2743_v24 = vld [vmem:[#allocation2 + $0x90] sm:$0xff] }
 0x161   : > { %v2391_v3 = vsel %vm2376_vm8, %v2374_v38, %v1968_v58  ;;  %v2503_v40 = vsel %vm2376_vm8, %v2487_v9, %v10877_v28  ;;  %v5366_v28 = vld [vmem:[#allocation3 + $0x128] sm:$0xff]  ;;  %v11830_v20 = vpack.c.bf16 %v2738_v59, %v2737_v0  ;;  %v11832_v56 = vpack.c.bf16 %v2740_v30, %v2739_v6  ;;  %v5638_v43 = vld [vmem:[#allocation3 + $0x19] sm:$0xff]  ;;  %v5640_v27 = vld [vmem:[#allocation3 + $0x31] sm:$0xff] }
 0x162   : > { %2590 = vst.msk [vmem:[#allocation2 + $0x169] sm:$0xff] %vm2505_vm0, %v2391_v3  ;;  %2591 = vst.msk [vmem:[#allocation2 + $0x171] sm:$0xff] %vm2505_vm0, %v2503_v40  ;;  %v11799_v21 = vpack.c.bf16 %v5366_v28, %v5365_v29  ;;  %v11834_v47 = vpack.c.bf16 %v5372_v8, %v5371_v39  ;;  %v2744_v25 = vld [vmem:[#allocation2 + $0x98] sm:$0xff]  ;;  %v11843_v11 = vpack.c.bf16 %v2742_v23, %v2741_v37  ;;  %v5641_v19 = vld [vmem:[#allocation3 + $0x39] sm:$0xff] }
 0x163   : > { %12901 = vst [vmem:[#allocation4_spill] sm:$0xff] %v11818_v17  ;;  %v5639_v58 = vld [vmem:[#allocation3 + $0x21] sm:$0xff]  ;;  %v11845_v54 = vpack.c.bf16 %v2744_v25, %v2743_v24  ;;  %v11849_v62 = vpack.c.bf16 %v5641_v19, %v5640_v27  ;;  %v2745_v4 = vld [vmem:[#allocation2 + $0xa8] sm:$0xff]  ;;  %v2747_v9 = vld [vmem:[#allocation2 + $0xc0] sm:$0xff] }
 0x164   : > { %12902 = vst [vmem:[#allocation5_spill] sm:$0xff] %v11834_v47  ;;  %v11847_v32 = vpack.c.bf16 %v5639_v58, %v5638_v43  ;;  %v11856_v46 = vld [vmem:[%s12879_s3 + $0x18] sm:$0xff]   ;;  %v2746_v38 = vld [vmem:[#allocation2 + $0xb0] sm:$0xff]  ;;  %v2748_v22 = vld [vmem:[#allocation2 + $0xc8] sm:$0xff] }
 0x165   : > { %9555 = vmatmul.mubr.msk.bf16.gmra.mrb[16].mxu0 %vm2505_vm0, %v11789_v44  ;;  %12904 = vst [vmem:[#allocation7_spill] sm:$0xff] %v11849_v62  ;;  %v5642_v5 = vld [vmem:[#allocation3 + $0x49] sm:$0xff]  ;;  %v5643_v3 = vld [vmem:[#allocation3 + $0x51] sm:$0xff]  ;;  %v11865_v40 = vpack.c.bf16 %v2746_v38, %v2745_v4  ;;  %v11868_v13 = vpack.c.bf16 %v2748_v22, %v2747_v9  ;;  %v2754_v45 = vld [vmem:[#allocation2 + $0x110] sm:$0xff] }
 0x166   : > { %9558 = vmatprep.mubr.msk.bf16.mxu0 %vm2505_vm0, %v11791_v34  ;;  %12903 = vst [vmem:[#allocation6_spill] sm:$0xff] %v11847_v32  ;;  %v5645_v53 = vld [vmem:[#allocation3 + $0x69] sm:$0xff]  ;;  %v11870_v63 = vpack.c.bf16 %v5643_v3, %v5642_v5  ;;  %v2753_v36 = vld [vmem:[#allocation2 + $0x108] sm:$0xff]  ;;  %v2759_v30 = vld [vmem:[#allocation2 + $0x150] sm:$0xff] }
 0x167   : > { %v11872_v29 = vpack.c.bf16 %v5645_v53, %v5644_v33  ;;  %v2750_v28 = vld [vmem:[#allocation2 + $0xe0] sm:$0xff]  ;;  %v5649_v55 = vld [vmem:[#allocation3 + $0x99] sm:$0xff]  ;;  %v2757_v0 = vld [vmem:[#allocation2 + $0x138] sm:$0xff]  ;;  %v11902_v27 = vpack.c.bf16 %v2754_v45, %v2753_v36 }
 0x168   : > { %12905 = vst [vmem:[#allocation8_spill] sm:$0xff] %v11870_v63  ;;  %v5648_v7 = vld [vmem:[#allocation3 + $0x91] sm:$0xff]  ;;  %v2760_v39 = vld [vmem:[#allocation2 + $0x158] sm:$0xff]  ;;  %v5654_v25 = vld [vmem:[#allocation3 + $0xd9] sm:$0xff] }
 0x169   : > { %v2809_v42 = vld [vmem:[#allocation2 + $0x169] sm:$0xff]  ;;  %v2810_v48 = vld [vmem:[#allocation2 + $0x171] sm:$0xff]  ;;  %12906 = vst [vmem:[#allocation9_spill] sm:$0xff] %v11872_v29  ;;  %v2755_v31 = vld [vmem:[#allocation2 + $0x120] sm:$0xff]  ;;  %v11888_v8 = vpack.c.bf16 %v5649_v55, %v5648_v7  ;;  %v11908_v38 = vpack.c.bf16 %v2760_v39, %v2759_v30 }
 0x16a   : > { %v2826_v41 = vpack.c.bf16 %v2810_v48, %v2809_v42  ;;  %v2751_v42 = vld [vmem:[#allocation2 + $0xf0] sm:$0xff]  ;;  %v2752_v48 = vld [vmem:[#allocation2 + $0xf8] sm:$0xff]  ;;  %v2756_v26 = vld [vmem:[#allocation2 + $0x128] sm:$0xff] }
 0x16b   : > { %v11884_v12 = vpack.c.bf16 %v2752_v48, %v2751_v42  ;;  %v2758_v59 = vld [vmem:[#allocation2 + $0x140] sm:$0xff]  ;;  %12908 = vst [vmem:[#allocation11_spill] sm:$0xff] %v11888_v8  ;;  %v11891_v37 = vld [vmem:[%s10787_s17 + $0x38] sm:$0xff]  ;;  %v11904_v19 = vpack.c.bf16 %v2756_v26, %v2755_v31  ;;  %v5657_v5 = vld [vmem:[#allocation3 + $0xf9] sm:$0xff] }
 0x16c   : > { %9261 = vmatmul.mubr.msk.bf16.gmra.mrb[28].mxu1 %vm2505_vm0, %v2826_v41  ;;  %v5647_v41 = vld [vmem:[#allocation3 + $0x81] sm:$0xff]  ;;  %v420_v23 = vmul.f32 0.46666667, %v11891_v37  ;;  %v5653_v24 = vld [vmem:[#allocation3 + $0xc9] sm:$0xff]  ;;  %v515_v43 = vmul.f32 0.93333334, %v11891_v37  ;;  %v11906_v4 = vpack.c.bf16 %v2758_v59, %v2757_v0 }
 0x16d   : > { %9266 = vmatprep.mubr.msk.bf16.mxu1 %vm2505_vm0, %v2763_v35  ;;  %9559 = vmatmul.mubr.msk.bf16.gmra.mrb[20].mxu0 %vm2505_vm0, %v11797_v60  ;;  %v5646_v35 = vld [vmem:[#allocation3 + $0x79] sm:$0xff]  ;;  %v11898_v58 = vmul.f32 0.73333335, %v11891_v37  ;;  %v5655_v9 = vld [vmem:[#allocation3 + $0xe1] sm:$0xff]  ;;  %v5656_v22 = vld [vmem:[#allocation3 + $0xf1] sm:$0xff] }
 0x16e   : > { %9562 = vmatprep.mubr.msk.bf16.mxu0 %vm2505_vm0, %v11799_v21  ;;  %v11886_v6 = vpack.c.bf16 %v5647_v41, %v5646_v35  ;;  %v404_v33 = vmul.f32 0.5333333, %v11891_v37  ;;  %v499_v53 = vmul.f32 0.06666666, %v11891_v37  ;;  %v547_v42 = vrot.slane %v515_v43, 1 }
 0x16f   : > { %v611_v48 = vmul.f32 0.4, %v11891_v37  ;;  %v707_v35 = vmul.f32 0.8666667, %v11891_v37  ;;  %v803_v36 = vmul.f32 0.33333334, %v11891_v37  ;;  %v11926_v55 = vpack.c.bf16 %v5655_v9, %v5654_v25 }
 0x170   : > { %12907 = vst [vmem:[#allocation10_spill] sm:$0xff] %v11886_v6  ;;  %v1075_v45 = vmul.f32 0.26666665, %v11891_v37  ;;  %v1107_v7 = vrot.slane %v11898_v58, 1  ;;  %v595_v31 = vmul.f32 0.6, %v11891_v37  ;;  %v11930_v59 = vpack.c.bf16 %v5657_v5, %v5656_v22 }
 0x171   : > { %v643_v26 = vrot.slane %v611_v48, 1  ;;  %v691_v0 = vmul.f32 0.13333333, %v11891_v37  ;;  %v739_v30 = vrot.slane %v707_v35, 1  ;;  %v899_v39 = vmul.f32 0.8, %v11891_v37 }
 0x172   : > { %v835_v25 = vrot.slane %v803_v36, 1  ;;  %v883_v9 = vmul.f32 0.19999999, %v11891_v37  ;;  %v1235_v5 = vmul.f32 0.3333333, %v11891_v37  ;;  %v1443_v36 = vrot.slane %v595_v31, 1 }
 0x173   : > { %v931_v48 = vrot.slane %v899_v39, 1  ;;  %v675_v22 = vadd.f32 %v643_v26, %v595_v31  ;;  %v1570_v31 = vmul.f32 0.46666664, %v11891_v37 }
 0x174   : > { %9267 = vmatmul.mubr.msk.bf16.vlgmr.msra.gmra.mrb[0].mxu1 %vm2505_vm0, %v11807_v10 }
 0x175   : > { %9270 = vmatprep.mubr.msk.bf16.mxu1 %vm2505_vm0, %v11809_v14  ;;  %9299 = vmatpush3.bf16.msra.mxu1 %v11654_v57  ;;  %v5668_v57 = vpack.c.bf16 %v5637_v51, %v5636_v18  ;;  %v5650_v18 = vld [vmem:[#allocation3 + $0xa9] sm:$0xff]  ;;  %v5651_v51 = vld [vmem:[#allocation3 + $0xb1] sm:$0xff] }
 0x176   : > { %9563 = vmatmul.mubr.msk.bf16.gmra.mrb[24].mxu0 %vm2505_vm0, %v11811_v50  ;;  %9332 = vmatprep.subr.bf16.mxu1 %v11816_v16  ;;  %v11912_v3 = vpack.c.bf16 %v5651_v51, %v5650_v18  ;;  %v995_v18 = vmul.f32 0.26666668, %v11891_v37 }
 0x177   : > { %9566 = vmatprep.mubr.msk.bf16.mxu0 %vm2505_vm0, %v11818_v17 }
 0x178   : > { %12909 = vst [vmem:[#allocation12_spill] sm:$0xff] %v11912_v3 }
 0x17c   : > { %9271 = vmatmul.mubr.msk.bf16.gmra.mrb[4].mxu1 %vm2505_vm0, %v11830_v20 }
 0x17d   : > { %9274 = vmatprep.mubr.msk.bf16.mxu1 %vm2505_vm0, %v11832_v56 }
 0x17e   : > { %9567 = vmatmul.mubr.msk.bf16.gmra.mrb[28].mxu0 %vm2505_vm0, %v11834_v47 }
 0x17f   : > { %9572 = vmatprep.mubr.msk.bf16.mxu0 %vm2505_vm0, %v5668_v57  ;;  %v5652_v57 = vld [vmem:[#allocation3 + $0xc1] sm:$0xff] }
 0x180   : > { %v11921_v41 = vpack.c.bf16 %v5653_v24, %v5652_v57  ;;  %v579_v57 = vadd.f32 %v547_v42, %v499_v53  ;;  %v1331_v53 = vmul.f32 0.13333334, %v11891_v37  ;;  %v1411_v42 = vmul.f32 0.39999998, %v11891_v37 }
 0x182   : > { %12910 = vst [vmem:[#allocation13_spill] sm:$0xff] %v11921_v41  ;;  %v1363_v26 = vrot.slane %v1331_v53, 1 }
 0x184   : > { %9275 = vmatmul.mubr.msk.bf16.gmra.mrb[8].mxu1 %vm2505_vm0, %v11843_v11  ;;  %v1395_v17 = vadd.f32 %v1363_v26, %v707_v35 }
 0x185   : > { %9278 = vmatprep.mubr.msk.bf16.mxu1 %vm2505_vm0, %v11845_v54 }
 0x186   : > { %9573 = vmatmul.mubr.msk.bf16.vlgmr.msra.gmra.mrb[0].mxu0 %vm2505_vm0, %v11847_v32 }
 0x187   : > { %9605 = vmatpush3.bf16.msra.mxu0 %v11589_v15  ;;  %9576 = vmatprep.mubr.msk.bf16.mxu0 %vm2505_vm0, %v11849_v62  ;;  %v2749_v15 = vld [vmem:[#allocation2 + $0xd8] sm:$0xff]  ;;  %v1475_v62 = vadd.f32 %v1443_v36, %v1411_v42 }
 0x188   : > { %9638 = vmatprep.subr.bf16.mxu0 %v11856_v46  ;;  %v11882_v61 = vpack.c.bf16 %v2750_v28, %v2749_v15  ;;  %v1155_v15 = vmul.f32 0.2, %v11891_v37  ;;  %v452_v28 = vrot.slane %v420_v23, 1  ;;  %v787_v23 = vmul.f32 0.6666666, %v11891_v37 }
 0x18a   : > { %v484_v51 = vadd.f32 %v452_v28, %v404_v33  ;;  %v1187_v24 = vrot.slane %v1155_v15, 1  ;;  %v1251_v33 = vmul.f32 0.6666667, %v11891_v37  ;;  %v771_v15 = vadd.f32 %v739_v30, %v691_v0 }
 0x18b   : > { %v1027_v28 = vrot.slane %v995_v18, 1  ;;  %v1729_v0 = vrot.slane %v579_v57, 6  ;;  %v1617_v18 = vrot.slane %v10827_v52, 1  ;;  %v3257_v57 = vld [vmem:[#allocation2 + $0x2] sm:$0xff] }
 0x18c   : > { %9279 = vmatmul.mubr.msk.bf16.gmra.mrb[12].mxu1 %vm2505_vm0, %v11865_v40  ;;  %v1681_v32 = vrot.slane %v484_v51, 7  ;;  %v2161_v51 = vrot.slane %v1395_v17, 2 }
 0x18d   : > { %9282 = vmatprep.mubr.msk.bf16.mxu1 %vm2505_vm0, %v11868_v13  ;;  %v1059_v30 = vadd.f32 %v1027_v28, %v11898_v58  ;;  %v2762_v58 = vld [vmem:[#allocation2 + $0x170] sm:$0xff]  ;;  %v1649_v17 = vadd.f32 %v1617_v18, %v1570_v31  ;;  %v3259_v18 = vld [vmem:[#allocation2 + $0x1a] sm:$0xff] }
 0x18e   : > { %9577 = vmatmul.mubr.msk.bf16.gmra.mrb[4].mxu0 %vm2505_vm0, %v11870_v63  ;;  %v963_v63 = vadd.f32 %v931_v48, %v883_v9 }
 0x18f   : > { %9580 = vmatprep.mubr.msk.bf16.mxu0 %vm2505_vm0, %v11872_v29  ;;  %v867_v29 = vadd.f32 %v835_v25, %v787_v23  ;;  %v2209_v23 = vrot.slane %v1475_v62, 1  ;;  %v3258_v25 = vld [vmem:[#allocation2 + $0xa] sm:$0xff]  ;;  %v1969_v62 = vrot.slane %v1059_v30, 4 }
 0x190   : > { %v1921_v52 = vrot.slane %v963_v63, 4  ;;  %v5658_v63 = vld [vmem:[#allocation3 + $0x109] sm:$0xff] }
 0x194   : > { %9283 = vmatmul.mubr.msk.bf16.gmra.mrb[16].mxu1 %vm2505_vm0, %v11882_v61 }
 0x195   : > { %9286 = vmatprep.mubr.msk.bf16.mxu1 %vm2505_vm0, %v11884_v12 }
 0x196   : > { %9581 = vmatmul.mubr.msk.bf16.gmra.mrb[8].mxu0 %vm2505_vm0, %v11886_v6  ;;  %v1522_v6 = vrot.slane %v10821_v49, 1  ;;  %v1873_v49 = vrot.slane %v867_v29, 5 }
 0x197   : > { %9584 = vmatprep.mubr.msk.bf16.mxu0 %vm2505_vm0, %v11888_v8  ;;  %v1139_v8 = vadd.f32 %v1107_v7, %v1075_v45  ;;  %v1219_v45 = vadd.f32 %v1187_v24, %v899_v39  ;;  %v1283_v7 = vrot.slane %v1251_v33, 1  ;;  %v1825_v39 = vrot.slane %v771_v15, 5  ;;  %v5661_v15 = vld [vmem:[#allocation3 + $0x129] sm:$0xff] }
 0x199   : > { %v1315_v47 = vadd.f32 %v1283_v7, %v1235_v5  ;;  %v2017_v24 = vrot.slane %v1139_v8, 3  ;;  %v2065_v33 = vrot.slane %v1219_v45, 3  ;;  %v5660_v5 = vld [vmem:[#allocation3 + $0x121] sm:$0xff] }
 0x19a   : > { %v11978_v30 = vpack.c.bf16 %v5661_v15, %v5660_v5  ;;  %v3269_v5 = vld [vmem:[#allocation2 + $0x92] sm:$0xff]  ;;  %v3270_v15 = vld [vmem:[#allocation2 + $0x9a] sm:$0xff] }
 0x19b   : > { %v2113_v53 = vrot.slane %v1315_v47, 2  ;;  %v2408_v47 = vsel %vm2274_vm2, %v2017_v24, %v2065_v33  ;;  %v3261_v24 = vld [vmem:[#allocation2 + $0x32] sm:$0xff]  ;;  %v3262_v33 = vld [vmem:[#allocation2 + $0x3a] sm:$0xff] }
 0x19c   : > { %9287 = vmatmul.mubr.msk.bf16.gmra.mrb[20].mxu1 %vm2505_vm0, %v11902_v27 }
 0x19d   : > { %9290 = vmatprep.mubr.msk.bf16.mxu1 %vm2505_vm0, %v11904_v19  ;;  %v2424_v29 = vsel %vm2291_vm3, %v2408_v47, %v2113_v53  ;;  %v5663_v53 = vld [vmem:[#allocation3 + $0x141] sm:$0xff]  ;;  %v3265_v47 = vld [vmem:[#allocation2 + $0x62] sm:$0xff] }
 0x19e   : > { %9585 = vmatmul.mubr.msk.bf16.gmra.mrb[12].mxu0 %vm2505_vm0, %v11912_v3  ;;  %v1554_v3 = vadd.f32 %v1522_v6, %v515_v43  ;;  %v2290_v6 = vsel %vm2274_vm2, %v11891_v37, %v1681_v32  ;;  %v2761_v43 = vld [vmem:[#allocation2 + $0x168] sm:$0xff]  ;;  %v2440_v48 = vsel %vm2308_vm4, %v2424_v29, %v2161_v51  ;;  %v5932_v29 = vld [vmem:[#allocation3 + $0xa] sm:$0xff] }
 0x19f   : > { %9588 = vmatprep.mubr.msk.bf16.mxu0 %vm2505_vm0, %v11921_v41  ;;  %v1777_v41 = vrot.slane %v675_v22, 6  ;;  %v2307_v8 = vsel %vm2291_vm3, %v2290_v6, %v1729_v0  ;;  %v11968_v22 = vpack.c.bf16 %v2762_v58, %v2761_v43  ;;  %v2456_v42 = vsel %vm2325_vm5, %v2440_v48, %v2209_v23  ;;  %v5664_v51 = vld [vmem:[#allocation3 + $0x151] sm:$0xff]  ;;  %v5665_v23 = vld [vmem:[#allocation3 + $0x159] sm:$0xff] }
 0x1a0   : > { %v2257_v35 = vrot.slane %v1554_v3, 1  ;;  %v5659_v3 = vld [vmem:[#allocation3 + $0x111] sm:$0xff]  ;;  %v11993_v6 = vpack.c.bf16 %v3262_v33, %v3261_v24  ;;  %v3272_v24 = vld [vmem:[#allocation2 + $0xb2] sm:$0xff] }
 0x1a1   : > { %v2324_v32 = vsel %vm2308_vm4, %v2307_v8, %v1777_v41  ;;  %v3289_v41 = vpack.c.bf16 %v3258_v25, %v3257_v57  ;;  %v11974_v7 = vpack.c.bf16 %v5659_v3, %v5658_v63  ;;  %v12000_v58 = vld [vmem:[%s12878_s2 + $0x20] sm:$0xff]   ;;  %v3264_v8 = vld [vmem:[#allocation2 + $0x52] sm:$0xff]  ;;  %v3266_v57 = vld [vmem:[#allocation2 + $0x6a] sm:$0xff] }
 0x1a2   : > { %v2341_v9 = vsel %vm2325_vm5, %v2324_v32, %v1825_v39  ;;  %v2472_v45 = vsel %vm2342_vm6, %v2456_v42, %v2257_v35  ;;  %v3260_v39 = vld [vmem:[#allocation2 + $0x22] sm:$0xff]  ;;  %v3263_v35 = vld [vmem:[#allocation2 + $0x4a] sm:$0xff]  ;;  %v5666_v25 = vld [vmem:[#allocation3 + $0x169] sm:$0xff]  ;;  %v12016_v63 = vpack.c.bf16 %v3266_v57, %v3265_v47 }
 0x1a3   : > { %v2358_v28 = vsel %vm2342_vm6, %v2341_v9, %v1873_v49  ;;  %v2488_v0 = vsel %vm2359_vm7, %v2472_v45, %v1649_v17  ;;  %v11991_v49 = vpack.c.bf16 %v3260_v39, %v3259_v18  ;;  %v5667_v17 = vld [vmem:[#allocation3 + $0x171] sm:$0xff]  ;;  %v5931_v32 = vld [vmem:[#allocation3 + $0x2] sm:$0xff]  ;;  %v5936_v45 = vld [vmem:[#allocation3 + $0x3a] sm:$0xff] }
 0x1a4   : > { %9291 = vmatmul.mubr.msk.bf16.gmra.mrb[24].mxu1 %vm2505_vm0, %v11906_v4  ;;  %v2375_v36 = vsel %vm2359_vm7, %v2358_v28, %v1921_v52  ;;  %v2504_v31 = vsel %vm2376_vm8, %v2488_v0, %v11891_v37  ;;  %v5662_v37 = vld [vmem:[#allocation3 + $0x139] sm:$0xff]  ;;  %v12002_v52 = vpack.c.bf16 %v5665_v23, %v5664_v51  ;;  %v12018_v3 = vpack.c.bf16 %v5667_v17, %v5666_v25  ;;  %v3267_v9 = vld [vmem:[#allocation2 + $0x7a] sm:$0xff]  ;;  %v5934_v42 = vld [vmem:[#allocation3 + $0x22] sm:$0xff] }
 0x1a5   : > { %9294 = vmatprep.mubr.msk.bf16.mxu1 %vm2505_vm0, %v11908_v38  ;;  %v2392_v26 = vsel %vm2376_vm8, %v2375_v36, %v1969_v62  ;;  %2593 = vst.msk [vmem:[#allocation2 + $0x189] sm:$0xff] %vm2505_vm0, %v2504_v31  ;;  %v11995_v43 = vpack.c.bf16 %v5663_v53, %v5662_v37  ;;  %v12014_v62 = vpack.c.bf16 %v3264_v8, %v3263_v35  ;;  %v3268_v48 = vld [vmem:[#allocation2 + $0x82] sm:$0xff]  ;;  %v5933_v28 = vld [vmem:[#allocation3 + $0x1a] sm:$0xff]  ;;  %v2625_v51 = vld [vmem:[%s11007_s21 + $0xf8] sm:$0xff] }
 0x1a6   : > { %9589 = vmatmul.mubr.msk.bf16.gmra.mrb[16].mxu0 %vm2505_vm0, %v11926_v55  ;;  %2592 = vst.msk [vmem:[#allocation2 + $0x181] sm:$0xff] %vm2505_vm0, %v2392_v26  ;;  %v5935_v36 = vld [vmem:[#allocation3 + $0x32] sm:$0xff]  ;;  %v12029_v26 = vpack.c.bf16 %v3270_v15, %v3269_v5  ;;  %v12031_v0 = vpack.c.bf16 %v5934_v42, %v5933_v28  ;;  %v3271_v39 = vld [vmem:[#allocation2 + $0xaa] sm:$0xff]  ;;  %v5937_v23 = vld [vmem:[#allocation3 + $0x4a] sm:$0xff] }
 0x1a7   : > { %9592 = vmatprep.mubr.msk.bf16.mxu0 %vm2505_vm0, %v11930_v59  ;;  %v12033_v31 = vpack.c.bf16 %v5936_v45, %v5935_v36  ;;  %v12040_v18 = vld [vmem:[%s12879_s3 + $0x20] sm:$0xff]   ;;  %v3274_v37 = vld [vmem:[#allocation2 + $0xca] sm:$0xff]  ;;  %2712 = vst.msk [vmem:[#allocation3 + $0x189] sm:$0xff] %vm2505_vm0, %v2625_v51  ;;  %v12053_v8 = vpack.c.bf16 %v3272_v24, %v3271_v39  ;;  %v5939_v47 = vld [vmem:[#allocation3 + $0x62] sm:$0xff] }
 0x1a8   : > { %v3273_v33 = vld [vmem:[#allocation2 + $0xc2] sm:$0xff]  ;;  %v2624_v53 = vld [vmem:[%s11007_s21 + $0xf0] sm:$0xff]  ;;  %v5940_v57 = vld [vmem:[#allocation3 + $0x6a] sm:$0xff] }
 0x1a9   : > { %v5938_v35 = vld [vmem:[#allocation3 + $0x52] sm:$0xff]  ;;  %2711 = vst.msk [vmem:[#allocation3 + $0x181] sm:$0xff] %vm2505_vm0, %v2624_v53  ;;  %v12056_v25 = vpack.c.bf16 %v3274_v37, %v3273_v33  ;;  %v5942_v5 = vld [vmem:[#allocation3 + $0x82] sm:$0xff]  ;;  %v5944_v42 = vld [vmem:[#allocation3 + $0x9a] sm:$0xff] }
 0x1aa   : > { %v12058_v17 = vpack.c.bf16 %v5938_v35, %v5937_v23  ;;  %v5943_v28 = vld [vmem:[#allocation3 + $0x92] sm:$0xff]  ;;  %v3279_v24 = vld [vmem:[#allocation2 + $0x10a] sm:$0xff]  ;;  %v3280_v33 = vld [vmem:[#allocation2 + $0x112] sm:$0xff] }
 0x1ab   : > { %v12076_v39 = vpack.c.bf16 %v5944_v42, %v5943_v28  ;;  %v3281_v37 = vld [vmem:[#allocation2 + $0x122] sm:$0xff]  ;;  %v3282_v53 = vld [vmem:[#allocation2 + $0x12a] sm:$0xff]  ;;  %v5945_v51 = vld [vmem:[#allocation3 + $0xaa] sm:$0xff]  ;;  %v12086_v35 = vpack.c.bf16 %v3280_v33, %v3279_v24 }
 0x1ac   : > { %9295 = vmatmul.mubr.msk.bf16.gmra.mrb[28].mxu1 %vm2505_vm0, %v11968_v22  ;;  %v5946_v23 = vld [vmem:[#allocation3 + $0xb2] sm:$0xff]  ;;  %v3286_v28 = vld [vmem:[#allocation2 + $0x15a] sm:$0xff]  ;;  %v5949_v42 = vld [vmem:[#allocation3 + $0xda] sm:$0xff] }
 0x1ad   : > { %9300 = vmatprep.mubr.msk.bf16.mxu1 %vm2505_vm0, %v3289_v41  ;;  %v12027_v41 = vpack.c.bf16 %v3268_v48, %v3267_v9  ;;  %v3278_v9 = vld [vmem:[#allocation2 + $0xfa] sm:$0xff]  ;;  %v5941_v48 = vld [vmem:[#allocation3 + $0x7a] sm:$0xff]  ;;  %v5950_v24 = vld [vmem:[#allocation3 + $0xe2] sm:$0xff] }
 0x1ae   : > { %9593 = vmatmul.mubr.msk.bf16.gmra.mrb[20].mxu0 %vm2505_vm0, %v11974_v7  ;;  %v12074_v45 = vpack.c.bf16 %v5942_v5, %v5941_v48  ;;  %v3284_v48 = vld [vmem:[#allocation2 + $0x142] sm:$0xff]  ;;  %v3285_v5 = vld [vmem:[#allocation2 + $0x152] sm:$0xff] }
 0x1af   : > { %9596 = vmatprep.mubr.msk.bf16.mxu0 %vm2505_vm0, %v11978_v30 }
 0x1b4   : > { %9301 = vmatmul.mubr.msk.bf16.vlgmr.msra.gmra.mrb[0].mxu1 %vm2505_vm0, %v11991_v49 }
 0x1b5   : > { %9304 = vmatprep.mubr.msk.bf16.mxu1 %vm2505_vm0, %v11993_v6  ;;  %9333 = vmatpush3.bf16.msra.mxu1 %v11816_v16  ;;  %v5963_v16 = vpack.c.bf16 %v5932_v29, %v5931_v32  ;;  %v3275_v32 = vld [vmem:[#allocation2 + $0xda] sm:$0xff]  ;;  %v3276_v29 = vld [vmem:[#allocation2 + $0xe2] sm:$0xff] }
 0x1b6   : > { %9597 = vmatmul.mubr.msk.bf16.gmra.mrb[24].mxu0 %vm2505_vm0, %v11995_v43  ;;  %9366 = vmatprep.subr.bf16.mxu1 %v12000_v58  ;;  %v12070_v15 = vpack.c.bf16 %v3276_v29, %v3275_v32  ;;  %v12088_v32 = vpack.c.bf16 %v3282_v53, %v3281_v37  ;;  %v12090_v29 = vpack.c.bf16 %v5946_v23, %v5945_v51  ;;  %v5951_v37 = vld [vmem:[#allocation3 + $0xf2] sm:$0xff]  ;;  %v5952_v53 = vld [vmem:[#allocation3 + $0xfa] sm:$0xff] }
 0x1b7   : > { %9600 = vmatprep.mubr.msk.bf16.mxu0 %vm2505_vm0, %v12002_v52  ;;  %v12104_v51 = vpack.c.bf16 %v3286_v28, %v3285_v5  ;;  %v12106_v23 = vpack.c.bf16 %v5950_v24, %v5949_v42  ;;  %v5955_v28 = vld [vmem:[#allocation3 + $0x122] sm:$0xff]  ;;  %v5956_v42 = vld [vmem:[#allocation3 + $0x12a] sm:$0xff] }
 0x1bc   : > { %9305 = vmatmul.mubr.msk.bf16.gmra.mrb[4].mxu1 %vm2505_vm0, %v12014_v62 }
 0x1bd   : > { %9308 = vmatprep.mubr.msk.bf16.mxu1 %vm2505_vm0, %v12016_v63 }
 0x1be   : > { %9601 = vmatmul.mubr.msk.bf16.gmra.mrb[28].mxu0 %vm2505_vm0, %v12018_v3 }
 0x1bf   : > { %9606 = vmatprep.mubr.msk.bf16.mxu0 %vm2505_vm0, %v5963_v16  ;;  %v3277_v16 = vld [vmem:[#allocation2 + $0xf2] sm:$0xff] }
 0x1c0   : > { %v12072_v36 = vpack.c.bf16 %v3278_v9, %v3277_v16  ;;  %v3283_v9 = vld [vmem:[#allocation2 + $0x13a] sm:$0xff] }
 0x1c1   : > { %v12102_v33 = vpack.c.bf16 %v3284_v48, %v3283_v9  ;;  %v5953_v9 = vld [vmem:[#allocation3 + $0x10a] sm:$0xff]  ;;  %v5954_v48 = vld [vmem:[#allocation3 + $0x112] sm:$0xff] }
 0x1c2   : > { %v12120_v24 = vpack.c.bf16 %v5954_v48, %v5953_v9  ;;  %v12137_v48 = vld [vmem:[%s12878_s2 + $0x28] sm:$0xff]  }
 0x1c4   : > { %9309 = vmatmul.mubr.msk.bf16.gmra.mrb[8].mxu1 %vm2505_vm0, %v12027_v41 }
 0x1c5   : > { %9312 = vmatprep.mubr.msk.bf16.mxu1 %vm2505_vm0, %v12029_v26 }
 0x1c6   : > { %9607 = vmatmul.mubr.msk.bf16.vlgmr.msra.gmra.mrb[0].mxu0 %vm2505_vm0, %v12031_v0 }
 0x1c7   : > { %9639 = vmatpush3.bf16.msra.mxu0 %v11856_v46  ;;  %9610 = vmatprep.mubr.msk.bf16.mxu0 %vm2505_vm0, %v12033_v31  ;;  %v12060_v46 = vpack.c.bf16 %v5940_v57, %v5939_v47  ;;  %v5947_v47 = vld [vmem:[#allocation3 + $0xc2] sm:$0xff]  ;;  %v5948_v57 = vld [vmem:[#allocation3 + $0xca] sm:$0xff] }
 0x1c8   : > { %9672 = vmatprep.subr.bf16.mxu0 %v12040_v18  ;;  %v12092_v16 = vpack.c.bf16 %v5948_v57, %v5947_v47  ;;  %v12108_v47 = vpack.c.bf16 %v5952_v53, %v5951_v37  ;;  %v3287_v57 = vld [vmem:[#allocation2 + $0x16a] sm:$0xff]  ;;  %v12122_v37 = vpack.c.bf16 %v5956_v42, %v5955_v28  ;;  %v5958_v53 = vld [vmem:[#allocation3 + $0x142] sm:$0xff]  ;;  %v5962_v42 = vld [vmem:[#allocation3 + $0x172] sm:$0xff] }
 0x1ca   : > { %12911 = vst [vmem:[#allocation14_spill] sm:$0xff] %v12092_v16  ;;  %12912 = vst [vmem:[#allocation15_spill] sm:$0xff] %v12108_v47 }
 0x1cc   : > { %9313 = vmatmul.mubr.msk.bf16.gmra.mrb[12].mxu1 %vm2505_vm0, %v12053_v8 }
 0x1cd   : > { %9316 = vmatprep.mubr.msk.bf16.mxu1 %vm2505_vm0, %v12056_v25 }
 0x1ce   : > { %9611 = vmatmul.mubr.msk.bf16.gmra.mrb[4].mxu0 %vm2505_vm0, %v12058_v17 }
 0x1cf   : > { %9614 = vmatprep.mubr.msk.bf16.mxu0 %vm2505_vm0, %v12060_v46 }
 0x1d4   : > { %9317 = vmatmul.mubr.msk.bf16.gmra.mrb[16].mxu1 %vm2505_vm0, %v12070_v15 }
 0x1d5   : > { %9320 = vmatprep.mubr.msk.bf16.mxu1 %vm2505_vm0, %v12072_v36 }
 0x1d6   : > { %9615 = vmatmul.mubr.msk.bf16.gmra.mrb[8].mxu0 %vm2505_vm0, %v12074_v45 }
 0x1d7   : > { %9618 = vmatprep.mubr.msk.bf16.mxu0 %vm2505_vm0, %v12076_v39 }
 0x1dc   : > { %9321 = vmatmul.mubr.msk.bf16.gmra.mrb[20].mxu1 %vm2505_vm0, %v12086_v35 }
 0x1dd   : > { %9324 = vmatprep.mubr.msk.bf16.mxu1 %vm2505_vm0, %v12088_v32 }
 0x1de   : > { %9619 = vmatmul.mubr.msk.bf16.gmra.mrb[12].mxu0 %vm2505_vm0, %v12090_v29 }
 0x1df   : > { %9622 = vmatprep.mubr.msk.bf16.mxu0 %vm2505_vm0, %v12092_v16  ;;  %v3288_v16 = vld [vmem:[#allocation2 + $0x172] sm:$0xff] }
 0x1e0   : > { %v12118_v5 = vpack.c.bf16 %v3288_v16, %v3287_v57  ;;  %v5957_v16 = vld [vmem:[#allocation3 + $0x13a] sm:$0xff]  ;;  %v5959_v57 = vld [vmem:[#allocation3 + $0x152] sm:$0xff] }
 0x1e1   : > { %v12132_v9 = vpack.c.bf16 %v5958_v53, %v5957_v16  ;;  %v6227_v16 = vld [vmem:[#allocation3 + $0x20] sm:$0xff] }
 0x1e3   : > { %12913 = vst [vmem:[#allocation16_spill] sm:$0xff] %v12132_v9 }
 0x1e4   : > { %9325 = vmatmul.mubr.msk.bf16.gmra.mrb[24].mxu1 %vm2505_vm0, %v12102_v33 }
 0x1e5   : > { %9328 = vmatprep.mubr.msk.bf16.mxu1 %vm2505_vm0, %v12104_v51 }
 0x1e6   : > { %9623 = vmatmul.mubr.msk.bf16.gmra.mrb[16].mxu0 %vm2505_vm0, %v12106_v23 }
 0x1e7   : > { %9626 = vmatprep.mubr.msk.bf16.mxu0 %vm2505_vm0, %v12108_v47  ;;  %v5960_v47 = vld [vmem:[#allocation3 + $0x15a] sm:$0xff] }
 0x1e8   : > { %v12139_v28 = vpack.c.bf16 %v5960_v47, %v5959_v57  ;;  %v6226_v47 = vld [vmem:[#allocation3 + $0x18] sm:$0xff]  ;;  %v6230_v57 = vld [vmem:[#allocation3 + $0x48] sm:$0xff] }
 0x1ea   : > { %12914 = vst [vmem:[#allocation17_spill] sm:$0xff] %v12139_v28 }
 0x1ec   : > { %9329 = vmatmul.mubr.msk.bf16.gmra.mrb[28].mxu1 %vm2505_vm0, %v12118_v5 }
 0x1ed   : > { %9334 = vmatprep.mubr.msk.bf16.mxu1 %vm2505_vm0, %v11807_v10  ;;  %v5961_v10 = vld [vmem:[#allocation3 + $0x16a] sm:$0xff] }
 0x1ee   : > { %9627 = vmatmul.mubr.msk.bf16.gmra.mrb[20].mxu0 %vm2505_vm0, %v12120_v24  ;;  %v12151_v53 = vpack.c.bf16 %v5962_v42, %v5961_v10  ;;  %v6234_v42 = vld [vmem:[#allocation3 + $0x78] sm:$0xff] }
 0x1ef   : > { %9630 = vmatprep.mubr.msk.bf16.mxu0 %vm2505_vm0, %v12122_v37 }
 0x1f4   : > { %9335 = vmatmul.mubr.msk.bf16.vlgmr.msra.gmra.mrb[0].mxu1 %vm2505_vm0, %v11809_v14  ;;  %v6258_v14 = vpack.c.bf16 %v6227_v16, %v6226_v47 }
 0x1f5   : > { %9338 = vmatprep.mubr.msk.bf16.mxu1 %vm2505_vm0, %v11830_v20  ;;  %9367 = vmatpush3.bf16.msra.mxu1 %v12000_v58  ;;  %v6228_v20 = vld [vmem:[#allocation3 + $0x30] sm:$0xff]  ;;  %v6229_v58 = vld [vmem:[#allocation3 + $0x38] sm:$0xff] }
 0x1f6   : > { %9631 = vmatmul.mubr.msk.bf16.gmra.mrb[24].mxu0 %vm2505_vm0, %v12132_v9  ;;  %9400 = vmatprep.subr.bf16.mxu1 %v12137_v48  ;;  %v12160_v9 = vpack.c.bf16 %v6229_v58, %v6228_v20  ;;  %v3853_v20 = vld [vmem:[#allocation2 + $0x61] sm:$0xff] }
 0x1f7   : > { %9634 = vmatprep.mubr.msk.bf16.mxu0 %vm2505_vm0, %v12139_v28  ;;  %v6231_v28 = vld [vmem:[#allocation3 + $0x50] sm:$0xff] }
 0x1f8   : > { %v12162_v10 = vpack.c.bf16 %v6231_v28, %v6230_v57  ;;  %v6233_v28 = vld [vmem:[#allocation3 + $0x68] sm:$0xff]  ;;  %v3856_v58 = vld [vmem:[#allocation2 + $0x81] sm:$0xff] }
 0x1f9   : > { %v12915_v57 = vld [vmem:[#allocation4_spill] sm:$0xff] }
 0x1fc   : > { %9339 = vmatmul.mubr.msk.bf16.gmra.mrb[4].mxu1 %vm2505_vm0, %v11832_v56  ;;  %v12169_v56 = vld [vmem:[%s12879_s3 + $0x28] sm:$0xff]  }
 0x1fd   : > { %9342 = vmatprep.mubr.msk.bf16.mxu1 %vm2505_vm0, %v11843_v11  ;;  %v6232_v11 = vld [vmem:[#allocation3 + $0x60] sm:$0xff] }
 0x1fe   : > { %9635 = vmatmul.mubr.msk.bf16.gmra.mrb[28].mxu0 %vm2505_vm0, %v12151_v53  ;;  %v12179_v47 = vpack.c.bf16 %v6233_v28, %v6232_v11  ;;  %v12916_v11 = vld [vmem:[#allocation5_spill] sm:$0xff]  ;;  %v6256_v28 = vld [vmem:[#allocation3 + $0x180] sm:$0xff] }
 0x1ff   : > { %9640 = vmatprep.mubr.msk.bf16.mxu0 %vm2505_vm0, %v6258_v14 }
 0x204   : > { %9343 = vmatmul.mubr.msk.bf16.gmra.mrb[8].mxu1 %vm2505_vm0, %v11845_v54  ;;  %v6235_v54 = vld [vmem:[#allocation3 + $0x80] sm:$0xff] }
 0x205   : > { %9346 = vmatprep.mubr.msk.bf16.mxu1 %vm2505_vm0, %v11865_v40  ;;  %v12181_v16 = vpack.c.bf16 %v6235_v54, %v6234_v42  ;;  %v6238_v40 = vld [vmem:[#allocation3 + $0xa8] sm:$0xff] }
 0x206   : > { %9641 = vmatmul.mubr.msk.bf16.vlgmr.msra.gmra.mrb[0].mxu0 %vm2505_vm0, %v12160_v9  ;;  %v6257_v42 = vld [vmem:[#allocation3 + $0x188] sm:$0xff] }
 0x207   : > { %9673 = vmatpush3.bf16.msra.mxu0 %v12040_v18  ;;  %9644 = vmatprep.mubr.msk.bf16.mxu0 %vm2505_vm0, %v12162_v10  ;;  %v6239_v18 = vld [vmem:[#allocation3 + $0xb0] sm:$0xff] }
 0x208   : > { %9706 = vmatprep.subr.bf16.mxu0 %v12169_v56  ;;  %v12191_v14 = vpack.c.bf16 %v6239_v18, %v6238_v40  ;;  %v12249_v18 = vpack.c.bf16 %v6257_v42, %v6256_v28  ;;  %v3865_v28 = vld [vmem:[#allocation2 + $0xf1] sm:$0xff]  ;;  %v3866_v42 = vld [vmem:[#allocation2 + $0xf9] sm:$0xff] }
 0x20c   : > { %9347 = vmatmul.mubr.msk.bf16.gmra.mrb[12].mxu1 %vm2505_vm0, %v11868_v13  ;;  %v3583_v13 = vld [vmem:[#allocation2 + $0x188] sm:$0xff] }
 0x20d   : > { %9350 = vmatprep.mubr.msk.bf16.mxu1 %vm2505_vm0, %v11882_v61  ;;  %v3847_v61 = vld [vmem:[#allocation2 + $0x19] sm:$0xff] }
 0x20e   : > { %9645 = vmatmul.mubr.msk.bf16.gmra.mrb[4].mxu0 %vm2505_vm0, %v12179_v47 }
 0x20f   : > { %9648 = vmatprep.mubr.msk.bf16.mxu0 %vm2505_vm0, %v12181_v16 }
 0x214   : > { %9351 = vmatmul.mubr.msk.bf16.gmra.mrb[16].mxu1 %vm2505_vm0, %v11884_v12  ;;  %v3848_v12 = vld [vmem:[#allocation2 + $0x21] sm:$0xff] }
 0x215   : > { %9354 = vmatprep.mubr.msk.bf16.mxu1 %vm2505_vm0, %v11902_v27  ;;  %v3879_v27 = vpack.c.bf16 %v3848_v12, %v3847_v61  ;;  %v3860_v61 = vld [vmem:[#allocation2 + $0xb1] sm:$0xff] }
 0x216   : > { %9649 = vmatmul.mubr.msk.bf16.gmra.mrb[8].mxu0 %vm2505_vm0, %v11765_v1  ;;  %v3582_v1 = vld [vmem:[#allocation2 + $0x180] sm:$0xff]  ;;  %v12917_v12 = vld [vmem:[#allocation6_spill] sm:$0xff] }
 0x217   : > { %9652 = vmatprep.mubr.msk.bf16.mxu0 %vm2505_vm0, %v12191_v14 }
 0x21c   : > { %9355 = vmatmul.mubr.msk.bf16.gmra.mrb[20].mxu1 %vm2505_vm0, %v11904_v19  ;;  %v3850_v19 = vld [vmem:[#allocation2 + $0x39] sm:$0xff] }
 0x21d   : > { %9358 = vmatprep.mubr.msk.bf16.mxu1 %vm2505_vm0, %v11906_v4  ;;  %v3851_v4 = vld [vmem:[#allocation2 + $0x49] sm:$0xff] }
 0x21e   : > { %9653 = vmatmul.mubr.msk.bf16.gmra.mrb[12].mxu0 %vm2505_vm0, %v11773_v2  ;;  %v12217_v2 = vpack.c.bf16 %v3583_v13, %v3582_v1  ;;  %v3858_v1 = vld [vmem:[#allocation2 + $0x99] sm:$0xff]  ;;  %v3859_v13 = vld [vmem:[#allocation2 + $0xa9] sm:$0xff] }
 0x21f   : > { %9656 = vmatprep.mubr.msk.bf16.mxu0 %vm2505_vm0, %v11789_v44  ;;  %v3849_v44 = vld [vmem:[#allocation2 + $0x31] sm:$0xff] }
 0x224   : > { %9359 = vmatmul.mubr.msk.bf16.gmra.mrb[24].mxu1 %vm2505_vm0, %v11908_v38  ;;  %v3852_v38 = vld [vmem:[#allocation2 + $0x51] sm:$0xff] }
 0x225   : > { %9362 = vmatprep.mubr.msk.bf16.mxu1 %vm2505_vm0, %v11968_v22  ;;  %v12233_v22 = vld [vmem:[%s12878_s2 + $0x30] sm:$0xff]  }
 0x226   : > { %9657 = vmatmul.mubr.msk.bf16.gmra.mrb[16].mxu0 %vm2505_vm0, %v11791_v34  ;;  %v12226_v34 = vpack.c.bf16 %v3850_v19, %v3849_v44  ;;  %v12261_v44 = vpack.c.bf16 %v3860_v61, %v3859_v13  ;;  %v12268_v19 = vld [vmem:[%s12879_s3 + $0x30] sm:$0xff]   ;;  %v12290_v61 = vpack.c.bf16 %v3866_v42, %v3865_v28 }
 0x227   : > { %9660 = vmatprep.mubr.msk.bf16.mxu0 %vm2505_vm0, %v11797_v60  ;;  %v12228_v60 = vpack.c.bf16 %v3852_v38, %v3851_v4  ;;  %v3861_v4 = vld [vmem:[#allocation2 + $0xc1] sm:$0xff]  ;;  %v3862_v38 = vld [vmem:[#allocation2 + $0xc9] sm:$0xff] }
 0x228   : > { %v12921_v13 = vld [vmem:[#allocation10_spill] sm:$0xff] }
 0x22c   : > { %9363 = vmatmul.mubr.msk.bf16.gmra.mrb[28].mxu1 %vm2505_vm0, %v12217_v2 }
 0x22d   : > { %9368 = vmatprep.mubr.msk.bf16.mxu1 %vm2505_vm0, %v3879_v27 }
 0x22e   : > { %9661 = vmatmul.mubr.msk.bf16.gmra.mrb[20].mxu0 %vm2505_vm0, %v11799_v21  ;;  %v3854_v21 = vld [vmem:[#allocation2 + $0x69] sm:$0xff] }
 0x22f   : > { %9664 = vmatprep.mubr.msk.bf16.mxu0 %vm2505_vm0, %v11811_v50  ;;  %v3855_v50 = vld [vmem:[#allocation2 + $0x79] sm:$0xff]  ;;  %v12245_v54 = vpack.c.bf16 %v3854_v21, %v3853_v20  ;;  %v3864_v21 = vld [vmem:[#allocation2 + $0xe1] sm:$0xff] }
 0x230   : > { %v12247_v40 = vpack.c.bf16 %v3856_v58, %v3855_v50  ;;  %v3863_v20 = vld [vmem:[#allocation2 + $0xd9] sm:$0xff] }
 0x231   : > { %v12918_v50 = vld [vmem:[#allocation7_spill] sm:$0xff]  ;;  %v12919_v58 = vld [vmem:[#allocation8_spill] sm:$0xff] }
 0x234   : > { %9369 = vmatmul.mubr.msk.bf16.vlgmr.msra.gmra.mrb[0].mxu1 %vm2505_vm0, %v12226_v34 }
 0x235   : > { %9372 = vmatprep.mubr.msk.bf16.mxu1 %vm2505_vm0, %v12228_v60  ;;  %9401 = vmatpush3.bf16.msra.mxu1 %v12137_v48  ;;  %v3857_v48 = vld [vmem:[#allocation2 + $0x91] sm:$0xff] }
 0x236   : > { %9665 = vmatmul.mubr.msk.bf16.gmra.mrb[24].mxu0 %vm2505_vm0, %v12915_v57  ;;  %9434 = vmatprep.subr.bf16.mxu1 %v12233_v22  ;;  %v12259_v27 = vpack.c.bf16 %v3858_v1, %v3857_v48  ;;  %v12277_v57 = vpack.c.bf16 %v3862_v38, %v3861_v4  ;;  %v3867_v48 = vld [vmem:[#allocation2 + $0x109] sm:$0xff]  ;;  %v3868_v1 = vld [vmem:[#allocation2 + $0x111] sm:$0xff]  ;;  %v3869_v4 = vld [vmem:[#allocation2 + $0x121] sm:$0xff] }
 0x237   : > { %9668 = vmatprep.mubr.msk.bf16.mxu0 %vm2505_vm0, %v12916_v11  ;;  %v12280_v11 = vpack.c.bf16 %v3864_v21, %v3863_v20  ;;  %v3870_v38 = vld [vmem:[#allocation2 + $0x129] sm:$0xff]  ;;  %v3871_v20 = vld [vmem:[#allocation2 + $0x139] sm:$0xff]  ;;  %v3872_v21 = vld [vmem:[#allocation2 + $0x141] sm:$0xff] }
 0x238   : > { %v12302_v28 = vpack.c.bf16 %v3870_v38, %v3869_v4  ;;  %v12304_v42 = vpack.c.bf16 %v3872_v21, %v3871_v20  ;;  %v3877_v20 = vld [vmem:[#allocation2 + $0x181] sm:$0xff]  ;;  %v3878_v21 = vld [vmem:[#allocation2 + $0x189] sm:$0xff] }
 0x23c   : > { %9373 = vmatmul.mubr.msk.bf16.gmra.mrb[4].mxu1 %vm2505_vm0, %v12245_v54 }
 0x23d   : > { %9376 = vmatprep.mubr.msk.bf16.mxu1 %vm2505_vm0, %v12247_v40 }
 0x23e   : > { %9669 = vmatmul.mubr.msk.bf16.gmra.mrb[28].mxu0 %vm2505_vm0, %v12249_v18 }
 0x23f   : > { %9674 = vmatprep.mubr.msk.bf16.mxu0 %vm2505_vm0, %v12917_v12  ;;  %v12292_v12 = vpack.c.bf16 %v3868_v1, %v3867_v48  ;;  %v3873_v48 = vld [vmem:[#allocation2 + $0x151] sm:$0xff]  ;;  %v3874_v1 = vld [vmem:[#allocation2 + $0x159] sm:$0xff] }
 0x240   : > { %v12314_v4 = vpack.c.bf16 %v3874_v1, %v3873_v48  ;;  %v12438_v48 = vld [vmem:[%s12879_s3 + $0x40] sm:$0xff]   ;;  %v4452_v1 = vld [vmem:[#allocation2 + $0xd8] sm:$0xff] }
 0x241   : > { %12922 = vst [vmem:[#allocation4_spill] sm:$0xff] %v12292_v12 }
 0x244   : > { %9377 = vmatmul.mubr.msk.bf16.gmra.mrb[8].mxu1 %vm2505_vm0, %v12259_v27 }
 0x245   : > { %9380 = vmatprep.mubr.msk.bf16.mxu1 %vm2505_vm0, %v12261_v44 }
 0x246   : > { %9675 = vmatmul.mubr.msk.bf16.vlgmr.msra.gmra.mrb[0].mxu0 %vm2505_vm0, %v12918_v50  ;;  %v12923_v50 = vld [vmem:[#allocation11_spill] sm:$0xff] }
 0x247   : > { %9707 = vmatpush3.bf16.msra.mxu0 %v12169_v56  ;;  %9678 = vmatprep.mubr.msk.bf16.mxu0 %vm2505_vm0, %v12919_v58  ;;  %v12920_v56 = vld [vmem:[#allocation9_spill] sm:$0xff]  ;;  %v12924_v58 = vld [vmem:[#allocation12_spill] sm:$0xff] }
 0x248   : > { %9740 = vmatprep.subr.bf16.mxu0 %v12268_v19 }
 0x24c   : > { %9381 = vmatmul.mubr.msk.bf16.gmra.mrb[12].mxu1 %vm2505_vm0, %v12277_v57 }
 0x24d   : > { %9384 = vmatprep.mubr.msk.bf16.mxu1 %vm2505_vm0, %v12280_v11 }
 0x24e   : > { %9679 = vmatmul.mubr.msk.bf16.gmra.mrb[4].mxu0 %vm2505_vm0, %v12920_v56  ;;  %v3875_v56 = vld [vmem:[#allocation2 + $0x169] sm:$0xff] }
 0x24f   : > { %9682 = vmatprep.mubr.msk.bf16.mxu0 %vm2505_vm0, %v12921_v13  ;;  %v3876_v13 = vld [vmem:[#allocation2 + $0x171] sm:$0xff] }
 0x250   : > { %v12316_v38 = vpack.c.bf16 %v3876_v13, %v3875_v56  ;;  %v4453_v56 = vld [vmem:[#allocation2 + $0xe0] sm:$0xff]  ;;  %v4454_v13 = vld [vmem:[#allocation2 + $0xf0] sm:$0xff] }
 0x254   : > { %9385 = vmatmul.mubr.msk.bf16.gmra.mrb[16].mxu1 %vm2505_vm0, %v12290_v61 }
 0x255   : > { %9388 = vmatprep.mubr.msk.bf16.mxu1 %vm2505_vm0, %v12292_v12  ;;  %v12925_v12 = vld [vmem:[#allocation13_spill] sm:$0xff] }
 0x256   : > { %9683 = vmatmul.mubr.msk.bf16.gmra.mrb[8].mxu0 %vm2505_vm0, %v12923_v50  ;;  %v4451_v50 = vld [vmem:[#allocation2 + $0xc8] sm:$0xff] }
 0x257   : > { %9686 = vmatprep.mubr.msk.bf16.mxu0 %vm2505_vm0, %v12924_v58 }
 0x25c   : > { %9389 = vmatmul.mubr.msk.bf16.gmra.mrb[20].mxu1 %vm2505_vm0, %v12302_v28 }
 0x25d   : > { %9392 = vmatprep.mubr.msk.bf16.mxu1 %vm2505_vm0, %v12304_v42 }
 0x25e   : > { %9687 = vmatmul.mubr.msk.bf16.gmra.mrb[12].mxu0 %vm2505_vm0, %v12925_v12  ;;  %v12326_v12 = vpack.c.bf16 %v3878_v21, %v3877_v20  ;;  %v4455_v20 = vld [vmem:[#allocation2 + $0xf8] sm:$0xff]  ;;  %v7120_v21 = vld [vmem:[#allocation3 + $0x90] sm:$0xff] }
 0x25f   : > { %9690 = vmatprep.mubr.msk.bf16.mxu0 %vm2505_vm0, %v11926_v55  ;;  %v10469_v55 = vld [vmem:[%s12878_s2 + $0x38] sm:$0xff]  }
 0x264   : > { %9393 = vmatmul.mubr.msk.bf16.gmra.mrb[24].mxu1 %vm2505_vm0, %v12314_v4 }
 0x265   : > { %9396 = vmatprep.mubr.msk.bf16.mxu1 %vm2505_vm0, %v12316_v38 }
 0x266   : > { %9691 = vmatmul.mubr.msk.bf16.gmra.mrb[16].mxu0 %vm2505_vm0, %v11930_v59  ;;  %v6551_v59 = vld [vmem:[#allocation3 + $0x181] sm:$0xff] }
 0x267   : > { %9694 = vmatprep.mubr.msk.bf16.mxu0 %vm2505_vm0, %v11974_v7  ;;  %v6552_v7 = vld [vmem:[#allocation3 + $0x189] sm:$0xff] }
 0x26c   : > { %9397 = vmatmul.mubr.msk.bf16.gmra.mrb[28].mxu1 %vm2505_vm0, %v12326_v12 }
 0x26d   : > { %9402 = vmatprep.mubr.msk.bf16.mxu1 %vm2505_vm0, %v11991_v49  ;;  %v12363_v49 = vld [vmem:[%s12879_s3 + $0x38] sm:$0xff]  }
 0x26e   : > { %9695 = vmatmul.mubr.msk.bf16.gmra.mrb[20].mxu0 %vm2505_vm0, %v11978_v30  ;;  %v12348_v30 = vpack.c.bf16 %v6552_v7, %v6551_v59  ;;  %v4478_v59 = vpack.c.bf16 %v4455_v20, %v4454_v13  ;;  %v7137_v13 = vld [vmem:[#allocation3 + $0x158] sm:$0xff] }
 0x26f   : > { %9698 = vmatprep.mubr.msk.bf16.mxu0 %vm2505_vm0, %v11995_v43  ;;  %v4172_v43 = vld [vmem:[#allocation2 + $0x182] sm:$0xff] }
 0x274   : > { %9403 = vmatmul.mubr.msk.bf16.vlgmr.msra.gmra.mrb[0].mxu1 %vm2505_vm0, %v11993_v6  ;;  %v12926_v6 = vld [vmem:[#allocation14_spill] sm:$0xff] }
 0x275   : > { %9406 = vmatprep.mubr.msk.bf16.mxu1 %vm2505_vm0, %v12014_v62  ;;  %9435 = vmatpush3.bf16.msra.mxu1 %v12233_v22  ;;  %v4438_v62 = vld [vmem:[#allocation2 + $0x30] sm:$0xff] }
 0x276   : > { %9699 = vmatmul.mubr.msk.bf16.gmra.mrb[24].mxu0 %vm2505_vm0, %v12002_v52  ;;  %9468 = vmatprep.subr.bf16.mxu1 %v10469_v55  ;;  %v4173_v52 = vld [vmem:[#allocation2 + $0x18a] sm:$0xff] }
 0x277   : > { %9702 = vmatprep.mubr.msk.bf16.mxu0 %vm2505_vm0, %v12018_v3  ;;  %v12927_v3 = vld [vmem:[#allocation15_spill] sm:$0xff]  ;;  %v4449_v22 = vld [vmem:[#allocation2 + $0xb0] sm:$0xff] }
 0x27c   : > { %9407 = vmatmul.mubr.msk.bf16.gmra.mrb[4].mxu1 %vm2505_vm0, %v12016_v63  ;;  %v4439_v63 = vld [vmem:[#allocation2 + $0x38] sm:$0xff] }
 0x27d   : > { %9410 = vmatprep.mubr.msk.bf16.mxu1 %vm2505_vm0, %v12027_v41  ;;  %v12405_v41 = vpack.c.bf16 %v4173_v52, %v4172_v43  ;;  %v4457_v43 = vld [vmem:[#allocation2 + $0x110] sm:$0xff]  ;;  %v4458_v52 = vld [vmem:[#allocation2 + $0x120] sm:$0xff] }
 0x27e   : > { %9703 = vmatmul.mubr.msk.bf16.gmra.mrb[28].mxu0 %vm2505_vm0, %v12348_v30 }
 0x27f   : > { %9708 = vmatprep.mubr.msk.bf16.mxu0 %vm2505_vm0, %v12031_v0  ;;  %v4440_v0 = vld [vmem:[#allocation2 + $0x48] sm:$0xff] }
 0x284   : > { %9411 = vmatmul.mubr.msk.bf16.gmra.mrb[8].mxu1 %vm2505_vm0, %v12029_v26  ;;  %v4470_v26 = vpack.c.bf16 %v4439_v63, %v4438_v62  ;;  %v7125_v62 = vld [vmem:[#allocation3 + $0xc8] sm:$0xff] }
 0x285   : > { %9414 = vmatprep.mubr.msk.bf16.mxu1 %vm2505_vm0, %v12053_v8  ;;  %v4442_v8 = vld [vmem:[#allocation2 + $0x60] sm:$0xff] }
 0x286   : > { %9709 = vmatmul.mubr.msk.bf16.vlgmr.msra.gmra.mrb[0].mxu0 %vm2505_vm0, %v12033_v31  ;;  %v4441_v31 = vld [vmem:[#allocation2 + $0x50] sm:$0xff] }
 0x287   : > { %9741 = vmatpush3.bf16.msra.mxu0 %v12268_v19  ;;  %9712 = vmatprep.mubr.msk.bf16.mxu0 %vm2505_vm0, %v12058_v17  ;;  %v12928_v17 = vld [vmem:[#allocation16_spill] sm:$0xff] }
 0x288   : > { %9774 = vmatprep.subr.bf16.mxu0 %v12363_v49  ;;  %v4450_v19 = vld [vmem:[#allocation2 + $0xc0] sm:$0xff] }
 0x289   : > { %v4476_v58 = vpack.c.bf16 %v4451_v50, %v4450_v19  ;;  %v4468_v19 = vld [vmem:[#allocation2 + $0x198] sm:$0xff]  ;;  %v4469_v50 = vld [vmem:[#allocation2 + $0x1a0] sm:$0xff] }
 0x28c   : > { %9415 = vmatmul.mubr.msk.bf16.gmra.mrb[12].mxu1 %vm2505_vm0, %v12056_v25  ;;  %v4443_v25 = vld [vmem:[#allocation2 + $0x68] sm:$0xff] }
 0x28d   : > { %9418 = vmatprep.mubr.msk.bf16.mxu1 %vm2505_vm0, %v12070_v15  ;;  %v4472_v15 = vpack.c.bf16 %v4443_v25, %v4442_v8  ;;  %v4463_v8 = vld [vmem:[#allocation2 + $0x158] sm:$0xff]  ;;  %v7127_v25 = vld [vmem:[#allocation3 + $0xe0] sm:$0xff] }
 0x28e   : > { %9713 = vmatmul.mubr.msk.bf16.gmra.mrb[4].mxu0 %vm2505_vm0, %v12060_v46  ;;  %v4471_v46 = vpack.c.bf16 %v4441_v31, %v4440_v0  ;;  %v4461_v0 = vld [vmem:[#allocation2 + $0x140] sm:$0xff]  ;;  %v4462_v31 = vld [vmem:[#allocation2 + $0x150] sm:$0xff] }
 0x28f   : > { %9716 = vmatprep.mubr.msk.bf16.mxu0 %vm2505_vm0, %v12074_v45  ;;  %v4445_v45 = vld [vmem:[#allocation2 + $0x80] sm:$0xff] }
 0x294   : > { %9419 = vmatmul.mubr.msk.bf16.gmra.mrb[16].mxu1 %vm2505_vm0, %v12072_v36  ;;  %v4444_v36 = vld [vmem:[#allocation2 + $0x78] sm:$0xff] }
 0x295   : > { %9422 = vmatprep.mubr.msk.bf16.mxu1 %vm2505_vm0, %v12086_v35  ;;  %v4447_v35 = vld [vmem:[#allocation2 + $0x98] sm:$0xff] }
 0x296   : > { %9717 = vmatmul.mubr.msk.bf16.gmra.mrb[8].mxu0 %vm2505_vm0, %v12076_v39  ;;  %v4446_v39 = vld [vmem:[#allocation2 + $0x90] sm:$0xff] }
 0x297   : > { %9720 = vmatprep.mubr.msk.bf16.mxu0 %vm2505_vm0, %v12090_v29  ;;  %v12421_v29 = vld [vmem:[%s12878_s2 + $0x40] sm:$0xff]  }
 0x29c   : > { %9423 = vmatmul.mubr.msk.bf16.gmra.mrb[20].mxu1 %vm2505_vm0, %v12088_v32  ;;  %v12929_v32 = vld [vmem:[#allocation17_spill] sm:$0xff] }
 0x29d   : > { %9426 = vmatprep.mubr.msk.bf16.mxu1 %vm2505_vm0, %v12102_v33  ;;  %v6846_v33 = vld [vmem:[#allocation3 + $0x182] sm:$0xff] }
 0x29e   : > { %9721 = vmatmul.mubr.msk.bf16.gmra.mrb[12].mxu0 %vm2505_vm0, %v12926_v6  ;;  %v4456_v6 = vld [vmem:[#allocation2 + $0x108] sm:$0xff] }
 0x29f   : > { %9724 = vmatprep.mubr.msk.bf16.mxu0 %vm2505_vm0, %v12106_v23  ;;  %v4473_v23 = vpack.c.bf16 %v4445_v45, %v4444_v36  ;;  %v4482_v36 = vpack.c.bf16 %v4463_v8, %v4462_v31  ;;  %v12930_v8 = vld [vmem:[#allocation4_spill] sm:$0xff] }
 0x2a4   : > { %9427 = vmatmul.mubr.msk.bf16.gmra.mrb[24].mxu1 %vm2505_vm0, %v12104_v51  ;;  %v6847_v51 = vld [vmem:[#allocation3 + $0x18a] sm:$0xff] }
 0x2a5   : > { %9430 = vmatprep.mubr.msk.bf16.mxu1 %vm2505_vm0, %v12118_v5  ;;  %v4474_v5 = vpack.c.bf16 %v4447_v35, %v4446_v39  ;;  %v4464_v35 = vld [vmem:[#allocation2 + $0x168] sm:$0xff] }
 0x2a6   : > { %9725 = vmatmul.mubr.msk.bf16.gmra.mrb[16].mxu0 %vm2505_vm0, %v12927_v3 }
 0x2a7   : > { %9728 = vmatprep.mubr.msk.bf16.mxu0 %vm2505_vm0, %v12120_v24  ;;  %v12426_v24 = vpack.c.bf16 %v6847_v51, %v6846_v33  ;;  %v7131_v33 = vld [vmem:[#allocation3 + $0x110] sm:$0xff] }
 0x2ac   : > { %9431 = vmatmul.mubr.msk.bf16.gmra.mrb[28].mxu1 %vm2505_vm0, %v12405_v41 }
 0x2ad   : > { %9436 = vmatprep.mubr.msk.bf16.mxu1 %vm2505_vm0, %v4470_v26  ;;  %v4460_v26 = vld [vmem:[#allocation2 + $0x138] sm:$0xff] }
 0x2ae   : > { %9729 = vmatmul.mubr.msk.bf16.gmra.mrb[20].mxu0 %vm2505_vm0, %v12122_v37  ;;  %v4448_v37 = vld [vmem:[#allocation2 + $0xa8] sm:$0xff] }
 0x2af   : > { %9732 = vmatprep.mubr.msk.bf16.mxu0 %vm2505_vm0, %v12928_v17  ;;  %v4481_v17 = vpack.c.bf16 %v4461_v0, %v4460_v26  ;;  %v7420_v26 = vld [vmem:[#allocation3 + $0xc9] sm:$0xff] }
 0x2b4   : > { %9437 = vmatmul.mubr.msk.bf16.vlgmr.msra.gmra.mrb[0].mxu1 %vm2505_vm0, %v4471_v46  ;;  %v7128_v46 = vld [vmem:[#allocation3 + $0xf0] sm:$0xff] }
 0x2b5   : > { %9440 = vmatprep.mubr.msk.bf16.mxu1 %vm2505_vm0, %v4472_v15  ;;  %9469 = vmatpush3.bf16.msra.mxu1 %v10469_v55  ;;  %v7121_v55 = vld [vmem:[#allocation3 + $0x98] sm:$0xff] }
 0x2b6   : > { %9733 = vmatmul.mubr.msk.bf16.gmra.mrb[24].mxu0 %vm2505_vm0, %v12929_v32  ;;  %9898 = vmatprep.subr.bf16.mxu1 %v12421_v29  ;;  %v7148_v7 = vpack.c.bf16 %v7121_v55, %v7120_v21  ;;  %v7129_v15 = vld [vmem:[#allocation3 + $0xf8] sm:$0xff]  ;;  %v4465_v32 = vld [vmem:[#allocation2 + $0x170] sm:$0xff]  ;;  %v7139_v21 = vld [vmem:[#allocation3 + $0x170] sm:$0xff] }
 0x2b7   : > { %9736 = vmatprep.mubr.msk.bf16.mxu0 %vm2505_vm0, %v12151_v53  ;;  %v4475_v53 = vpack.c.bf16 %v4449_v22, %v4448_v37  ;;  %v7152_v39 = vpack.c.bf16 %v7129_v15, %v7128_v46  ;;  %v4483_v51 = vpack.c.bf16 %v4465_v32, %v4464_v35  ;;  %v7426_v15 = vld [vmem:[#allocation3 + $0x111] sm:$0xff] }
 0x2b8   : > { %v4764_v32 = vld [vmem:[#allocation2 + $0x1a1] sm:$0xff] }
 0x2bc   : > { %9441 = vmatmul.mubr.msk.bf16.gmra.mrb[4].mxu1 %vm2505_vm0, %v4473_v23  ;;  %v7132_v23 = vld [vmem:[#allocation3 + $0x120] sm:$0xff] }
 0x2bd   : > { %9444 = vmatprep.mubr.msk.bf16.mxu1 %vm2505_vm0, %v4474_v5  ;;  %v7133_v5 = vld [vmem:[#allocation3 + $0x128] sm:$0xff] }
 0x2be   : > { %9737 = vmatmul.mubr.msk.bf16.gmra.mrb[28].mxu0 %vm2505_vm0, %v12426_v24  ;;  %v7154_v22 = vpack.c.bf16 %v7133_v5, %v7132_v23  ;;  %v7431_v5 = vld [vmem:[#allocation3 + $0x151] sm:$0xff] }
 0x2bf   : > { %9742 = vmatprep.mubr.msk.bf16.mxu0 %vm2505_vm0, %v12160_v9  ;;  %v4477_v9 = vpack.c.bf16 %v4453_v56, %v4452_v1  ;;  %v4485_v1 = vpack.c.bf16 %v4469_v50, %v4468_v19  ;;  %v7136_v56 = vld [vmem:[#allocation3 + $0x150] sm:$0xff] }
 0x2c4   : > { %9445 = vmatmul.mubr.msk.bf16.gmra.mrb[8].mxu1 %vm2505_vm0, %v4475_v53  ;;  %v7134_v53 = vld [vmem:[#allocation3 + $0x138] sm:$0xff] }
 0x2c5   : > { %9448 = vmatprep.mubr.msk.bf16.mxu1 %vm2505_vm0, %v4476_v58  ;;  %v7135_v58 = vld [vmem:[#allocation3 + $0x140] sm:$0xff] }
 0x2c6   : > { %9743 = vmatmul.mubr.msk.bf16.vlgmr.msra.gmra.mrb[0].mxu0 %vm2505_vm0, %v12162_v10  ;;  %v4459_v10 = vld [vmem:[#allocation2 + $0x128] sm:$0xff]  ;;  %v7155_v20 = vpack.c.bf16 %v7135_v58, %v7134_v53 }
 0x2c7   : > { %9775 = vmatpush3.bf16.msra.mxu0 %v12363_v49  ;;  %9746 = vmatprep.mubr.msk.bf16.mxu0 %vm2505_vm0, %v12179_v47  ;;  %v4479_v47 = vpack.c.bf16 %v4457_v43, %v4456_v6  ;;  %v7124_v49 = vld [vmem:[#allocation3 + $0xc0] sm:$0xff]  ;;  %v4480_v63 = vpack.c.bf16 %v4459_v10, %v4458_v52  ;;  %v5048_v53 = vld [vmem:[#allocation2 + $0x122] sm:$0xff] }
 0x2c8   : > { %9808 = vmatprep.subr.bf16.mxu0 %v12438_v48  ;;  %v7150_v3 = vpack.c.bf16 %v7125_v62, %v7124_v49  ;;  %v7408_v6 = vld [vmem:[#allocation3 + $0x39] sm:$0xff]  ;;  %v7415_v49 = vld [vmem:[#allocation3 + $0x91] sm:$0xff] }
 0x2c9   : > { %v7416_v62 = vld [vmem:[#allocation3 + $0x99] sm:$0xff] }
 0x2ca   : > { %v5049_v58 = vld [vmem:[#allocation2 + $0x12a] sm:$0xff] }
 0x2cc   : > { %9449 = vmatmul.mubr.msk.bf16.gmra.mrb[12].mxu1 %vm2505_vm0, %v4477_v9  ;;  %v7156_v9 = vpack.c.bf16 %v7137_v13, %v7136_v56  ;;  %v7434_v56 = vld [vmem:[#allocation3 + $0x171] sm:$0xff] }
 0x2cd   : > { %9452 = vmatprep.mubr.msk.bf16.mxu1 %vm2505_vm0, %v4478_v59  ;;  %v7143_v59 = vld [vmem:[#allocation3 + $0x1a0] sm:$0xff] }
 0x2ce   : > { %9747 = vmatmul.mubr.msk.bf16.gmra.mrb[4].mxu0 %vm2505_vm0, %v12181_v16  ;;  %v7126_v16 = vld [vmem:[#allocation3 + $0xd8] sm:$0xff] }
 0x2cf   : > { %9750 = vmatprep.mubr.msk.bf16.mxu0 %vm2505_vm0, %v7148_v7  ;;  %v7151_v45 = vpack.c.bf16 %v7127_v25, %v7126_v16  ;;  %v7407_v7 = vld [vmem:[#allocation3 + $0x31] sm:$0xff]  ;;  %v7424_v25 = vld [vmem:[#allocation3 + $0xf9] sm:$0xff] }
 0x2d0   : > { %v7439_v52 = vpack.c.bf16 %v7408_v6, %v7407_v7  ;;  %v7423_v16 = vld [vmem:[#allocation3 + $0xf1] sm:$0xff]  ;;  %v7438_v7 = vld [vmem:[#allocation3 + $0x1a1] sm:$0xff] }
 0x2d1   : > { %v7447_v46 = vpack.c.bf16 %v7424_v25, %v7423_v16  ;;  %v7714_v16 = vld [vmem:[#allocation3 + $0xc2] sm:$0xff]  ;;  %v7715_v25 = vld [vmem:[#allocation3 + $0xca] sm:$0xff] }
 0x2d4   : > { %9453 = vmatmul.mubr.msk.bf16.gmra.mrb[16].mxu1 %vm2505_vm0, %v4479_v47 }
 0x2d5   : > { %9456 = vmatprep.mubr.msk.bf16.mxu1 %vm2505_vm0, %v4480_v63 }
 0x2d6   : > { %9751 = vmatmul.mubr.msk.bf16.gmra.mrb[8].mxu0 %vm2505_vm0, %v12191_v14  ;;  %v7130_v14 = vld [vmem:[#allocation3 + $0x108] sm:$0xff] }
 0x2d7   : > { %9754 = vmatprep.mubr.msk.bf16.mxu0 %vm2505_vm0, %v7150_v3  ;;  %v7153_v37 = vpack.c.bf16 %v7131_v33, %v7130_v14  ;;  %v7443_v3 = vpack.c.bf16 %v7416_v62, %v7415_v49  ;;  %v5044_v14 = vld [vmem:[#allocation2 + $0xf2] sm:$0xff]  ;;  %v7429_v33 = vld [vmem:[#allocation3 + $0x139] sm:$0xff]  ;;  %v7707_v49 = vld [vmem:[#allocation3 + $0x6a] sm:$0xff] }
 0x2dc   : > { %9457 = vmatmul.mubr.msk.bf16.gmra.mrb[20].mxu1 %vm2505_vm0, %v4481_v17 }
 0x2dd   : > { %9460 = vmatprep.mubr.msk.bf16.mxu1 %vm2505_vm0, %v4482_v36  ;;  %v7427_v36 = vld [vmem:[#allocation3 + $0x121] sm:$0xff] }
 0x2de   : > { %9755 = vmatmul.mubr.msk.bf16.gmra.mrb[12].mxu0 %vm2505_vm0, %v7151_v45  ;;  %v7428_v45 = vld [vmem:[#allocation3 + $0x129] sm:$0xff] }
 0x2df   : > { %9758 = vmatprep.mubr.msk.bf16.mxu0 %vm2505_vm0, %v7152_v39  ;;  %v7449_v35 = vpack.c.bf16 %v7428_v45, %v7427_v36  ;;  %v7718_v36 = vld [vmem:[#allocation3 + $0xf2] sm:$0xff]  ;;  %v7719_v45 = vld [vmem:[#allocation3 + $0xfa] sm:$0xff] }
 0x2e4   : > { %9461 = vmatmul.mubr.msk.bf16.gmra.mrb[24].mxu1 %vm2505_vm0, %v4483_v51  ;;  %v7430_v51 = vld [vmem:[#allocation3 + $0x141] sm:$0xff] }
 0x2e5   : > { %9464 = vmatprep.mubr.msk.bf16.mxu1 %vm2505_vm0, %v12217_v2  ;;  %v7138_v2 = vld [vmem:[#allocation3 + $0x168] sm:$0xff]  ;;  %v7450_v19 = vpack.c.bf16 %v7430_v51, %v7429_v33 }
 0x2e6   : > { %9759 = vmatmul.mubr.msk.bf16.gmra.mrb[16].mxu0 %vm2505_vm0, %v7153_v37  ;;  %v7157_v55 = vpack.c.bf16 %v7139_v21, %v7138_v2  ;;  %v7432_v37 = vld [vmem:[#allocation3 + $0x159] sm:$0xff]  ;;  %v5050_v2 = vld [vmem:[#allocation2 + $0x13a] sm:$0xff] }
 0x2e7   : > { %9762 = vmatprep.mubr.msk.bf16.mxu0 %vm2505_vm0, %v7154_v22  ;;  %v7451_v50 = vpack.c.bf16 %v7432_v37, %v7431_v5  ;;  %v5051_v21 = vld [vmem:[#allocation2 + $0x142] sm:$0xff]  ;;  %v7725_v5 = vld [vmem:[#allocation3 + $0x142] sm:$0xff] }
 0x2e8   : > { %v5071_v6 = vpack.c.bf16 %v5051_v21, %v5050_v2  ;;  %v7726_v37 = vld [vmem:[#allocation3 + $0x152] sm:$0xff] }
 0x2ec   : > { %9465 = vmatmul.mubr.msk.bf16.gmra.mrb[28].mxu1 %vm2505_vm0, %v4485_v1  ;;  %v7433_v1 = vld [vmem:[#allocation3 + $0x169] sm:$0xff] }
 0x2ed   : > { %9470 = vmatprep.mubr.msk.bf16.mxu1 %vm2505_vm0, %v12226_v34  ;;  %v7142_v34 = vld [vmem:[#allocation3 + $0x198] sm:$0xff] }
 0x2ee   : > { %9763 = vmatmul.mubr.msk.bf16.gmra.mrb[20].mxu0 %vm2505_vm0, %v7155_v20  ;;  %v7159_v43 = vpack.c.bf16 %v7143_v59, %v7142_v34  ;;  %v5070_v20 = vpack.c.bf16 %v5049_v58, %v5048_v53  ;;  %v5053_v34 = vld [vmem:[#allocation2 + $0x15a] sm:$0xff]  ;;  %v7437_v59 = vld [vmem:[#allocation3 + $0x199] sm:$0xff] }
 0x2ef   : > { %9766 = vmatprep.mubr.msk.bf16.mxu0 %vm2505_vm0, %v7156_v9  ;;  %v7452_v9 = vpack.c.bf16 %v7434_v56, %v7433_v1  ;;  %v7732_v58 = vld [vmem:[#allocation3 + $0x19a] sm:$0xff]  ;;  %v7733_v1 = vld [vmem:[#allocation3 + $0x1a2] sm:$0xff] }
 0x2f0   : > { %v7749_v56 = vpack.c.bf16 %v7733_v1, %v7732_v58 }
 0x2f4   : > { %9471 = vmatmul.mubr.msk.bf16.vlgmr.msra.gmra.mrb[0].mxu1 %vm2505_vm0, %v12228_v60  ;;  %v7409_v60 = vld [vmem:[#allocation3 + $0x49] sm:$0xff] }
 0x2f5   : > { %9474 = vmatprep.mubr.msk.bf16.mxu1 %vm2505_vm0, %v12245_v54  ;;  %9899 = vmatpush3.bf16.msra.mxu1 %v12421_v29  ;;  %v7410_v54 = vld [vmem:[#allocation3 + $0x51] sm:$0xff]  ;;  %v7411_v29 = vld [vmem:[#allocation3 + $0x61] sm:$0xff] }
 0x2f6   : > { %9767 = vmatmul.mubr.msk.bf16.gmra.mrb[24].mxu0 %vm2505_vm0, %v7157_v55  ;;  %v7440_v10 = vpack.c.bf16 %v7410_v54, %v7409_v60  ;;  %v5052_v55 = vld [vmem:[#allocation2 + $0x152] sm:$0xff]  ;;  %v7454_v54 = vpack.c.bf16 %v7438_v7, %v7437_v59 }
 0x2f7   : > { %9770 = vmatprep.mubr.msk.bf16.mxu0 %vm2505_vm0, %v12249_v18  ;;  %v7412_v18 = vld [vmem:[#allocation3 + $0x69] sm:$0xff]  ;;  %v5072_v60 = vpack.c.bf16 %v5053_v34, %v5052_v55 }
 0x2f8   : > { %v7441_v47 = vpack.c.bf16 %v7412_v18, %v7411_v29  ;;  %v5054_v18 = vld [vmem:[#allocation2 + $0x16a] sm:$0xff] }
 0x2fc   : > { %9475 = vmatmul.mubr.msk.bf16.gmra.mrb[4].mxu1 %vm2505_vm0, %v12247_v40  ;;  %v7413_v40 = vld [vmem:[#allocation3 + $0x79] sm:$0xff] }
 0x2fd   : > { %9478 = vmatprep.mubr.msk.bf16.mxu1 %vm2505_vm0, %v12259_v27  ;;  %v7414_v27 = vld [vmem:[#allocation3 + $0x81] sm:$0xff] }
 0x2fe   : > { %9771 = vmatmul.mubr.msk.bf16.gmra.mrb[28].mxu0 %vm2505_vm0, %v7159_v43  ;;  %v7442_v63 = vpack.c.bf16 %v7414_v27, %v7413_v40  ;;  %v7702_v43 = vld [vmem:[#allocation3 + $0x32] sm:$0xff]  ;;  %v7706_v27 = vld [vmem:[#allocation3 + $0x62] sm:$0xff] }
 0x2ff   : > { %9776 = vmatprep.mubr.msk.bf16.mxu0 %vm2505_vm0, %v7439_v52  ;;  %v7703_v52 = vld [vmem:[#allocation3 + $0x3a] sm:$0xff] }
 0x300   : > { %v7734_v29 = vpack.c.bf16 %v7703_v52, %v7702_v43 }
 0x304   : > { %9479 = vmatmul.mubr.msk.bf16.gmra.mrb[8].mxu1 %vm2505_vm0, %v12261_v44  ;;  %v7417_v44 = vld [vmem:[#allocation3 + $0xa9] sm:$0xff] }
 0x305   : > { %9482 = vmatprep.mubr.msk.bf16.mxu1 %vm2505_vm0, %v12277_v57  ;;  %v7418_v57 = vld [vmem:[#allocation3 + $0xb1] sm:$0xff] }
 0x306   : > { %9777 = vmatmul.mubr.msk.bf16.vlgmr.msra.gmra.mrb[0].mxu0 %vm2505_vm0, %v7440_v10  ;;  %v7444_v0 = vpack.c.bf16 %v7418_v57, %v7417_v44  ;;  %v5055_v10 = vld [vmem:[#allocation2 + $0x172] sm:$0xff]  ;;  %v5059_v44 = vld [vmem:[#allocation2 + $0x1a2] sm:$0xff]  ;;  %v7708_v57 = vld [vmem:[#allocation3 + $0x7a] sm:$0xff] }
 0x307   : > { %9809 = vmatpush3.bf16.msra.mxu0 %v12438_v48  ;;  %9780 = vmatprep.mubr.msk.bf16.mxu0 %vm2505_vm0, %v7441_v47  ;;  %v7419_v48 = vld [vmem:[#allocation3 + $0xc1] sm:$0xff]  ;;  %v7704_v47 = vld [vmem:[#allocation3 + $0x4a] sm:$0xff]  ;;  %v5073_v40 = vpack.c.bf16 %v5055_v10, %v5054_v18 }
 0x308   : > { %v7445_v31 = vpack.c.bf16 %v7420_v26, %v7419_v48  ;;  %v7709_v48 = vld [vmem:[#allocation3 + $0x82] sm:$0xff] }
 0x30c   : > { %9483 = vmatmul.mubr.msk.bf16.gmra.mrb[12].mxu1 %vm2505_vm0, %v12280_v11  ;;  %v7421_v11 = vld [vmem:[#allocation3 + $0xd9] sm:$0xff] }
 0x30d   : > { %9486 = vmatprep.mubr.msk.bf16.mxu1 %vm2505_vm0, %v12290_v61  ;;  %v7422_v61 = vld [vmem:[#allocation3 + $0xe1] sm:$0xff] }
 0x30e   : > { %9781 = vmatmul.mubr.msk.bf16.gmra.mrb[4].mxu0 %vm2505_vm0, %v7442_v63  ;;  %v7446_v17 = vpack.c.bf16 %v7422_v61, %v7421_v11  ;;  %v7736_v63 = vpack.c.bf16 %v7707_v49, %v7706_v27  ;;  %v7713_v61 = vld [vmem:[#allocation3 + $0xb2] sm:$0xff] }
 0x30f   : > { %9784 = vmatprep.mubr.msk.bf16.mxu0 %vm2505_vm0, %v7443_v3  ;;  %v5058_v3 = vld [vmem:[#allocation2 + $0x19a] sm:$0xff] }
 0x310   : > { %v5075_v26 = vpack.c.bf16 %v5059_v44, %v5058_v3 }
 0x314   : > { %9487 = vmatmul.mubr.msk.bf16.gmra.mrb[16].mxu1 %vm2505_vm0, %v12930_v8  ;;  %v7737_v8 = vpack.c.bf16 %v7709_v48, %v7708_v57 }
 0x315   : > { %9490 = vmatprep.mubr.msk.bf16.mxu1 %vm2505_vm0, %v12302_v28  ;;  %v7425_v28 = vld [vmem:[#allocation3 + $0x109] sm:$0xff] }
 0x316   : > { %9785 = vmatmul.mubr.msk.bf16.gmra.mrb[8].mxu0 %vm2505_vm0, %v7444_v0  ;;  %v7448_v39 = vpack.c.bf16 %v7426_v15, %v7425_v28  ;;  %v7710_v0 = vld [vmem:[#allocation3 + $0x92] sm:$0xff]  ;;  %v7716_v28 = vld [vmem:[#allocation3 + $0xda] sm:$0xff]  ;;  %v7717_v15 = vld [vmem:[#allocation3 + $0xe2] sm:$0xff] }
 0x317   : > { %9788 = vmatprep.mubr.msk.bf16.mxu0 %vm2505_vm0, %v7445_v31  ;;  %v7711_v31 = vld [vmem:[#allocation3 + $0x9a] sm:$0xff] }
 0x318   : > { %v7738_v11 = vpack.c.bf16 %v7711_v31, %v7710_v0  ;;  %v12596_v31 = vld [vmem:[%s12880_s4] ss:$0 sm:$0xff] }
 0x31c   : > { %9491 = vmatmul.mubr.msk.bf16.gmra.mrb[20].mxu1 %vm2505_vm0, %v12304_v42  ;;  %v4763_v42 = vld [vmem:[#allocation2 + $0x199] sm:$0xff] }
 0x31d   : > { %9494 = vmatprep.mubr.msk.bf16.mxu1 %vm2505_vm0, %v12314_v4  ;;  %v5045_v4 = vld [vmem:[#allocation2 + $0xfa] sm:$0xff]  ;;  %v4780_v23 = vpack.c.bf16 %v4764_v32, %v4763_v42  ;;  %v7721_v32 = vld [vmem:[#allocation3 + $0x112] sm:$0xff] }
 0x31e   : > { %9789 = vmatmul.mubr.msk.bf16.gmra.mrb[12].mxu0 %vm2505_vm0, %v7446_v17  ;;  %v5068_v22 = vpack.c.bf16 %v5045_v4, %v5044_v14  ;;  %v7720_v42 = vld [vmem:[#allocation3 + $0x10a] sm:$0xff]  ;;  %v7722_v14 = vld [vmem:[#allocation3 + $0x122] sm:$0xff] }
 0x31f   : > { %9792 = vmatprep.mubr.msk.bf16.mxu0 %vm2505_vm0, %v7447_v46  ;;  %v7740_v46 = vpack.c.bf16 %v7715_v25, %v7714_v16  ;;  %v7723_v4 = vld [vmem:[#allocation3 + $0x12a] sm:$0xff]  ;;  %v7743_v33 = vpack.c.bf16 %v7721_v32, %v7720_v42 }
 0x320   : > { %v7744_v51 = vpack.c.bf16 %v7723_v4, %v7722_v14 }
 0x324   : > { %9495 = vmatmul.mubr.msk.bf16.gmra.mrb[24].mxu1 %vm2505_vm0, %v12316_v38  ;;  %v5046_v38 = vld [vmem:[#allocation2 + $0x10a] sm:$0xff] }
 0x325   : > { %9498 = vmatprep.mubr.msk.bf16.mxu1 %vm2505_vm0, %v12326_v12  ;;  %v5047_v12 = vld [vmem:[#allocation2 + $0x112] sm:$0xff] }
 0x326   : > { %9793 = vmatmul.mubr.msk.bf16.gmra.mrb[16].mxu0 %vm2505_vm0, %v7448_v39  ;;  %v5069_v13 = vpack.c.bf16 %v5047_v12, %v5046_v38  ;;  %v7741_v39 = vpack.c.bf16 %v7717_v15, %v7716_v28  ;;  %v7728_v38 = vld [vmem:[#allocation3 + $0x16a] sm:$0xff]  ;;  %v7729_v12 = vld [vmem:[#allocation3 + $0x172] sm:$0xff] }
 0x327   : > { %9796 = vmatprep.mubr.msk.bf16.mxu0 %vm2505_vm0, %v7449_v35  ;;  %v7742_v35 = vpack.c.bf16 %v7719_v45, %v7718_v36  ;;  %v7747_v53 = vpack.c.bf16 %v7729_v12, %v7728_v38 }
 0x32c   : > { %9499 = vmatmul.mubr.msk.bf16.gmra.mrb[28].mxu1 %vm2505_vm0, %v4780_v23  ;;  %v7724_v23 = vld [vmem:[#allocation3 + $0x13a] sm:$0xff] }
 0x32d   : > { %9520 = vmatprep.mubr.msk.bf16.mxu1 %vm2505_vm0, %v5068_v22  ;;  %v7727_v22 = vld [vmem:[#allocation3 + $0x15a] sm:$0xff] }
 0x32e   : > { %9797 = vmatmul.mubr.msk.bf16.gmra.mrb[20].mxu0 %vm2505_vm0, %v7450_v19  ;;  %v7745_v19 = vpack.c.bf16 %v7725_v5, %v7724_v23 }
 0x32f   : > { %9800 = vmatprep.mubr.msk.bf16.mxu0 %vm2505_vm0, %v7451_v50  ;;  %v7746_v50 = vpack.c.bf16 %v7727_v22, %v7726_v37 }
 0x334   : > { %9521 = vmatmul.mubr.msk.bf16.vlgmr.msra.gmra.mrb[16].mxu1 %vm2505_vm0, %v5069_v13  ;;  %v8068_v13 = vld [vmem:[%s12881_s5] sm:$0xff] }
 0x335   : > { %9524 = vmatprep.mubr.msk.bf16.mxu1 %vm2505_vm0, %v5070_v20  ;;  %v8069_v20 = vld [vmem:[%s12881_s5 + $0x8] sm:$0xff] }
 0x336   : > { %9801 = vmatmul.mubr.msk.bf16.gmra.mrb[24].mxu0 %vm2505_vm0, %v7452_v9  ;;  %v9894_v9 = vpack.c.bf16 %v8069_v20, %v8068_v13 }
 0x337   : > { %9804 = vmatprep.mubr.msk.bf16.mxu0 %vm2505_vm0, %v12348_v30  ;;  %v7705_v30 = vld [vmem:[#allocation3 + $0x52] sm:$0xff] }
 0x338   : > { %v7735_v62 = vpack.c.bf16 %v7705_v30, %v7704_v47  ;;  %9895 = vmatprep.subr.bf16.mxu1 %v9894_v9 }
 0x339   : > { %9897 = vmatpush3.bf16.msra.mxu1 %v9894_v9 }
 0x33c   : > { %9525 = vmatmul.mubr.msk.bf16.gmra.mrb[20].mxu1 %vm2505_vm0, %v5071_v6 }
 0x33d   : > { %9528 = vmatprep.mubr.msk.bf16.mxu1 %vm2505_vm0, %v5072_v60 }
 0x33e   : > { %9805 = vmatmul.mubr.msk.bf16.gmra.mrb[28].mxu0 %vm2505_vm0, %v7454_v54 }
 0x33f   : > { %9810 = vmatprep.mubr.msk.bf16.mxu0 %vm2505_vm0, %v7734_v29 }
 0x344   : > { %9529 = vmatmul.mubr.msk.bf16.gmra.mrb[24].mxu1 %vm2505_vm0, %v5073_v40 }
 0x345   : > { %9532 = vmatprep.mubr.msk.bf16.mxu1 %vm2505_vm0, %v12405_v41  ;;  %v7712_v41 = vld [vmem:[#allocation3 + $0xaa] sm:$0xff] }
 0x346   : > { %9811 = vmatmul.mubr.msk.bf16.vlgmr.msra.gmra.mrb[0].mxu0 %vm2505_vm0, %v7735_v62  ;;  %v7739_v17 = vpack.c.bf16 %v7713_v61, %v7712_v41 }
 0x347   : > { %9814 = vmatprep.mubr.msk.bf16.mxu0 %vm2505_vm0, %v7736_v63 }
 0x34c   : > { %9533 = vmatmul.mubr.msk.bf16.gmra.mrb[28].mxu1 %vm2505_vm0, %v5075_v26 }
 0x34e   : > { %9815 = vmatmul.mubr.msk.bf16.gmra.mrb[4].mxu0 %vm2505_vm0, %v7737_v8 }
 0x34f   : > { %9818 = vmatprep.mubr.msk.bf16.mxu0 %vm2505_vm0, %v7738_v11 }
 0x356   : > { %9819 = vmatmul.mubr.msk.bf16.gmra.mrb[8].mxu0 %vm2505_vm0, %v7739_v17 }
 0x357   : > { %9822 = vmatprep.mubr.msk.bf16.mxu0 %vm2505_vm0, %v7740_v46 }
 0x35e   : > { %9823 = vmatmul.mubr.msk.bf16.gmra.mrb[12].mxu0 %vm2505_vm0, %v7741_v39 }
 0x35f   : > { %9826 = vmatprep.mubr.msk.bf16.mxu0 %vm2505_vm0, %v7742_v35 }
 0x366   : > { %9827 = vmatmul.mubr.msk.bf16.gmra.mrb[16].mxu0 %vm2505_vm0, %v7743_v33 }
 0x367   : > { %9830 = vmatprep.mubr.msk.bf16.mxu0 %vm2505_vm0, %v7744_v51 }
 0x36e   : > { %9831 = vmatmul.mubr.msk.bf16.gmra.mrb[20].mxu0 %vm2505_vm0, %v7745_v19 }
 0x36f   : > { %9834 = vmatprep.mubr.msk.bf16.mxu0 %vm2505_vm0, %v7746_v50 }
 0x376   : > { %9835 = vmatmul.mubr.msk.bf16.gmra.mrb[24].mxu0 %vm2505_vm0, %v7747_v53 }
 0x377   : > { %9838 = vmatprep.mubr.msk.bf16.mxu0 %vm2505_vm0, %v12426_v24 }
 0x37e   : > { %9839 = vmatmul.mubr.msk.bf16.gmra.mrb[28].mxu0 %vm2505_vm0, %v7749_v56 }
 0x3c7   : > { %v9472_v2 = vpop.f32.mrb[0].mxu1 }
 0x3c8   : > { %v4869_v21 = vpop.f32.mrb[1].mxu1 }
 0x3c9   : > { %v9473_v55 = vpop.f32.mrb[2].mxu1 }
 0x3ca   : > { %v4872_v24 = vpop.f32.mrb[3].mxu1 }
 0x3cf   : > { %v9476_v34 = vpop.f32.mrb[4].mxu1 }
 0x3d0   : > { %v4885_v59 = vpop.f32.mrb[5].mxu1 }
 0x3d1   : > { %v9477_v7 = vpop.f32.mrb[6].mxu1 }
 0x3d2   : > { %v4888_v6 = vpop.f32.mrb[7].mxu1 }
 0x3d7   : > { %v12555_v43 = vpop.f32.mrb[8].mxu1 }
 0x3d8   : > { %v12557_v52 = vpop.f32.mrb[9].mxu1 }
 0x3d9   : > { %v12559_v60 = vpop.f32.mrb[10].mxu1 }
 0x3da   : > { %v12561_v54 = vpop.f32.mrb[11].mxu1 }
 0x3df   : > { %v12563_v29 = vpop.f32.mrb[12].mxu1 }
 0x3e0   : > { %v12565_v18 = vpop.f32.mrb[13].mxu1 }
 0x3e1   : > { %v12567_v10 = vpop.f32.mrb[14].mxu1 }
 0x3e2   : > { %v12569_v47 = vpop.f32.mrb[15].mxu1 }
 0x407   : > { %v12571_v30 = vpop.f32.mrb[16].mxu1 }
 0x408   : > { %v12573_v40 = vpop.f32.mrb[17].mxu1 }
 0x409   : > { %v12575_v27 = vpop.f32.mrb[18].mxu1 }
 0x40a   : > { %v12577_v49 = vpop.f32.mrb[19].mxu1 }
 0x40f   : > { %v12579_v62 = vpop.f32.mrb[20].mxu1 }
 0x410   : > { %v12581_v63 = vpop.f32.mrb[21].mxu1 }
 0x411   : > { %v12583_v3 = vpop.f32.mrb[22].mxu1 }
 0x412   : > { %v12585_v44 = vpop.f32.mrb[23].mxu1 }
 0x417   : > { %v12587_v57 = vpop.f32.mrb[24].mxu1 }
 0x418   : > { %v12589_v48 = vpop.f32.mrb[25].mxu1 }
 0x419   : > { %v12591_v26 = vpop.f32.mrb[26].mxu1  ;;  %v9812_v0 = vpop.f32.mrb[0].mxu0 }
 0x41a   : > { %v12598_v8 = vpop.f32.mrb[27].mxu1  ;;  %v9900_v11 = vadd.f32 %v9812_v0, %v9472_v2  ;;  %v7838_v41 = vpop.f32.mrb[1].mxu0 }
 0x41b   : > { %v9901_v61 = vadd.f32 %v7838_v41, %v4869_v21  ;;  %v9813_v16 = vpop.f32.mrb[2].mxu0 }
 0x41c   : > { %v8006_v25 = vadd.f32 %v9900_v11, %v12596_v31  ;;  %v9902_v17 = vadd.f32 %v9813_v16, %v9473_v55  ;;  %v7841_v46 = vpop.f32.mrb[3].mxu0 }
 0x41d   : > { %v8004_v28 = vadd.f32 %v9901_v61, %v12596_v31  ;;  %v9903_v15 = vadd.f32 %v7841_v46, %v4872_v24 }
 0x41e   : > { %8038 = vst.msk [vmem:[%s12604_s24 + $0x10] sm:$0xff] %vm2505_vm0, %v8006_v25  ;;  %v8007_v36 = vadd.f32 %v9902_v17, %v12596_v31 }
 0x41f   : > { %v12611_v45 = vpop.f32.mrb[28].mxu1  ;;  %8036 = vst.msk [vmem:[%s12604_s24] sm:$0xff] %vm2505_vm0, %v8004_v28  ;;  %v8005_v39 = vadd.f32 %v9903_v15, %v12596_v31  ;;  %9846 = vmatprep.mubr.msk.f32.mxu1 %vm2505_vm0, %v8004_v28 }
 0x420   : > { %v12617_v35 = vpop.f32.mrb[29].mxu1  ;;  %8039 = vst.msk [vmem:[%s12604_s24 + $0x18] sm:$0xff] %vm2505_vm0, %v8007_v36 }
 0x421   : > { %v12621_v42 = vpop.f32.mrb[30].mxu1  ;;  %8037 = vst.msk [vmem:[%s12604_s24 + $0x8] sm:$0xff] %vm2505_vm0, %v8005_v39  ;;  %v9816_v32 = vpop.f32.mrb[4].mxu0  ;;  %9847 = vmatmul.mubr.msk.f32.vlgmr.msra.gmra.mrb[32].mxu1 %vm2505_vm0, %v8005_v39 }
 0x422   : > { %v12626_v14 = vpop.f32.mrb[31].mxu1  ;;  %v9904_v4 = vadd.f32 %v9816_v32, %v9476_v34  ;;  %v7854_v33 = vpop.f32.mrb[5].mxu0  ;;  %9849 = vmatprep.mubr.msk.f32.mxu1 %vm2505_vm0, %v8006_v25 }
 0x423   : > { %v9905_v51 = vadd.f32 %v7854_v33, %v4885_v59  ;;  %v9817_v23 = vpop.f32.mrb[6].mxu0 }
 0x424   : > { %v8010_v5 = vadd.f32 %v9904_v4, %v12596_v31  ;;  %v9906_v37 = vadd.f32 %v9817_v23, %v9477_v7  ;;  %v7857_v22 = vpop.f32.mrb[7].mxu0 }
 0x425   : > { %v8008_v19 = vadd.f32 %v9905_v51, %v12596_v31  ;;  %v9907_v50 = vadd.f32 %v7857_v22, %v4888_v6  ;;  %9850 = vmatmul.mubr.msk.f32.gmra.mrb[34].mxu1 %vm2505_vm0, %v8007_v36 }
 0x426   : > { %8042 = vst.msk [vmem:[%s12604_s24 + $0x30] sm:$0xff] %vm2505_vm0, %v8010_v5  ;;  %v8011_v38 = vadd.f32 %v9906_v37, %v12596_v31 }
 0x427   : > { %8040 = vst.msk [vmem:[%s12604_s24 + $0x20] sm:$0xff] %vm2505_vm0, %v8008_v19  ;;  %v8009_v12 = vadd.f32 %v9907_v50, %v12596_v31  ;;  %9852 = vmatprep.mubr.msk.f32.mxu1 %vm2505_vm0, %v8008_v19 }
 0x428   : > { %8043 = vst.msk [vmem:[%s12604_s24 + $0x38] sm:$0xff] %vm2505_vm0, %v8011_v38 }
 0x429   : > { %8041 = vst.msk [vmem:[%s12604_s24 + $0x28] sm:$0xff] %vm2505_vm0, %v8009_v12  ;;  %v9820_v53 = vpop.f32.mrb[8].mxu0  ;;  %9853 = vmatmul.mubr.msk.f32.gmra.mrb[36].mxu1 %vm2505_vm0, %v8009_v12 }
 0x42a   : > { %v9908_v58 = vadd.f32 %v9820_v53, %v12555_v43  ;;  %v7870_v1 = vpop.f32.mrb[9].mxu0  ;;  %9855 = vmatprep.mubr.msk.f32.mxu1 %vm2505_vm0, %v8010_v5 }
 0x42b   : > { %v9909_v56 = vadd.f32 %v7870_v1, %v12557_v52  ;;  %v9821_v13 = vpop.f32.mrb[10].mxu0 }
 0x42c   : > { %v8014_v20 = vadd.f32 %v9908_v58, %v12596_v31  ;;  %v9910_v9 = vadd.f32 %v9821_v13, %v12559_v60  ;;  %v7873_v2 = vpop.f32.mrb[11].mxu0 }
 0x42d   : > { %v8012_v21 = vadd.f32 %v9909_v56, %v12596_v31  ;;  %v9911_v55 = vadd.f32 %v7873_v2, %v12561_v54  ;;  %9856 = vmatmul.mubr.msk.f32.gmra.mrb[38].mxu1 %vm2505_vm0, %v8011_v38 }
 0x42e   : > { %8046 = vst.msk [vmem:[%s12604_s24 + $0x50] sm:$0xff] %vm2505_vm0, %v8014_v20  ;;  %v8015_v24 = vadd.f32 %v9910_v9, %v12596_v31 }
 0x42f   : > { %8044 = vst.msk [vmem:[%s12604_s24 + $0x40] sm:$0xff] %vm2505_vm0, %v8012_v21  ;;  %v8013_v34 = vadd.f32 %v9911_v55, %v12596_v31  ;;  %9858 = vmatprep.mubr.msk.f32.mxu1 %vm2505_vm0, %v8012_v21 }
 0x430   : > { %8047 = vst.msk [vmem:[%s12604_s24 + $0x58] sm:$0xff] %vm2505_vm0, %v8015_v24 }
 0x431   : > { %8045 = vst.msk [vmem:[%s12604_s24 + $0x48] sm:$0xff] %vm2505_vm0, %v8013_v34  ;;  %v9824_v59 = vpop.f32.mrb[12].mxu0  ;;  %9859 = vmatmul.mubr.msk.f32.gmra.mrb[40].mxu1 %vm2505_vm0, %v8013_v34 }
 0x432   : > { %v9912_v7 = vadd.f32 %v9824_v59, %v12563_v29  ;;  %v7886_v6 = vpop.f32.mrb[13].mxu0  ;;  %9861 = vmatprep.mubr.msk.f32.mxu1 %vm2505_vm0, %v8014_v20 }
 0x433   : > { %v9913_v43 = vadd.f32 %v7886_v6, %v12565_v18  ;;  %v9825_v52 = vpop.f32.mrb[14].mxu0 }
 0x434   : > { %v8018_v60 = vadd.f32 %v9912_v7, %v12596_v31  ;;  %v9914_v54 = vadd.f32 %v9825_v52, %v12567_v10  ;;  %v7889_v0 = vpop.f32.mrb[15].mxu0 }
 0x435   : > { %v8016_v11 = vadd.f32 %v9913_v43, %v12596_v31  ;;  %v9915_v41 = vadd.f32 %v7889_v0, %v12569_v47  ;;  %9862 = vmatmul.mubr.msk.f32.gmra.mrb[42].mxu1 %vm2505_vm0, %v8015_v24 }
 0x436   : > { %8050 = vst.msk [vmem:[%s12604_s24 + $0x70] sm:$0xff] %vm2505_vm0, %v8018_v60  ;;  %v8019_v29 = vadd.f32 %v9914_v54, %v12596_v31 }
 0x437   : > { %8048 = vst.msk [vmem:[%s12604_s24 + $0x60] sm:$0xff] %vm2505_vm0, %v8016_v11  ;;  %v8017_v18 = vadd.f32 %v9915_v41, %v12596_v31  ;;  %9864 = vmatprep.mubr.msk.f32.mxu1 %vm2505_vm0, %v8016_v11 }
 0x438   : > { %8051 = vst.msk [vmem:[%s12604_s24 + $0x78] sm:$0xff] %vm2505_vm0, %v8019_v29 }
 0x439   : > { %8049 = vst.msk [vmem:[%s12604_s24 + $0x68] sm:$0xff] %vm2505_vm0, %v8017_v18  ;;  %v9828_v10 = vpop.f32.mrb[16].mxu0  ;;  %9865 = vmatmul.mubr.msk.f32.gmra.mrb[44].mxu1 %vm2505_vm0, %v8017_v18 }
 0x43a   : > { %v9916_v47 = vadd.f32 %v9828_v10, %v12571_v30  ;;  %v7902_v61 = vpop.f32.mrb[17].mxu0  ;;  %9867 = vmatprep.mubr.msk.f32.mxu1 %vm2505_vm0, %v8018_v60 }
 0x43b   : > { %v9917_v16 = vadd.f32 %v7902_v61, %v12573_v40  ;;  %v9829_v25 = vpop.f32.mrb[18].mxu0 }
 0x43c   : > { %v8022_v17 = vadd.f32 %v9916_v47, %v12596_v31  ;;  %v9918_v46 = vadd.f32 %v9829_v25, %v12575_v27  ;;  %v7905_v28 = vpop.f32.mrb[19].mxu0 }
 0x43d   : > { %v8020_v15 = vadd.f32 %v9917_v16, %v12596_v31  ;;  %v9919_v36 = vadd.f32 %v7905_v28, %v12577_v49  ;;  %9868 = vmatmul.mubr.msk.f32.gmra.mrb[46].mxu1 %vm2505_vm0, %v8019_v29 }
 0x43e   : > { %8054 = vst.msk [vmem:[%s12604_s24 + $0x90] sm:$0xff] %vm2505_vm0, %v8022_v17  ;;  %v8023_v30 = vadd.f32 %v9918_v46, %v12596_v31 }
 0x43f   : > { %8052 = vst.msk [vmem:[%s12604_s24 + $0x80] sm:$0xff] %vm2505_vm0, %v8020_v15  ;;  %v8021_v40 = vadd.f32 %v9919_v36, %v12596_v31  ;;  %9870 = vmatprep.mubr.msk.f32.mxu1 %vm2505_vm0, %v8020_v15 }
 0x440   : > { %8055 = vst.msk [vmem:[%s12604_s24 + $0x98] sm:$0xff] %vm2505_vm0, %v8023_v30 }
 0x441   : > { %8053 = vst.msk [vmem:[%s12604_s24 + $0x88] sm:$0xff] %vm2505_vm0, %v8021_v40  ;;  %v9832_v27 = vpop.f32.mrb[20].mxu0  ;;  %9871 = vmatmul.mubr.msk.f32.gmra.mrb[48].mxu1 %vm2505_vm0, %v8021_v40 }
 0x442   : > { %v9920_v49 = vadd.f32 %v9832_v27, %v12579_v62  ;;  %v7918_v39 = vpop.f32.mrb[21].mxu0  ;;  %9873 = vmatprep.mubr.msk.f32.mxu1 %vm2505_vm0, %v8022_v17 }
 0x443   : > { %v9921_v32 = vadd.f32 %v7918_v39, %v12581_v63  ;;  %v9833_v4 = vpop.f32.mrb[22].mxu0 }
 0x444   : > { %v8026_v33 = vadd.f32 %v9920_v49, %v12596_v31  ;;  %v9922_v51 = vadd.f32 %v9833_v4, %v12583_v3  ;;  %v7921_v23 = vpop.f32.mrb[23].mxu0 }
 0x445   : > { %v8024_v5 = vadd.f32 %v9921_v32, %v12596_v31  ;;  %v9923_v37 = vadd.f32 %v7921_v23, %v12585_v44  ;;  %9874 = vmatmul.mubr.msk.f32.gmra.mrb[50].mxu1 %vm2505_vm0, %v8023_v30 }
 0x446   : > { %8058 = vst.msk [vmem:[%s12604_s24 + $0xb0] sm:$0xff] %vm2505_vm0, %v8026_v33  ;;  %v8027_v62 = vadd.f32 %v9922_v51, %v12596_v31 }
 0x447   : > { %8056 = vst.msk [vmem:[%s12604_s24 + $0xa0] sm:$0xff] %vm2505_vm0, %v8024_v5  ;;  %v8025_v63 = vadd.f32 %v9923_v37, %v12596_v31  ;;  %9876 = vmatprep.mubr.msk.f32.mxu1 %vm2505_vm0, %v8024_v5 }
 0x448   : > { %8059 = vst.msk [vmem:[%s12604_s24 + $0xb8] sm:$0xff] %vm2505_vm0, %v8027_v62 }
 0x449   : > { %8057 = vst.msk [vmem:[%s12604_s24 + $0xa8] sm:$0xff] %vm2505_vm0, %v8025_v63  ;;  %v9836_v3 = vpop.f32.mrb[24].mxu0  ;;  %9877 = vmatmul.mubr.msk.f32.gmra.mrb[52].mxu1 %vm2505_vm0, %v8025_v63 }
 0x44a   : > { %v9924_v44 = vadd.f32 %v9836_v3, %v12587_v57  ;;  %v7934_v22 = vpop.f32.mrb[25].mxu0  ;;  %9879 = vmatprep.mubr.msk.f32.mxu1 %vm2505_vm0, %v8026_v33 }
 0x44b   : > { %v9925_v19 = vadd.f32 %v7934_v22, %v12589_v48  ;;  %v9837_v50 = vpop.f32.mrb[26].mxu0 }
 0x44c   : > { %v8030_v38 = vadd.f32 %v9924_v44, %v12596_v31  ;;  %v9926_v12 = vadd.f32 %v9837_v50, %v12591_v26  ;;  %v7937_v53 = vpop.f32.mrb[27].mxu0 }
 0x44d   : > { %v8028_v58 = vadd.f32 %v9925_v19, %v12596_v31  ;;  %v9927_v1 = vadd.f32 %v7937_v53, %v12598_v8  ;;  %9880 = vmatmul.mubr.msk.f32.gmra.mrb[54].mxu1 %vm2505_vm0, %v8027_v62 }
 0x44e   : > { %8062 = vst.msk [vmem:[%s12604_s24 + $0xd0] sm:$0xff] %vm2505_vm0, %v8030_v38  ;;  %v8031_v57 = vadd.f32 %v9926_v12, %v12596_v31 }
 0x44f   : > { %8060 = vst.msk [vmem:[%s12604_s24 + $0xc0] sm:$0xff] %vm2505_vm0, %v8028_v58  ;;  %v8029_v48 = vadd.f32 %v9927_v1, %v12596_v31  ;;  %9882 = vmatprep.mubr.msk.f32.mxu1 %vm2505_vm0, %v8028_v58 }
 0x450   : > { %8063 = vst.msk [vmem:[%s12604_s24 + $0xd8] sm:$0xff] %vm2505_vm0, %v8031_v57 }
 0x451   : > { %8061 = vst.msk [vmem:[%s12604_s24 + $0xc8] sm:$0xff] %vm2505_vm0, %v8029_v48  ;;  %v9840_v26 = vpop.f32.mrb[28].mxu0  ;;  %9883 = vmatmul.mubr.msk.f32.gmra.mrb[56].mxu1 %vm2505_vm0, %v8029_v48 }
 0x452   : > { %v9928_v8 = vadd.f32 %v9840_v26, %v12611_v45  ;;  %v7950_v56 = vpop.f32.mrb[29].mxu0  ;;  %9885 = vmatprep.mubr.msk.f32.mxu1 %vm2505_vm0, %v8030_v38 }
 0x453   : > { %v9929_v13 = vadd.f32 %v7950_v56, %v12617_v35  ;;  %v9841_v20 = vpop.f32.mrb[30].mxu0 }
 0x454   : > { %v8034_v9 = vadd.f32 %v9928_v8, %v12596_v31  ;;  %v9930_v2 = vadd.f32 %v9841_v20, %v12621_v42  ;;  %v7953_v21 = vpop.f32.mrb[31].mxu0  ;;  %v12769_v42 = vld [vmem:[%s12882_s6] ss:$0 sm:$0xff] }
 0x455   : > { %v8032_v55 = vadd.f32 %v9929_v13, %v12596_v31  ;;  %v9931_v24 = vadd.f32 %v7953_v21, %v12626_v14  ;;  %9886 = vmatmul.mubr.msk.f32.gmra.mrb[58].mxu1 %vm2505_vm0, %v8031_v57 }
 0x456   : > { %8066 = vst.msk [vmem:[%s12604_s24 + $0xf0] sm:$0xff] %vm2505_vm0, %v8034_v9  ;;  %v8035_v45 = vadd.f32 %v9930_v2, %v12596_v31 }
 0x457   : > { %8064 = vst.msk [vmem:[%s12604_s24 + $0xe0] sm:$0xff] %vm2505_vm0, %v8032_v55  ;;  %v8033_v35 = vadd.f32 %v9931_v24, %v12596_v31  ;;  %9888 = vmatprep.mubr.msk.f32.mxu1 %vm2505_vm0, %v8032_v55 }
 0x458   : > { %8067 = vst.msk [vmem:[%s12604_s24 + $0xf8] sm:$0xff] %vm2505_vm0, %v8035_v45 }
 0x459   : > { %8065 = vst.msk [vmem:[%s12604_s24 + $0xe8] sm:$0xff] %vm2505_vm0, %v8033_v35  ;;  %9889 = vmatmul.mubr.msk.f32.gmra.mrb[60].mxu1 %vm2505_vm0, %v8033_v35 }
 0x45a   : > { %9891 = vmatprep.mubr.msk.f32.mxu1 %vm2505_vm0, %v8034_v9 }
 0x45d   : > { %9892 = vmatmul.mubr.msk.f32.gmra.mrb[62].mxu1 %vm2505_vm0, %v8035_v45 }
 0x4f4   : > { %v9848_v31 = vpop.f32.mrb[32].mxu1 }
 0x4f5   : > { %v8245_v14 = vadd.f32 %v9848_v31, %v12769_v42  ;;  %v8239_v34 = vpop.f32.mrb[33].mxu1 }
 0x4f6   : > { %v8240_v59 = vadd.f32 %v12769_v42, %v8239_v34 }
 0x4f7   : > { %8400 = vst.msk [vmem:[%s12775_s30 + $0x8] sm:$0xff] %vm8398_vm9, %v8245_v14 }
 0x4f8   : > { %8399 = vst.msk [vmem:[%s12775_s30] sm:$0xff] %vm8398_vm9, %v8240_v59  ;;  %v9851_v7 = vpop.f32.mrb[34].mxu1 }
 0x4f9   : > { %v8255_v6 = vadd.f32 %v9851_v7, %v12769_v42  ;;  %v8249_v43 = vpop.f32.mrb[35].mxu1 }
 0x4fa   : > { %v8250_v52 = vadd.f32 %v12769_v42, %v8249_v43 }
 0x4fb   : > { %8402 = vst.msk [vmem:[%s12775_s30 + $0x18] sm:$0xff] %vm8398_vm9, %v8255_v6 }
 0x4fc   : > { %8401 = vst.msk [vmem:[%s12775_s30 + $0x10] sm:$0xff] %vm8398_vm9, %v8250_v52  ;;  %v9854_v60 = vpop.f32.mrb[36].mxu1 }
 0x4fd   : > { %v8265_v54 = vadd.f32 %v9854_v60, %v12769_v42  ;;  %v8259_v0 = vpop.f32.mrb[37].mxu1 }
 0x4fe   : > { %v8260_v11 = vadd.f32 %v12769_v42, %v8259_v0 }
 0x4ff   : > { %8404 = vst.msk [vmem:[%s12775_s30 + $0x28] sm:$0xff] %vm8398_vm9, %v8265_v54 }
 0x500   : > { %8403 = vst.msk [vmem:[%s12775_s30 + $0x20] sm:$0xff] %vm8398_vm9, %v8260_v11  ;;  %v9857_v41 = vpop.f32.mrb[38].mxu1 }
 0x501   : > { %v8275_v29 = vadd.f32 %v9857_v41, %v12769_v42  ;;  %v8269_v18 = vpop.f32.mrb[39].mxu1 }
 0x502   : > { %v8270_v10 = vadd.f32 %v12769_v42, %v8269_v18 }
 0x503   : > { %8406 = vst.msk [vmem:[%s12775_s30 + $0x38] sm:$0xff] %vm8398_vm9, %v8275_v29 }
 0x504   : > { %8405 = vst.msk [vmem:[%s12775_s30 + $0x30] sm:$0xff] %vm8398_vm9, %v8270_v10  ;;  %v9860_v47 = vpop.f32.mrb[40].mxu1 }
 0x505   : > { %v8285_v61 = vadd.f32 %v9860_v47, %v12769_v42  ;;  %v8279_v16 = vpop.f32.mrb[41].mxu1 }
 0x506   : > { %v8280_v25 = vadd.f32 %v12769_v42, %v8279_v16 }
 0x507   : > { %8408 = vst.msk [vmem:[%s12775_s30 + $0x48] sm:$0xff] %vm8398_vm9, %v8285_v61 }
 0x508   : > { %8407 = vst.msk [vmem:[%s12775_s30 + $0x40] sm:$0xff] %vm8398_vm9, %v8280_v25  ;;  %v9863_v17 = vpop.f32.mrb[42].mxu1 }
 0x509   : > { %v8295_v46 = vadd.f32 %v9863_v17, %v12769_v42  ;;  %v8289_v28 = vpop.f32.mrb[43].mxu1 }
 0x50a   : > { %v8290_v15 = vadd.f32 %v12769_v42, %v8289_v28 }
 0x50b   : > { %8410 = vst.msk [vmem:[%s12775_s30 + $0x58] sm:$0xff] %vm8398_vm9, %v8295_v46 }
 0x50c   : > { %8409 = vst.msk [vmem:[%s12775_s30 + $0x50] sm:$0xff] %vm8398_vm9, %v8290_v15  ;;  %v9866_v36 = vpop.f32.mrb[44].mxu1 }
 0x50d   : > { %v8305_v30 = vadd.f32 %v9866_v36, %v12769_v42  ;;  %v8299_v40 = vpop.f32.mrb[45].mxu1 }
 0x50e   : > { %v8300_v27 = vadd.f32 %v12769_v42, %v8299_v40 }
 0x50f   : > { %8412 = vst.msk [vmem:[%s12775_s30 + $0x68] sm:$0xff] %vm8398_vm9, %v8305_v30 }
 0x510   : > { %8411 = vst.msk [vmem:[%s12775_s30 + $0x60] sm:$0xff] %vm8398_vm9, %v8300_v27  ;;  %v9869_v49 = vpop.f32.mrb[46].mxu1 }
 0x511   : > { %v8315_v39 = vadd.f32 %v9869_v49, %v12769_v42  ;;  %v8309_v32 = vpop.f32.mrb[47].mxu1 }
 0x512   : > { %v8310_v4 = vadd.f32 %v12769_v42, %v8309_v32 }
 0x513   : > { %8414 = vst.msk [vmem:[%s12775_s30 + $0x78] sm:$0xff] %vm8398_vm9, %v8315_v39 }
 0x514   : > { %8413 = vst.msk [vmem:[%s12775_s30 + $0x70] sm:$0xff] %vm8398_vm9, %v8310_v4  ;;  %v9872_v33 = vpop.f32.mrb[48].mxu1 }
 0x515   : > { %v8325_v51 = vadd.f32 %v9872_v33, %v12769_v42  ;;  %v8319_v23 = vpop.f32.mrb[49].mxu1 }
 0x516   : > { %v8320_v5 = vadd.f32 %v12769_v42, %v8319_v23 }
 0x517   : > { %8416 = vst.msk [vmem:[%s12775_s30 + $0x88] sm:$0xff] %vm8398_vm9, %v8325_v51 }
 0x518   : > { %8415 = vst.msk [vmem:[%s12775_s30 + $0x80] sm:$0xff] %vm8398_vm9, %v8320_v5  ;;  %v9875_v37 = vpop.f32.mrb[50].mxu1 }
 0x519   : > { %v8335_v62 = vadd.f32 %v9875_v37, %v12769_v42  ;;  %v8329_v63 = vpop.f32.mrb[51].mxu1 }
 0x51a   : > { %v8330_v3 = vadd.f32 %v12769_v42, %v8329_v63 }
 0x51b   : > { %8418 = vst.msk [vmem:[%s12775_s30 + $0x98] sm:$0xff] %vm8398_vm9, %v8335_v62 }
 0x51c   : > { %8417 = vst.msk [vmem:[%s12775_s30 + $0x90] sm:$0xff] %vm8398_vm9, %v8330_v3  ;;  %v9878_v44 = vpop.f32.mrb[52].mxu1 }
 0x51d   : > { %v8345_v22 = vadd.f32 %v9878_v44, %v12769_v42  ;;  %v8339_v19 = vpop.f32.mrb[53].mxu1 }
 0x51e   : > { %v8340_v50 = vadd.f32 %v12769_v42, %v8339_v19 }
 0x51f   : > { %8420 = vst.msk [vmem:[%s12775_s30 + $0xa8] sm:$0xff] %vm8398_vm9, %v8345_v22 }
 0x520   : > { %8419 = vst.msk [vmem:[%s12775_s30 + $0xa0] sm:$0xff] %vm8398_vm9, %v8340_v50  ;;  %v9881_v38 = vpop.f32.mrb[54].mxu1 }
 0x521   : > { %v8355_v12 = vadd.f32 %v9881_v38, %v12769_v42  ;;  %v8349_v53 = vpop.f32.mrb[55].mxu1 }
 0x522   : > { %v8350_v58 = vadd.f32 %v12769_v42, %v8349_v53 }
 0x523   : > { %8422 = vst.msk [vmem:[%s12775_s30 + $0xb8] sm:$0xff] %vm8398_vm9, %v8355_v12 }
 0x524   : > { %8421 = vst.msk [vmem:[%s12775_s30 + $0xb0] sm:$0xff] %vm8398_vm9, %v8350_v58  ;;  %v9884_v1 = vpop.f32.mrb[56].mxu1 }
 0x525   : > { %v8365_v57 = vadd.f32 %v9884_v1, %v12769_v42  ;;  %v8359_v48 = vpop.f32.mrb[57].mxu1 }
 0x526   : > { %v8360_v26 = vadd.f32 %v12769_v42, %v8359_v48 }
 0x527   : > { %8424 = vst.msk [vmem:[%s12775_s30 + $0xc8] sm:$0xff] %vm8398_vm9, %v8365_v57 }
 0x528   : > { %8423 = vst.msk [vmem:[%s12775_s30 + $0xc0] sm:$0xff] %vm8398_vm9, %v8360_v26  ;;  %v9887_v8 = vpop.f32.mrb[58].mxu1 }
 0x529   : > { %v8375_v56 = vadd.f32 %v9887_v8, %v12769_v42  ;;  %v8369_v13 = vpop.f32.mrb[59].mxu1 }
 0x52a   : > { %v8370_v20 = vadd.f32 %v12769_v42, %v8369_v13 }
 0x52b   : > { %8426 = vst.msk [vmem:[%s12775_s30 + $0xd8] sm:$0xff] %vm8398_vm9, %v8375_v56 }
 0x52c   : > { %8425 = vst.msk [vmem:[%s12775_s30 + $0xd0] sm:$0xff] %vm8398_vm9, %v8370_v20  ;;  %v9890_v9 = vpop.f32.mrb[60].mxu1 }
 0x52d   : > { %v8385_v2 = vadd.f32 %v9890_v9, %v12769_v42  ;;  %v8379_v21 = vpop.f32.mrb[61].mxu1 }
 0x52e   : > { %v8380_v55 = vadd.f32 %v12769_v42, %v8379_v21 }
 0x52f   : > { %8428 = vst.msk [vmem:[%s12775_s30 + $0xe8] sm:$0xff] %vm8398_vm9, %v8385_v2 }
 0x530   : > { %8427 = vst.msk [vmem:[%s12775_s30 + $0xe0] sm:$0xff] %vm8398_vm9, %v8380_v55  ;;  %v9893_v24 = vpop.f32.mrb[62].mxu1 }
 0x531   : > { %v8395_v45 = vadd.f32 %v9893_v24, %v12769_v42  ;;  %v8389_v35 = vpop.f32.mrb[63].mxu1 }
 0x532   : > { %v8390_v31 = vadd.f32 %v12769_v42, %v8389_v35 }
 0x533   : > { %8430 = vst.msk [vmem:[%s12775_s30 + $0xf8] sm:$0xff] %vm8398_vm9, %v8395_v45 }
 0x534   : > { %8429 = vst.msk [vmem:[%s12775_s30 + $0xf0] sm:$0xff] %vm8398_vm9, %v8390_v31 }
 0x535 PF: > { %s19_s27 = sadd.s32 1, %s10480_s27  }
 0x536   : > { %p16_p4 = scmp.ge.s32.totalorder %s19_s27, 4  }
 0x538   :  { %18 = sbr.rel (!%p16_p4) target bundleno = 1 (0x1), region = 97 }

</bundles_post_ra>
